<compile_context>
chip_gen: v7x
topology: tpu7x:2x2x1
jax: 0.10.0
libtpu: 0.0.40
codegen_flags: <defaults>
</compile_context>

<pallas_src>
import functools

import jax
import jax.numpy as jnp
from jax.experimental import pallas as pl
from jax.experimental.pallas import tpu as pltpu


# ---------------------------------------------------------------------------
# Pallas kernels
# ---------------------------------------------------------------------------
def _conv_mm_kernel(a_ref, b_ref, bias_ref, o_ref):
    # relu(a @ b + bias), single K block per grid step.
    acc = jnp.dot(a_ref[...], b_ref[...], preferred_element_type=jnp.float32)
    acc = acc + bias_ref[...]
    o_ref[...] = jnp.maximum(acc, 0.0).astype(o_ref.dtype)


def matmul_bias_relu(a, b, bias, *, tm=512):
    """relu(a @ b + bias) with bf16 operands, f32 accumulation.

    a: (M, K) bf16, b: (K, N) bf16, bias: (1, N) f32 -> (M, N) bf16.
    K and N are taken as single full blocks (they are small for the convs);
    M is tiled with a ragged grid (no padding copies).
    """
    M, K = a.shape
    Kb, N = b.shape
    assert K == Kb
    grid = (pl.cdiv(M, tm),)
    return pl.pallas_call(
        _conv_mm_kernel,
        out_shape=jax.ShapeDtypeStruct((M, N), jnp.bfloat16),
        grid_spec=pltpu.PrefetchScalarGridSpec(
            num_scalar_prefetch=0,
            grid=grid,
            in_specs=[
                pl.BlockSpec((tm, K), lambda i: (i, 0)),
                pl.BlockSpec((K, N), lambda i: (0, 0)),
                pl.BlockSpec((1, N), lambda i: (0, 0)),
            ],
            out_specs=pl.BlockSpec((tm, N), lambda i: (i, 0)),
        ),
        compiler_params=pltpu.CompilerParams(
            dimension_semantics=("parallel",)
        ),
    )(a, b, bias)


def _fc_tail_kernel(x_ref, w1_ref, b1_ref, w2_ref, b2_ref, w3_ref, b3_ref,
                    o_ref, acc_ref):
    # Grid axis 0 streams fc1's K dimension; fc2/fc3/log_softmax run in the
    # last-step epilogue entirely in VMEM.
    k = pl.program_id(0)

    @pl.when(k == 0)
    def _():
        acc_ref[...] = jnp.zeros_like(acc_ref)

    acc_ref[...] += jnp.dot(
        x_ref[...], w1_ref[...], preferred_element_type=jnp.float32
    )

    @pl.when(k == pl.num_programs(0) - 1)
    def _():
        h1 = jnp.maximum(acc_ref[...] + b1_ref[...], 0.0)        # (B, F1) f32
        h1 = h1.astype(w2_ref.dtype)
        h2 = jnp.dot(h1, w2_ref[...], preferred_element_type=jnp.float32)
        h2 = jnp.maximum(h2 + b2_ref[...], 0.0).astype(w3_ref.dtype)
        h3 = jnp.dot(h2, w3_ref[...], preferred_element_type=jnp.float32)
        h3 = h3 + b3_ref[...]                                     # (B, 29)
        m = jnp.max(h3, axis=-1, keepdims=True)
        s = h3 - m
        lse = jnp.log(jnp.sum(jnp.exp(s), axis=-1, keepdims=True))
        o_ref[...] = (s - lse).astype(o_ref.dtype)


def _pick_tk(K, target=4608):
    tk = min(target, K)
    tk -= tk % 128
    while tk > 128 and K % tk:
        tk -= 128
    assert tk >= 128 and K % tk == 0 and tk % 128 == 0
    return tk


def fc_tail(x, w1, b1, w2, b2, w3, b3):
    """log_softmax(relu(relu(x@w1+b1)@w2+b2)@w3+b3) as one fused kernel."""
    B, K1 = x.shape
    F1 = w1.shape[1]
    F2 = w2.shape[1]
    F3 = w3.shape[1]
    assert K1 % 128 == 0
    tk = _pick_tk(K1)
    nk = K1 // tk
    return pl.pallas_call(
        _fc_tail_kernel,
        out_shape=jax.ShapeDtypeStruct((B, F3), jnp.float32),
        grid_spec=pltpu.PrefetchScalarGridSpec(
            num_scalar_prefetch=0,
            grid=(nk,),
            in_specs=[
                pl.BlockSpec((B, tk), lambda k: (0, k)),
                pl.BlockSpec((tk, F1), lambda k: (k, 0)),
                pl.BlockSpec((1, F1), lambda k: (0, 0)),
                pl.BlockSpec((F1, F2), lambda k: (0, 0)),
                pl.BlockSpec((1, F2), lambda k: (0, 0)),
                pl.BlockSpec((F2, F3), lambda k: (0, 0)),
                pl.BlockSpec((1, F3), lambda k: (0, 0)),
            ],
            out_specs=pl.BlockSpec((B, F3), lambda k: (0, 0)),
            scratch_shapes=[pltpu.VMEM((B, F1), jnp.float32)],
        ),
        compiler_params=pltpu.CompilerParams(
            dimension_semantics=("arbitrary",)
        ),
    )(x, w1, b1, w2, b2, w3, b3)


# ---------------------------------------------------------------------------
# im2col (space-to-depth form) + conv wrapper — plain-JAX glue only
# ---------------------------------------------------------------------------
def _im2col_s2d(x, k, s):
    """Patch extraction on NHWC input for a k x k conv with stride s (s | k).

    Returns (patches (N*Ho*Wo, nb*nb*s*s*C), Ho, Wo) with patch feature
    ordering (bi, bj, rh, rw, c), nb = k // s. Only ~nb^2 contiguous slices.
    """
    N, H, W, C = x.shape
    assert k % s == 0 and H % s == 0 and W % s == 0
    nb = k // s
    Ht, Wt = H // s, W // s
    Ho = (H - k) // s + 1
    Wo = (W - k) // s + 1
    t = x.reshape(N, Ht, s, Wt, s, C).transpose(0, 1, 3, 2, 4, 5)
    t = t.reshape(N, Ht, Wt, s * s * C)
    cols = []
    for bi in range(nb):
        for bj in range(nb):
            cols.append(t[:, bi:bi + Ho, bj:bj + Wo, :])
    patches = jnp.concatenate(cols, axis=-1)          # (N, Ho, Wo, nb*nb*s*s*C)
    return patches.reshape(N * Ho * Wo, nb * nb * s * s * C), Ho, Wo


def conv2d_relu(x_nhwc, w_flat, bias, *, ksize, stride):
    # x_nhwc: (N, H, W, Cin) bf16; w_flat: (k*k*Cin, Cout) bf16 (prepped);
    # bias: (1, Cout) f32. Output NHWC bf16.
    N = x_nhwc.shape[0]
    patches, Ho, Wo = _im2col_s2d(x_nhwc, ksize, stride)
    y = matmul_bias_relu(patches, w_flat, bias)       # (N*Ho*Wo, Cout) bf16
    return y.reshape(N, Ho, Wo, -1)


# ---------------------------------------------------------------------------
# Parameters (PyTorch layout) + one-time kernel-friendly preparation
# ---------------------------------------------------------------------------
def init_params(key, out_features1, out_features2):
    ks = jax.random.split(key, 12)

    def uinit(k, shape, fan_in):
        bound = 1.0 / (fan_in ** 0.5)
        return jax.random.uniform(k, shape, jnp.float32, -bound, bound)

    p = {}
    p["conv1_w"] = uinit(ks[0], (32, 3, 8, 8), 3 * 8 * 8)
    p["conv1_b"] = uinit(ks[1], (32,), 3 * 8 * 8)
    p["conv2_w"] = uinit(ks[2], (64, 32, 4, 4), 32 * 4 * 4)
    p["conv2_b"] = uinit(ks[3], (64,), 32 * 4 * 4)
    p["conv3_w"] = uinit(ks[4], (64, 64, 3, 3), 64 * 3 * 3)
    p["conv3_b"] = uinit(ks[5], (64,), 64 * 3 * 3)
    p["fc1_w"] = uinit(ks[6], (out_features1, 36864), 36864)
    p["fc1_b"] = uinit(ks[7], (out_features1,), 36864)
    p["fc2_w"] = uinit(ks[8], (out_features2, out_features1), out_features1)
    p["fc2_b"] = uinit(ks[9], (out_features2,), out_features1)
    p["fc3_w"] = uinit(ks[10], (29, out_features2), out_features2)
    p["fc3_b"] = uinit(ks[11], (29,), out_features2)
    return p


def _prep_conv_w(w, stride):
    # (Cout, Cin, k, k) torch layout -> (nb*nb*s*s*Cin, Cout) matching the
    # space-to-depth im2col patch ordering (bi, bj, rh, rw, ci).
    Cout, Cin, kh, kw = w.shape
    assert kh == kw and kh % stride == 0
    nb, s = kh // stride, stride
    wt = w.reshape(Cout, Cin, nb, s, nb, s).transpose(2, 4, 3, 5, 1, 0)
    return wt.reshape(nb * nb * s * s * Cin, Cout).astype(jnp.bfloat16)


def prepare_params(p):
    """One-time weight preparation: bf16 cast, layout permutes, transposes."""
    prep = {}
    for name, stride in (("conv1", 4), ("conv2", 2), ("conv3", 1)):
        prep[f"{name}_w"] = _prep_conv_w(p[f"{name}_w"], stride)
        prep[f"{name}_b"] = p[f"{name}_b"].reshape(1, -1).astype(jnp.float32)
    # fc1 consumes the NHWC flatten (H=24, W=24, C=64); permute from torch's
    # NCHW flatten order (C, H, W) once.
    out1 = p["fc1_w"].shape[0]
    w1 = p["fc1_w"].reshape(out1, 64, 24, 24).transpose(2, 3, 1, 0)
    prep["fc1_w"] = w1.reshape(24 * 24 * 64, out1).astype(jnp.bfloat16)
    prep["fc1_b"] = p["fc1_b"].reshape(1, -1).astype(jnp.float32)
    prep["fc2_w"] = p["fc2_w"].T.astype(jnp.bfloat16)
    prep["fc2_b"] = p["fc2_b"].reshape(1, -1).astype(jnp.float32)
    prep["fc3_w"] = p["fc3_w"].T.astype(jnp.bfloat16)
    prep["fc3_b"] = p["fc3_b"].reshape(1, -1).astype(jnp.float32)
    return prep


# ---------------------------------------------------------------------------
# Forward pass
# ---------------------------------------------------------------------------
@jax.jit
def convnet_quantized_forward(prep, x):
    # quant stub: identity (un-converted eager model)
    x = jnp.transpose(x, (0, 2, 3, 1)).astype(jnp.bfloat16)   # NCHW -> NHWC
    x = conv2d_relu(x, prep["conv1_w"], prep["conv1_b"], ksize=8, stride=4)
    x = conv2d_relu(x, prep["conv2_w"], prep["conv2_b"], ksize=4, stride=2)
    x = conv2d_relu(x, prep["conv3_w"], prep["conv3_b"], ksize=3, stride=1)
    n = x.shape[0]
    x = x.reshape(n, -1)   # NHWC flatten; fc1_w was permuted at prep to match
    # fc1 + fc2 + fc3 + log_softmax fused in a single Pallas kernel.
    out = fc_tail(x, prep["fc1_w"], prep["fc1_b"],
                  prep["fc2_w"], prep["fc2_b"],
                  prep["fc3_w"], prep["fc3_b"])
    # dequant stub: identity
    return out


if __name__ == "__main__":
    key = jax.random.PRNGKey(0)
    pkey, xkey = jax.random.split(key)

    out_features1, out_features2 = 128, 64
    params = init_params(pkey, out_features1, out_features2)
    prep = prepare_params(params)   # one-time weight prep (outside the fwd jit)

    # in_features=36864 of the first Linear forces conv3 output 64x24x24,
    # which implies a 3x220x220 input image.
    x = jax.random.normal(xkey, (2, 3, 220, 220), dtype=jnp.float32)

    out = convnet_quantized_forward(prep, x)
    jax.block_until_ready(out)
    assert out.shape == (2, 29)
    # log_softmax rows must sum to ~1 in prob space
    assert jnp.allclose(jnp.sum(jnp.exp(out), axis=1), 1.0, atol=1e-3)
    print("KERNEL_OK")
</pallas_src>

<mosaic_0001>
module attributes {stable_mosaic.version = 11 : i64} {
  func.func @_conv_mm_kernel(%arg0: i32, %arg1: memref<512x192xbf16, #tpu.memory_space<vmem>>, %arg2: memref<192x32xbf16, #tpu.memory_space<vmem>>, %arg3: memref<1x32xf32, #tpu.memory_space<vmem>>, %arg4: memref<512x32xbf16, #tpu.memory_space<vmem>>) attributes {dimension_semantics = [#tpu.dimension_semantics<parallel>], iteration_bounds = array<i64: 12>, scalar_prefetch = 0 : i64, scratch_operands = 0 : i64, tpu.core_type = #tpu.core_type<tc>, window_params = [{transform_indices = @transform_0, window_bounds = array<i64: 512, 192>}, {pipeline_mode = #tpu.pipeline_mode<synchronous>, transform_indices = @transform_1, window_bounds = array<i64: 192, 32>}, {pipeline_mode = #tpu.pipeline_mode<synchronous>, transform_indices = @transform_2, window_bounds = array<i64: 1, 32>}, {transform_indices = @transform_3, window_bounds = array<i64: 512, 32>}]} {
    %c0 = arith.constant 0 : index
    %c0_0 = arith.constant 0 : index
    %0 = vector.load %arg1[%c0, %c0_0] : memref<512x192xbf16, #tpu.memory_space<vmem>>, vector<512x192xbf16>
    %c0_1 = arith.constant 0 : index
    %c0_2 = arith.constant 0 : index
    %1 = vector.load %arg2[%c0_1, %c0_2] : memref<192x32xbf16, #tpu.memory_space<vmem>>, vector<192x32xbf16>
    %cst = arith.constant dense<0.000000e+00> : vector<512x32xf32>
    %2 = tpu.matmul %0, %1, %cst {dimension_numbers = #tpu.dot_dimension_numbers<[1], [0], [0], [1], [0, 0, 1, 1], [], []>} : vector<512x192xbf16>, vector<192x32xbf16>, vector<512x32xf32> -> vector<512x32xf32>
    %c0_3 = arith.constant 0 : index
    %c0_4 = arith.constant 0 : index
    %3 = vector.load %arg3[%c0_3, %c0_4] : memref<1x32xf32, #tpu.memory_space<vmem>>, vector<1x32xf32>
    %4 = vector.broadcast %3 : vector<1x32xf32> to vector<512x32xf32>
    %5 = arith.addf %2, %4 : vector<512x32xf32>
    %cst_5 = arith.constant 0.000000e+00 : f32
    %6 = vector.broadcast %cst_5 : f32 to vector<512x32xf32>
    %7 = arith.maximumf %5, %6 : vector<512x32xf32>
    %8 = arith.truncf %7 : vector<512x32xf32> to vector<512x32xbf16>
    %c0_6 = arith.constant 0 : index
    %c0_7 = arith.constant 0 : index
    %9 = vector.load %arg4[%c0_6, %c0_7] : memref<512x32xbf16, #tpu.memory_space<vmem>>, vector<512x32xbf16>
    tpu.vector_store %arg4[%c0_6, %c0_7], %8 {strides = array<i32>} : memref<512x32xbf16, #tpu.memory_space<vmem>>, vector<512x32xbf16>,
    return
  }
  func.func @transform_0(%arg0: i32) -> (i32, i32) {
    %c0_i32 = arith.constant 0 : i32
    %c0_i32_0 = arith.constant 0 : i32
    return %arg0, %c0_i32 : i32, i32
  }
  func.func @transform_1(%arg0: i32) -> (i32, i32) {
    %c0_i32 = arith.constant 0 : i32
    %c0_i32_0 = arith.constant 0 : i32
    %c0_i32_1 = arith.constant 0 : i32
    return %c0_i32, %c0_i32_0 : i32, i32
  }
  func.func @transform_2(%arg0: i32) -> (i32, i32) {
    %c0_i32 = arith.constant 0 : i32
    %c0_i32_0 = arith.constant 0 : i32
    %c0_i32_1 = arith.constant 0 : i32
    return %c0_i32, %c0_i32_0 : i32, i32
  }
  func.func @transform_3(%arg0: i32) -> (i32, i32) {
    %c0_i32 = arith.constant 0 : i32
    %c0_i32_0 = arith.constant 0 : i32
    return %arg0, %c0_i32 : i32, i32
  }
}

module attributes {stable_mosaic.version = 11 : i64} {
  func.func @_conv_mm_kernel(%arg0: i32, %arg1: memref<512x512xbf16, #tpu.memory_space<vmem>>, %arg2: memref<512x64xbf16, #tpu.memory_space<vmem>>, %arg3: memref<1x64xf32, #tpu.memory_space<vmem>>, %arg4: memref<512x64xbf16, #tpu.memory_space<vmem>>) attributes {dimension_semantics = [#tpu.dimension_semantics<parallel>], iteration_bounds = array<i64: 3>, scalar_prefetch = 0 : i64, scratch_operands = 0 : i64, tpu.core_type = #tpu.core_type<tc>, window_params = [{transform_indices = @transform_0, window_bounds = array<i64: 512, 512>}, {pipeline_mode = #tpu.pipeline_mode<synchronous>, transform_indices = @transform_1, window_bounds = array<i64: 512, 64>}, {pipeline_mode = #tpu.pipeline_mode<synchronous>, transform_indices = @transform_2, window_bounds = array<i64: 1, 64>}, {transform_indices = @transform_3, window_bounds = array<i64: 512, 64>}]} {
    %c0 = arith.constant 0 : index
    %c0_0 = arith.constant 0 : index
    %0 = vector.load %arg1[%c0, %c0_0] : memref<512x512xbf16, #tpu.memory_space<vmem>>, vector<512x512xbf16>
    %c0_1 = arith.constant 0 : index
    %c0_2 = arith.constant 0 : index
    %1 = vector.load %arg2[%c0_1, %c0_2] : memref<512x64xbf16, #tpu.memory_space<vmem>>, vector<512x64xbf16>
    %cst = arith.constant dense<0.000000e+00> : vector<512x64xf32>
    %2 = tpu.matmul %0, %1, %cst {dimension_numbers = #tpu.dot_dimension_numbers<[1], [0], [0], [1], [0, 0, 1, 1], [], []>} : vector<512x512xbf16>, vector<512x64xbf16>, vector<512x64xf32> -> vector<512x64xf32>
    %c0_3 = arith.constant 0 : index
    %c0_4 = arith.constant 0 : index
    %3 = vector.load %arg3[%c0_3, %c0_4] : memref<1x64xf32, #tpu.memory_space<vmem>>, vector<1x64xf32>
    %4 = vector.broadcast %3 : vector<1x64xf32> to vector<512x64xf32>
    %5 = arith.addf %2, %4 : vector<512x64xf32>
    %cst_5 = arith.constant 0.000000e+00 : f32
    %6 = vector.broadcast %cst_5 : f32 to vector<512x64xf32>
    %7 = arith.maximumf %5, %6 : vector<512x64xf32>
    %8 = arith.truncf %7 : vector<512x64xf32> to vector<512x64xbf16>
    %c0_6 = arith.constant 0 : index
    %c0_7 = arith.constant 0 : index
    %9 = vector.load %arg4[%c0_6, %c0_7] : memref<512x64xbf16, #tpu.memory_space<vmem>>, vector<512x64xbf16>
    tpu.vector_store %arg4[%c0_6, %c0_7], %8 {strides = array<i32>} : memref<512x64xbf16, #tpu.memory_space<vmem>>, vector<512x64xbf16>,
    return
  }
  func.func @transform_0(%arg0: i32) -> (i32, i32) {
    %c0_i32 = arith.constant 0 : i32
    %c0_i32_0 = arith.constant 0 : i32
    return %arg0, %c0_i32 : i32, i32
  }
  func.func @transform_1(%arg0: i32) -> (i32, i32) {
    %c0_i32 = arith.constant 0 : i32
    %c0_i32_0 = arith.constant 0 : i32
    %c0_i32_1 = arith.constant 0 : i32
    return %c0_i32, %c0_i32_0 : i32, i32
  }
  func.func @transform_2(%arg0: i32) -> (i32, i32) {
    %c0_i32 = arith.constant 0 : i32
    %c0_i32_0 = arith.constant 0 : i32
    %c0_i32_1 = arith.constant 0 : i32
    return %c0_i32, %c0_i32_0 : i32, i32
  }
  func.func @transform_3(%arg0: i32) -> (i32, i32) {
    %c0_i32 = arith.constant 0 : i32
    %c0_i32_0 = arith.constant 0 : i32
    return %arg0, %c0_i32 : i32, i32
  }
}

module attributes {stable_mosaic.version = 11 : i64} {
  func.func @_conv_mm_kernel(%arg0: i32, %arg1: memref<512x576xbf16, #tpu.memory_space<vmem>>, %arg2: memref<576x64xbf16, #tpu.memory_space<vmem>>, %arg3: memref<1x64xf32, #tpu.memory_space<vmem>>, %arg4: memref<512x64xbf16, #tpu.memory_space<vmem>>) attributes {dimension_semantics = [#tpu.dimension_semantics<parallel>], iteration_bounds = array<i64: 3>, scalar_prefetch = 0 : i64, scratch_operands = 0 : i64, tpu.core_type = #tpu.core_type<tc>, window_params = [{transform_indices = @transform_0, window_bounds = array<i64: 512, 576>}, {pipeline_mode = #tpu.pipeline_mode<synchronous>, transform_indices = @transform_1, window_bounds = array<i64: 576, 64>}, {pipeline_mode = #tpu.pipeline_mode<synchronous>, transform_indices = @transform_2, window_bounds = array<i64: 1, 64>}, {transform_indices = @transform_3, window_bounds = array<i64: 512, 64>}]} {
    %c0 = arith.constant 0 : index
    %c0_0 = arith.constant 0 : index
    %0 = vector.load %arg1[%c0, %c0_0] : memref<512x576xbf16, #tpu.memory_space<vmem>>, vector<512x576xbf16>
    %c0_1 = arith.constant 0 : index
    %c0_2 = arith.constant 0 : index
    %1 = vector.load %arg2[%c0_1, %c0_2] : memref<576x64xbf16, #tpu.memory_space<vmem>>, vector<576x64xbf16>
    %cst = arith.constant dense<0.000000e+00> : vector<512x64xf32>
    %2 = tpu.matmul %0, %1, %cst {dimension_numbers = #tpu.dot_dimension_numbers<[1], [0], [0], [1], [0, 0, 1, 1], [], []>} : vector<512x576xbf16>, vector<576x64xbf16>, vector<512x64xf32> -> vector<512x64xf32>
    %c0_3 = arith.constant 0 : index
    %c0_4 = arith.constant 0 : index
    %3 = vector.load %arg3[%c0_3, %c0_4] : memref<1x64xf32, #tpu.memory_space<vmem>>, vector<1x64xf32>
    %4 = vector.broadcast %3 : vector<1x64xf32> to vector<512x64xf32>
    %5 = arith.addf %2, %4 : vector<512x64xf32>
    %cst_5 = arith.constant 0.000000e+00 : f32
    %6 = vector.broadcast %cst_5 : f32 to vector<512x64xf32>
    %7 = arith.maximumf %5, %6 : vector<512x64xf32>
    %8 = arith.truncf %7 : vector<512x64xf32> to vector<512x64xbf16>
    %c0_6 = arith.constant 0 : index
    %c0_7 = arith.constant 0 : index
    %9 = vector.load %arg4[%c0_6, %c0_7] : memref<512x64xbf16, #tpu.memory_space<vmem>>, vector<512x64xbf16>
    tpu.vector_store %arg4[%c0_6, %c0_7], %8 {strides = array<i32>} : memref<512x64xbf16, #tpu.memory_space<vmem>>, vector<512x64xbf16>,
    return
  }
  func.func @transform_0(%arg0: i32) -> (i32, i32) {
    %c0_i32 = arith.constant 0 : i32
    %c0_i32_0 = arith.constant 0 : i32
    return %arg0, %c0_i32 : i32, i32
  }
  func.func @transform_1(%arg0: i32) -> (i32, i32) {
    %c0_i32 = arith.constant 0 : i32
    %c0_i32_0 = arith.constant 0 : i32
    %c0_i32_1 = arith.constant 0 : i32
    return %c0_i32, %c0_i32_0 : i32, i32
  }
  func.func @transform_2(%arg0: i32) -> (i32, i32) {
    %c0_i32 = arith.constant 0 : i32
    %c0_i32_0 = arith.constant 0 : i32
    %c0_i32_1 = arith.constant 0 : i32
    return %c0_i32, %c0_i32_0 : i32, i32
  }
  func.func @transform_3(%arg0: i32) -> (i32, i32) {
    %c0_i32 = arith.constant 0 : i32
    %c0_i32_0 = arith.constant 0 : i32
    return %arg0, %c0_i32 : i32, i32
  }
}

module attributes {stable_mosaic.version = 11 : i64} {
  func.func @_fc_tail_kernel(%arg0: i32, %arg1: memref<2x4608xbf16, #tpu.memory_space<vmem>>, %arg2: memref<4608x128xbf16, #tpu.memory_space<vmem>>, %arg3: memref<1x128xf32, #tpu.memory_space<vmem>>, %arg4: memref<128x64xbf16, #tpu.memory_space<vmem>>, %arg5: memref<1x64xf32, #tpu.memory_space<vmem>>, %arg6: memref<64x29xbf16, #tpu.memory_space<vmem>>, %arg7: memref<1x29xf32, #tpu.memory_space<vmem>>, %arg8: memref<2x29xf32, #tpu.memory_space<vmem>>, %arg9: memref<2x128xf32, #tpu.memory_space<vmem>>) attributes {dimension_semantics = [#tpu.dimension_semantics<arbitrary>], iteration_bounds = array<i64: 8>, scalar_prefetch = 0 : i64, scratch_operands = 1 : i64, tpu.core_type = #tpu.core_type<tc>, window_params = [{transform_indices = @transform_0, window_bounds = array<i64: 2, 4608>}, {transform_indices = @transform_1, window_bounds = array<i64: 4608, 128>}, {pipeline_mode = #tpu.pipeline_mode<synchronous>, transform_indices = @transform_2, window_bounds = array<i64: 1, 128>}, {pipeline_mode = #tpu.pipeline_mode<synchronous>, transform_indices = @transform_3, window_bounds = array<i64: 128, 64>}, {pipeline_mode = #tpu.pipeline_mode<synchronous>, transform_indices = @transform_4, window_bounds = array<i64: 1, 64>}, {pipeline_mode = #tpu.pipeline_mode<synchronous>, transform_indices = @transform_5, window_bounds = array<i64: 64, 29>}, {pipeline_mode = #tpu.pipeline_mode<synchronous>, transform_indices = @transform_6, window_bounds = array<i64: 1, 29>}, {pipeline_mode = #tpu.pipeline_mode<synchronous>, transform_indices = @transform_7, window_bounds = array<i64: 2, 29>}]} {
    %c0_i32 = arith.constant 0 : i32
    %0 = arith.cmpi eq, %arg0, %c0_i32 : i32
    %1 = arith.extui %0 : i1 to i32
    %c0_i32_0 = arith.constant 0 : i32
    %2 = arith.cmpi ne, %1, %c0_i32_0 : i32
    scf.if %2 {
      %cst_9 = arith.constant 0.000000e+00 : f32
      %12 = vector.broadcast %cst_9 : f32 to vector<2x128xf32>
      %c0_10 = arith.constant 0 : index
      %c0_11 = arith.constant 0 : index
      %13 = vector.load %arg9[%c0_10, %c0_11] : memref<2x128xf32, #tpu.memory_space<vmem>>, vector<2x128xf32>
      tpu.vector_store %arg9[%c0_10, %c0_11], %12 {strides = array<i32>} : memref<2x128xf32, #tpu.memory_space<vmem>>, vector<2x128xf32>,
    } else {
    }
    %c0 = arith.constant 0 : index
    %c0_1 = arith.constant 0 : index
    %3 = vector.load %arg9[%c0, %c0_1] : memref<2x128xf32, #tpu.memory_space<vmem>>, vector<2x128xf32>
    %c0_2 = arith.constant 0 : index
    %c0_3 = arith.constant 0 : index
    %4 = vector.load %arg1[%c0_2, %c0_3] : memref<2x4608xbf16, #tpu.memory_space<vmem>>, vector<2x4608xbf16>
    %c0_4 = arith.constant 0 : index
    %c0_5 = arith.constant 0 : index
    %5 = vector.load %arg2[%c0_4, %c0_5] : memref<4608x128xbf16, #tpu.memory_space<vmem>>, vector<4608x128xbf16>
    %cst = arith.constant dense<0.000000e+00> : vector<2x128xf32>
    %6 = tpu.matmul %4, %5, %cst {dimension_numbers = #tpu.dot_dimension_numbers<[1], [0], [0], [1], [0, 0, 1, 1], [], []>} : vector<2x4608xbf16>, vector<4608x128xbf16>, vector<2x128xf32> -> vector<2x128xf32>
    %7 = arith.addf %3, %6 : vector<2x128xf32>
    %c0_6 = arith.constant 0 : index
    %c0_7 = arith.constant 0 : index
    %8 = vector.load %arg9[%c0_6, %c0_7] : memref<2x128xf32, #tpu.memory_space<vmem>>, vector<2x128xf32>
    tpu.vector_store %arg9[%c0_6, %c0_7], %7 {strides = array<i32>} : memref<2x128xf32, #tpu.memory_space<vmem>>, vector<2x128xf32>,
    %c7_i32 = arith.constant 7 : i32
    %9 = arith.cmpi eq, %arg0, %c7_i32 : i32
    %10 = arith.extui %9 : i1 to i32
    %c0_i32_8 = arith.constant 0 : i32
    %11 = arith.cmpi ne, %10, %c0_i32_8 : i32
    scf.if %11 {
      %c0_9 = arith.constant 0 : index
      %c0_10 = arith.constant 0 : index
      %12 = vector.load %arg9[%c0_9, %c0_10] : memref<2x128xf32, #tpu.memory_space<vmem>>, vector<2x128xf32>
      %c0_11 = arith.constant 0 : index
      %c0_12 = arith.constant 0 : index
      %13 = vector.load %arg3[%c0_11, %c0_12] : memref<1x128xf32, #tpu.memory_space<vmem>>, vector<1x128xf32>
      %14 = vector.broadcast %13 : vector<1x128xf32> to vector<2x128xf32>
      %15 = arith.addf %12, %14 : vector<2x128xf32>
      %cst_13 = arith.constant 0.000000e+00 : f32
      %16 = vector.broadcast %cst_13 : f32 to vector<2x128xf32>
      %17 = arith.maximumf %15, %16 : vector<2x128xf32>
      %18 = arith.truncf %17 : vector<2x128xf32> to vector<2x128xbf16>
      %c0_14 = arith.constant 0 : index
      %c0_15 = arith.constant 0 : index
      %19 = vector.load %arg4[%c0_14, %c0_15] : memref<128x64xbf16, #tpu.memory_space<vmem>>, vector<128x64xbf16>
      %cst_16 = arith.constant dense<0.000000e+00> : vector<2x64xf32>
      %20 = tpu.matmul %18, %19, %cst_16 {dimension_numbers = #tpu.dot_dimension_numbers<[1], [0], [0], [1], [0, 0, 1, 1], [], []>} : vector<2x128xbf16>, vector<128x64xbf16>, vector<2x64xf32> -> vector<2x64xf32>
      %c0_17 = arith.constant 0 : index
      %c0_18 = arith.constant 0 : index
      %21 = vector.load %arg5[%c0_17, %c0_18] : memref<1x64xf32, #tpu.memory_space<vmem>>, vector<1x64xf32>
      %22 = vector.broadcast %21 : vector<1x64xf32> to vector<2x64xf32>
      %23 = arith.addf %20, %22 : vector<2x64xf32>
      %cst_19 = arith.constant 0.000000e+00 : f32
      %24 = vector.broadcast %cst_19 : f32 to vector<2x64xf32>
      %25 = arith.maximumf %23, %24 : vector<2x64xf32>
      %26 = arith.truncf %25 : vector<2x64xf32> to vector<2x64xbf16>
      %c0_20 = arith.constant 0 : index
      %c0_21 = arith.constant 0 : index
      %27 = vector.load %arg6[%c0_20, %c0_21] : memref<64x29xbf16, #tpu.memory_space<vmem>>, vector<64x29xbf16>
      %cst_22 = arith.constant dense<0.000000e+00> : vector<2x29xf32>
      %28 = tpu.matmul %26, %27, %cst_22 {dimension_numbers = #tpu.dot_dimension_numbers<[1], [0], [0], [1], [0, 0, 1, 1], [], []>} : vector<2x64xbf16>, vector<64x29xbf16>, vector<2x29xf32> -> vector<2x29xf32>
      %c0_23 = arith.constant 0 : index
      %c0_24 = arith.constant 0 : index
      %29 = vector.load %arg7[%c0_23, %c0_24] : memref<1x29xf32, #tpu.memory_space<vmem>>, vector<1x29xf32>
      %30 = vector.broadcast %29 : vector<1x29xf32> to vector<2x29xf32>
      %31 = arith.addf %28, %30 : vector<2x29xf32>
      %cst_25 = arith.constant dense<0xFF800000> : vector<2xf32>
      %32 = vector.multi_reduction <maximumf>, %31, %cst_25 [1] : vector<2x29xf32> to vector<2xf32>
      %33 = vector.shape_cast %32 : vector<2xf32> to vector<2x1xf32>
      %34 = vector.broadcast %33 : vector<2x1xf32> to vector<2x29xf32>
      %35 = arith.subf %31, %34 : vector<2x29xf32>
      %36 = math.exp %35 : vector<2x29xf32>
      %cst_26 = arith.constant dense<0.000000e+00> : vector<2xf32>
      %37 = vector.multi_reduction <add>, %36, %cst_26 [1] : vector<2x29xf32> to vector<2xf32>
      %38 = vector.shape_cast %37 : vector<2xf32> to vector<2x1xf32>
      %39 = math.log %38 : vector<2x1xf32>
      %40 = vector.broadcast %39 : vector<2x1xf32> to vector<2x29xf32>
      %41 = arith.subf %35, %40 : vector<2x29xf32>
      %c0_27 = arith.constant 0 : index
      %c0_28 = arith.constant 0 : index
      %42 = vector.load %arg8[%c0_27, %c0_28] : memref<2x29xf32, #tpu.memory_space<vmem>>, vector<2x29xf32>
      tpu.vector_store %arg8[%c0_27, %c0_28], %41 {strides = array<i32>} : memref<2x29xf32, #tpu.memory_space<vmem>>, vector<2x29xf32>,
    } else {
    }
    return
  }
  func.func @transform_0(%arg0: i32) -> (i32, i32) {
    %c0_i32 = arith.constant 0 : i32
    %c0_i32_0 = arith.constant 0 : i32
    return %c0_i32, %arg0 : i32, i32
  }
  func.func @transform_1(%arg0: i32) -> (i32, i32) {
    %c0_i32 = arith.constant 0 : i32
    %c0_i32_0 = arith.constant 0 : i32
    return %arg0, %c0_i32 : i32, i32
  }
  func.func @transform_2(%arg0: i32) -> (i32, i32) {
    %c0_i32 = arith.constant 0 : i32
    %c0_i32_0 = arith.constant 0 : i32
    %c0_i32_1 = arith.constant 0 : i32
    return %c0_i32, %c0_i32_0 : i32, i32
  }
  func.func @transform_3(%arg0: i32) -> (i32, i32) {
    %c0_i32 = arith.constant 0 : i32
    %c0_i32_0 = arith.constant 0 : i32
    %c0_i32_1 = arith.constant 0 : i32
    return %c0_i32, %c0_i32_0 : i32, i32
  }
  func.func @transform_4(%arg0: i32) -> (i32, i32) {
    %c0_i32 = arith.constant 0 : i32
    %c0_i32_0 = arith.constant 0 : i32
    %c0_i32_1 = arith.constant 0 : i32
    return %c0_i32, %c0_i32_0 : i32, i32
  }
  func.func @transform_5(%arg0: i32) -> (i32, i32) {
    %c0_i32 = arith.constant 0 : i32
    %c0_i32_0 = arith.constant 0 : i32
    %c0_i32_1 = arith.constant 0 : i32
    return %c0_i32, %c0_i32_0 : i32, i32
  }
  func.func @transform_6(%arg0: i32) -> (i32, i32) {
    %c0_i32 = arith.constant 0 : i32
    %c0_i32_0 = arith.constant 0 : i32
    %c0_i32_1 = arith.constant 0 : i32
    return %c0_i32, %c0_i32_0 : i32, i32
  }
  func.func @transform_7(%arg0: i32) -> (i32, i32) {
    %c0_i32 = arith.constant 0 : i32
    %c0_i32_0 = arith.constant 0 : i32
    %c0_i32_1 = arith.constant 0 : i32
    return %c0_i32, %c0_i32_0 : i32, i32
  }
}

</mosaic_0001>

<bundles_post_ra>
// kernel: convnet_quantized_forward.4
= control target key start
LH: loop header
LB: loop body
LE: loop exit
PB: predicated region body
PF: predicated region fallthrough
CT: control target
= control target key end

     0   :  { %s2489_s12 = smov 0   ;;  %s2491_s13 = smov 0   ;;  %s3083_s0 = inlined_call_operand.vmem [shape: bf16[5832,192], index: 0, kind: input, shape index: {}]   ;;  %s3084_s1 = inlined_call_operand.vmem [shape: bf16[192,32], index: 1, kind: input, shape index: {}]   ;;  %s3085_s2 = inlined_call_operand.vmem [shape: f32[1,32], index: 2, kind: input, shape index: {}]   ;;  %s3086_s3 = inlined_call_operand.vmem [shape: bf16[5832,32], index: 3, kind: output, shape index: {}]  }
   0x1   :  { %s2493_s14 = smov 0  }
   0x2 LB: > { %s2502_s15 = sadd.s32 4294967295, %s2434_s14   ;;  %s2504_s16 = sadd.s32 1, %s2434_s14   ;;  %s2434_s14 = sphi %s2493_s14, %s3093_s14   ;;  %s2430_s13 = sphi %s2491_s13, %s3092_s13   ;;  %s2426_s12 = sphi %s2489_s12, %s3091_s12  }
   0x3   : > { %s85_s17 = ssub.s32 %s2434_s14, %s2504_s16  ;;  %s88_s18 = sadd.s32 1, %s2430_s13 }
   0x4   : > { %p86_p0 = scmp.eq.s32.totalorder %s85_s17, 0  ;;  %p98_p1 = scmp.ne.s32.totalorder %s2430_s13, %s2426_s12 }
   0x5   : > { %p99_p2 = scmp.eq.s32.totalorder %s2502_s15, 11  ;;  %p1896_p3 = scmp.ge.s32.totalorder %s2434_s14, 1 }
   0x6   : > { %s2512_s19 = scalar_select %p86_p0, %s2430_s13, %s88_s18  }
   0x7   : > { %p2514_p4 = por %p99_p2, %p98_p1  ;;  %p149_p5 = scmp.lt.s32.totalorder %s2434_s14, 13 }
   0x9   : > { %p150_p6 = pnand %p1896_p3, %p149_p5 }
   0xa   : > { %v2272_v0 = vld [vmem:[%s3084_s1] sm:$0xff] (!%p150_p6)   ;;  %v2468_v1 = vmov (!%p150_p6), 0   ;;  %s2524_s23 = sshll.u32 (!%p150_p6), %s2502_s15, 6  ;;  %v2273_v2 = vld [vmem:[%s3084_s1 + $0x8] sm:$0xff] (!%p150_p6)   ;;  %v2274_v3 = vld [vmem:[%s3084_s1 + $0x10] sm:$0xff] (!%p150_p6)   ;;  %vm656_vm0 = vcmask (!%p150_p6), 523264  }
   0xb   : > { %153 = sbr.rel (%p150_p6) target bundleno = 491 (0x1eb), region = 32  ;;  %753 = vmatprep.subr.bf16.mxu0 (!%p150_p6), %v2468_v1  ;;  %2159 = vmatprep.subr.bf16.mxu1 (!%p150_p6), %v2468_v1  ;;  %p184_p7 = scmp.lt.s32.totalorder (!%p150_p6), %s2524_s23, 728  ;;  %v2275_v4 = vld [vmem:[%s3084_s1 + $0x18] sm:$0xff] (!%p150_p6)   ;;  %v2276_v6 = vld [vmem:[%s3084_s1 + $0x20] sm:$0xff] (!%p150_p6)   ;;  %v2277_v8 = vld [vmem:[%s3084_s1 + $0x28] sm:$0xff] (!%p150_p6)   ;;  %vm1362_vm1 = vcmask (!%p150_p6), 257024  }
   0xc   : > { %754 = vmatpush1.bf16.msra.mxu0 (!%p150_p6), %v2272_v0  ;;  %2171 = vmatpush1.bf16.msra.mxu1 (!%p150_p6), %v2272_v0  ;;  %v2278_v9 = vld [vmem:[%s3084_s1 + $0x30] sm:$0xff] (!%p150_p6)   ;;  %v2279_v10 = vld [vmem:[%s3084_s1 + $0x38] sm:$0xff] (!%p150_p6)   ;;  %v2280_v11 = vld [vmem:[%s3084_s1 + $0x40] sm:$0xff] (!%p150_p6)   ;;  %s175_s4 = sand.u32 (!%p150_p6), 1, %s2426_s12  }
   0xd   : > { %755 = vmatprep.subr.bf16.mxu0 (!%p150_p6), %v2468_v1  ;;  %2160 = vmatprep.subr.bf16.mxu1 (!%p150_p6), %v2468_v1  ;;  %v2281_v12 = vld [vmem:[%s3084_s1 + $0x48] sm:$0xff] (!%p150_p6)   ;;  %v2282_v13 = vld [vmem:[%s3084_s1 + $0x50] sm:$0xff] (!%p150_p6)   ;;  %v2283_v14 = vld [vmem:[%s3084_s1 + $0x58] sm:$0xff] (!%p150_p6)   ;;  %s1897_s8 = sshll.u32 (!%p150_p6), %s175_s4, 8 }
   0xe   : > { %s2694_s12 = scalar_lea.vmem (!%p150_p6), [#allocation2], %s1897_s8  }
  0x10   : > { %756 = vmatpush1.bf16.msra.mxu0 (!%p150_p6), %v2273_v2  ;;  %2172 = vmatpush1.bf16.msra.mxu1 (!%p150_p6), %v2273_v2 }
  0x11   : > { %757 = vmatprep.subr.bf16.mxu0 (!%p150_p6), %v2468_v1  ;;  %2161 = vmatprep.subr.bf16.mxu1 (!%p150_p6), %v2468_v1 }
  0x12   : > { %s185_s26 = scalar_select %p184_p7, %s2524_s23, 728 }
  0x13   : > { %s2156_s9 = sshll.u32 (%p2514_p4), %s2502_s15, 8 }
  0x14   : > { %s2091_s29 = sshll.u32 %s185_s26, 3  ;;  %758 = vmatpush1.bf16.msra.mxu0 %v2274_v3  ;;  %2173 = vmatpush1.bf16.msra.mxu1 %v2274_v3  ;;  %s2891_s14 = scalar_lea.vmem (%p2514_p4), %s3086_s3, %s2156_s9  }
  0x15   : > { %s2544_s7 = scalar_lea.vmem %s3083_s0, %s2091_s29  ;;  %759 = vmatprep.subr.bf16.mxu0 %v2468_v1  ;;  %2162 = vmatprep.subr.bf16.mxu1 %v2468_v1 }
  0x16   : > { %v2286_v5 = vld [vmem:[%s2544_s7 + $0x4] ss:$8 sps:$4 sm:$0xff]   ;;  %v2284_v15 = vld [vmem:[%s2544_s7] ss:$8 sps:$4 sm:$0xff]   ;;  %v2290_v17 = vld [vmem:[%s2544_s7 + $0x14] ss:$8 sps:$4 sm:$0xff]  }
  0x17   : > { %v2289_v7 = vld [vmem:[%s2544_s7 + $0x104] ss:$8 sps:$4 sm:$0xff]   ;;  %1978 = vmatprep.mubr.msk.bf16.mxu0 %vm656_vm0, %v2286_v5  ;;  %v2287_v16 = vld [vmem:[%s2544_s7 + $0x100] ss:$8 sps:$4 sm:$0xff]   ;;  %v2292_v18 = vld [vmem:[%s2544_s7 + $0x114] ss:$8 sps:$4 sm:$0xff]  }
  0x18   : > { %760 = vmatpush1.bf16.msra.mxu0 %v2275_v4  ;;  %2174 = vmatpush1.bf16.msra.mxu1 %v2275_v4  ;;  %v2294_v19 = vld [vmem:[%s2544_s7 + $0x10] ss:$8 sps:$4 sm:$0xff]   ;;  %v2296_v21 = vld [vmem:[%s2544_s7 + $0x24] ss:$8 sps:$4 sm:$0xff]   ;;  %v2300_v23 = vld [vmem:[%s2544_s7 + $0x20] ss:$8 sps:$4 sm:$0xff]  }
  0x19   : > { %761 = vmatprep.subr.bf16.mxu0 %v2468_v1  ;;  %2163 = vmatprep.subr.bf16.mxu1 %v2468_v1  ;;  %v2295_v20 = vld [vmem:[%s2544_s7 + $0x110] ss:$8 sps:$4 sm:$0xff]   ;;  %v2298_v22 = vld [vmem:[%s2544_s7 + $0x124] ss:$8 sps:$4 sm:$0xff]   ;;  %v2301_v24 = vld [vmem:[%s2544_s7 + $0x120] ss:$8 sps:$4 sm:$0xff]  }
  0x1a   : > { %1994 = vmatprep.mubr.msk.bf16.mxu1 %vm656_vm0, %v2289_v7  ;;  %v2302_v25 = vld [vmem:[%s2544_s7 + $0x34] ss:$8 sps:$4 sm:$0xff]   ;;  %v2306_v27 = vld [vmem:[%s2544_s7 + $0x30] ss:$8 sps:$4 sm:$0xff]   ;;  %v2308_v29 = vld [vmem:[%s2544_s7 + $0x44] ss:$8 sps:$4 sm:$0xff]  }
  0x1b   : > { %v2304_v26 = vld [vmem:[%s2544_s7 + $0x134] ss:$8 sps:$4 sm:$0xff]   ;;  %v2307_v28 = vld [vmem:[%s2544_s7 + $0x130] ss:$8 sps:$4 sm:$0xff]   ;;  %v2310_v30 = vld [vmem:[%s2544_s7 + $0x144] ss:$8 sps:$4 sm:$0xff]  }
  0x1c   : > { %762 = vmatpush1.bf16.msra.mxu0 %v2276_v6  ;;  %2175 = vmatpush1.bf16.msra.mxu1 %v2276_v6  ;;  %v2312_v31 = vld [vmem:[%s2544_s7 + $0x40] ss:$8 sps:$4 sm:$0xff]   ;;  %v2314_v33 = vld [vmem:[%s2544_s7 + $0x54] ss:$8 sps:$4 sm:$0xff]   ;;  %v2318_v35 = vld [vmem:[%s2544_s7 + $0x50] ss:$8 sps:$4 sm:$0xff]  }
  0x1d   : > { %763 = vmatprep.subr.bf16.mxu0 %v2468_v1  ;;  %2164 = vmatprep.subr.bf16.mxu1 %v2468_v1  ;;  %v2313_v32 = vld [vmem:[%s2544_s7 + $0x140] ss:$8 sps:$4 sm:$0xff]   ;;  %v2316_v34 = vld [vmem:[%s2544_s7 + $0x154] ss:$8 sps:$4 sm:$0xff]   ;;  %v2319_v36 = vld [vmem:[%s2544_s7 + $0x150] ss:$8 sps:$4 sm:$0xff]  }
  0x1e   : > { %v2320_v37 = vld [vmem:[%s2544_s7 + $0x64] ss:$8 sps:$4 sm:$0xff]   ;;  %v2324_v39 = vld [vmem:[%s2544_s7 + $0x60] ss:$8 sps:$4 sm:$0xff]   ;;  %v2326_v41 = vld [vmem:[%s2544_s7 + $0x74] ss:$8 sps:$4 sm:$0xff]  }
  0x1f   : > { %v2322_v38 = vld [vmem:[%s2544_s7 + $0x164] ss:$8 sps:$4 sm:$0xff]   ;;  %v2325_v40 = vld [vmem:[%s2544_s7 + $0x160] ss:$8 sps:$4 sm:$0xff]   ;;  %v2328_v42 = vld [vmem:[%s2544_s7 + $0x174] ss:$8 sps:$4 sm:$0xff]  }
  0x20   : > { %764 = vmatpush1.bf16.msra.mxu0 %v2277_v8  ;;  %2176 = vmatpush1.bf16.msra.mxu1 %v2277_v8  ;;  %v2330_v43 = vld [vmem:[%s2544_s7 + $0x70] ss:$8 sps:$4 sm:$0xff]   ;;  %v2332_v45 = vld [vmem:[%s2544_s7 + $0x84] ss:$8 sps:$4 sm:$0xff]   ;;  %v2336_v47 = vld [vmem:[%s2544_s7 + $0x80] ss:$8 sps:$4 sm:$0xff]  }
  0x21   : > { %765 = vmatprep.subr.bf16.mxu0 %v2468_v1  ;;  %2165 = vmatprep.subr.bf16.mxu1 %v2468_v1  ;;  %v2331_v44 = vld [vmem:[%s2544_s7 + $0x170] ss:$8 sps:$4 sm:$0xff]   ;;  %v2334_v46 = vld [vmem:[%s2544_s7 + $0x184] ss:$8 sps:$4 sm:$0xff]   ;;  %v2337_v48 = vld [vmem:[%s2544_s7 + $0x180] ss:$8 sps:$4 sm:$0xff]  }
  0x22   : > { %v2338_v49 = vld [vmem:[%s2544_s7 + $0x94] ss:$8 sps:$4 sm:$0xff]   ;;  %v2342_v51 = vld [vmem:[%s2544_s7 + $0x90] ss:$8 sps:$4 sm:$0xff]   ;;  %v2344_v53 = vld [vmem:[%s2544_s7 + $0xa4] ss:$8 sps:$4 sm:$0xff]  }
  0x23   : > { %v2340_v50 = vld [vmem:[%s2544_s7 + $0x194] ss:$8 sps:$4 sm:$0xff]   ;;  %v2343_v52 = vld [vmem:[%s2544_s7 + $0x190] ss:$8 sps:$4 sm:$0xff]   ;;  %v2346_v54 = vld [vmem:[%s2544_s7 + $0x1a4] ss:$8 sps:$4 sm:$0xff]  }
  0x24   : > { %766 = vmatpush1.bf16.msra.mxu0 %v2278_v9  ;;  %2177 = vmatpush1.bf16.msra.mxu1 %v2278_v9  ;;  %v2348_v55 = vld [vmem:[%s2544_s7 + $0xa0] ss:$8 sps:$4 sm:$0xff]   ;;  %v2350_v57 = vld [vmem:[%s2544_s7 + $0xb4] ss:$8 sps:$4 sm:$0xff]   ;;  %v2354_v59 = vld [vmem:[%s2544_s7 + $0xb0] ss:$8 sps:$4 sm:$0xff]  }
  0x25   : > { %767 = vmatprep.subr.bf16.mxu0 %v2468_v1  ;;  %2166 = vmatprep.subr.bf16.mxu1 %v2468_v1  ;;  %v2349_v56 = vld [vmem:[%s2544_s7 + $0x1a0] ss:$8 sps:$4 sm:$0xff]   ;;  %v2352_v58 = vld [vmem:[%s2544_s7 + $0x1b4] ss:$8 sps:$4 sm:$0xff]   ;;  %v2355_v60 = vld [vmem:[%s2544_s7 + $0x1b0] ss:$8 sps:$4 sm:$0xff]  }
  0x26   : > { %v2356_v61 = vld [vmem:[%s2544_s7 + $0xc4] ss:$8 sps:$4 sm:$0xff]   ;;  %v2360_v63 = vld [vmem:[%s2544_s7 + $0xc0] ss:$8 sps:$4 sm:$0xff]   ;;  %v2364_v2 = vld [vmem:[%s2544_s7 + $0x1d4] ss:$8 sps:$4 sm:$0xff]  }
  0x27   : > { %v2358_v62 = vld [vmem:[%s2544_s7 + $0x1c4] ss:$8 sps:$4 sm:$0xff]   ;;  %v2361_v0 = vld [vmem:[%s2544_s7 + $0x1c0] ss:$8 sps:$4 sm:$0xff]   ;;  %v2366_v3 = vld [vmem:[%s2544_s7 + $0xd0] ss:$8 sps:$4 sm:$0xff]  }
  0x28   : > { %768 = vmatpush1.bf16.msra.mxu0 %v2279_v10  ;;  %2178 = vmatpush1.bf16.msra.mxu1 %v2279_v10  ;;  %v2367_v4 = vld [vmem:[%s2544_s7 + $0x1d0] ss:$8 sps:$4 sm:$0xff]   ;;  %v2368_v5 = vld [vmem:[%s2544_s7 + $0xe4] ss:$8 sps:$4 sm:$0xff]   ;;  %v2372_v7 = vld [vmem:[%s2544_s7 + $0xe0] ss:$8 sps:$4 sm:$0xff]  }
  0x29   : > { %769 = vmatprep.subr.bf16.mxu0 %v2468_v1  ;;  %2167 = vmatprep.subr.bf16.mxu1 %v2468_v1  ;;  %v2370_v6 = vld [vmem:[%s2544_s7 + $0x1e4] ss:$8 sps:$4 sm:$0xff]   ;;  %v2373_v8 = vld [vmem:[%s2544_s7 + $0x1e0] ss:$8 sps:$4 sm:$0xff]   ;;  %v2374_v9 = vld [vmem:[%s2544_s7 + $0xf4] ss:$8 sps:$4 sm:$0xff]  }
  0x2a   : > { %v2376_v10 = vld [vmem:[%s2544_s7 + $0x1f4] ss:$8 sps:$4 sm:$0xff]  }
  0x2c   : > { %770 = vmatpush1.bf16.msra.mxu0 %v2280_v11  ;;  %2179 = vmatpush1.bf16.msra.mxu1 %v2280_v11  ;;  %v2378_v11 = vld [vmem:[%s2544_s7 + $0xf0] ss:$8 sps:$4 sm:$0xff]  }
  0x2d   : > { %771 = vmatprep.subr.bf16.mxu0 %v2468_v1  ;;  %2168 = vmatprep.subr.bf16.mxu1 %v2468_v1 }
  0x30   : > { %772 = vmatpush1.bf16.msra.mxu0 %v2281_v12  ;;  %2180 = vmatpush1.bf16.msra.mxu1 %v2281_v12  ;;  %v2379_v12 = vld [vmem:[%s2544_s7 + $0x1f0] ss:$8 sps:$4 sm:$0xff]  }
  0x31   : > { %773 = vmatprep.subr.bf16.mxu0 %v2468_v1  ;;  %2169 = vmatprep.subr.bf16.mxu1 %v2468_v1 }
  0x34   : > { %774 = vmatpush1.bf16.msra.mxu0 %v2282_v13  ;;  %2181 = vmatpush1.bf16.msra.mxu1 %v2282_v13  ;;  %v2688_v13 = vld [vmem:[%s3085_s2] ss:$0 sm:$0xff] }
  0x35   : > { %775 = vmatprep.subr.bf16.mxu0 %v2468_v1  ;;  %2170 = vmatprep.subr.bf16.mxu1 %v2468_v1  ;;  %v2362_v1 = vld [vmem:[%s2544_s7 + $0xd4] ss:$8 sps:$4 sm:$0xff]   ;;  %s1435_s7 = ssub.s32 (%p2514_p4), 729, %s2524_s23 }
  0x36   : > { %p1436_p8 = scmp.lt.s32.totalorder (%p2514_p4), %s1435_s7, 64 }
  0x38   : > { %776 = vmatpush1.bf16.msra.mxu0 %v2283_v14  ;;  %2182 = vmatpush1.bf16.msra.mxu1 %v2283_v14 }
  0x3b   : > { %786 = vmatmul.mubr.bf16.vlgmr.msra.gmra.mrb[0].mxu0 %v2284_v15  ;;  %914 = vmatmul.mubr.bf16.vlgmr.msra.gmra.mrb[0].mxu1 %v2287_v16 }
  0x3c   : > { %1979 = vmatprep.mubr.msk.bf16.mxu0 %vm656_vm0, %v2290_v17  ;;  %1995 = vmatprep.mubr.msk.bf16.mxu1 %vm656_vm0, %v2292_v18 }
  0x43   : > { %794 = vmatmul.mubr.bf16.gmra.mrb[4].mxu0 %v2294_v19  ;;  %922 = vmatmul.mubr.bf16.gmra.mrb[4].mxu1 %v2295_v20 }
  0x44   : > { %1980 = vmatprep.mubr.msk.bf16.mxu0 %vm656_vm0, %v2296_v21  ;;  %1996 = vmatprep.mubr.msk.bf16.mxu1 %vm656_vm0, %v2298_v22 }
  0x4b   : > { %802 = vmatmul.mubr.bf16.gmra.mrb[8].mxu0 %v2300_v23  ;;  %930 = vmatmul.mubr.bf16.gmra.mrb[8].mxu1 %v2301_v24 }
  0x4c   : > { %1981 = vmatprep.mubr.msk.bf16.mxu0 %vm656_vm0, %v2302_v25  ;;  %1997 = vmatprep.mubr.msk.bf16.mxu1 %vm656_vm0, %v2304_v26 }
  0x53   : > { %810 = vmatmul.mubr.bf16.gmra.mrb[12].mxu0 %v2306_v27  ;;  %938 = vmatmul.mubr.bf16.gmra.mrb[12].mxu1 %v2307_v28 }
  0x54   : > { %1982 = vmatprep.mubr.msk.bf16.mxu0 %vm656_vm0, %v2308_v29  ;;  %1998 = vmatprep.mubr.msk.bf16.mxu1 %vm656_vm0, %v2310_v30 }
  0x5b   : > { %818 = vmatmul.mubr.bf16.gmra.mrb[16].mxu0 %v2312_v31  ;;  %946 = vmatmul.mubr.bf16.gmra.mrb[16].mxu1 %v2313_v32 }
  0x5c   : > { %1983 = vmatprep.mubr.msk.bf16.mxu0 %vm656_vm0, %v2314_v33  ;;  %1999 = vmatprep.mubr.msk.bf16.mxu1 %vm656_vm0, %v2316_v34 }
  0x63   : > { %826 = vmatmul.mubr.bf16.gmra.mrb[20].mxu0 %v2318_v35  ;;  %954 = vmatmul.mubr.bf16.gmra.mrb[20].mxu1 %v2319_v36 }
  0x64   : > { %1984 = vmatprep.mubr.msk.bf16.mxu0 %vm656_vm0, %v2320_v37  ;;  %2000 = vmatprep.mubr.msk.bf16.mxu1 %vm656_vm0, %v2322_v38 }
  0x6b   : > { %834 = vmatmul.mubr.bf16.gmra.mrb[24].mxu0 %v2324_v39  ;;  %962 = vmatmul.mubr.bf16.gmra.mrb[24].mxu1 %v2325_v40 }
  0x6c   : > { %1985 = vmatprep.mubr.msk.bf16.mxu0 %vm656_vm0, %v2326_v41  ;;  %2001 = vmatprep.mubr.msk.bf16.mxu1 %vm656_vm0, %v2328_v42 }
  0x73   : > { %842 = vmatmul.mubr.bf16.gmra.mrb[28].mxu0 %v2330_v43  ;;  %970 = vmatmul.mubr.bf16.gmra.mrb[28].mxu1 %v2331_v44 }
  0x74   : > { %1986 = vmatprep.mubr.msk.bf16.mxu0 %vm656_vm0, %v2332_v45  ;;  %2002 = vmatprep.mubr.msk.bf16.mxu1 %vm656_vm0, %v2334_v46 }
  0x7b   : > { %850 = vmatmul.mubr.bf16.gmra.mrb[32].mxu0 %v2336_v47  ;;  %978 = vmatmul.mubr.bf16.gmra.mrb[32].mxu1 %v2337_v48 }
  0x7c   : > { %1987 = vmatprep.mubr.msk.bf16.mxu0 %vm656_vm0, %v2338_v49  ;;  %2003 = vmatprep.mubr.msk.bf16.mxu1 %vm656_vm0, %v2340_v50 }
  0x83   : > { %858 = vmatmul.mubr.bf16.gmra.mrb[36].mxu0 %v2342_v51  ;;  %986 = vmatmul.mubr.bf16.gmra.mrb[36].mxu1 %v2343_v52 }
  0x84   : > { %1988 = vmatprep.mubr.msk.bf16.mxu0 %vm656_vm0, %v2344_v53  ;;  %2004 = vmatprep.mubr.msk.bf16.mxu1 %vm656_vm0, %v2346_v54 }
  0x8b   : > { %866 = vmatmul.mubr.bf16.gmra.mrb[40].mxu0 %v2348_v55  ;;  %994 = vmatmul.mubr.bf16.gmra.mrb[40].mxu1 %v2349_v56 }
  0x8c   : > { %1989 = vmatprep.mubr.msk.bf16.mxu0 %vm656_vm0, %v2350_v57  ;;  %2005 = vmatprep.mubr.msk.bf16.mxu1 %vm656_vm0, %v2352_v58 }
  0x93   : > { %874 = vmatmul.mubr.bf16.gmra.mrb[44].mxu0 %v2354_v59  ;;  %1002 = vmatmul.mubr.bf16.gmra.mrb[44].mxu1 %v2355_v60 }
  0x94   : > { %1990 = vmatprep.mubr.msk.bf16.mxu0 %vm656_vm0, %v2356_v61  ;;  %2006 = vmatprep.mubr.msk.bf16.mxu1 %vm656_vm0, %v2358_v62 }
  0x9b   : > { %882 = vmatmul.mubr.bf16.gmra.mrb[48].mxu0 %v2360_v63  ;;  %1010 = vmatmul.mubr.bf16.gmra.mrb[48].mxu1 %v2361_v0 }
  0x9c   : > { %1991 = vmatprep.mubr.msk.bf16.mxu0 %vm656_vm0, %v2362_v1  ;;  %2007 = vmatprep.mubr.msk.bf16.mxu1 %vm656_vm0, %v2364_v2 }
  0xa3   : > { %890 = vmatmul.mubr.bf16.gmra.mrb[52].mxu0 %v2366_v3  ;;  %1018 = vmatmul.mubr.bf16.gmra.mrb[52].mxu1 %v2367_v4 }
  0xa4   : > { %1992 = vmatprep.mubr.msk.bf16.mxu0 %vm656_vm0, %v2368_v5  ;;  %2008 = vmatprep.mubr.msk.bf16.mxu1 %vm656_vm0, %v2370_v6 }
  0xab   : > { %898 = vmatmul.mubr.bf16.gmra.mrb[56].mxu0 %v2372_v7  ;;  %1026 = vmatmul.mubr.bf16.gmra.mrb[56].mxu1 %v2373_v8 }
  0xac   : > { %1993 = vmatprep.mubr.msk.bf16.mxu0 %vm656_vm0, %v2374_v9  ;;  %2009 = vmatprep.mubr.msk.bf16.mxu1 %vm656_vm0, %v2376_v10 }
  0xb3   : > { %906 = vmatmul.mubr.bf16.gmra.mrb[60].mxu0 %v2378_v11  ;;  %1034 = vmatmul.mubr.bf16.gmra.mrb[60].mxu1 %v2379_v12 }
 0x10e   : > { %v787_v14 = vpop.f32.mrb[0].mxu0  ;;  %v915_v15 = vpop.f32.mrb[0].mxu1 }
 0x10f   : > { %v788_v16 = vadd.f32 %v2688_v13, %v787_v14  ;;  %v916_v17 = vadd.f32 %v2688_v13, %v915_v15  ;;  %v789_v18 = vpop.f32.mrb[1].mxu0  ;;  %v917_v19 = vpop.f32.mrb[1].mxu1 }
 0x110   : > { %v790_v20 = vpop.f32.mrb[2].mxu0  ;;  %v918_v21 = vpop.f32.mrb[2].mxu1 }
 0x111   : > { %v1042_v22 = vmax.f32 %v788_v16, 0.0  ;;  %v1074_v23 = vmax.f32 %v916_v17, 0.0  ;;  %v791_v24 = vadd.f32 %v2688_v13, %v790_v20  ;;  %v919_v25 = vadd.f32 %v2688_v13, %v918_v21  ;;  %v792_v26 = vpop.f32.mrb[3].mxu0  ;;  %v920_v27 = vpop.f32.mrb[3].mxu1 }
 0x113   : > { %v2092_v28 = vpack.c.bf16 %v1042_v22, %v1042_v22  ;;  %v2124_v29 = vpack.c.bf16 %v1074_v23, %v1074_v23  ;;  %v1043_v30 = vmax.f32 %v791_v24, 0.0  ;;  %v1075_v31 = vmax.f32 %v919_v25, 0.0 }
 0x115   : > { %1363 = vst.msk [vmem:[%s2694_s12] sm:$0xf] %vm1362_vm1, %v2092_v28  ;;  %1395 = vst.msk [vmem:[%s2694_s12 + $0x80] sm:$0xf] %vm1362_vm1, %v2124_v29  ;;  %v2093_v32 = vpack.c.bf16 %v1043_v30, %v1043_v30  ;;  %v2125_v33 = vpack.c.bf16 %v1075_v31, %v1075_v31 }
 0x116   : > { %v795_v34 = vpop.f32.mrb[4].mxu0  ;;  %v923_v35 = vpop.f32.mrb[4].mxu1 }
 0x117   : > { %1364 = vst.msk [vmem:[%s2694_s12 + $0x4] sm:$0xf] %vm1362_vm1, %v2093_v32  ;;  %1396 = vst.msk [vmem:[%s2694_s12 + $0x84] sm:$0xf] %vm1362_vm1, %v2125_v33  ;;  %v796_v36 = vadd.f32 %v2688_v13, %v795_v34  ;;  %v924_v37 = vadd.f32 %v2688_v13, %v923_v35  ;;  %v797_v38 = vpop.f32.mrb[5].mxu0  ;;  %v925_v39 = vpop.f32.mrb[5].mxu1 }
 0x118   : > { %v798_v40 = vpop.f32.mrb[6].mxu0  ;;  %v926_v41 = vpop.f32.mrb[6].mxu1 }
 0x119   : > { %v1044_v42 = vmax.f32 %v796_v36, 0.0  ;;  %v1076_v43 = vmax.f32 %v924_v37, 0.0  ;;  %v799_v44 = vadd.f32 %v2688_v13, %v798_v40  ;;  %v927_v45 = vadd.f32 %v2688_v13, %v926_v41  ;;  %v800_v46 = vpop.f32.mrb[7].mxu0  ;;  %v928_v47 = vpop.f32.mrb[7].mxu1 }
 0x11b   : > { %v2094_v48 = vpack.c.bf16 %v1044_v42, %v1044_v42  ;;  %v2126_v49 = vpack.c.bf16 %v1076_v43, %v1076_v43  ;;  %v1045_v50 = vmax.f32 %v799_v44, 0.0  ;;  %v1077_v51 = vmax.f32 %v927_v45, 0.0 }
 0x11d   : > { %1365 = vst.msk [vmem:[%s2694_s12 + $0x8] sm:$0xf] %vm1362_vm1, %v2094_v48  ;;  %1397 = vst.msk [vmem:[%s2694_s12 + $0x88] sm:$0xf] %vm1362_vm1, %v2126_v49  ;;  %v2095_v52 = vpack.c.bf16 %v1045_v50, %v1045_v50  ;;  %v2127_v53 = vpack.c.bf16 %v1077_v51, %v1077_v51 }
 0x11e   : > { %v803_v54 = vpop.f32.mrb[8].mxu0  ;;  %v931_v55 = vpop.f32.mrb[8].mxu1 }
 0x11f   : > { %1366 = vst.msk [vmem:[%s2694_s12 + $0xc] sm:$0xf] %vm1362_vm1, %v2095_v52  ;;  %1398 = vst.msk [vmem:[%s2694_s12 + $0x8c] sm:$0xf] %vm1362_vm1, %v2127_v53  ;;  %v804_v56 = vadd.f32 %v2688_v13, %v803_v54  ;;  %v932_v57 = vadd.f32 %v2688_v13, %v931_v55  ;;  %v805_v58 = vpop.f32.mrb[9].mxu0  ;;  %v933_v59 = vpop.f32.mrb[9].mxu1 }
 0x120   : > { %v806_v60 = vpop.f32.mrb[10].mxu0  ;;  %v934_v61 = vpop.f32.mrb[10].mxu1 }
 0x121   : > { %v1046_v62 = vmax.f32 %v804_v56, 0.0  ;;  %v1078_v63 = vmax.f32 %v932_v57, 0.0  ;;  %v807_v0 = vadd.f32 %v2688_v13, %v806_v60  ;;  %v935_v1 = vadd.f32 %v2688_v13, %v934_v61  ;;  %v808_v2 = vpop.f32.mrb[11].mxu0  ;;  %v936_v3 = vpop.f32.mrb[11].mxu1 }
 0x123   : > { %v2096_v4 = vpack.c.bf16 %v1046_v62, %v1046_v62  ;;  %v2128_v5 = vpack.c.bf16 %v1078_v63, %v1078_v63  ;;  %v1047_v6 = vmax.f32 %v807_v0, 0.0  ;;  %v1079_v7 = vmax.f32 %v935_v1, 0.0 }
 0x125   : > { %1367 = vst.msk [vmem:[%s2694_s12 + $0x10] sm:$0xf] %vm1362_vm1, %v2096_v4  ;;  %1399 = vst.msk [vmem:[%s2694_s12 + $0x90] sm:$0xf] %vm1362_vm1, %v2128_v5  ;;  %v2097_v8 = vpack.c.bf16 %v1047_v6, %v1047_v6  ;;  %v2129_v9 = vpack.c.bf16 %v1079_v7, %v1079_v7 }
 0x126   : > { %v811_v10 = vpop.f32.mrb[12].mxu0  ;;  %v939_v11 = vpop.f32.mrb[12].mxu1 }
 0x127   : > { %1368 = vst.msk [vmem:[%s2694_s12 + $0x14] sm:$0xf] %vm1362_vm1, %v2097_v8  ;;  %1400 = vst.msk [vmem:[%s2694_s12 + $0x94] sm:$0xf] %vm1362_vm1, %v2129_v9  ;;  %v812_v12 = vadd.f32 %v2688_v13, %v811_v10  ;;  %v940_v14 = vadd.f32 %v2688_v13, %v939_v11  ;;  %v813_v15 = vpop.f32.mrb[13].mxu0  ;;  %v941_v16 = vpop.f32.mrb[13].mxu1 }
 0x128   : > { %v814_v17 = vpop.f32.mrb[14].mxu0  ;;  %v942_v18 = vpop.f32.mrb[14].mxu1 }
 0x129   : > { %v1048_v19 = vmax.f32 %v812_v12, 0.0  ;;  %v1080_v20 = vmax.f32 %v940_v14, 0.0  ;;  %v815_v21 = vadd.f32 %v2688_v13, %v814_v17  ;;  %v943_v22 = vadd.f32 %v2688_v13, %v942_v18  ;;  %v816_v23 = vpop.f32.mrb[15].mxu0  ;;  %v944_v24 = vpop.f32.mrb[15].mxu1 }
 0x12b   : > { %v2098_v25 = vpack.c.bf16 %v1048_v19, %v1048_v19  ;;  %v2130_v26 = vpack.c.bf16 %v1080_v20, %v1080_v20  ;;  %v1049_v27 = vmax.f32 %v815_v21, 0.0  ;;  %v1081_v28 = vmax.f32 %v943_v22, 0.0 }
 0x12d   : > { %1369 = vst.msk [vmem:[%s2694_s12 + $0x18] sm:$0xf] %vm1362_vm1, %v2098_v25  ;;  %1401 = vst.msk [vmem:[%s2694_s12 + $0x98] sm:$0xf] %vm1362_vm1, %v2130_v26  ;;  %v2099_v29 = vpack.c.bf16 %v1049_v27, %v1049_v27  ;;  %v2131_v30 = vpack.c.bf16 %v1081_v28, %v1081_v28 }
 0x12e   : > { %v819_v31 = vpop.f32.mrb[16].mxu0  ;;  %v947_v32 = vpop.f32.mrb[16].mxu1 }
 0x12f   : > { %1370 = vst.msk [vmem:[%s2694_s12 + $0x1c] sm:$0xf] %vm1362_vm1, %v2099_v29  ;;  %1402 = vst.msk [vmem:[%s2694_s12 + $0x9c] sm:$0xf] %vm1362_vm1, %v2131_v30  ;;  %v820_v33 = vadd.f32 %v2688_v13, %v819_v31  ;;  %v948_v34 = vadd.f32 %v2688_v13, %v947_v32  ;;  %v821_v35 = vpop.f32.mrb[17].mxu0  ;;  %v949_v36 = vpop.f32.mrb[17].mxu1 }
 0x130   : > { %v822_v37 = vpop.f32.mrb[18].mxu0  ;;  %v950_v38 = vpop.f32.mrb[18].mxu1 }
 0x131   : > { %v1050_v39 = vmax.f32 %v820_v33, 0.0  ;;  %v1082_v40 = vmax.f32 %v948_v34, 0.0  ;;  %v823_v41 = vadd.f32 %v2688_v13, %v822_v37  ;;  %v951_v42 = vadd.f32 %v2688_v13, %v950_v38  ;;  %v824_v43 = vpop.f32.mrb[19].mxu0  ;;  %v952_v44 = vpop.f32.mrb[19].mxu1 }
 0x133   : > { %v2100_v45 = vpack.c.bf16 %v1050_v39, %v1050_v39  ;;  %v2132_v46 = vpack.c.bf16 %v1082_v40, %v1082_v40  ;;  %v1051_v47 = vmax.f32 %v823_v41, 0.0  ;;  %v1083_v48 = vmax.f32 %v951_v42, 0.0 }
 0x135   : > { %1371 = vst.msk [vmem:[%s2694_s12 + $0x20] sm:$0xf] %vm1362_vm1, %v2100_v45  ;;  %1403 = vst.msk [vmem:[%s2694_s12 + $0xa0] sm:$0xf] %vm1362_vm1, %v2132_v46  ;;  %v2101_v49 = vpack.c.bf16 %v1051_v47, %v1051_v47  ;;  %v2133_v50 = vpack.c.bf16 %v1083_v48, %v1083_v48 }
 0x136   : > { %v827_v51 = vpop.f32.mrb[20].mxu0  ;;  %v955_v52 = vpop.f32.mrb[20].mxu1 }
 0x137   : > { %1372 = vst.msk [vmem:[%s2694_s12 + $0x24] sm:$0xf] %vm1362_vm1, %v2101_v49  ;;  %1404 = vst.msk [vmem:[%s2694_s12 + $0xa4] sm:$0xf] %vm1362_vm1, %v2133_v50  ;;  %v828_v53 = vadd.f32 %v2688_v13, %v827_v51  ;;  %v956_v54 = vadd.f32 %v2688_v13, %v955_v52  ;;  %v829_v55 = vpop.f32.mrb[21].mxu0  ;;  %v957_v56 = vpop.f32.mrb[21].mxu1 }
 0x138   : > { %v830_v57 = vpop.f32.mrb[22].mxu0  ;;  %v958_v58 = vpop.f32.mrb[22].mxu1 }
 0x139   : > { %v1052_v59 = vmax.f32 %v828_v53, 0.0  ;;  %v1084_v60 = vmax.f32 %v956_v54, 0.0  ;;  %v831_v61 = vadd.f32 %v2688_v13, %v830_v57  ;;  %v959_v62 = vadd.f32 %v2688_v13, %v958_v58  ;;  %v832_v63 = vpop.f32.mrb[23].mxu0  ;;  %v960_v0 = vpop.f32.mrb[23].mxu1 }
 0x13b   : > { %v2102_v1 = vpack.c.bf16 %v1052_v59, %v1052_v59  ;;  %v2134_v2 = vpack.c.bf16 %v1084_v60, %v1084_v60  ;;  %v1053_v3 = vmax.f32 %v831_v61, 0.0  ;;  %v1085_v4 = vmax.f32 %v959_v62, 0.0 }
 0x13d   : > { %1373 = vst.msk [vmem:[%s2694_s12 + $0x28] sm:$0xf] %vm1362_vm1, %v2102_v1  ;;  %1405 = vst.msk [vmem:[%s2694_s12 + $0xa8] sm:$0xf] %vm1362_vm1, %v2134_v2  ;;  %v2103_v5 = vpack.c.bf16 %v1053_v3, %v1053_v3  ;;  %v2135_v6 = vpack.c.bf16 %v1085_v4, %v1085_v4 }
 0x13e   : > { %v835_v7 = vpop.f32.mrb[24].mxu0  ;;  %v963_v8 = vpop.f32.mrb[24].mxu1 }
 0x13f   : > { %1374 = vst.msk [vmem:[%s2694_s12 + $0x2c] sm:$0xf] %vm1362_vm1, %v2103_v5  ;;  %1406 = vst.msk [vmem:[%s2694_s12 + $0xac] sm:$0xf] %vm1362_vm1, %v2135_v6  ;;  %v836_v9 = vadd.f32 %v2688_v13, %v835_v7  ;;  %v964_v10 = vadd.f32 %v2688_v13, %v963_v8  ;;  %v837_v11 = vpop.f32.mrb[25].mxu0  ;;  %v965_v12 = vpop.f32.mrb[25].mxu1 }
 0x140   : > { %v838_v14 = vpop.f32.mrb[26].mxu0  ;;  %v966_v15 = vpop.f32.mrb[26].mxu1 }
 0x141   : > { %v1054_v16 = vmax.f32 %v836_v9, 0.0  ;;  %v1086_v17 = vmax.f32 %v964_v10, 0.0  ;;  %v839_v18 = vadd.f32 %v2688_v13, %v838_v14  ;;  %v967_v19 = vadd.f32 %v2688_v13, %v966_v15  ;;  %v840_v20 = vpop.f32.mrb[27].mxu0  ;;  %v968_v21 = vpop.f32.mrb[27].mxu1 }
 0x143   : > { %v2104_v22 = vpack.c.bf16 %v1054_v16, %v1054_v16  ;;  %v2136_v23 = vpack.c.bf16 %v1086_v17, %v1086_v17  ;;  %v1055_v24 = vmax.f32 %v839_v18, 0.0  ;;  %v1087_v25 = vmax.f32 %v967_v19, 0.0 }
 0x145   : > { %1375 = vst.msk [vmem:[%s2694_s12 + $0x30] sm:$0xf] %vm1362_vm1, %v2104_v22  ;;  %1407 = vst.msk [vmem:[%s2694_s12 + $0xb0] sm:$0xf] %vm1362_vm1, %v2136_v23  ;;  %v2105_v26 = vpack.c.bf16 %v1055_v24, %v1055_v24  ;;  %v2137_v27 = vpack.c.bf16 %v1087_v25, %v1087_v25 }
 0x146   : > { %v843_v28 = vpop.f32.mrb[28].mxu0  ;;  %v971_v29 = vpop.f32.mrb[28].mxu1 }
 0x147   : > { %1376 = vst.msk [vmem:[%s2694_s12 + $0x34] sm:$0xf] %vm1362_vm1, %v2105_v26  ;;  %1408 = vst.msk [vmem:[%s2694_s12 + $0xb4] sm:$0xf] %vm1362_vm1, %v2137_v27  ;;  %v844_v30 = vadd.f32 %v2688_v13, %v843_v28  ;;  %v972_v31 = vadd.f32 %v2688_v13, %v971_v29  ;;  %v845_v32 = vpop.f32.mrb[29].mxu0  ;;  %v973_v33 = vpop.f32.mrb[29].mxu1 }
 0x148   : > { %v846_v34 = vpop.f32.mrb[30].mxu0  ;;  %v974_v35 = vpop.f32.mrb[30].mxu1 }
 0x149   : > { %v1056_v36 = vmax.f32 %v844_v30, 0.0  ;;  %v1088_v37 = vmax.f32 %v972_v31, 0.0  ;;  %v847_v38 = vadd.f32 %v2688_v13, %v846_v34  ;;  %v975_v39 = vadd.f32 %v2688_v13, %v974_v35  ;;  %v848_v40 = vpop.f32.mrb[31].mxu0  ;;  %v976_v41 = vpop.f32.mrb[31].mxu1 }
 0x14b   : > { %v2106_v42 = vpack.c.bf16 %v1056_v36, %v1056_v36  ;;  %v2138_v43 = vpack.c.bf16 %v1088_v37, %v1088_v37  ;;  %v1057_v44 = vmax.f32 %v847_v38, 0.0  ;;  %v1089_v45 = vmax.f32 %v975_v39, 0.0 }
 0x14d   : > { %1377 = vst.msk [vmem:[%s2694_s12 + $0x38] sm:$0xf] %vm1362_vm1, %v2106_v42  ;;  %1409 = vst.msk [vmem:[%s2694_s12 + $0xb8] sm:$0xf] %vm1362_vm1, %v2138_v43  ;;  %v2107_v46 = vpack.c.bf16 %v1057_v44, %v1057_v44  ;;  %v2139_v47 = vpack.c.bf16 %v1089_v45, %v1089_v45 }
 0x14e   : > { %v851_v48 = vpop.f32.mrb[32].mxu0  ;;  %v979_v49 = vpop.f32.mrb[32].mxu1 }
 0x14f   : > { %1378 = vst.msk [vmem:[%s2694_s12 + $0x3c] sm:$0xf] %vm1362_vm1, %v2107_v46  ;;  %1410 = vst.msk [vmem:[%s2694_s12 + $0xbc] sm:$0xf] %vm1362_vm1, %v2139_v47  ;;  %v852_v50 = vadd.f32 %v2688_v13, %v851_v48  ;;  %v980_v51 = vadd.f32 %v2688_v13, %v979_v49  ;;  %v853_v52 = vpop.f32.mrb[33].mxu0  ;;  %v981_v53 = vpop.f32.mrb[33].mxu1 }
 0x150   : > { %v854_v54 = vpop.f32.mrb[34].mxu0  ;;  %v982_v55 = vpop.f32.mrb[34].mxu1 }
 0x151   : > { %v1058_v56 = vmax.f32 %v852_v50, 0.0  ;;  %v1090_v57 = vmax.f32 %v980_v51, 0.0  ;;  %v855_v58 = vadd.f32 %v2688_v13, %v854_v54  ;;  %v983_v59 = vadd.f32 %v2688_v13, %v982_v55  ;;  %v856_v60 = vpop.f32.mrb[35].mxu0  ;;  %v984_v61 = vpop.f32.mrb[35].mxu1 }
 0x153   : > { %v2108_v62 = vpack.c.bf16 %v1058_v56, %v1058_v56  ;;  %v2140_v63 = vpack.c.bf16 %v1090_v57, %v1090_v57  ;;  %v1059_v0 = vmax.f32 %v855_v58, 0.0  ;;  %v1091_v1 = vmax.f32 %v983_v59, 0.0 }
 0x155   : > { %1379 = vst.msk [vmem:[%s2694_s12 + $0x40] sm:$0xf] %vm1362_vm1, %v2108_v62  ;;  %1411 = vst.msk [vmem:[%s2694_s12 + $0xc0] sm:$0xf] %vm1362_vm1, %v2140_v63  ;;  %v2109_v2 = vpack.c.bf16 %v1059_v0, %v1059_v0  ;;  %v2141_v3 = vpack.c.bf16 %v1091_v1, %v1091_v1 }
 0x156   : > { %v859_v4 = vpop.f32.mrb[36].mxu0  ;;  %v987_v5 = vpop.f32.mrb[36].mxu1 }
 0x157   : > { %1380 = vst.msk [vmem:[%s2694_s12 + $0x44] sm:$0xf] %vm1362_vm1, %v2109_v2  ;;  %1412 = vst.msk [vmem:[%s2694_s12 + $0xc4] sm:$0xf] %vm1362_vm1, %v2141_v3  ;;  %v860_v6 = vadd.f32 %v2688_v13, %v859_v4  ;;  %v988_v7 = vadd.f32 %v2688_v13, %v987_v5  ;;  %v861_v8 = vpop.f32.mrb[37].mxu0  ;;  %v989_v9 = vpop.f32.mrb[37].mxu1 }
 0x158   : > { %v862_v10 = vpop.f32.mrb[38].mxu0  ;;  %v990_v11 = vpop.f32.mrb[38].mxu1 }
 0x159   : > { %v1060_v12 = vmax.f32 %v860_v6, 0.0  ;;  %v1092_v14 = vmax.f32 %v988_v7, 0.0  ;;  %v863_v15 = vadd.f32 %v2688_v13, %v862_v10  ;;  %v991_v16 = vadd.f32 %v2688_v13, %v990_v11  ;;  %v864_v17 = vpop.f32.mrb[39].mxu0  ;;  %v992_v18 = vpop.f32.mrb[39].mxu1 }
 0x15b   : > { %v2110_v19 = vpack.c.bf16 %v1060_v12, %v1060_v12  ;;  %v2142_v20 = vpack.c.bf16 %v1092_v14, %v1092_v14  ;;  %v1061_v21 = vmax.f32 %v863_v15, 0.0  ;;  %v1093_v22 = vmax.f32 %v991_v16, 0.0 }
 0x15d   : > { %1381 = vst.msk [vmem:[%s2694_s12 + $0x48] sm:$0xf] %vm1362_vm1, %v2110_v19  ;;  %1413 = vst.msk [vmem:[%s2694_s12 + $0xc8] sm:$0xf] %vm1362_vm1, %v2142_v20  ;;  %v2111_v23 = vpack.c.bf16 %v1061_v21, %v1061_v21  ;;  %v2143_v24 = vpack.c.bf16 %v1093_v22, %v1093_v22 }
 0x15e   : > { %v867_v25 = vpop.f32.mrb[40].mxu0  ;;  %v995_v26 = vpop.f32.mrb[40].mxu1 }
 0x15f   : > { %1382 = vst.msk [vmem:[%s2694_s12 + $0x4c] sm:$0xf] %vm1362_vm1, %v2111_v23  ;;  %1414 = vst.msk [vmem:[%s2694_s12 + $0xcc] sm:$0xf] %vm1362_vm1, %v2143_v24  ;;  %v868_v27 = vadd.f32 %v2688_v13, %v867_v25  ;;  %v996_v28 = vadd.f32 %v2688_v13, %v995_v26  ;;  %v869_v29 = vpop.f32.mrb[41].mxu0  ;;  %v997_v30 = vpop.f32.mrb[41].mxu1 }
 0x160   : > { %v870_v31 = vpop.f32.mrb[42].mxu0  ;;  %v998_v32 = vpop.f32.mrb[42].mxu1 }
 0x161   : > { %v1062_v33 = vmax.f32 %v868_v27, 0.0  ;;  %v1094_v34 = vmax.f32 %v996_v28, 0.0  ;;  %v871_v35 = vadd.f32 %v2688_v13, %v870_v31  ;;  %v999_v36 = vadd.f32 %v2688_v13, %v998_v32  ;;  %v872_v37 = vpop.f32.mrb[43].mxu0  ;;  %v1000_v38 = vpop.f32.mrb[43].mxu1 }
 0x163   : > { %v2112_v39 = vpack.c.bf16 %v1062_v33, %v1062_v33  ;;  %v2144_v40 = vpack.c.bf16 %v1094_v34, %v1094_v34  ;;  %v1063_v41 = vmax.f32 %v871_v35, 0.0  ;;  %v1095_v42 = vmax.f32 %v999_v36, 0.0 }
 0x165   : > { %1383 = vst.msk [vmem:[%s2694_s12 + $0x50] sm:$0xf] %vm1362_vm1, %v2112_v39  ;;  %1415 = vst.msk [vmem:[%s2694_s12 + $0xd0] sm:$0xf] %vm1362_vm1, %v2144_v40  ;;  %v2113_v43 = vpack.c.bf16 %v1063_v41, %v1063_v41  ;;  %v2145_v44 = vpack.c.bf16 %v1095_v42, %v1095_v42 }
 0x166   : > { %v875_v45 = vpop.f32.mrb[44].mxu0  ;;  %v1003_v46 = vpop.f32.mrb[44].mxu1 }
 0x167   : > { %1384 = vst.msk [vmem:[%s2694_s12 + $0x54] sm:$0xf] %vm1362_vm1, %v2113_v43  ;;  %1416 = vst.msk [vmem:[%s2694_s12 + $0xd4] sm:$0xf] %vm1362_vm1, %v2145_v44  ;;  %v876_v47 = vadd.f32 %v2688_v13, %v875_v45  ;;  %v1004_v48 = vadd.f32 %v2688_v13, %v1003_v46  ;;  %v877_v49 = vpop.f32.mrb[45].mxu0  ;;  %v1005_v50 = vpop.f32.mrb[45].mxu1 }
 0x168   : > { %v878_v51 = vpop.f32.mrb[46].mxu0  ;;  %v1006_v52 = vpop.f32.mrb[46].mxu1 }
 0x169   : > { %v1064_v53 = vmax.f32 %v876_v47, 0.0  ;;  %v1096_v54 = vmax.f32 %v1004_v48, 0.0  ;;  %v879_v55 = vadd.f32 %v2688_v13, %v878_v51  ;;  %v1007_v56 = vadd.f32 %v2688_v13, %v1006_v52  ;;  %v880_v57 = vpop.f32.mrb[47].mxu0  ;;  %v1008_v58 = vpop.f32.mrb[47].mxu1 }
 0x16b   : > { %v2114_v59 = vpack.c.bf16 %v1064_v53, %v1064_v53  ;;  %v2146_v60 = vpack.c.bf16 %v1096_v54, %v1096_v54  ;;  %v1065_v61 = vmax.f32 %v879_v55, 0.0  ;;  %v1097_v62 = vmax.f32 %v1007_v56, 0.0 }
 0x16d   : > { %1385 = vst.msk [vmem:[%s2694_s12 + $0x58] sm:$0xf] %vm1362_vm1, %v2114_v59  ;;  %1417 = vst.msk [vmem:[%s2694_s12 + $0xd8] sm:$0xf] %vm1362_vm1, %v2146_v60  ;;  %v2115_v63 = vpack.c.bf16 %v1065_v61, %v1065_v61  ;;  %v2147_v0 = vpack.c.bf16 %v1097_v62, %v1097_v62 }
 0x16e   : > { %v883_v1 = vpop.f32.mrb[48].mxu0  ;;  %v1011_v2 = vpop.f32.mrb[48].mxu1 }
 0x16f   : > { %1386 = vst.msk [vmem:[%s2694_s12 + $0x5c] sm:$0xf] %vm1362_vm1, %v2115_v63  ;;  %1418 = vst.msk [vmem:[%s2694_s12 + $0xdc] sm:$0xf] %vm1362_vm1, %v2147_v0  ;;  %v884_v3 = vadd.f32 %v2688_v13, %v883_v1  ;;  %v1012_v4 = vadd.f32 %v2688_v13, %v1011_v2  ;;  %v885_v5 = vpop.f32.mrb[49].mxu0  ;;  %v1013_v6 = vpop.f32.mrb[49].mxu1 }
 0x170   : > { %v886_v7 = vpop.f32.mrb[50].mxu0  ;;  %v1014_v8 = vpop.f32.mrb[50].mxu1 }
 0x171   : > { %v1066_v9 = vmax.f32 %v884_v3, 0.0  ;;  %v1098_v10 = vmax.f32 %v1012_v4, 0.0  ;;  %v887_v11 = vadd.f32 %v2688_v13, %v886_v7  ;;  %v1015_v12 = vadd.f32 %v2688_v13, %v1014_v8  ;;  %v888_v14 = vpop.f32.mrb[51].mxu0  ;;  %v1016_v15 = vpop.f32.mrb[51].mxu1 }
 0x173   : > { %v2116_v16 = vpack.c.bf16 %v1066_v9, %v1066_v9  ;;  %v2148_v17 = vpack.c.bf16 %v1098_v10, %v1098_v10  ;;  %v1067_v18 = vmax.f32 %v887_v11, 0.0  ;;  %v1099_v19 = vmax.f32 %v1015_v12, 0.0 }
 0x175   : > { %1387 = vst.msk [vmem:[%s2694_s12 + $0x60] sm:$0xf] %vm1362_vm1, %v2116_v16  ;;  %1419 = vst.msk [vmem:[%s2694_s12 + $0xe0] sm:$0xf] %vm1362_vm1, %v2148_v17  ;;  %v2117_v20 = vpack.c.bf16 %v1067_v18, %v1067_v18  ;;  %v2149_v21 = vpack.c.bf16 %v1099_v19, %v1099_v19 }
 0x176   : > { %v891_v22 = vpop.f32.mrb[52].mxu0  ;;  %v1019_v23 = vpop.f32.mrb[52].mxu1 }
 0x177   : > { %1388 = vst.msk [vmem:[%s2694_s12 + $0x64] sm:$0xf] %vm1362_vm1, %v2117_v20  ;;  %1420 = vst.msk [vmem:[%s2694_s12 + $0xe4] sm:$0xf] %vm1362_vm1, %v2149_v21  ;;  %v892_v24 = vadd.f32 %v2688_v13, %v891_v22  ;;  %v1020_v25 = vadd.f32 %v2688_v13, %v1019_v23  ;;  %v893_v26 = vpop.f32.mrb[53].mxu0  ;;  %v1021_v27 = vpop.f32.mrb[53].mxu1 }
 0x178   : > { %v894_v28 = vpop.f32.mrb[54].mxu0  ;;  %v1022_v29 = vpop.f32.mrb[54].mxu1 }
 0x179   : > { %v1068_v30 = vmax.f32 %v892_v24, 0.0  ;;  %v1100_v31 = vmax.f32 %v1020_v25, 0.0  ;;  %v895_v32 = vadd.f32 %v2688_v13, %v894_v28  ;;  %v1023_v33 = vadd.f32 %v2688_v13, %v1022_v29  ;;  %v896_v34 = vpop.f32.mrb[55].mxu0  ;;  %v1024_v35 = vpop.f32.mrb[55].mxu1 }
 0x17b   : > { %v2118_v36 = vpack.c.bf16 %v1068_v30, %v1068_v30  ;;  %v2150_v37 = vpack.c.bf16 %v1100_v31, %v1100_v31  ;;  %v1069_v38 = vmax.f32 %v895_v32, 0.0  ;;  %v1101_v39 = vmax.f32 %v1023_v33, 0.0 }
 0x17d   : > { %1389 = vst.msk [vmem:[%s2694_s12 + $0x68] sm:$0xf] %vm1362_vm1, %v2118_v36  ;;  %1421 = vst.msk [vmem:[%s2694_s12 + $0xe8] sm:$0xf] %vm1362_vm1, %v2150_v37  ;;  %v2119_v40 = vpack.c.bf16 %v1069_v38, %v1069_v38  ;;  %v2151_v41 = vpack.c.bf16 %v1101_v39, %v1101_v39 }
 0x17e   : > { %v899_v42 = vpop.f32.mrb[56].mxu0  ;;  %v1027_v43 = vpop.f32.mrb[56].mxu1 }
 0x17f   : > { %1390 = vst.msk [vmem:[%s2694_s12 + $0x6c] sm:$0xf] %vm1362_vm1, %v2119_v40  ;;  %1422 = vst.msk [vmem:[%s2694_s12 + $0xec] sm:$0xf] %vm1362_vm1, %v2151_v41  ;;  %v900_v44 = vadd.f32 %v2688_v13, %v899_v42  ;;  %v1028_v45 = vadd.f32 %v2688_v13, %v1027_v43  ;;  %v901_v46 = vpop.f32.mrb[57].mxu0  ;;  %v1029_v47 = vpop.f32.mrb[57].mxu1 }
 0x180   : > { %v902_v48 = vpop.f32.mrb[58].mxu0  ;;  %v1030_v49 = vpop.f32.mrb[58].mxu1 }
 0x181   : > { %v1070_v50 = vmax.f32 %v900_v44, 0.0  ;;  %v1102_v51 = vmax.f32 %v1028_v45, 0.0  ;;  %v903_v52 = vadd.f32 %v2688_v13, %v902_v48  ;;  %v1031_v53 = vadd.f32 %v2688_v13, %v1030_v49  ;;  %v904_v54 = vpop.f32.mrb[59].mxu0  ;;  %v1032_v55 = vpop.f32.mrb[59].mxu1 }
 0x183   : > { %v2120_v56 = vpack.c.bf16 %v1070_v50, %v1070_v50  ;;  %v2152_v57 = vpack.c.bf16 %v1102_v51, %v1102_v51  ;;  %v1071_v58 = vmax.f32 %v903_v52, 0.0  ;;  %v1103_v59 = vmax.f32 %v1031_v53, 0.0 }
 0x185   : > { %1391 = vst.msk [vmem:[%s2694_s12 + $0x70] sm:$0xf] %vm1362_vm1, %v2120_v56  ;;  %1423 = vst.msk [vmem:[%s2694_s12 + $0xf0] sm:$0xf] %vm1362_vm1, %v2152_v57  ;;  %v2121_v60 = vpack.c.bf16 %v1071_v58, %v1071_v58  ;;  %v2153_v61 = vpack.c.bf16 %v1103_v59, %v1103_v59 }
 0x186   : > { %v907_v62 = vpop.f32.mrb[60].mxu0  ;;  %v1035_v63 = vpop.f32.mrb[60].mxu1 }
 0x187   : > { %1392 = vst.msk [vmem:[%s2694_s12 + $0x74] sm:$0xf] %vm1362_vm1, %v2121_v60  ;;  %1424 = vst.msk [vmem:[%s2694_s12 + $0xf4] sm:$0xf] %vm1362_vm1, %v2153_v61  ;;  %v908_v0 = vadd.f32 %v2688_v13, %v907_v62  ;;  %v1036_v1 = vadd.f32 %v2688_v13, %v1035_v63  ;;  %v909_v2 = vpop.f32.mrb[61].mxu0  ;;  %v1037_v3 = vpop.f32.mrb[61].mxu1 }
 0x188   : > { %v910_v4 = vpop.f32.mrb[62].mxu0  ;;  %v1038_v5 = vpop.f32.mrb[62].mxu1 }
 0x189   : > { %v1072_v6 = vmax.f32 %v908_v0, 0.0  ;;  %v1104_v7 = vmax.f32 %v1036_v1, 0.0  ;;  %v911_v8 = vadd.f32 %v2688_v13, %v910_v4  ;;  %v1039_v9 = vadd.f32 %v2688_v13, %v1038_v5  ;;  %v912_v10 = vpop.f32.mrb[63].mxu0  ;;  %v1040_v11 = vpop.f32.mrb[63].mxu1  ;;  %1433 = sbr.rel (!%p2514_p4) target bundleno = 491 (0x1eb), region = 36 }
 0x18b   : > { %v2122_v12 = vpack.c.bf16 %v1072_v6, %v1072_v6  ;;  %v2154_v14 = vpack.c.bf16 %v1104_v7, %v1104_v7  ;;  %v1073_v15 = vmax.f32 %v911_v8, 0.0  ;;  %v1105_v16 = vmax.f32 %v1039_v9, 0.0 }
 0x18d   : > { %1393 = vst.msk [vmem:[%s2694_s12 + $0x78] sm:$0xf] %vm1362_vm1, %v2122_v12  ;;  %1425 = vst.msk [vmem:[%s2694_s12 + $0xf8] sm:$0xf] %vm1362_vm1, %v2154_v14  ;;  %v2123_v17 = vpack.c.bf16 %v1073_v15, %v1073_v15  ;;  %v2155_v18 = vpack.c.bf16 %v1105_v16, %v1105_v16 }
 0x18f   : > { %1394 = vst.msk [vmem:[%s2694_s12 + $0x7c] sm:$0xf] %vm1362_vm1, %v2123_v17  ;;  %1426 = vst.msk [vmem:[%s2694_s12 + $0xfc] sm:$0xf] %vm1362_vm1, %v2155_v18 }
 0x190   : > { %s3095_s7 = smov (!%p1436_p8, %s1435_s7), 64 }
 0x191   : > { %s2076_s17 = sshll.u32 %s3095_s7, 6 }
 0x192   : > { %p2079_p9 = scmp.eq.s32.totalorder %s2076_s17, 0 }
 0x193   : > { %s2897_s18 = sshrl.u32 (!%p2079_p9), %s3095_s7, 6 }
 0x194   : > { %1444 = sbr.rel (%p2079_p9) target bundleno = 491 (0x1eb), region = 40  ;;  %p2080_p10 = scmp.le.s32.totalorder (!%p2079_p9), %s2897_s18, 0 }
 0x19b   : > { %1849 = sbr.rel (%p2080_p10) target bundleno = 470 (0x1d6), region = 112  ;;  %s3088_s15 = smov (!%p2080_p10), %s2891_s14 }
 0x19c   : > { %s3089_s20 = smov (!%p2080_p10), %s2694_s12  ;;  %s2906_s23 = smov (!%p2080_p10), 0  }
 0x19d   : > { %s2908_s21 = smov (!%p2080_p10), 0  }
 0x1a2 LB: >> { %v1460_v13 = vld [vmem:[%s2442_s20] sm:$0xf]  ;;  %v1462_v19 = vld [vmem:[%s2442_s20 + $0x4] sm:$0xf]  ;;  %v1464_v20 = vld [vmem:[%s2442_s20 + $0x8] sm:$0xf]  ;;  %s2450_s21 = sphi %s2908_s21, %s1454_s21   ;;  %s2446_s23 = sphi %s2906_s23, %s3090_s23   ;;  %s2442_s20 = sphi %s3089_s20, %s1593_s20   ;;  %s2438_s15 = sphi %s3088_s15, %s1594_s15  }
 0x1a3   : >> { %1461 = vst [vmem:[%s2438_s15] sm:$0xf] %v1460_v13  ;;  %1463 = vst [vmem:[%s2438_s15 + $0x4] sm:$0xf] %v1462_v19  ;;  %v1466_v21 = vld [vmem:[%s2442_s20 + $0xc] sm:$0xf]  ;;  %s1588_s22 = sadd.s32 1, %s2446_s23 }
 0x1a4   : >> { %1465 = vst [vmem:[%s2438_s15 + $0x8] sm:$0xf] %v1464_v20  ;;  %v1468_v22 = vld [vmem:[%s2442_s20 + $0x10] sm:$0xf]  ;;  %v1470_v23 = vld [vmem:[%s2442_s20 + $0x14] sm:$0xf]  ;;  %p1589_p11 = scmp.ge.s32.totalorder %s1588_s22, %s2897_s18 }
 0x1a5   : >> { %1467 = vst [vmem:[%s2438_s15 + $0xc] sm:$0xf] %v1466_v21  ;;  %1469 = vst [vmem:[%s2438_s15 + $0x10] sm:$0xf] %v1468_v22  ;;  %v1472_v24 = vld [vmem:[%s2442_s20 + $0x18] sm:$0xf] }
 0x1a6   : >> { %1471 = vst [vmem:[%s2438_s15 + $0x14] sm:$0xf] %v1470_v23  ;;  %v1474_v25 = vld [vmem:[%s2442_s20 + $0x1c] sm:$0xf]  ;;  %v1476_v26 = vld [vmem:[%s2442_s20 + $0x20] sm:$0xf] }
 0x1a7   : >> { %1473 = vst [vmem:[%s2438_s15 + $0x18] sm:$0xf] %v1472_v24  ;;  %1475 = vst [vmem:[%s2438_s15 + $0x1c] sm:$0xf] %v1474_v25  ;;  %v1478_v27 = vld [vmem:[%s2442_s20 + $0x24] sm:$0xf] }
 0x1a8   : >> { %1477 = vst [vmem:[%s2438_s15 + $0x20] sm:$0xf] %v1476_v26  ;;  %v1480_v28 = vld [vmem:[%s2442_s20 + $0x28] sm:$0xf]  ;;  %v1482_v29 = vld [vmem:[%s2442_s20 + $0x2c] sm:$0xf] }
 0x1a9   : >> { %1479 = vst [vmem:[%s2438_s15 + $0x24] sm:$0xf] %v1478_v27  ;;  %1481 = vst [vmem:[%s2438_s15 + $0x28] sm:$0xf] %v1480_v28  ;;  %v1484_v30 = vld [vmem:[%s2442_s20 + $0x30] sm:$0xf] }
 0x1aa   : >> { %1483 = vst [vmem:[%s2438_s15 + $0x2c] sm:$0xf] %v1482_v29  ;;  %v1486_v31 = vld [vmem:[%s2442_s20 + $0x34] sm:$0xf]  ;;  %v1488_v32 = vld [vmem:[%s2442_s20 + $0x38] sm:$0xf] }
 0x1ab   : >> { %1485 = vst [vmem:[%s2438_s15 + $0x30] sm:$0xf] %v1484_v30  ;;  %1487 = vst [vmem:[%s2438_s15 + $0x34] sm:$0xf] %v1486_v31  ;;  %v1490_v33 = vld [vmem:[%s2442_s20 + $0x3c] sm:$0xf] }
 0x1ac   : >> { %1489 = vst [vmem:[%s2438_s15 + $0x38] sm:$0xf] %v1488_v32  ;;  %v1492_v34 = vld [vmem:[%s2442_s20 + $0x40] sm:$0xf]  ;;  %v1494_v35 = vld [vmem:[%s2442_s20 + $0x44] sm:$0xf] }
 0x1ad   : >> { %1491 = vst [vmem:[%s2438_s15 + $0x3c] sm:$0xf] %v1490_v33  ;;  %1493 = vst [vmem:[%s2438_s15 + $0x40] sm:$0xf] %v1492_v34  ;;  %v1496_v36 = vld [vmem:[%s2442_s20 + $0x48] sm:$0xf] }
 0x1ae   : >> { %1495 = vst [vmem:[%s2438_s15 + $0x44] sm:$0xf] %v1494_v35  ;;  %v1498_v37 = vld [vmem:[%s2442_s20 + $0x4c] sm:$0xf]  ;;  %v1500_v38 = vld [vmem:[%s2442_s20 + $0x50] sm:$0xf] }
 0x1af   : >> { %1497 = vst [vmem:[%s2438_s15 + $0x48] sm:$0xf] %v1496_v36  ;;  %1499 = vst [vmem:[%s2438_s15 + $0x4c] sm:$0xf] %v1498_v37  ;;  %v1502_v39 = vld [vmem:[%s2442_s20 + $0x54] sm:$0xf] }
 0x1b0   : >> { %1501 = vst [vmem:[%s2438_s15 + $0x50] sm:$0xf] %v1500_v38  ;;  %v1504_v40 = vld [vmem:[%s2442_s20 + $0x58] sm:$0xf]  ;;  %v1506_v41 = vld [vmem:[%s2442_s20 + $0x5c] sm:$0xf] }
 0x1b1   : >> { %1503 = vst [vmem:[%s2438_s15 + $0x54] sm:$0xf] %v1502_v39  ;;  %1505 = vst [vmem:[%s2438_s15 + $0x58] sm:$0xf] %v1504_v40  ;;  %v1508_v42 = vld [vmem:[%s2442_s20 + $0x60] sm:$0xf] }
 0x1b2   : >> { %1507 = vst [vmem:[%s2438_s15 + $0x5c] sm:$0xf] %v1506_v41  ;;  %v1510_v43 = vld [vmem:[%s2442_s20 + $0x64] sm:$0xf]  ;;  %v1512_v44 = vld [vmem:[%s2442_s20 + $0x68] sm:$0xf] }
 0x1b3   : >> { %1509 = vst [vmem:[%s2438_s15 + $0x60] sm:$0xf] %v1508_v42  ;;  %1511 = vst [vmem:[%s2438_s15 + $0x64] sm:$0xf] %v1510_v43  ;;  %v1514_v45 = vld [vmem:[%s2442_s20 + $0x6c] sm:$0xf] }
 0x1b4   : >> { %1513 = vst [vmem:[%s2438_s15 + $0x68] sm:$0xf] %v1512_v44  ;;  %v1516_v46 = vld [vmem:[%s2442_s20 + $0x70] sm:$0xf]  ;;  %v1518_v47 = vld [vmem:[%s2442_s20 + $0x74] sm:$0xf] }
 0x1b5   : >> { %1515 = vst [vmem:[%s2438_s15 + $0x6c] sm:$0xf] %v1514_v45  ;;  %1517 = vst [vmem:[%s2438_s15 + $0x70] sm:$0xf] %v1516_v46  ;;  %v1520_v48 = vld [vmem:[%s2442_s20 + $0x78] sm:$0xf] }
 0x1b6   : >> { %1519 = vst [vmem:[%s2438_s15 + $0x74] sm:$0xf] %v1518_v47  ;;  %v1522_v49 = vld [vmem:[%s2442_s20 + $0x7c] sm:$0xf]  ;;  %v1524_v50 = vld [vmem:[%s2442_s20 + $0x80] sm:$0xf] }
 0x1b7   : >> { %1521 = vst [vmem:[%s2438_s15 + $0x78] sm:$0xf] %v1520_v48  ;;  %1523 = vst [vmem:[%s2438_s15 + $0x7c] sm:$0xf] %v1522_v49  ;;  %v1526_v51 = vld [vmem:[%s2442_s20 + $0x84] sm:$0xf] }
 0x1b8   : >> { %1525 = vst [vmem:[%s2438_s15 + $0x80] sm:$0xf] %v1524_v50  ;;  %v1528_v52 = vld [vmem:[%s2442_s20 + $0x88] sm:$0xf]  ;;  %v1530_v53 = vld [vmem:[%s2442_s20 + $0x8c] sm:$0xf] }
 0x1b9   : >> { %1527 = vst [vmem:[%s2438_s15 + $0x84] sm:$0xf] %v1526_v51  ;;  %1529 = vst [vmem:[%s2438_s15 + $0x88] sm:$0xf] %v1528_v52  ;;  %v1532_v54 = vld [vmem:[%s2442_s20 + $0x90] sm:$0xf] }
 0x1ba   : >> { %1531 = vst [vmem:[%s2438_s15 + $0x8c] sm:$0xf] %v1530_v53  ;;  %v1534_v55 = vld [vmem:[%s2442_s20 + $0x94] sm:$0xf]  ;;  %v1536_v56 = vld [vmem:[%s2442_s20 + $0x98] sm:$0xf] }
 0x1bb   : >> { %1533 = vst [vmem:[%s2438_s15 + $0x90] sm:$0xf] %v1532_v54  ;;  %1535 = vst [vmem:[%s2438_s15 + $0x94] sm:$0xf] %v1534_v55  ;;  %v1538_v57 = vld [vmem:[%s2442_s20 + $0x9c] sm:$0xf] }
 0x1bc   : >> { %1537 = vst [vmem:[%s2438_s15 + $0x98] sm:$0xf] %v1536_v56  ;;  %v1540_v58 = vld [vmem:[%s2442_s20 + $0xa0] sm:$0xf]  ;;  %v1542_v59 = vld [vmem:[%s2442_s20 + $0xa4] sm:$0xf] }
 0x1bd   : >> { %1539 = vst [vmem:[%s2438_s15 + $0x9c] sm:$0xf] %v1538_v57  ;;  %1541 = vst [vmem:[%s2438_s15 + $0xa0] sm:$0xf] %v1540_v58  ;;  %v1544_v60 = vld [vmem:[%s2442_s20 + $0xa8] sm:$0xf] }
 0x1be   : >> { %1543 = vst [vmem:[%s2438_s15 + $0xa4] sm:$0xf] %v1542_v59  ;;  %v1546_v61 = vld [vmem:[%s2442_s20 + $0xac] sm:$0xf]  ;;  %v1548_v62 = vld [vmem:[%s2442_s20 + $0xb0] sm:$0xf] }
 0x1bf   : >> { %1545 = vst [vmem:[%s2438_s15 + $0xa8] sm:$0xf] %v1544_v60  ;;  %1547 = vst [vmem:[%s2438_s15 + $0xac] sm:$0xf] %v1546_v61  ;;  %v1550_v63 = vld [vmem:[%s2442_s20 + $0xb4] sm:$0xf] }
 0x1c0   : >> { %1549 = vst [vmem:[%s2438_s15 + $0xb0] sm:$0xf] %v1548_v62  ;;  %v1552_v0 = vld [vmem:[%s2442_s20 + $0xb8] sm:$0xf]  ;;  %v1554_v1 = vld [vmem:[%s2442_s20 + $0xbc] sm:$0xf] }
 0x1c1   : >> { %1551 = vst [vmem:[%s2438_s15 + $0xb4] sm:$0xf] %v1550_v63  ;;  %1553 = vst [vmem:[%s2438_s15 + $0xb8] sm:$0xf] %v1552_v0  ;;  %v1556_v2 = vld [vmem:[%s2442_s20 + $0xc0] sm:$0xf] }
 0x1c2   : >> { %1555 = vst [vmem:[%s2438_s15 + $0xbc] sm:$0xf] %v1554_v1  ;;  %v1558_v3 = vld [vmem:[%s2442_s20 + $0xc4] sm:$0xf]  ;;  %v1560_v4 = vld [vmem:[%s2442_s20 + $0xc8] sm:$0xf] }
 0x1c3   : >> { %1557 = vst [vmem:[%s2438_s15 + $0xc0] sm:$0xf] %v1556_v2  ;;  %1559 = vst [vmem:[%s2438_s15 + $0xc4] sm:$0xf] %v1558_v3  ;;  %v1562_v5 = vld [vmem:[%s2442_s20 + $0xcc] sm:$0xf] }
 0x1c4   : >> { %1561 = vst [vmem:[%s2438_s15 + $0xc8] sm:$0xf] %v1560_v4  ;;  %v1564_v6 = vld [vmem:[%s2442_s20 + $0xd0] sm:$0xf]  ;;  %v1566_v7 = vld [vmem:[%s2442_s20 + $0xd4] sm:$0xf] }
 0x1c5   : >> { %1563 = vst [vmem:[%s2438_s15 + $0xcc] sm:$0xf] %v1562_v5  ;;  %1565 = vst [vmem:[%s2438_s15 + $0xd0] sm:$0xf] %v1564_v6  ;;  %v1568_v8 = vld [vmem:[%s2442_s20 + $0xd8] sm:$0xf] }
 0x1c6   : >> { %1567 = vst [vmem:[%s2438_s15 + $0xd4] sm:$0xf] %v1566_v7  ;;  %v1570_v9 = vld [vmem:[%s2442_s20 + $0xdc] sm:$0xf]  ;;  %v1572_v10 = vld [vmem:[%s2442_s20 + $0xe0] sm:$0xf] }
 0x1c7   : >> { %1569 = vst [vmem:[%s2438_s15 + $0xd8] sm:$0xf] %v1568_v8  ;;  %1571 = vst [vmem:[%s2438_s15 + $0xdc] sm:$0xf] %v1570_v9  ;;  %v1574_v11 = vld [vmem:[%s2442_s20 + $0xe4] sm:$0xf] }
 0x1c8   : >> { %1573 = vst [vmem:[%s2438_s15 + $0xe0] sm:$0xf] %v1572_v10  ;;  %v1576_v12 = vld [vmem:[%s2442_s20 + $0xe8] sm:$0xf]  ;;  %v1578_v14 = vld [vmem:[%s2442_s20 + $0xec] sm:$0xf] }
 0x1c9   : >> { %1575 = vst [vmem:[%s2438_s15 + $0xe4] sm:$0xf] %v1574_v11  ;;  %1577 = vst [vmem:[%s2438_s15 + $0xe8] sm:$0xf] %v1576_v12  ;;  %v1580_v15 = vld [vmem:[%s2442_s20 + $0xf0] sm:$0xf] }
 0x1ca   : >> { %1579 = vst [vmem:[%s2438_s15 + $0xec] sm:$0xf] %v1578_v14  ;;  %v1582_v16 = vld [vmem:[%s2442_s20 + $0xf4] sm:$0xf]  ;;  %v1584_v17 = vld [vmem:[%s2442_s20 + $0xf8] sm:$0xf] }
 0x1cb   : >> { %1581 = vst [vmem:[%s2438_s15 + $0xf0] sm:$0xf] %v1580_v15  ;;  %1583 = vst [vmem:[%s2438_s15 + $0xf4] sm:$0xf] %v1582_v16  ;;  %v1586_v18 = vld [vmem:[%s2442_s20 + $0xfc] sm:$0xf] }
 0x1cc   : >> { %1585 = vst [vmem:[%s2438_s15 + $0xf8] sm:$0xf] %v1584_v17  ;;  %1587 = vst [vmem:[%s2438_s15 + $0xfc] sm:$0xf] %v1586_v18  ;;  %s3097_s22 = smov (%p1589_p11, %s1588_s22), 0  ;;  %s1454_s21 = sadd.s32 1, %s2450_s21  }
 0x1cd   : >> { %s2081_s24 = sshll.u32 %s3097_s22, 8  ;;  %p1453_p12 = scmp.ge.s32.totalorder %s1454_s21, %s2897_s18 }
 0x1ce   : >> { %s1593_s20 = scalar_lea.vmem %s2694_s12, %s2081_s24 [#allocation2]   ;;  %s1594_s15 = scalar_lea.vmem %s2891_s14, %s2081_s24  }
 0x1cf   : >> { %s3090_s23 = smov %s3097_s22  ;;  %1456 = sbr.rel (!%p1453_p12) target bundleno = 418 (0x1a2), region = 118 }
 0x1d6 PF: > { %s3065_s25 = sand.u32 63, %s3095_s7   ;;  %s2157_s26 = sshll.u32 %s2897_s18, 8 }
 0x1d7   : > { %s1599_s27 = scalar_lea.vmem %s2694_s12, %s2157_s26 [#allocation2]   ;;  %s1601_s28 = scalar_lea.vmem %s2891_s14, %s2157_s26  }
 0x1d8   : > { %p2086_p13 = scmp.le.s32.totalorder %s3065_s25, 0 }
 0x1d9   : > { %s2452_s29 = smov (!%p2086_p13), %s1601_s28   ;;  %s2456_s30 = smov (!%p2086_p13), %s1599_s27  }
 0x1da   : > { %1863 = sbr.rel (%p2086_p13) target bundleno = 491 (0x1eb), region = 123  ;;  %s2460_s4 = smov (!%p2086_p13), 0  }
 0x1db   : > { %s2464_s5 = smov (!%p2086_p13), 0  }
 0x1e1 LB: >> { %v1611_v13 = vld [vmem:[%s2458_s30] sm:$0xf]  ;;  %s1613_s6 = sadd.s32 1, %s2462_s4  ;;  %s1605_s5 = sadd.s32 1, %s2466_s5   ;;  %s2466_s5 = sphi %s2464_s5, %s1605_s5   ;;  %s2462_s4 = sphi %s2460_s4, %s2461_s4   ;;  %s2458_s30 = sphi %s2456_s30, %s1618_s30   ;;  %s2454_s29 = sphi %s2452_s29, %s1619_s29  }
 0x1e2   : >> { %1612 = vst [vmem:[%s2454_s29] sm:$0xf] %v1611_v13  ;;  %p1614_p0 = scmp.ge.s32.totalorder %s1613_s6, %s3065_s25  ;;  %p1604_p1 = scmp.ge.s32.totalorder %s1605_s5, %s3065_s25 }
 0x1e4   : >> { %s3099_s6 = smov (%p1614_p0, %s1613_s6), 0  ;;  %1607 = sbr.rel (!%p1604_p1) target bundleno = 481 (0x1e1), region = 129 }
 0x1e5   : >> { %s2087_s8 = sshll.u32 %s3099_s6, 2  ;;  %s2461_s4 = smov %s3099_s6  }
 0x1e6   : >> { %s1618_s30 = scalar_lea.vmem %s1599_s27, %s2087_s8 [#allocation2]   ;;  %s1619_s29 = scalar_lea.vmem %s1601_s28, %s2087_s8  }
 0x1eb PF: > { %p10_p2 = scmp.ge.s32.totalorder %s2504_s16, 14   ;;  %s3091_s12 = smov %s2430_s13 }
 0x1ec   : > { %s3092_s13 = smov %s2512_s19  ;;  %s3093_s14 = smov %s2504_s16 }
 0x1ed   :  { %12 = sbr.rel (!%p10_p2) target bundleno = 2 (0x2), region = 140 }

// kernel: convnet_quantized_forward.5
= control target key start
LH: loop header
LB: loop body
LE: loop exit
PB: predicated region body
PF: predicated region fallthrough
CT: control target
= control target key end

     0   :  { %s3530_s12 = smov 0   ;;  %s3532_s13 = smov 0   ;;  %s4229_s0 = inlined_call_operand.vmem [shape: bf16[1352,512], index: 0, kind: input, shape index: {}]   ;;  %s4230_s1 = inlined_call_operand.vmem [shape: bf16[512,64], index: 1, kind: input, shape index: {}]   ;;  %s4231_s2 = inlined_call_operand.vmem [shape: f32[1,64], index: 2, kind: input, shape index: {}]   ;;  %s4232_s3 = inlined_call_operand.vmem [shape: bf16[1352,64], index: 3, kind: output, shape index: {}]  }
   0x1   :  { %s3534_s14 = smov 0  }
   0x2 LB: > { %s3543_s15 = sadd.s32 4294967295, %s3475_s14   ;;  %s3545_s16 = sadd.s32 1, %s3475_s14   ;;  %s3475_s14 = sphi %s3534_s14, %s4239_s14   ;;  %s3471_s13 = sphi %s3532_s13, %s4238_s13   ;;  %s3467_s12 = sphi %s3530_s12, %s4237_s12  }
   0x3   : > { %s85_s17 = ssub.s32 %s3475_s14, %s3545_s16  ;;  %s88_s18 = sadd.s32 1, %s3471_s13 }
   0x4   : > { %p86_p0 = scmp.eq.s32.totalorder %s85_s17, 0  ;;  %p98_p1 = scmp.ne.s32.totalorder %s3471_s13, %s3467_s12 }
   0x5   : > { %p99_p2 = scmp.eq.s32.totalorder %s3543_s15, 2  ;;  %p2664_p3 = scmp.ge.s32.totalorder %s3475_s14, 1 }
   0x6   : > { %s3553_s19 = scalar_select %p86_p0, %s3471_s13, %s88_s18  }
   0x7   : > { %p3555_p4 = por %p99_p2, %p98_p1  ;;  %p149_p5 = scmp.lt.s32.totalorder %s3475_s14, 4 }
   0x9   : > { %p150_p6 = pnand %p2664_p3, %p149_p5 }
   0xa   : > { %v3196_v0 = vld [vmem:[%s4230_s1] sm:$0xff] (!%p150_p6)   ;;  %v3509_v1 = vmov (!%p150_p6), 0   ;;  %v3198_v3 = vld [vmem:[%s4230_s1 + $0x8] sm:$0xff] (!%p150_p6)   ;;  %v3200_v5 = vld [vmem:[%s4230_s1 + $0x10] sm:$0xff] (!%p150_p6)   ;;  %s3600_s18 = sshll.u32 (!%p150_p6), %s3543_s15, 6  ;;  %s175_s6 = sand.u32 (!%p150_p6), 1, %s3467_s12  }
   0xb   : > { %153 = sbr.rel (%p150_p6) target bundleno = 637 (0x27d), region = 32  ;;  %1232 = vmatprep.subr.bf16.mxu1 (!%p150_p6), %v3509_v1  ;;  %1521 = vmatprep.subr.bf16.mxu0 (!%p150_p6), %v3509_v1  ;;  %v3197_v2 = vld [vmem:[%s4230_s1 + $0x80] sm:$0xff] (!%p150_p6)   ;;  %v3199_v4 = vld [vmem:[%s4230_s1 + $0x88] sm:$0xff] (!%p150_p6)   ;;  %v3201_v6 = vld [vmem:[%s4230_s1 + $0x90] sm:$0xff] (!%p150_p6)   ;;  %p184_p7 = scmp.lt.s32.totalorder (!%p150_p6), %s3600_s18, 168  ;;  %vm2130_vm0 = vcmask (!%p150_p6), 519168  }
   0xc   : > { %1233 = vmatpush1.bf16.msra.mxu1 (!%p150_p6), %v3196_v0  ;;  %1522 = vmatpush1.bf16.msra.mxu0 (!%p150_p6), %v3197_v2  ;;  %v3202_v7 = vld [vmem:[%s4230_s1 + $0x18] sm:$0xff] (!%p150_p6)   ;;  %v3204_v9 = vld [vmem:[%s4230_s1 + $0x20] sm:$0xff] (!%p150_p6)   ;;  %v3206_v11 = vld [vmem:[%s4230_s1 + $0x28] sm:$0xff] (!%p150_p6)  }
   0xd   : > { %1234 = vmatprep.subr.bf16.mxu1 (!%p150_p6), %v3509_v1  ;;  %1523 = vmatprep.subr.bf16.mxu0 (!%p150_p6), %v3509_v1  ;;  %v3203_v8 = vld [vmem:[%s4230_s1 + $0x98] sm:$0xff] (!%p150_p6)   ;;  %v3205_v10 = vld [vmem:[%s4230_s1 + $0xa0] sm:$0xff] (!%p150_p6)   ;;  %v3207_v12 = vld [vmem:[%s4230_s1 + $0xa8] sm:$0xff] (!%p150_p6)  }
   0xe   : > { %v3208_v13 = vld [vmem:[%s4230_s1 + $0x30] sm:$0xff] (!%p150_p6)   ;;  %v3210_v15 = vld [vmem:[%s4230_s1 + $0x38] sm:$0xff] (!%p150_p6)   ;;  %v3212_v17 = vld [vmem:[%s4230_s1 + $0x40] sm:$0xff] (!%p150_p6)  }
   0xf   : > { %v3209_v14 = vld [vmem:[%s4230_s1 + $0xb0] sm:$0xff] (!%p150_p6)   ;;  %v3211_v16 = vld [vmem:[%s4230_s1 + $0xb8] sm:$0xff] (!%p150_p6)   ;;  %v3213_v18 = vld [vmem:[%s4230_s1 + $0xc0] sm:$0xff] (!%p150_p6)  }
  0x10   : > { %1235 = vmatpush1.bf16.msra.mxu1 (!%p150_p6), %v3198_v3  ;;  %1524 = vmatpush1.bf16.msra.mxu0 (!%p150_p6), %v3199_v4  ;;  %v3214_v20 = vld [vmem:[%s4230_s1 + $0x48] sm:$0xff] (!%p150_p6)   ;;  %v3216_v23 = vld [vmem:[%s4230_s1 + $0x50] sm:$0xff] (!%p150_p6)   ;;  %v3218_v25 = vld [vmem:[%s4230_s1 + $0x58] sm:$0xff] (!%p150_p6)  }
  0x11   : > { %1236 = vmatprep.subr.bf16.mxu1 (!%p150_p6), %v3509_v1  ;;  %1525 = vmatprep.subr.bf16.mxu0 (!%p150_p6), %v3509_v1  ;;  %v3215_v22 = vld [vmem:[%s4230_s1 + $0xc8] sm:$0xff] (!%p150_p6)   ;;  %v3217_v24 = vld [vmem:[%s4230_s1 + $0xd0] sm:$0xff] (!%p150_p6)   ;;  %v3219_v26 = vld [vmem:[%s4230_s1 + $0xd8] sm:$0xff] (!%p150_p6)  }
  0x12   : > { %s185_s29 = scalar_select %p184_p7, %s3600_s18, 168  ;;  %v3220_v27 = vld [vmem:[%s4230_s1 + $0x60] sm:$0xff]   ;;  %v3222_v29 = vld [vmem:[%s4230_s1 + $0x68] sm:$0xff]   ;;  %v3224_v31 = vld [vmem:[%s4230_s1 + $0x70] sm:$0xff]  }
  0x13   : > { %v3221_v28 = vld [vmem:[%s4230_s1 + $0xe0] sm:$0xff]   ;;  %v3223_v30 = vld [vmem:[%s4230_s1 + $0xe8] sm:$0xff]   ;;  %v3225_v32 = vld [vmem:[%s4230_s1 + $0xf0] sm:$0xff]   ;;  %s2203_s9 = ssub.s32 (%p3555_p4), 169, %s3600_s18  ;;  %s2976_s10 = sshll.u32 (%p3555_p4), %s3543_s15, 8 }
  0x14   : > { %1237 = vmatpush1.bf16.msra.mxu1 %v3200_v5  ;;  %1526 = vmatpush1.bf16.msra.mxu0 %v3201_v6  ;;  %s2911_s7 = sshll.u32 %s185_s29, 4  ;;  %v3226_v33 = vld [vmem:[%s4230_s1 + $0x78] sm:$0xff]   ;;  %p2204_p8 = scmp.lt.s32.totalorder (%p3555_p4), %s2203_s9, 64 }
  0x15   : > { %1238 = vmatprep.subr.bf16.mxu1 %v3509_v1  ;;  %1527 = vmatprep.subr.bf16.mxu0 %v3509_v1  ;;  %s3634_s14 = scalar_lea.vmem %s4229_s0, %s2911_s7  ;;  %v3227_v34 = vld [vmem:[%s4230_s1 + $0xf8] sm:$0xff]   ;;  %s2665_s7 = sshll.u32 %s175_s6, 8 }
  0x16   : > { %v3230_v19 = vld [vmem:[%s3634_s14 + $0x4] ss:$16 sps:$4 sm:$0xff]   ;;  %v3233_v21 = vld [vmem:[%s3634_s14 + $0xc] ss:$16 sps:$4 sm:$0xff]   ;;  %v3228_v35 = vld [vmem:[%s3634_s14] ss:$16 sps:$4 sm:$0xff]   ;;  %s4037_s21 = scalar_lea.vmem (%p3555_p4), %s4232_s3, %s2976_s10  }
  0x17   : > { %1264 = vmatprep.mubr.bf16.mxu1 %v3230_v19  ;;  %1553 = vmatprep.mubr.bf16.mxu0 %v3233_v21  ;;  %v3231_v36 = vld [vmem:[%s3634_s14 + $0x8] ss:$16 sps:$4 sm:$0xff]   ;;  %v3234_v37 = vld [vmem:[%s3634_s14 + $0x24] ss:$16 sps:$4 sm:$0xff]   ;;  %v3236_v38 = vld [vmem:[%s3634_s14 + $0x2c] ss:$16 sps:$4 sm:$0xff]  }
  0x18   : > { %1239 = vmatpush1.bf16.msra.mxu1 %v3202_v7  ;;  %1528 = vmatpush1.bf16.msra.mxu0 %v3203_v8  ;;  %v3238_v39 = vld [vmem:[%s3634_s14 + $0x20] ss:$16 sps:$4 sm:$0xff]   ;;  %v3239_v40 = vld [vmem:[%s3634_s14 + $0x28] ss:$16 sps:$4 sm:$0xff]   ;;  %v3240_v41 = vld [vmem:[%s3634_s14 + $0x44] ss:$16 sps:$4 sm:$0xff]  }
  0x19   : > { %1240 = vmatprep.subr.bf16.mxu1 %v3509_v1  ;;  %1529 = vmatprep.subr.bf16.mxu0 %v3509_v1  ;;  %v3242_v42 = vld [vmem:[%s3634_s14 + $0x4c] ss:$16 sps:$4 sm:$0xff]   ;;  %v3244_v43 = vld [vmem:[%s3634_s14 + $0x40] ss:$16 sps:$4 sm:$0xff]   ;;  %v3245_v44 = vld [vmem:[%s3634_s14 + $0x48] ss:$16 sps:$4 sm:$0xff]  }
  0x1a   : > { %v3246_v45 = vld [vmem:[%s3634_s14 + $0x64] ss:$16 sps:$4 sm:$0xff]   ;;  %v3248_v46 = vld [vmem:[%s3634_s14 + $0x6c] ss:$16 sps:$4 sm:$0xff]   ;;  %v3250_v47 = vld [vmem:[%s3634_s14 + $0x60] ss:$16 sps:$4 sm:$0xff]  }
  0x1b   : > { %v3251_v48 = vld [vmem:[%s3634_s14 + $0x68] ss:$16 sps:$4 sm:$0xff]   ;;  %v3252_v49 = vld [vmem:[%s3634_s14 + $0x84] ss:$16 sps:$4 sm:$0xff]   ;;  %v3254_v50 = vld [vmem:[%s3634_s14 + $0x8c] ss:$16 sps:$4 sm:$0xff]  }
  0x1c   : > { %1241 = vmatpush1.bf16.msra.mxu1 %v3204_v9  ;;  %1530 = vmatpush1.bf16.msra.mxu0 %v3205_v10  ;;  %v3256_v51 = vld [vmem:[%s3634_s14 + $0x80] ss:$16 sps:$4 sm:$0xff]   ;;  %v3257_v52 = vld [vmem:[%s3634_s14 + $0x88] ss:$16 sps:$4 sm:$0xff]   ;;  %v3258_v53 = vld [vmem:[%s3634_s14 + $0xa4] ss:$16 sps:$4 sm:$0xff]  }
  0x1d   : > { %1242 = vmatprep.subr.bf16.mxu1 %v3509_v1  ;;  %1531 = vmatprep.subr.bf16.mxu0 %v3509_v1  ;;  %v3260_v54 = vld [vmem:[%s3634_s14 + $0xac] ss:$16 sps:$4 sm:$0xff]   ;;  %v3262_v55 = vld [vmem:[%s3634_s14 + $0xa0] ss:$16 sps:$4 sm:$0xff]   ;;  %v3263_v56 = vld [vmem:[%s3634_s14 + $0xa8] ss:$16 sps:$4 sm:$0xff]  }
  0x1e   : > { %v3264_v57 = vld [vmem:[%s3634_s14 + $0xc4] ss:$16 sps:$4 sm:$0xff]   ;;  %v3266_v58 = vld [vmem:[%s3634_s14 + $0xcc] ss:$16 sps:$4 sm:$0xff]   ;;  %v3268_v59 = vld [vmem:[%s3634_s14 + $0xc0] ss:$16 sps:$4 sm:$0xff]  }
  0x1f   : > { %v3269_v60 = vld [vmem:[%s3634_s14 + $0xc8] ss:$16 sps:$4 sm:$0xff]   ;;  %v3270_v61 = vld [vmem:[%s3634_s14 + $0xe4] ss:$16 sps:$4 sm:$0xff]   ;;  %v3272_v62 = vld [vmem:[%s3634_s14 + $0xec] ss:$16 sps:$4 sm:$0xff]  }
  0x20   : > { %1243 = vmatpush1.bf16.msra.mxu1 %v3206_v11  ;;  %1532 = vmatpush1.bf16.msra.mxu0 %v3207_v12  ;;  %v3274_v63 = vld [vmem:[%s3634_s14 + $0xe0] ss:$16 sps:$4 sm:$0xff]   ;;  %v3275_v0 = vld [vmem:[%s3634_s14 + $0xe8] ss:$16 sps:$4 sm:$0xff]   ;;  %v3278_v2 = vld [vmem:[%s3634_s14 + $0x10c] ss:$16 sps:$4 sm:$0xff]  }
  0x21   : > { %1244 = vmatprep.subr.bf16.mxu1 %v3509_v1  ;;  %1533 = vmatprep.subr.bf16.mxu0 %v3509_v1  ;;  %v3280_v3 = vld [vmem:[%s3634_s14 + $0x100] ss:$16 sps:$4 sm:$0xff]   ;;  %v3281_v4 = vld [vmem:[%s3634_s14 + $0x108] ss:$16 sps:$4 sm:$0xff]   ;;  %v3282_v5 = vld [vmem:[%s3634_s14 + $0x124] ss:$16 sps:$4 sm:$0xff]  }
  0x22   : > { %v3284_v6 = vld [vmem:[%s3634_s14 + $0x12c] ss:$16 sps:$4 sm:$0xff]   ;;  %v3286_v7 = vld [vmem:[%s3634_s14 + $0x120] ss:$16 sps:$4 sm:$0xff]   ;;  %v3287_v8 = vld [vmem:[%s3634_s14 + $0x128] ss:$16 sps:$4 sm:$0xff]  }
  0x23   : > { %v3288_v9 = vld [vmem:[%s3634_s14 + $0x144] ss:$16 sps:$4 sm:$0xff]   ;;  %v3290_v10 = vld [vmem:[%s3634_s14 + $0x14c] ss:$16 sps:$4 sm:$0xff]   ;;  %v3292_v11 = vld [vmem:[%s3634_s14 + $0x140] ss:$16 sps:$4 sm:$0xff]  }
  0x24   : > { %1245 = vmatpush1.bf16.msra.mxu1 %v3208_v13  ;;  %1534 = vmatpush1.bf16.msra.mxu0 %v3209_v14  ;;  %v3293_v12 = vld [vmem:[%s3634_s14 + $0x148] ss:$16 sps:$4 sm:$0xff]   ;;  %v3294_v13 = vld [vmem:[%s3634_s14 + $0x164] ss:$16 sps:$4 sm:$0xff]   ;;  %v3296_v14 = vld [vmem:[%s3634_s14 + $0x16c] ss:$16 sps:$4 sm:$0xff]  }
  0x25   : > { %1246 = vmatprep.subr.bf16.mxu1 %v3509_v1  ;;  %1535 = vmatprep.subr.bf16.mxu0 %v3509_v1  ;;  %v3304_v19 = vld [vmem:[%s3634_s14 + $0x180] ss:$16 sps:$4 sm:$0xff]   ;;  %v3306_v21 = vld [vmem:[%s3634_s14 + $0x1a4] ss:$16 sps:$4 sm:$0xff]   ;;  %s3819_s12 = scalar_lea.vmem [#allocation2], %s2665_s7  }
  0x28   : > { %1247 = vmatpush1.bf16.msra.mxu1 %v3210_v15  ;;  %1536 = vmatpush1.bf16.msra.mxu0 %v3211_v16  ;;  %v3298_v15 = vld [vmem:[%s3634_s14 + $0x160] ss:$16 sps:$4 sm:$0xff]   ;;  %v3299_v16 = vld [vmem:[%s3634_s14 + $0x168] ss:$16 sps:$4 sm:$0xff]  }
  0x29   : > { %1248 = vmatprep.subr.bf16.mxu1 %v3509_v1  ;;  %1537 = vmatprep.subr.bf16.mxu0 %v3509_v1 }
  0x2c   : > { %1249 = vmatpush1.bf16.msra.mxu1 %v3212_v17  ;;  %1538 = vmatpush1.bf16.msra.mxu0 %v3213_v18  ;;  %v3300_v17 = vld [vmem:[%s3634_s14 + $0x184] ss:$16 sps:$4 sm:$0xff]   ;;  %v3302_v18 = vld [vmem:[%s3634_s14 + $0x18c] ss:$16 sps:$4 sm:$0xff]  }
  0x2d   : > { %1250 = vmatprep.subr.bf16.mxu1 %v3509_v1  ;;  %1539 = vmatprep.subr.bf16.mxu0 %v3509_v1 }
  0x30   : > { %1251 = vmatpush1.bf16.msra.mxu1 %v3214_v20  ;;  %1540 = vmatpush1.bf16.msra.mxu0 %v3215_v22  ;;  %v3305_v20 = vld [vmem:[%s3634_s14 + $0x188] ss:$16 sps:$4 sm:$0xff]   ;;  %v3308_v22 = vld [vmem:[%s3634_s14 + $0x1ac] ss:$16 sps:$4 sm:$0xff]  }
  0x31   : > { %1252 = vmatprep.subr.bf16.mxu1 %v3509_v1  ;;  %1541 = vmatprep.subr.bf16.mxu0 %v3509_v1 }
  0x34   : > { %1253 = vmatpush1.bf16.msra.mxu1 %v3216_v23  ;;  %1542 = vmatpush1.bf16.msra.mxu0 %v3217_v24  ;;  %v3310_v23 = vld [vmem:[%s3634_s14 + $0x1a0] ss:$16 sps:$4 sm:$0xff]   ;;  %v3311_v24 = vld [vmem:[%s3634_s14 + $0x1a8] ss:$16 sps:$4 sm:$0xff]  }
  0x35   : > { %1254 = vmatprep.subr.bf16.mxu1 %v3509_v1  ;;  %1543 = vmatprep.subr.bf16.mxu0 %v3509_v1 }
  0x38   : > { %1255 = vmatpush1.bf16.msra.mxu1 %v3218_v25  ;;  %1544 = vmatpush1.bf16.msra.mxu0 %v3219_v26  ;;  %v3312_v25 = vld [vmem:[%s3634_s14 + $0x1c4] ss:$16 sps:$4 sm:$0xff]   ;;  %v3314_v26 = vld [vmem:[%s3634_s14 + $0x1cc] ss:$16 sps:$4 sm:$0xff]  }
  0x39   : > { %1256 = vmatprep.subr.bf16.mxu1 %v3509_v1  ;;  %1545 = vmatprep.subr.bf16.mxu0 %v3509_v1 }
  0x3c   : > { %1257 = vmatpush1.bf16.msra.mxu1 %v3220_v27  ;;  %1546 = vmatpush1.bf16.msra.mxu0 %v3221_v28  ;;  %v3316_v27 = vld [vmem:[%s3634_s14 + $0x1c0] ss:$16 sps:$4 sm:$0xff]   ;;  %v3317_v28 = vld [vmem:[%s3634_s14 + $0x1c8] ss:$16 sps:$4 sm:$0xff]  }
  0x3d   : > { %1258 = vmatprep.subr.bf16.mxu1 %v3509_v1  ;;  %1547 = vmatprep.subr.bf16.mxu0 %v3509_v1 }
  0x40   : > { %1259 = vmatpush1.bf16.msra.mxu1 %v3222_v29  ;;  %1548 = vmatpush1.bf16.msra.mxu0 %v3223_v30  ;;  %v3318_v29 = vld [vmem:[%s3634_s14 + $0x1e4] ss:$16 sps:$4 sm:$0xff]   ;;  %v3320_v30 = vld [vmem:[%s3634_s14 + $0x1ec] ss:$16 sps:$4 sm:$0xff]  }
  0x41   : > { %1260 = vmatprep.subr.bf16.mxu1 %v3509_v1  ;;  %1549 = vmatprep.subr.bf16.mxu0 %v3509_v1 }
  0x44   : > { %1261 = vmatpush1.bf16.msra.mxu1 %v3224_v31  ;;  %1550 = vmatpush1.bf16.msra.mxu0 %v3225_v32  ;;  %v3322_v31 = vld [vmem:[%s3634_s14 + $0x1e0] ss:$16 sps:$4 sm:$0xff]   ;;  %v3323_v32 = vld [vmem:[%s3634_s14 + $0x1e8] ss:$16 sps:$4 sm:$0xff]  }
  0x45   : > { %1262 = vmatprep.subr.bf16.mxu1 %v3509_v1  ;;  %1551 = vmatprep.subr.bf16.mxu0 %v3509_v1  ;;  %v3276_v1 = vld [vmem:[%s3634_s14 + $0x104] ss:$16 sps:$4 sm:$0xff]  }
  0x48   : > { %1263 = vmatpush1.bf16.msra.mxu1 %v3226_v33  ;;  %1552 = vmatpush1.bf16.msra.mxu0 %v3227_v34  ;;  %v3324_v33 = vld [vmem:[%s3634_s14 + $0x204] ss:$16 sps:$4 sm:$0xff]   ;;  %v3326_v34 = vld [vmem:[%s3634_s14 + $0x20c] ss:$16 sps:$4 sm:$0xff]  }
  0x4b   : > { %1265 = vmatmul.mubr.bf16.vlgmr.msra.gmra.mrb[0].mxu1 %v3228_v35  ;;  %1554 = vmatmul.mubr.bf16.vlgmr.msra.gmra.mrb[0].mxu0 %v3231_v36  ;;  %v3328_v35 = vld [vmem:[%s3634_s14 + $0x200] ss:$16 sps:$4 sm:$0xff]   ;;  %v3329_v36 = vld [vmem:[%s3634_s14 + $0x208] ss:$16 sps:$4 sm:$0xff]  }
  0x4c   : > { %1272 = vmatprep.mubr.bf16.mxu1 %v3234_v37  ;;  %1561 = vmatprep.mubr.bf16.mxu0 %v3236_v38  ;;  %v3330_v37 = vld [vmem:[%s3634_s14 + $0x224] ss:$16 sps:$4 sm:$0xff]   ;;  %v3332_v38 = vld [vmem:[%s3634_s14 + $0x22c] ss:$16 sps:$4 sm:$0xff]  }
  0x53   : > { %1273 = vmatmul.mubr.bf16.gmra.mrb[4].mxu1 %v3238_v39  ;;  %1562 = vmatmul.mubr.bf16.gmra.mrb[4].mxu0 %v3239_v40  ;;  %v3334_v39 = vld [vmem:[%s3634_s14 + $0x220] ss:$16 sps:$4 sm:$0xff]   ;;  %v3335_v40 = vld [vmem:[%s3634_s14 + $0x228] ss:$16 sps:$4 sm:$0xff]  }
  0x54   : > { %1280 = vmatprep.mubr.bf16.mxu1 %v3240_v41  ;;  %1569 = vmatprep.mubr.bf16.mxu0 %v3242_v42  ;;  %v3336_v41 = vld [vmem:[%s3634_s14 + $0x244] ss:$16 sps:$4 sm:$0xff]   ;;  %v3338_v42 = vld [vmem:[%s3634_s14 + $0x24c] ss:$16 sps:$4 sm:$0xff]  }
  0x5b   : > { %1281 = vmatmul.mubr.bf16.gmra.mrb[8].mxu1 %v3244_v43  ;;  %1570 = vmatmul.mubr.bf16.gmra.mrb[8].mxu0 %v3245_v44  ;;  %v3340_v43 = vld [vmem:[%s3634_s14 + $0x240] ss:$16 sps:$4 sm:$0xff]   ;;  %v3341_v44 = vld [vmem:[%s3634_s14 + $0x248] ss:$16 sps:$4 sm:$0xff]  }
  0x5c   : > { %1288 = vmatprep.mubr.bf16.mxu1 %v3246_v45  ;;  %1577 = vmatprep.mubr.bf16.mxu0 %v3248_v46  ;;  %v3342_v45 = vld [vmem:[%s3634_s14 + $0x264] ss:$16 sps:$4 sm:$0xff]   ;;  %v3344_v46 = vld [vmem:[%s3634_s14 + $0x26c] ss:$16 sps:$4 sm:$0xff]  }
  0x63   : > { %1289 = vmatmul.mubr.bf16.gmra.mrb[12].mxu1 %v3250_v47  ;;  %1578 = vmatmul.mubr.bf16.gmra.mrb[12].mxu0 %v3251_v48  ;;  %v3346_v47 = vld [vmem:[%s3634_s14 + $0x260] ss:$16 sps:$4 sm:$0xff]   ;;  %v3347_v48 = vld [vmem:[%s3634_s14 + $0x268] ss:$16 sps:$4 sm:$0xff]  }
  0x64   : > { %1296 = vmatprep.mubr.bf16.mxu1 %v3252_v49  ;;  %1585 = vmatprep.mubr.bf16.mxu0 %v3254_v50  ;;  %v3348_v49 = vld [vmem:[%s3634_s14 + $0x284] ss:$16 sps:$4 sm:$0xff]   ;;  %v3350_v50 = vld [vmem:[%s3634_s14 + $0x28c] ss:$16 sps:$4 sm:$0xff]  }
  0x6b   : > { %1297 = vmatmul.mubr.bf16.gmra.mrb[16].mxu1 %v3256_v51  ;;  %1586 = vmatmul.mubr.bf16.gmra.mrb[16].mxu0 %v3257_v52  ;;  %v3352_v51 = vld [vmem:[%s3634_s14 + $0x280] ss:$16 sps:$4 sm:$0xff]   ;;  %v3353_v52 = vld [vmem:[%s3634_s14 + $0x288] ss:$16 sps:$4 sm:$0xff]  }
  0x6c   : > { %1304 = vmatprep.mubr.bf16.mxu1 %v3258_v53  ;;  %1593 = vmatprep.mubr.bf16.mxu0 %v3260_v54  ;;  %v3354_v53 = vld [vmem:[%s3634_s14 + $0x2a4] ss:$16 sps:$4 sm:$0xff]   ;;  %v3356_v54 = vld [vmem:[%s3634_s14 + $0x2ac] ss:$16 sps:$4 sm:$0xff]  }
  0x73   : > { %1305 = vmatmul.mubr.bf16.gmra.mrb[20].mxu1 %v3262_v55  ;;  %1594 = vmatmul.mubr.bf16.gmra.mrb[20].mxu0 %v3263_v56  ;;  %v3358_v55 = vld [vmem:[%s3634_s14 + $0x2a0] ss:$16 sps:$4 sm:$0xff]   ;;  %v3359_v56 = vld [vmem:[%s3634_s14 + $0x2a8] ss:$16 sps:$4 sm:$0xff]  }
  0x74   : > { %1312 = vmatprep.mubr.bf16.mxu1 %v3264_v57  ;;  %1601 = vmatprep.mubr.bf16.mxu0 %v3266_v58  ;;  %v3360_v57 = vld [vmem:[%s3634_s14 + $0x2c4] ss:$16 sps:$4 sm:$0xff]   ;;  %v3362_v58 = vld [vmem:[%s3634_s14 + $0x2cc] ss:$16 sps:$4 sm:$0xff]  }
  0x7b   : > { %1313 = vmatmul.mubr.bf16.gmra.mrb[24].mxu1 %v3268_v59  ;;  %1602 = vmatmul.mubr.bf16.gmra.mrb[24].mxu0 %v3269_v60  ;;  %v3364_v59 = vld [vmem:[%s3634_s14 + $0x2c0] ss:$16 sps:$4 sm:$0xff]   ;;  %v3365_v60 = vld [vmem:[%s3634_s14 + $0x2c8] ss:$16 sps:$4 sm:$0xff]  }
  0x7c   : > { %1320 = vmatprep.mubr.bf16.mxu1 %v3270_v61  ;;  %1609 = vmatprep.mubr.bf16.mxu0 %v3272_v62  ;;  %v3366_v61 = vld [vmem:[%s3634_s14 + $0x2e4] ss:$16 sps:$4 sm:$0xff]   ;;  %v3368_v62 = vld [vmem:[%s3634_s14 + $0x2ec] ss:$16 sps:$4 sm:$0xff]  }
  0x83   : > { %1321 = vmatmul.mubr.bf16.gmra.mrb[28].mxu1 %v3274_v63  ;;  %1610 = vmatmul.mubr.bf16.gmra.mrb[28].mxu0 %v3275_v0  ;;  %v3370_v63 = vld [vmem:[%s3634_s14 + $0x2e0] ss:$16 sps:$4 sm:$0xff]   ;;  %v3371_v0 = vld [vmem:[%s3634_s14 + $0x2e8] ss:$16 sps:$4 sm:$0xff]  }
  0x84   : > { %1328 = vmatprep.mubr.bf16.mxu1 %v3276_v1  ;;  %1617 = vmatprep.mubr.bf16.mxu0 %v3278_v2  ;;  %v3372_v1 = vld [vmem:[%s3634_s14 + $0x304] ss:$16 sps:$4 sm:$0xff]   ;;  %v3374_v2 = vld [vmem:[%s3634_s14 + $0x30c] ss:$16 sps:$4 sm:$0xff]  }
  0x8b   : > { %1329 = vmatmul.mubr.bf16.gmra.mrb[32].mxu1 %v3280_v3  ;;  %1618 = vmatmul.mubr.bf16.gmra.mrb[32].mxu0 %v3281_v4  ;;  %v3376_v3 = vld [vmem:[%s3634_s14 + $0x300] ss:$16 sps:$4 sm:$0xff]   ;;  %v3377_v4 = vld [vmem:[%s3634_s14 + $0x308] ss:$16 sps:$4 sm:$0xff]  }
  0x8c   : > { %1336 = vmatprep.mubr.bf16.mxu1 %v3282_v5  ;;  %1625 = vmatprep.mubr.bf16.mxu0 %v3284_v6  ;;  %v3378_v5 = vld [vmem:[%s3634_s14 + $0x324] ss:$16 sps:$4 sm:$0xff]   ;;  %v3380_v6 = vld [vmem:[%s3634_s14 + $0x32c] ss:$16 sps:$4 sm:$0xff]  }
  0x93   : > { %1337 = vmatmul.mubr.bf16.gmra.mrb[36].mxu1 %v3286_v7  ;;  %1626 = vmatmul.mubr.bf16.gmra.mrb[36].mxu0 %v3287_v8  ;;  %v3382_v7 = vld [vmem:[%s3634_s14 + $0x320] ss:$16 sps:$4 sm:$0xff]   ;;  %v3383_v8 = vld [vmem:[%s3634_s14 + $0x328] ss:$16 sps:$4 sm:$0xff]  }
  0x94   : > { %1344 = vmatprep.mubr.bf16.mxu1 %v3288_v9  ;;  %1633 = vmatprep.mubr.bf16.mxu0 %v3290_v10  ;;  %v3384_v9 = vld [vmem:[%s3634_s14 + $0x344] ss:$16 sps:$4 sm:$0xff]   ;;  %v3386_v10 = vld [vmem:[%s3634_s14 + $0x34c] ss:$16 sps:$4 sm:$0xff]  }
  0x9b   : > { %1345 = vmatmul.mubr.bf16.gmra.mrb[40].mxu1 %v3292_v11  ;;  %1634 = vmatmul.mubr.bf16.gmra.mrb[40].mxu0 %v3293_v12  ;;  %v3388_v11 = vld [vmem:[%s3634_s14 + $0x340] ss:$16 sps:$4 sm:$0xff]   ;;  %v3389_v12 = vld [vmem:[%s3634_s14 + $0x348] ss:$16 sps:$4 sm:$0xff]  }
  0x9c   : > { %1352 = vmatprep.mubr.bf16.mxu1 %v3294_v13  ;;  %1641 = vmatprep.mubr.bf16.mxu0 %v3296_v14  ;;  %v3390_v13 = vld [vmem:[%s3634_s14 + $0x364] ss:$16 sps:$4 sm:$0xff]   ;;  %v3392_v14 = vld [vmem:[%s3634_s14 + $0x36c] ss:$16 sps:$4 sm:$0xff]  }
  0xa3   : > { %1353 = vmatmul.mubr.bf16.gmra.mrb[44].mxu1 %v3298_v15  ;;  %1642 = vmatmul.mubr.bf16.gmra.mrb[44].mxu0 %v3299_v16  ;;  %v3810_v15 = vld [vmem:[%s4231_s2] ss:$0 sm:$0xff] }
  0xa4   : > { %1360 = vmatprep.mubr.bf16.mxu1 %v3300_v17  ;;  %1649 = vmatprep.mubr.bf16.mxu0 %v3302_v18 }
  0xab   : > { %1361 = vmatmul.mubr.bf16.gmra.mrb[48].mxu1 %v3304_v19  ;;  %1650 = vmatmul.mubr.bf16.gmra.mrb[48].mxu0 %v3305_v20  ;;  %v3394_v20 = vld [vmem:[%s3634_s14 + $0x360] ss:$16 sps:$4 sm:$0xff]  }
  0xac   : > { %1368 = vmatprep.mubr.bf16.mxu1 %v3306_v21  ;;  %1657 = vmatprep.mubr.bf16.mxu0 %v3308_v22 }
  0xb3   : > { %1369 = vmatmul.mubr.bf16.gmra.mrb[52].mxu1 %v3310_v23  ;;  %1658 = vmatmul.mubr.bf16.gmra.mrb[52].mxu0 %v3311_v24  ;;  %v3395_v23 = vld [vmem:[%s3634_s14 + $0x368] ss:$16 sps:$4 sm:$0xff]   ;;  %v3396_v24 = vld [vmem:[%s3634_s14 + $0x384] ss:$16 sps:$4 sm:$0xff]  }
  0xb4   : > { %1376 = vmatprep.mubr.bf16.mxu1 %v3312_v25  ;;  %1665 = vmatprep.mubr.bf16.mxu0 %v3314_v26 }
  0xbb   : > { %1377 = vmatmul.mubr.bf16.gmra.mrb[56].mxu1 %v3316_v27  ;;  %1666 = vmatmul.mubr.bf16.gmra.mrb[56].mxu0 %v3317_v28 }
  0xbc   : > { %1384 = vmatprep.mubr.bf16.mxu1 %v3318_v29  ;;  %1673 = vmatprep.mubr.bf16.mxu0 %v3320_v30  ;;  %v3398_v29 = vld [vmem:[%s3634_s14 + $0x38c] ss:$16 sps:$4 sm:$0xff]  }
  0xc3   : > { %1385 = vmatmul.mubr.bf16.gmra.mrb[60].mxu1 %v3322_v31  ;;  %1674 = vmatmul.mubr.bf16.gmra.mrb[60].mxu0 %v3323_v32 }
  0xc4   : > { %1392 = vmatprep.mubr.bf16.mxu1 %v3324_v33  ;;  %1681 = vmatprep.mubr.bf16.mxu0 %v3326_v34 }
  0xcb   : > { %1393 = vmatmul.mubr.bf16.gmra.mrb[64].mxu1 %v3328_v35  ;;  %1682 = vmatmul.mubr.bf16.gmra.mrb[64].mxu0 %v3329_v36 }
  0xcc   : > { %1400 = vmatprep.mubr.bf16.mxu1 %v3330_v37  ;;  %1689 = vmatprep.mubr.bf16.mxu0 %v3332_v38 }
  0xd3   : > { %1401 = vmatmul.mubr.bf16.gmra.mrb[68].mxu1 %v3334_v39  ;;  %1690 = vmatmul.mubr.bf16.gmra.mrb[68].mxu0 %v3335_v40  ;;  %v3400_v40 = vld [vmem:[%s3634_s14 + $0x380] ss:$16 sps:$4 sm:$0xff]  }
  0xd4   : > { %1408 = vmatprep.mubr.bf16.mxu1 %v3336_v41  ;;  %1697 = vmatprep.mubr.bf16.mxu0 %v3338_v42 }
  0xdb   : > { %1409 = vmatmul.mubr.bf16.gmra.mrb[72].mxu1 %v3340_v43  ;;  %1698 = vmatmul.mubr.bf16.gmra.mrb[72].mxu0 %v3341_v44  ;;  %v3401_v43 = vld [vmem:[%s3634_s14 + $0x388] ss:$16 sps:$4 sm:$0xff]   ;;  %v3402_v44 = vld [vmem:[%s3634_s14 + $0x3a4] ss:$16 sps:$4 sm:$0xff]  }
  0xdc   : > { %1416 = vmatprep.mubr.bf16.mxu1 %v3342_v45  ;;  %1705 = vmatprep.mubr.bf16.mxu0 %v3344_v46 }
  0xe3   : > { %1417 = vmatmul.mubr.bf16.gmra.mrb[76].mxu1 %v3346_v47  ;;  %1706 = vmatmul.mubr.bf16.gmra.mrb[76].mxu0 %v3347_v48 }
  0xe4   : > { %1424 = vmatprep.mubr.bf16.mxu1 %v3348_v49  ;;  %1713 = vmatprep.mubr.bf16.mxu0 %v3350_v50  ;;  %v3404_v49 = vld [vmem:[%s3634_s14 + $0x3ac] ss:$16 sps:$4 sm:$0xff]  }
  0xeb   : > { %1425 = vmatmul.mubr.bf16.gmra.mrb[80].mxu1 %v3352_v51  ;;  %1714 = vmatmul.mubr.bf16.gmra.mrb[80].mxu0 %v3353_v52 }
  0xec   : > { %1432 = vmatprep.mubr.bf16.mxu1 %v3354_v53  ;;  %1721 = vmatprep.mubr.bf16.mxu0 %v3356_v54 }
  0xf3   : > { %1433 = vmatmul.mubr.bf16.gmra.mrb[84].mxu1 %v3358_v55  ;;  %1722 = vmatmul.mubr.bf16.gmra.mrb[84].mxu0 %v3359_v56 }
  0xf4   : > { %1440 = vmatprep.mubr.bf16.mxu1 %v3360_v57  ;;  %1729 = vmatprep.mubr.bf16.mxu0 %v3362_v58 }
  0xfb   : > { %1441 = vmatmul.mubr.bf16.gmra.mrb[88].mxu1 %v3364_v59  ;;  %1730 = vmatmul.mubr.bf16.gmra.mrb[88].mxu0 %v3365_v60  ;;  %v3406_v60 = vld [vmem:[%s3634_s14 + $0x3a0] ss:$16 sps:$4 sm:$0xff]  }
  0xfc   : > { %1448 = vmatprep.mubr.bf16.mxu1 %v3366_v61  ;;  %1737 = vmatprep.mubr.bf16.mxu0 %v3368_v62 }
 0x103   : > { %1449 = vmatmul.mubr.bf16.gmra.mrb[92].mxu1 %v3370_v63  ;;  %1738 = vmatmul.mubr.bf16.gmra.mrb[92].mxu0 %v3371_v0  ;;  %v3407_v63 = vld [vmem:[%s3634_s14 + $0x3a8] ss:$16 sps:$4 sm:$0xff]   ;;  %v3408_v0 = vld [vmem:[%s3634_s14 + $0x3c4] ss:$16 sps:$4 sm:$0xff]  }
 0x104   : > { %1456 = vmatprep.mubr.bf16.mxu1 %v3372_v1  ;;  %1745 = vmatprep.mubr.bf16.mxu0 %v3374_v2 }
 0x10b   : > { %1457 = vmatmul.mubr.bf16.gmra.mrb[96].mxu1 %v3376_v3  ;;  %1746 = vmatmul.mubr.bf16.gmra.mrb[96].mxu0 %v3377_v4 }
 0x10c   : > { %1464 = vmatprep.mubr.bf16.mxu1 %v3378_v5  ;;  %1753 = vmatprep.mubr.bf16.mxu0 %v3380_v6  ;;  %v3410_v5 = vld [vmem:[%s3634_s14 + $0x3cc] ss:$16 sps:$4 sm:$0xff]  }
 0x113   : > { %1465 = vmatmul.mubr.bf16.gmra.mrb[100].mxu1 %v3382_v7  ;;  %1754 = vmatmul.mubr.bf16.gmra.mrb[100].mxu0 %v3383_v8 }
 0x114   : > { %1472 = vmatprep.mubr.bf16.mxu1 %v3384_v9  ;;  %1761 = vmatprep.mubr.bf16.mxu0 %v3386_v10 }
 0x11b   : > { %1473 = vmatmul.mubr.bf16.gmra.mrb[104].mxu1 %v3388_v11  ;;  %1762 = vmatmul.mubr.bf16.gmra.mrb[104].mxu0 %v3389_v12 }
 0x11c   : > { %1480 = vmatprep.mubr.bf16.mxu1 %v3390_v13  ;;  %1769 = vmatprep.mubr.bf16.mxu0 %v3392_v14 }
 0x11e   : > { %v1266_v16 = vpop.f32.mrb[0].mxu1  ;;  %v1555_v18 = vpop.f32.mrb[0].mxu0 }
 0x11f   : > { %v1267_v17 = vadd.f32 %v3810_v15, %v1266_v16  ;;  %v1268_v19 = vpop.f32.mrb[1].mxu1  ;;  %v1557_v21 = vpop.f32.mrb[1].mxu0 }
 0x120   : > { %v1269_v22 = vpop.f32.mrb[2].mxu1  ;;  %v1558_v27 = vpop.f32.mrb[2].mxu0  ;;  %v3414_v21 = vld [vmem:[%s3634_s14 + $0x3e4] ss:$16 sps:$4 sm:$0xff]  }
 0x121   : > { %v1556_v25 = vadd.f32 %v1555_v18, %v1267_v17  ;;  %v1270_v26 = vadd.f32 %v3810_v15, %v1269_v22  ;;  %v1271_v28 = vpop.f32.mrb[3].mxu1  ;;  %v1560_v30 = vpop.f32.mrb[3].mxu0  ;;  %v3412_v17 = vld [vmem:[%s3634_s14 + $0x3c0] ss:$16 sps:$4 sm:$0xff]  }
 0x123   : > { %v1810_v31 = vmax.f32 %v1556_v25, 0.0  ;;  %v1559_v32 = vadd.f32 %v1558_v27, %v1270_v26  ;;  %1481 = vmatmul.mubr.bf16.gmra.mrb[108].mxu1 %v3394_v20  ;;  %1770 = vmatmul.mubr.bf16.gmra.mrb[108].mxu0 %v3395_v23  ;;  %v3413_v20 = vld [vmem:[%s3634_s14 + $0x3c8] ss:$16 sps:$4 sm:$0xff]   ;;  %v3416_v26 = vld [vmem:[%s3634_s14 + $0x3ec] ss:$16 sps:$4 sm:$0xff]  }
 0x124   : > { %1488 = vmatprep.mubr.bf16.mxu1 %v3396_v24  ;;  %1777 = vmatprep.mubr.bf16.mxu0 %v3398_v29 }
 0x125   : > { %v2912_v33 = vpack.c.bf16 %v1810_v31, %v1810_v31  ;;  %v1811_v34 = vmax.f32 %v1559_v32, 0.0 }
 0x126   : > { %v1274_v35 = vpop.f32.mrb[4].mxu1  ;;  %v1563_v38 = vpop.f32.mrb[4].mxu0 }
 0x127   : > { %2131 = vst.msk [vmem:[%s3819_s12] sm:$0xf] %vm2130_vm0, %v2912_v33  ;;  %v2913_v36 = vpack.c.bf16 %v1811_v34, %v1811_v34  ;;  %v1275_v37 = vadd.f32 %v3810_v15, %v1274_v35  ;;  %v1276_v39 = vpop.f32.mrb[5].mxu1  ;;  %v1565_v41 = vpop.f32.mrb[5].mxu0 }
 0x128   : > { %v1277_v42 = vpop.f32.mrb[6].mxu1  ;;  %v1566_v47 = vpop.f32.mrb[6].mxu0 }
 0x129   : > { %2132 = vst.msk [vmem:[%s3819_s12 + $0x4] sm:$0xf] %vm2130_vm0, %v2913_v36  ;;  %v1564_v45 = vadd.f32 %v1563_v38, %v1275_v37  ;;  %v1278_v46 = vadd.f32 %v3810_v15, %v1277_v42  ;;  %v1279_v48 = vpop.f32.mrb[7].mxu1  ;;  %v1568_v50 = vpop.f32.mrb[7].mxu0  ;;  %v3418_v37 = vld [vmem:[%s3634_s14 + $0x3e0] ss:$16 sps:$4 sm:$0xff]  }
 0x12b   : > { %v1812_v51 = vmax.f32 %v1564_v45, 0.0  ;;  %v1567_v52 = vadd.f32 %v1566_v47, %v1278_v46  ;;  %1489 = vmatmul.mubr.bf16.gmra.mrb[112].mxu1 %v3400_v40  ;;  %1778 = vmatmul.mubr.bf16.gmra.mrb[112].mxu0 %v3401_v43  ;;  %v3419_v40 = vld [vmem:[%s3634_s14 + $0x3e8] ss:$16 sps:$4 sm:$0xff]  }
 0x12c   : > { %1496 = vmatprep.mubr.bf16.mxu1 %v3402_v44  ;;  %1785 = vmatprep.mubr.bf16.mxu0 %v3404_v49 }
 0x12d   : > { %v2914_v53 = vpack.c.bf16 %v1812_v51, %v1812_v51  ;;  %v1813_v54 = vmax.f32 %v1567_v52, 0.0 }
 0x12e   : > { %v1282_v55 = vpop.f32.mrb[8].mxu1  ;;  %v1571_v58 = vpop.f32.mrb[8].mxu0 }
 0x12f   : > { %2133 = vst.msk [vmem:[%s3819_s12 + $0x8] sm:$0xf] %vm2130_vm0, %v2914_v53  ;;  %v2915_v56 = vpack.c.bf16 %v1813_v54, %v1813_v54  ;;  %v1283_v57 = vadd.f32 %v3810_v15, %v1282_v55  ;;  %v1284_v59 = vpop.f32.mrb[9].mxu1  ;;  %v1573_v61 = vpop.f32.mrb[9].mxu0 }
 0x130   : > { %v1285_v62 = vpop.f32.mrb[10].mxu1  ;;  %v1574_v3 = vpop.f32.mrb[10].mxu0 }
 0x131   : > { %2134 = vst.msk [vmem:[%s3819_s12 + $0xc] sm:$0xf] %vm2130_vm0, %v2915_v56  ;;  %v1572_v1 = vadd.f32 %v1571_v58, %v1283_v57  ;;  %v1286_v2 = vadd.f32 %v3810_v15, %v1285_v62  ;;  %v1287_v4 = vpop.f32.mrb[11].mxu1  ;;  %v1576_v6 = vpop.f32.mrb[11].mxu0 }
 0x133   : > { %v1814_v7 = vmax.f32 %v1572_v1, 0.0  ;;  %v1575_v8 = vadd.f32 %v1574_v3, %v1286_v2  ;;  %1497 = vmatmul.mubr.bf16.gmra.mrb[116].mxu1 %v3406_v60  ;;  %1786 = vmatmul.mubr.bf16.gmra.mrb[116].mxu0 %v3407_v63 }
 0x134   : > { %1504 = vmatprep.mubr.bf16.mxu1 %v3408_v0  ;;  %1793 = vmatprep.mubr.bf16.mxu0 %v3410_v5 }
 0x135   : > { %v2916_v9 = vpack.c.bf16 %v1814_v7, %v1814_v7  ;;  %v1815_v10 = vmax.f32 %v1575_v8, 0.0 }
 0x136   : > { %v1290_v11 = vpop.f32.mrb[12].mxu1  ;;  %v1579_v14 = vpop.f32.mrb[12].mxu0 }
 0x137   : > { %2135 = vst.msk [vmem:[%s3819_s12 + $0x10] sm:$0xf] %vm2130_vm0, %v2916_v9  ;;  %v2917_v12 = vpack.c.bf16 %v1815_v10, %v1815_v10  ;;  %v1291_v13 = vadd.f32 %v3810_v15, %v1290_v11  ;;  %v1292_v16 = vpop.f32.mrb[13].mxu1  ;;  %v1581_v18 = vpop.f32.mrb[13].mxu0 }
 0x138   : > { %v1293_v19 = vpop.f32.mrb[14].mxu1  ;;  %v1582_v24 = vpop.f32.mrb[14].mxu0 }
 0x139   : > { %2136 = vst.msk [vmem:[%s3819_s12 + $0x14] sm:$0xf] %vm2130_vm0, %v2917_v12  ;;  %v1580_v22 = vadd.f32 %v1579_v14, %v1291_v13  ;;  %v1294_v23 = vadd.f32 %v3810_v15, %v1293_v19  ;;  %v1295_v25 = vpop.f32.mrb[15].mxu1  ;;  %v1584_v27 = vpop.f32.mrb[15].mxu0 }
 0x13b   : > { %v1816_v28 = vmax.f32 %v1580_v22, 0.0  ;;  %v1583_v29 = vadd.f32 %v1582_v24, %v1294_v23  ;;  %1505 = vmatmul.mubr.bf16.gmra.mrb[120].mxu1 %v3412_v17  ;;  %1794 = vmatmul.mubr.bf16.gmra.mrb[120].mxu0 %v3413_v20 }
 0x13c   : > { %1512 = vmatprep.mubr.bf16.mxu1 %v3414_v21  ;;  %1801 = vmatprep.mubr.bf16.mxu0 %v3416_v26 }
 0x13d   : > { %v2918_v30 = vpack.c.bf16 %v1816_v28, %v1816_v28  ;;  %v1817_v31 = vmax.f32 %v1583_v29, 0.0 }
 0x13e   : > { %v1298_v32 = vpop.f32.mrb[16].mxu1  ;;  %v1587_v35 = vpop.f32.mrb[16].mxu0 }
 0x13f   : > { %2137 = vst.msk [vmem:[%s3819_s12 + $0x18] sm:$0xf] %vm2130_vm0, %v2918_v30  ;;  %v2919_v33 = vpack.c.bf16 %v1817_v31, %v1817_v31  ;;  %v1299_v34 = vadd.f32 %v3810_v15, %v1298_v32  ;;  %v1300_v36 = vpop.f32.mrb[17].mxu1  ;;  %v1589_v38 = vpop.f32.mrb[17].mxu0 }
 0x140   : > { %v1301_v39 = vpop.f32.mrb[18].mxu1  ;;  %v1590_v43 = vpop.f32.mrb[18].mxu0 }
 0x141   : > { %2138 = vst.msk [vmem:[%s3819_s12 + $0x1c] sm:$0xf] %vm2130_vm0, %v2919_v33  ;;  %v1588_v41 = vadd.f32 %v1587_v35, %v1299_v34  ;;  %v1302_v42 = vadd.f32 %v3810_v15, %v1301_v39  ;;  %v1303_v44 = vpop.f32.mrb[19].mxu1  ;;  %v1592_v45 = vpop.f32.mrb[19].mxu0 }
 0x143   : > { %v1818_v46 = vmax.f32 %v1588_v41, 0.0  ;;  %v1591_v47 = vadd.f32 %v1590_v43, %v1302_v42  ;;  %1513 = vmatmul.mubr.bf16.gmra.mrb[124].mxu1 %v3418_v37  ;;  %1802 = vmatmul.mubr.bf16.gmra.mrb[124].mxu0 %v3419_v40 }
 0x145   : > { %v2920_v48 = vpack.c.bf16 %v1818_v46, %v1818_v46  ;;  %v1819_v49 = vmax.f32 %v1591_v47, 0.0 }
 0x146   : > { %v1306_v50 = vpop.f32.mrb[20].mxu1  ;;  %v1595_v53 = vpop.f32.mrb[20].mxu0 }
 0x147   : > { %2139 = vst.msk [vmem:[%s3819_s12 + $0x20] sm:$0xf] %vm2130_vm0, %v2920_v48  ;;  %v2921_v51 = vpack.c.bf16 %v1819_v49, %v1819_v49  ;;  %v1307_v52 = vadd.f32 %v3810_v15, %v1306_v50  ;;  %v1308_v54 = vpop.f32.mrb[21].mxu1  ;;  %v1597_v55 = vpop.f32.mrb[21].mxu0 }
 0x148   : > { %v1309_v56 = vpop.f32.mrb[22].mxu1  ;;  %v1598_v59 = vpop.f32.mrb[22].mxu0 }
 0x149   : > { %2140 = vst.msk [vmem:[%s3819_s12 + $0x24] sm:$0xf] %vm2130_vm0, %v2921_v51  ;;  %v1596_v57 = vadd.f32 %v1595_v53, %v1307_v52  ;;  %v1310_v58 = vadd.f32 %v3810_v15, %v1309_v56  ;;  %v1311_v60 = vpop.f32.mrb[23].mxu1  ;;  %v1600_v61 = vpop.f32.mrb[23].mxu0 }
 0x14b   : > { %v1820_v62 = vmax.f32 %v1596_v57, 0.0  ;;  %v1599_v63 = vadd.f32 %v1598_v59, %v1310_v58 }
 0x14d   : > { %v2922_v0 = vpack.c.bf16 %v1820_v62, %v1820_v62  ;;  %v1821_v1 = vmax.f32 %v1599_v63, 0.0 }
 0x14e   : > { %v1314_v2 = vpop.f32.mrb[24].mxu1  ;;  %v1603_v5 = vpop.f32.mrb[24].mxu0 }
 0x14f   : > { %2141 = vst.msk [vmem:[%s3819_s12 + $0x28] sm:$0xf] %vm2130_vm0, %v2922_v0  ;;  %v2923_v3 = vpack.c.bf16 %v1821_v1, %v1821_v1  ;;  %v1315_v4 = vadd.f32 %v3810_v15, %v1314_v2  ;;  %v1316_v6 = vpop.f32.mrb[25].mxu1  ;;  %v1605_v7 = vpop.f32.mrb[25].mxu0 }
 0x150   : > { %v1317_v8 = vpop.f32.mrb[26].mxu1  ;;  %v1606_v11 = vpop.f32.mrb[26].mxu0 }
 0x151   : > { %2142 = vst.msk [vmem:[%s3819_s12 + $0x2c] sm:$0xf] %vm2130_vm0, %v2923_v3  ;;  %v1604_v9 = vadd.f32 %v1603_v5, %v1315_v4  ;;  %v1318_v10 = vadd.f32 %v3810_v15, %v1317_v8  ;;  %v1319_v12 = vpop.f32.mrb[27].mxu1  ;;  %v1608_v13 = vpop.f32.mrb[27].mxu0 }
 0x153   : > { %v1822_v14 = vmax.f32 %v1604_v9, 0.0  ;;  %v1607_v16 = vadd.f32 %v1606_v11, %v1318_v10 }
 0x155   : > { %v2924_v17 = vpack.c.bf16 %v1822_v14, %v1822_v14  ;;  %v1823_v18 = vmax.f32 %v1607_v16, 0.0 }
 0x156   : > { %v1322_v19 = vpop.f32.mrb[28].mxu1  ;;  %v1611_v22 = vpop.f32.mrb[28].mxu0 }
 0x157   : > { %2143 = vst.msk [vmem:[%s3819_s12 + $0x30] sm:$0xf] %vm2130_vm0, %v2924_v17  ;;  %v2925_v20 = vpack.c.bf16 %v1823_v18, %v1823_v18  ;;  %v1323_v21 = vadd.f32 %v3810_v15, %v1322_v19  ;;  %v1324_v23 = vpop.f32.mrb[29].mxu1  ;;  %v1613_v24 = vpop.f32.mrb[29].mxu0 }
 0x158   : > { %v1325_v25 = vpop.f32.mrb[30].mxu1  ;;  %v1614_v28 = vpop.f32.mrb[30].mxu0 }
 0x159   : > { %2144 = vst.msk [vmem:[%s3819_s12 + $0x34] sm:$0xf] %vm2130_vm0, %v2925_v20  ;;  %v1612_v26 = vadd.f32 %v1611_v22, %v1323_v21  ;;  %v1326_v27 = vadd.f32 %v3810_v15, %v1325_v25  ;;  %v1327_v29 = vpop.f32.mrb[31].mxu1  ;;  %v1616_v30 = vpop.f32.mrb[31].mxu0 }
 0x15b   : > { %v1824_v31 = vmax.f32 %v1612_v26, 0.0  ;;  %v1615_v32 = vadd.f32 %v1614_v28, %v1326_v27 }
 0x15d   : > { %v2926_v33 = vpack.c.bf16 %v1824_v31, %v1824_v31  ;;  %v1825_v34 = vmax.f32 %v1615_v32, 0.0 }
 0x15e   : > { %v1330_v35 = vpop.f32.mrb[32].mxu1  ;;  %v1619_v38 = vpop.f32.mrb[32].mxu0 }
 0x15f   : > { %2145 = vst.msk [vmem:[%s3819_s12 + $0x38] sm:$0xf] %vm2130_vm0, %v2926_v33  ;;  %v2927_v36 = vpack.c.bf16 %v1825_v34, %v1825_v34  ;;  %v1331_v37 = vadd.f32 %v3810_v15, %v1330_v35  ;;  %v1332_v39 = vpop.f32.mrb[33].mxu1  ;;  %v1621_v40 = vpop.f32.mrb[33].mxu0 }
 0x160   : > { %v1333_v41 = vpop.f32.mrb[34].mxu1  ;;  %v1622_v44 = vpop.f32.mrb[34].mxu0 }
 0x161   : > { %2146 = vst.msk [vmem:[%s3819_s12 + $0x3c] sm:$0xf] %vm2130_vm0, %v2927_v36  ;;  %v1620_v42 = vadd.f32 %v1619_v38, %v1331_v37  ;;  %v1334_v43 = vadd.f32 %v3810_v15, %v1333_v41  ;;  %v1335_v45 = vpop.f32.mrb[35].mxu1  ;;  %v1624_v46 = vpop.f32.mrb[35].mxu0 }
 0x163   : > { %v1826_v47 = vmax.f32 %v1620_v42, 0.0  ;;  %v1623_v48 = vadd.f32 %v1622_v44, %v1334_v43 }
 0x165   : > { %v2928_v49 = vpack.c.bf16 %v1826_v47, %v1826_v47  ;;  %v1827_v50 = vmax.f32 %v1623_v48, 0.0 }
 0x166   : > { %v1338_v51 = vpop.f32.mrb[36].mxu1  ;;  %v1627_v54 = vpop.f32.mrb[36].mxu0 }
 0x167   : > { %2147 = vst.msk [vmem:[%s3819_s12 + $0x40] sm:$0xf] %vm2130_vm0, %v2928_v49  ;;  %v2929_v52 = vpack.c.bf16 %v1827_v50, %v1827_v50  ;;  %v1339_v53 = vadd.f32 %v3810_v15, %v1338_v51  ;;  %v1340_v55 = vpop.f32.mrb[37].mxu1  ;;  %v1629_v56 = vpop.f32.mrb[37].mxu0 }
 0x168   : > { %v1341_v57 = vpop.f32.mrb[38].mxu1  ;;  %v1630_v60 = vpop.f32.mrb[38].mxu0 }
 0x169   : > { %2148 = vst.msk [vmem:[%s3819_s12 + $0x44] sm:$0xf] %vm2130_vm0, %v2929_v52  ;;  %v1628_v58 = vadd.f32 %v1627_v54, %v1339_v53  ;;  %v1342_v59 = vadd.f32 %v3810_v15, %v1341_v57  ;;  %v1343_v61 = vpop.f32.mrb[39].mxu1  ;;  %v1632_v62 = vpop.f32.mrb[39].mxu0 }
 0x16b   : > { %v1828_v63 = vmax.f32 %v1628_v58, 0.0  ;;  %v1631_v0 = vadd.f32 %v1630_v60, %v1342_v59 }
 0x16d   : > { %v2930_v1 = vpack.c.bf16 %v1828_v63, %v1828_v63  ;;  %v1829_v2 = vmax.f32 %v1631_v0, 0.0 }
 0x16e   : > { %v1346_v3 = vpop.f32.mrb[40].mxu1  ;;  %v1635_v6 = vpop.f32.mrb[40].mxu0 }
 0x16f   : > { %2149 = vst.msk [vmem:[%s3819_s12 + $0x48] sm:$0xf] %vm2130_vm0, %v2930_v1  ;;  %v2931_v4 = vpack.c.bf16 %v1829_v2, %v1829_v2  ;;  %v1347_v5 = vadd.f32 %v3810_v15, %v1346_v3  ;;  %v1348_v7 = vpop.f32.mrb[41].mxu1  ;;  %v1637_v8 = vpop.f32.mrb[41].mxu0 }
 0x170   : > { %v1349_v9 = vpop.f32.mrb[42].mxu1  ;;  %v1638_v12 = vpop.f32.mrb[42].mxu0 }
 0x171   : > { %2150 = vst.msk [vmem:[%s3819_s12 + $0x4c] sm:$0xf] %vm2130_vm0, %v2931_v4  ;;  %v1636_v10 = vadd.f32 %v1635_v6, %v1347_v5  ;;  %v1350_v11 = vadd.f32 %v3810_v15, %v1349_v9  ;;  %v1351_v13 = vpop.f32.mrb[43].mxu1  ;;  %v1640_v14 = vpop.f32.mrb[43].mxu0 }
 0x173   : > { %v1830_v16 = vmax.f32 %v1636_v10, 0.0  ;;  %v1639_v17 = vadd.f32 %v1638_v12, %v1350_v11 }
 0x175   : > { %v2932_v18 = vpack.c.bf16 %v1830_v16, %v1830_v16  ;;  %v1831_v19 = vmax.f32 %v1639_v17, 0.0 }
 0x176   : > { %v1354_v20 = vpop.f32.mrb[44].mxu1  ;;  %v1643_v23 = vpop.f32.mrb[44].mxu0 }
 0x177   : > { %2151 = vst.msk [vmem:[%s3819_s12 + $0x50] sm:$0xf] %vm2130_vm0, %v2932_v18  ;;  %v2933_v21 = vpack.c.bf16 %v1831_v19, %v1831_v19  ;;  %v1355_v22 = vadd.f32 %v3810_v15, %v1354_v20  ;;  %v1356_v24 = vpop.f32.mrb[45].mxu1  ;;  %v1645_v25 = vpop.f32.mrb[45].mxu0 }
 0x178   : > { %v1357_v26 = vpop.f32.mrb[46].mxu1  ;;  %v1646_v29 = vpop.f32.mrb[46].mxu0 }
 0x179   : > { %2152 = vst.msk [vmem:[%s3819_s12 + $0x54] sm:$0xf] %vm2130_vm0, %v2933_v21  ;;  %v1644_v27 = vadd.f32 %v1643_v23, %v1355_v22  ;;  %v1358_v28 = vadd.f32 %v3810_v15, %v1357_v26  ;;  %v1359_v30 = vpop.f32.mrb[47].mxu1  ;;  %v1648_v31 = vpop.f32.mrb[47].mxu0 }
 0x17b   : > { %v1832_v32 = vmax.f32 %v1644_v27, 0.0  ;;  %v1647_v33 = vadd.f32 %v1646_v29, %v1358_v28 }
 0x17d   : > { %v2934_v34 = vpack.c.bf16 %v1832_v32, %v1832_v32  ;;  %v1833_v35 = vmax.f32 %v1647_v33, 0.0 }
 0x17e   : > { %v1362_v36 = vpop.f32.mrb[48].mxu1  ;;  %v1651_v39 = vpop.f32.mrb[48].mxu0 }
 0x17f   : > { %2153 = vst.msk [vmem:[%s3819_s12 + $0x58] sm:$0xf] %vm2130_vm0, %v2934_v34  ;;  %v2935_v37 = vpack.c.bf16 %v1833_v35, %v1833_v35  ;;  %v1363_v38 = vadd.f32 %v3810_v15, %v1362_v36  ;;  %v1364_v40 = vpop.f32.mrb[49].mxu1  ;;  %v1653_v41 = vpop.f32.mrb[49].mxu0 }
 0x180   : > { %v1365_v42 = vpop.f32.mrb[50].mxu1  ;;  %v1654_v45 = vpop.f32.mrb[50].mxu0 }
 0x181   : > { %2154 = vst.msk [vmem:[%s3819_s12 + $0x5c] sm:$0xf] %vm2130_vm0, %v2935_v37  ;;  %v1652_v43 = vadd.f32 %v1651_v39, %v1363_v38  ;;  %v1366_v44 = vadd.f32 %v3810_v15, %v1365_v42  ;;  %v1367_v46 = vpop.f32.mrb[51].mxu1  ;;  %v1656_v47 = vpop.f32.mrb[51].mxu0 }
 0x183   : > { %v1834_v48 = vmax.f32 %v1652_v43, 0.0  ;;  %v1655_v49 = vadd.f32 %v1654_v45, %v1366_v44 }
 0x185   : > { %v2936_v50 = vpack.c.bf16 %v1834_v48, %v1834_v48  ;;  %v1835_v51 = vmax.f32 %v1655_v49, 0.0 }
 0x186   : > { %v1370_v52 = vpop.f32.mrb[52].mxu1  ;;  %v1659_v55 = vpop.f32.mrb[52].mxu0 }
 0x187   : > { %2155 = vst.msk [vmem:[%s3819_s12 + $0x60] sm:$0xf] %vm2130_vm0, %v2936_v50  ;;  %v2937_v53 = vpack.c.bf16 %v1835_v51, %v1835_v51  ;;  %v1371_v54 = vadd.f32 %v3810_v15, %v1370_v52  ;;  %v1372_v56 = vpop.f32.mrb[53].mxu1  ;;  %v1661_v57 = vpop.f32.mrb[53].mxu0 }
 0x188   : > { %v1373_v58 = vpop.f32.mrb[54].mxu1  ;;  %v1662_v61 = vpop.f32.mrb[54].mxu0 }
 0x189   : > { %2156 = vst.msk [vmem:[%s3819_s12 + $0x64] sm:$0xf] %vm2130_vm0, %v2937_v53  ;;  %v1660_v59 = vadd.f32 %v1659_v55, %v1371_v54  ;;  %v1374_v60 = vadd.f32 %v3810_v15, %v1373_v58  ;;  %v1375_v62 = vpop.f32.mrb[55].mxu1  ;;  %v1664_v63 = vpop.f32.mrb[55].mxu0 }
 0x18b   : > { %v1836_v0 = vmax.f32 %v1660_v59, 0.0  ;;  %v1663_v1 = vadd.f32 %v1662_v61, %v1374_v60 }
 0x18d   : > { %v2938_v2 = vpack.c.bf16 %v1836_v0, %v1836_v0  ;;  %v1837_v3 = vmax.f32 %v1663_v1, 0.0 }
 0x18e   : > { %v1378_v4 = vpop.f32.mrb[56].mxu1  ;;  %v1667_v7 = vpop.f32.mrb[56].mxu0 }
 0x18f   : > { %2157 = vst.msk [vmem:[%s3819_s12 + $0x68] sm:$0xf] %vm2130_vm0, %v2938_v2  ;;  %v2939_v5 = vpack.c.bf16 %v1837_v3, %v1837_v3  ;;  %v1379_v6 = vadd.f32 %v3810_v15, %v1378_v4  ;;  %v1380_v8 = vpop.f32.mrb[57].mxu1  ;;  %v1669_v9 = vpop.f32.mrb[57].mxu0 }
 0x190   : > { %v1381_v10 = vpop.f32.mrb[58].mxu1  ;;  %v1670_v13 = vpop.f32.mrb[58].mxu0 }
 0x191   : > { %2158 = vst.msk [vmem:[%s3819_s12 + $0x6c] sm:$0xf] %vm2130_vm0, %v2939_v5  ;;  %v1668_v11 = vadd.f32 %v1667_v7, %v1379_v6  ;;  %v1382_v12 = vadd.f32 %v3810_v15, %v1381_v10  ;;  %v1383_v14 = vpop.f32.mrb[59].mxu1  ;;  %v1672_v16 = vpop.f32.mrb[59].mxu0 }
 0x193   : > { %v1838_v17 = vmax.f32 %v1668_v11, 0.0  ;;  %v1671_v18 = vadd.f32 %v1670_v13, %v1382_v12 }
 0x195   : > { %v2940_v19 = vpack.c.bf16 %v1838_v17, %v1838_v17  ;;  %v1839_v20 = vmax.f32 %v1671_v18, 0.0 }
 0x196   : > { %v1386_v21 = vpop.f32.mrb[60].mxu1  ;;  %v1675_v24 = vpop.f32.mrb[60].mxu0 }
 0x197   : > { %2159 = vst.msk [vmem:[%s3819_s12 + $0x70] sm:$0xf] %vm2130_vm0, %v2940_v19  ;;  %v2941_v22 = vpack.c.bf16 %v1839_v20, %v1839_v20  ;;  %v1387_v23 = vadd.f32 %v3810_v15, %v1386_v21  ;;  %v1388_v25 = vpop.f32.mrb[61].mxu1  ;;  %v1677_v26 = vpop.f32.mrb[61].mxu0 }
 0x198   : > { %v1389_v27 = vpop.f32.mrb[62].mxu1  ;;  %v1678_v30 = vpop.f32.mrb[62].mxu0 }
 0x199   : > { %2160 = vst.msk [vmem:[%s3819_s12 + $0x74] sm:$0xf] %vm2130_vm0, %v2941_v22  ;;  %v1676_v28 = vadd.f32 %v1675_v24, %v1387_v23  ;;  %v1390_v29 = vadd.f32 %v3810_v15, %v1389_v27  ;;  %v1391_v31 = vpop.f32.mrb[63].mxu1  ;;  %v1680_v32 = vpop.f32.mrb[63].mxu0 }
 0x19b   : > { %v1840_v33 = vmax.f32 %v1676_v28, 0.0  ;;  %v1679_v34 = vadd.f32 %v1678_v30, %v1390_v29 }
 0x19d   : > { %v2942_v35 = vpack.c.bf16 %v1840_v33, %v1840_v33  ;;  %v1841_v36 = vmax.f32 %v1679_v34, 0.0 }
 0x19e   : > { %v1394_v37 = vpop.f32.mrb[64].mxu1  ;;  %v1683_v40 = vpop.f32.mrb[64].mxu0 }
 0x19f   : > { %2161 = vst.msk [vmem:[%s3819_s12 + $0x78] sm:$0xf] %vm2130_vm0, %v2942_v35  ;;  %v2943_v38 = vpack.c.bf16 %v1841_v36, %v1841_v36  ;;  %v1395_v39 = vadd.f32 %v3810_v15, %v1394_v37  ;;  %v1396_v41 = vpop.f32.mrb[65].mxu1  ;;  %v1685_v42 = vpop.f32.mrb[65].mxu0 }
 0x1a0   : > { %v1397_v43 = vpop.f32.mrb[66].mxu1  ;;  %v1686_v46 = vpop.f32.mrb[66].mxu0 }
 0x1a1   : > { %2162 = vst.msk [vmem:[%s3819_s12 + $0x7c] sm:$0xf] %vm2130_vm0, %v2943_v38  ;;  %v1684_v44 = vadd.f32 %v1683_v40, %v1395_v39  ;;  %v1398_v45 = vadd.f32 %v3810_v15, %v1397_v43  ;;  %v1399_v47 = vpop.f32.mrb[67].mxu1  ;;  %v1688_v48 = vpop.f32.mrb[67].mxu0 }
 0x1a3   : > { %v1842_v49 = vmax.f32 %v1684_v44, 0.0  ;;  %v1687_v50 = vadd.f32 %v1686_v46, %v1398_v45 }
 0x1a5   : > { %v2944_v51 = vpack.c.bf16 %v1842_v49, %v1842_v49  ;;  %v1843_v52 = vmax.f32 %v1687_v50, 0.0 }
 0x1a6   : > { %v1402_v53 = vpop.f32.mrb[68].mxu1  ;;  %v1691_v56 = vpop.f32.mrb[68].mxu0 }
 0x1a7   : > { %2163 = vst.msk [vmem:[%s3819_s12 + $0x80] sm:$0xf] %vm2130_vm0, %v2944_v51  ;;  %v2945_v54 = vpack.c.bf16 %v1843_v52, %v1843_v52  ;;  %v1403_v55 = vadd.f32 %v3810_v15, %v1402_v53  ;;  %v1404_v57 = vpop.f32.mrb[69].mxu1  ;;  %v1693_v58 = vpop.f32.mrb[69].mxu0 }
 0x1a8   : > { %v1405_v59 = vpop.f32.mrb[70].mxu1  ;;  %v1694_v62 = vpop.f32.mrb[70].mxu0 }
 0x1a9   : > { %2164 = vst.msk [vmem:[%s3819_s12 + $0x84] sm:$0xf] %vm2130_vm0, %v2945_v54  ;;  %v1692_v60 = vadd.f32 %v1691_v56, %v1403_v55  ;;  %v1406_v61 = vadd.f32 %v3810_v15, %v1405_v59  ;;  %v1407_v63 = vpop.f32.mrb[71].mxu1  ;;  %v1696_v0 = vpop.f32.mrb[71].mxu0 }
 0x1ab   : > { %v1844_v1 = vmax.f32 %v1692_v60, 0.0  ;;  %v1695_v2 = vadd.f32 %v1694_v62, %v1406_v61 }
 0x1ad   : > { %v2946_v3 = vpack.c.bf16 %v1844_v1, %v1844_v1  ;;  %v1845_v4 = vmax.f32 %v1695_v2, 0.0 }
 0x1ae   : > { %v1410_v5 = vpop.f32.mrb[72].mxu1  ;;  %v1699_v8 = vpop.f32.mrb[72].mxu0 }
 0x1af   : > { %2165 = vst.msk [vmem:[%s3819_s12 + $0x88] sm:$0xf] %vm2130_vm0, %v2946_v3  ;;  %v2947_v6 = vpack.c.bf16 %v1845_v4, %v1845_v4  ;;  %v1411_v7 = vadd.f32 %v3810_v15, %v1410_v5  ;;  %v1412_v9 = vpop.f32.mrb[73].mxu1  ;;  %v1701_v10 = vpop.f32.mrb[73].mxu0 }
 0x1b0   : > { %v1413_v11 = vpop.f32.mrb[74].mxu1  ;;  %v1702_v14 = vpop.f32.mrb[74].mxu0 }
 0x1b1   : > { %2166 = vst.msk [vmem:[%s3819_s12 + $0x8c] sm:$0xf] %vm2130_vm0, %v2947_v6  ;;  %v1700_v12 = vadd.f32 %v1699_v8, %v1411_v7  ;;  %v1414_v13 = vadd.f32 %v3810_v15, %v1413_v11  ;;  %v1415_v16 = vpop.f32.mrb[75].mxu1  ;;  %v1704_v17 = vpop.f32.mrb[75].mxu0 }
 0x1b3   : > { %v1846_v18 = vmax.f32 %v1700_v12, 0.0  ;;  %v1703_v19 = vadd.f32 %v1702_v14, %v1414_v13 }
 0x1b5   : > { %v2948_v20 = vpack.c.bf16 %v1846_v18, %v1846_v18  ;;  %v1847_v21 = vmax.f32 %v1703_v19, 0.0 }
 0x1b6   : > { %v1418_v22 = vpop.f32.mrb[76].mxu1  ;;  %v1707_v25 = vpop.f32.mrb[76].mxu0 }
 0x1b7   : > { %2167 = vst.msk [vmem:[%s3819_s12 + $0x90] sm:$0xf] %vm2130_vm0, %v2948_v20  ;;  %v2949_v23 = vpack.c.bf16 %v1847_v21, %v1847_v21  ;;  %v1419_v24 = vadd.f32 %v3810_v15, %v1418_v22  ;;  %v1420_v26 = vpop.f32.mrb[77].mxu1  ;;  %v1709_v27 = vpop.f32.mrb[77].mxu0 }
 0x1b8   : > { %v1421_v28 = vpop.f32.mrb[78].mxu1  ;;  %v1710_v31 = vpop.f32.mrb[78].mxu0 }
 0x1b9   : > { %2168 = vst.msk [vmem:[%s3819_s12 + $0x94] sm:$0xf] %vm2130_vm0, %v2949_v23  ;;  %v1708_v29 = vadd.f32 %v1707_v25, %v1419_v24  ;;  %v1422_v30 = vadd.f32 %v3810_v15, %v1421_v28  ;;  %v1423_v32 = vpop.f32.mrb[79].mxu1  ;;  %v1712_v33 = vpop.f32.mrb[79].mxu0 }
 0x1bb   : > { %v1848_v34 = vmax.f32 %v1708_v29, 0.0  ;;  %v1711_v35 = vadd.f32 %v1710_v31, %v1422_v30 }
 0x1bd   : > { %v2950_v36 = vpack.c.bf16 %v1848_v34, %v1848_v34  ;;  %v1849_v37 = vmax.f32 %v1711_v35, 0.0 }
 0x1be   : > { %v1426_v38 = vpop.f32.mrb[80].mxu1  ;;  %v1715_v41 = vpop.f32.mrb[80].mxu0 }
 0x1bf   : > { %2169 = vst.msk [vmem:[%s3819_s12 + $0x98] sm:$0xf] %vm2130_vm0, %v2950_v36  ;;  %v2951_v39 = vpack.c.bf16 %v1849_v37, %v1849_v37  ;;  %v1427_v40 = vadd.f32 %v3810_v15, %v1426_v38  ;;  %v1428_v42 = vpop.f32.mrb[81].mxu1  ;;  %v1717_v43 = vpop.f32.mrb[81].mxu0 }
 0x1c0   : > { %v1429_v44 = vpop.f32.mrb[82].mxu1  ;;  %v1718_v47 = vpop.f32.mrb[82].mxu0 }
 0x1c1   : > { %2170 = vst.msk [vmem:[%s3819_s12 + $0x9c] sm:$0xf] %vm2130_vm0, %v2951_v39  ;;  %v1716_v45 = vadd.f32 %v1715_v41, %v1427_v40  ;;  %v1430_v46 = vadd.f32 %v3810_v15, %v1429_v44  ;;  %v1431_v48 = vpop.f32.mrb[83].mxu1  ;;  %v1720_v49 = vpop.f32.mrb[83].mxu0 }
 0x1c3   : > { %v1850_v50 = vmax.f32 %v1716_v45, 0.0  ;;  %v1719_v51 = vadd.f32 %v1718_v47, %v1430_v46 }
 0x1c5   : > { %v2952_v52 = vpack.c.bf16 %v1850_v50, %v1850_v50  ;;  %v1851_v53 = vmax.f32 %v1719_v51, 0.0 }
 0x1c6   : > { %v1434_v54 = vpop.f32.mrb[84].mxu1  ;;  %v1723_v57 = vpop.f32.mrb[84].mxu0 }
 0x1c7   : > { %2171 = vst.msk [vmem:[%s3819_s12 + $0xa0] sm:$0xf] %vm2130_vm0, %v2952_v52  ;;  %v2953_v55 = vpack.c.bf16 %v1851_v53, %v1851_v53  ;;  %v1435_v56 = vadd.f32 %v3810_v15, %v1434_v54  ;;  %v1436_v58 = vpop.f32.mrb[85].mxu1  ;;  %v1725_v59 = vpop.f32.mrb[85].mxu0 }
 0x1c8   : > { %v1437_v60 = vpop.f32.mrb[86].mxu1  ;;  %v1726_v63 = vpop.f32.mrb[86].mxu0 }
 0x1c9   : > { %2172 = vst.msk [vmem:[%s3819_s12 + $0xa4] sm:$0xf] %vm2130_vm0, %v2953_v55  ;;  %v1724_v61 = vadd.f32 %v1723_v57, %v1435_v56  ;;  %v1438_v62 = vadd.f32 %v3810_v15, %v1437_v60  ;;  %v1439_v0 = vpop.f32.mrb[87].mxu1  ;;  %v1728_v1 = vpop.f32.mrb[87].mxu0 }
 0x1cb   : > { %v1852_v2 = vmax.f32 %v1724_v61, 0.0  ;;  %v1727_v3 = vadd.f32 %v1726_v63, %v1438_v62 }
 0x1cd   : > { %v2954_v4 = vpack.c.bf16 %v1852_v2, %v1852_v2  ;;  %v1853_v5 = vmax.f32 %v1727_v3, 0.0 }
 0x1ce   : > { %v1442_v6 = vpop.f32.mrb[88].mxu1  ;;  %v1731_v9 = vpop.f32.mrb[88].mxu0 }
 0x1cf   : > { %2173 = vst.msk [vmem:[%s3819_s12 + $0xa8] sm:$0xf] %vm2130_vm0, %v2954_v4  ;;  %v2955_v7 = vpack.c.bf16 %v1853_v5, %v1853_v5  ;;  %v1443_v8 = vadd.f32 %v3810_v15, %v1442_v6  ;;  %v1444_v10 = vpop.f32.mrb[89].mxu1  ;;  %v1733_v11 = vpop.f32.mrb[89].mxu0 }
 0x1d0   : > { %v1445_v12 = vpop.f32.mrb[90].mxu1  ;;  %v1734_v16 = vpop.f32.mrb[90].mxu0 }
 0x1d1   : > { %2174 = vst.msk [vmem:[%s3819_s12 + $0xac] sm:$0xf] %vm2130_vm0, %v2955_v7  ;;  %v1732_v13 = vadd.f32 %v1731_v9, %v1443_v8  ;;  %v1446_v14 = vadd.f32 %v3810_v15, %v1445_v12  ;;  %v1447_v17 = vpop.f32.mrb[91].mxu1  ;;  %v1736_v18 = vpop.f32.mrb[91].mxu0 }
 0x1d3   : > { %v1854_v19 = vmax.f32 %v1732_v13, 0.0  ;;  %v1735_v20 = vadd.f32 %v1734_v16, %v1446_v14  ;;  %v3993_v16 = vld [vmem:[%s4231_s2] ss:$0 sm:$0xff] }
 0x1d5   : > { %v2956_v21 = vpack.c.bf16 %v1854_v19, %v1854_v19  ;;  %v1855_v22 = vmax.f32 %v1735_v20, 0.0 }
 0x1d6   : > { %v1450_v23 = vpop.f32.mrb[92].mxu1  ;;  %v1739_v26 = vpop.f32.mrb[92].mxu0 }
 0x1d7   : > { %2175 = vst.msk [vmem:[%s3819_s12 + $0xb0] sm:$0xf] %vm2130_vm0, %v2956_v21  ;;  %v2957_v24 = vpack.c.bf16 %v1855_v22, %v1855_v22  ;;  %v1451_v25 = vadd.f32 %v3810_v15, %v1450_v23  ;;  %v1452_v27 = vpop.f32.mrb[93].mxu1  ;;  %v1741_v28 = vpop.f32.mrb[93].mxu0 }
 0x1d8   : > { %v1453_v29 = vpop.f32.mrb[94].mxu1  ;;  %v1742_v32 = vpop.f32.mrb[94].mxu0 }
 0x1d9   : > { %2176 = vst.msk [vmem:[%s3819_s12 + $0xb4] sm:$0xf] %vm2130_vm0, %v2957_v24  ;;  %v1740_v30 = vadd.f32 %v1739_v26, %v1451_v25  ;;  %v1454_v31 = vadd.f32 %v3810_v15, %v1453_v29  ;;  %v1455_v33 = vpop.f32.mrb[95].mxu1  ;;  %v1744_v34 = vpop.f32.mrb[95].mxu0 }
 0x1db   : > { %v1856_v35 = vmax.f32 %v1740_v30, 0.0  ;;  %v1743_v36 = vadd.f32 %v1742_v32, %v1454_v31 }
 0x1dd   : > { %v2958_v37 = vpack.c.bf16 %v1856_v35, %v1856_v35  ;;  %v1857_v38 = vmax.f32 %v1743_v36, 0.0 }
 0x1de   : > { %v1458_v39 = vpop.f32.mrb[96].mxu1  ;;  %v1747_v42 = vpop.f32.mrb[96].mxu0 }
 0x1df   : > { %2177 = vst.msk [vmem:[%s3819_s12 + $0xb8] sm:$0xf] %vm2130_vm0, %v2958_v37  ;;  %v2959_v40 = vpack.c.bf16 %v1857_v38, %v1857_v38  ;;  %v1459_v41 = vadd.f32 %v3810_v15, %v1458_v39  ;;  %v1460_v43 = vpop.f32.mrb[97].mxu1  ;;  %v1749_v44 = vpop.f32.mrb[97].mxu0 }
 0x1e0   : > { %v1461_v45 = vpop.f32.mrb[98].mxu1  ;;  %v1750_v48 = vpop.f32.mrb[98].mxu0 }
 0x1e1   : > { %2178 = vst.msk [vmem:[%s3819_s12 + $0xbc] sm:$0xf] %vm2130_vm0, %v2959_v40  ;;  %v1748_v46 = vadd.f32 %v1747_v42, %v1459_v41  ;;  %v1462_v47 = vadd.f32 %v3810_v15, %v1461_v45  ;;  %v1463_v49 = vpop.f32.mrb[99].mxu1  ;;  %v1752_v50 = vpop.f32.mrb[99].mxu0 }
 0x1e3   : > { %v1858_v51 = vmax.f32 %v1748_v46, 0.0  ;;  %v1751_v52 = vadd.f32 %v1750_v48, %v1462_v47 }
 0x1e5   : > { %v2960_v53 = vpack.c.bf16 %v1858_v51, %v1858_v51  ;;  %v1859_v54 = vmax.f32 %v1751_v52, 0.0 }
 0x1e6   : > { %v1466_v55 = vpop.f32.mrb[100].mxu1  ;;  %v1755_v58 = vpop.f32.mrb[100].mxu0 }
 0x1e7   : > { %2179 = vst.msk [vmem:[%s3819_s12 + $0xc0] sm:$0xf] %vm2130_vm0, %v2960_v53  ;;  %v2961_v56 = vpack.c.bf16 %v1859_v54, %v1859_v54  ;;  %v1467_v57 = vadd.f32 %v3810_v15, %v1466_v55  ;;  %v1468_v59 = vpop.f32.mrb[101].mxu1  ;;  %v1757_v60 = vpop.f32.mrb[101].mxu0 }
 0x1e8   : > { %v1469_v61 = vpop.f32.mrb[102].mxu1  ;;  %v1758_v0 = vpop.f32.mrb[102].mxu0 }
 0x1e9   : > { %2180 = vst.msk [vmem:[%s3819_s12 + $0xc4] sm:$0xf] %vm2130_vm0, %v2961_v56  ;;  %v1756_v62 = vadd.f32 %v1755_v58, %v1467_v57  ;;  %v1470_v63 = vadd.f32 %v3810_v15, %v1469_v61  ;;  %v1471_v1 = vpop.f32.mrb[103].mxu1  ;;  %v1760_v2 = vpop.f32.mrb[103].mxu0 }
 0x1eb   : > { %v1860_v3 = vmax.f32 %v1756_v62, 0.0  ;;  %v1759_v4 = vadd.f32 %v1758_v0, %v1470_v63 }
 0x1ed   : > { %v2962_v5 = vpack.c.bf16 %v1860_v3, %v1860_v3  ;;  %v1861_v6 = vmax.f32 %v1759_v4, 0.0 }
 0x1ee   : > { %v1474_v7 = vpop.f32.mrb[104].mxu1  ;;  %v1763_v10 = vpop.f32.mrb[104].mxu0 }
 0x1ef   : > { %2181 = vst.msk [vmem:[%s3819_s12 + $0xc8] sm:$0xf] %vm2130_vm0, %v2962_v5  ;;  %v2963_v8 = vpack.c.bf16 %v1861_v6, %v1861_v6  ;;  %v1475_v9 = vadd.f32 %v3810_v15, %v1474_v7  ;;  %v1476_v11 = vpop.f32.mrb[105].mxu1  ;;  %v1765_v12 = vpop.f32.mrb[105].mxu0 }
 0x1f0   : > { %v1477_v13 = vpop.f32.mrb[106].mxu1  ;;  %v1766_v18 = vpop.f32.mrb[106].mxu0 }
 0x1f1   : > { %2182 = vst.msk [vmem:[%s3819_s12 + $0xcc] sm:$0xf] %vm2130_vm0, %v2963_v8  ;;  %v1764_v14 = vadd.f32 %v1763_v10, %v1475_v9  ;;  %v1478_v17 = vadd.f32 %v3993_v16, %v1477_v13  ;;  %v1479_v19 = vpop.f32.mrb[107].mxu1  ;;  %v1768_v20 = vpop.f32.mrb[107].mxu0 }
 0x1f3   : > { %v1862_v15 = vmax.f32 %v1764_v14, 0.0  ;;  %v1767_v21 = vadd.f32 %v1766_v18, %v1478_v17 }
 0x1f5   : > { %v2964_v22 = vpack.c.bf16 %v1862_v15, %v1862_v15  ;;  %v1863_v23 = vmax.f32 %v1767_v21, 0.0 }
 0x1f6   : > { %v1482_v24 = vpop.f32.mrb[108].mxu1  ;;  %v1771_v27 = vpop.f32.mrb[108].mxu0 }
 0x1f7   : > { %2183 = vst.msk [vmem:[%s3819_s12 + $0xd0] sm:$0xf] %vm2130_vm0, %v2964_v22  ;;  %v2965_v25 = vpack.c.bf16 %v1863_v23, %v1863_v23  ;;  %v1483_v26 = vadd.f32 %v3993_v16, %v1482_v24  ;;  %v1484_v28 = vpop.f32.mrb[109].mxu1  ;;  %v1773_v29 = vpop.f32.mrb[109].mxu0 }
 0x1f8   : > { %v1485_v30 = vpop.f32.mrb[110].mxu1  ;;  %v1774_v33 = vpop.f32.mrb[110].mxu0 }
 0x1f9   : > { %2184 = vst.msk [vmem:[%s3819_s12 + $0xd4] sm:$0xf] %vm2130_vm0, %v2965_v25  ;;  %v1772_v31 = vadd.f32 %v1771_v27, %v1483_v26  ;;  %v1486_v32 = vadd.f32 %v3993_v16, %v1485_v30  ;;  %v1487_v34 = vpop.f32.mrb[111].mxu1  ;;  %v1776_v35 = vpop.f32.mrb[111].mxu0 }
 0x1fb   : > { %v1864_v36 = vmax.f32 %v1772_v31, 0.0  ;;  %v1775_v37 = vadd.f32 %v1774_v33, %v1486_v32 }
 0x1fd   : > { %v2966_v38 = vpack.c.bf16 %v1864_v36, %v1864_v36  ;;  %v1865_v39 = vmax.f32 %v1775_v37, 0.0 }
 0x1fe   : > { %v1490_v40 = vpop.f32.mrb[112].mxu1  ;;  %v1779_v43 = vpop.f32.mrb[112].mxu0 }
 0x1ff   : > { %2185 = vst.msk [vmem:[%s3819_s12 + $0xd8] sm:$0xf] %vm2130_vm0, %v2966_v38  ;;  %v2967_v41 = vpack.c.bf16 %v1865_v39, %v1865_v39  ;;  %v1491_v42 = vadd.f32 %v3993_v16, %v1490_v40  ;;  %v1492_v44 = vpop.f32.mrb[113].mxu1  ;;  %v1781_v45 = vpop.f32.mrb[113].mxu0 }
 0x200   : > { %v1493_v46 = vpop.f32.mrb[114].mxu1  ;;  %v1782_v49 = vpop.f32.mrb[114].mxu0 }
 0x201   : > { %2186 = vst.msk [vmem:[%s3819_s12 + $0xdc] sm:$0xf] %vm2130_vm0, %v2967_v41  ;;  %v1780_v47 = vadd.f32 %v1779_v43, %v1491_v42  ;;  %v1494_v48 = vadd.f32 %v3993_v16, %v1493_v46  ;;  %v1495_v50 = vpop.f32.mrb[115].mxu1  ;;  %v1784_v51 = vpop.f32.mrb[115].mxu0 }
 0x203   : > { %v1866_v52 = vmax.f32 %v1780_v47, 0.0  ;;  %v1783_v53 = vadd.f32 %v1782_v49, %v1494_v48 }
 0x205   : > { %v2968_v54 = vpack.c.bf16 %v1866_v52, %v1866_v52  ;;  %v1867_v55 = vmax.f32 %v1783_v53, 0.0 }
 0x206   : > { %v1498_v56 = vpop.f32.mrb[116].mxu1  ;;  %v1787_v59 = vpop.f32.mrb[116].mxu0 }
 0x207   : > { %2187 = vst.msk [vmem:[%s3819_s12 + $0xe0] sm:$0xf] %vm2130_vm0, %v2968_v54  ;;  %v2969_v57 = vpack.c.bf16 %v1867_v55, %v1867_v55  ;;  %v1499_v58 = vadd.f32 %v3993_v16, %v1498_v56  ;;  %v1500_v60 = vpop.f32.mrb[117].mxu1  ;;  %v1789_v61 = vpop.f32.mrb[117].mxu0 }
 0x208   : > { %v1501_v62 = vpop.f32.mrb[118].mxu1  ;;  %v1790_v1 = vpop.f32.mrb[118].mxu0 }
 0x209   : > { %2188 = vst.msk [vmem:[%s3819_s12 + $0xe4] sm:$0xf] %vm2130_vm0, %v2969_v57  ;;  %v1788_v63 = vadd.f32 %v1787_v59, %v1499_v58  ;;  %v1502_v0 = vadd.f32 %v3993_v16, %v1501_v62  ;;  %v1503_v2 = vpop.f32.mrb[119].mxu1  ;;  %v1792_v3 = vpop.f32.mrb[119].mxu0 }
 0x20b   : > { %v1868_v4 = vmax.f32 %v1788_v63, 0.0  ;;  %v1791_v5 = vadd.f32 %v1790_v1, %v1502_v0 }
 0x20d   : > { %v2970_v6 = vpack.c.bf16 %v1868_v4, %v1868_v4  ;;  %v1869_v7 = vmax.f32 %v1791_v5, 0.0 }
 0x20e   : > { %v1506_v8 = vpop.f32.mrb[120].mxu1  ;;  %v1795_v11 = vpop.f32.mrb[120].mxu0 }
 0x20f   : > { %2189 = vst.msk [vmem:[%s3819_s12 + $0xe8] sm:$0xf] %vm2130_vm0, %v2970_v6  ;;  %v2971_v9 = vpack.c.bf16 %v1869_v7, %v1869_v7  ;;  %v1507_v10 = vadd.f32 %v3993_v16, %v1506_v8  ;;  %v1508_v12 = vpop.f32.mrb[121].mxu1  ;;  %v1797_v13 = vpop.f32.mrb[121].mxu0 }
 0x210   : > { %v1509_v14 = vpop.f32.mrb[122].mxu1  ;;  %v1798_v19 = vpop.f32.mrb[122].mxu0 }
 0x211   : > { %2190 = vst.msk [vmem:[%s3819_s12 + $0xec] sm:$0xf] %vm2130_vm0, %v2971_v9  ;;  %v1796_v17 = vadd.f32 %v1795_v11, %v1507_v10  ;;  %v1510_v18 = vadd.f32 %v3993_v16, %v1509_v14  ;;  %v1511_v20 = vpop.f32.mrb[123].mxu1  ;;  %v1800_v15 = vpop.f32.mrb[123].mxu0 }
 0x213   : > { %v1870_v21 = vmax.f32 %v1796_v17, 0.0  ;;  %v1799_v22 = vadd.f32 %v1798_v19, %v1510_v18 }
 0x215   : > { %v2972_v23 = vpack.c.bf16 %v1870_v21, %v1870_v21  ;;  %v1871_v24 = vmax.f32 %v1799_v22, 0.0 }
 0x216   : > { %v1514_v25 = vpop.f32.mrb[124].mxu1  ;;  %v1803_v28 = vpop.f32.mrb[124].mxu0 }
 0x217   : > { %2191 = vst.msk [vmem:[%s3819_s12 + $0xf0] sm:$0xf] %vm2130_vm0, %v2972_v23  ;;  %v2973_v26 = vpack.c.bf16 %v1871_v24, %v1871_v24  ;;  %v1515_v27 = vadd.f32 %v3993_v16, %v1514_v25  ;;  %v1516_v29 = vpop.f32.mrb[125].mxu1  ;;  %v1805_v30 = vpop.f32.mrb[125].mxu0 }
 0x218   : > { %v1517_v31 = vpop.f32.mrb[126].mxu1  ;;  %v1806_v34 = vpop.f32.mrb[126].mxu0 }
 0x219   : > { %2192 = vst.msk [vmem:[%s3819_s12 + $0xf4] sm:$0xf] %vm2130_vm0, %v2973_v26  ;;  %v1804_v32 = vadd.f32 %v1803_v28, %v1515_v27  ;;  %v1518_v33 = vadd.f32 %v3993_v16, %v1517_v31  ;;  %v1519_v35 = vpop.f32.mrb[127].mxu1  ;;  %v1808_v36 = vpop.f32.mrb[127].mxu0 }
 0x21b   : > { %v1872_v37 = vmax.f32 %v1804_v32, 0.0  ;;  %v1807_v38 = vadd.f32 %v1806_v34, %v1518_v33  ;;  %2201 = sbr.rel (!%p3555_p4) target bundleno = 637 (0x27d), region = 36 }
 0x21d   : > { %v2974_v39 = vpack.c.bf16 %v1872_v37, %v1872_v37  ;;  %v1873_v40 = vmax.f32 %v1807_v38, 0.0 }
 0x21f   : > { %2193 = vst.msk [vmem:[%s3819_s12 + $0xf8] sm:$0xf] %vm2130_vm0, %v2974_v39  ;;  %v2975_v41 = vpack.c.bf16 %v1873_v40, %v1873_v40 }
 0x221   : > { %2194 = vst.msk [vmem:[%s3819_s12 + $0xfc] sm:$0xf] %vm2130_vm0, %v2975_v41 }
 0x222   : > { %s4241_s9 = smov (!%p2204_p8, %s2203_s9), 64 }
 0x223   : > { %s2896_s22 = sshll.u32 %s4241_s9, 6 }
 0x224   : > { %p2899_p9 = scmp.eq.s32.totalorder %s2896_s22, 0 }
 0x225   : > { %s4043_s23 = sshrl.u32 (!%p2899_p9), %s4241_s9, 6 }
 0x226   : > { %2212 = sbr.rel (%p2899_p9) target bundleno = 637 (0x27d), region = 40  ;;  %p2900_p10 = scmp.le.s32.totalorder (!%p2899_p9), %s4043_s23, 0 }
 0x22d   : > { %2617 = sbr.rel (%p2900_p10) target bundleno = 616 (0x268), region = 112  ;;  %s4234_s15 = smov (!%p2900_p10), %s4037_s21 }
 0x22e   : > { %s4235_s20 = smov (!%p2900_p10), %s3819_s12  ;;  %s4052_s18 = smov (!%p2900_p10), 0  }
 0x22f   : > { %s4054_s24 = smov (!%p2900_p10), 0  }
 0x234 LB: >> { %v2228_v16 = vld [vmem:[%s3483_s20] sm:$0xf]  ;;  %v2230_v42 = vld [vmem:[%s3483_s20 + $0x4] sm:$0xf]  ;;  %v2232_v43 = vld [vmem:[%s3483_s20 + $0x8] sm:$0xf]  ;;  %s3491_s24 = sphi %s4054_s24, %s2222_s24   ;;  %s3487_s18 = sphi %s4052_s18, %s4236_s18   ;;  %s3483_s20 = sphi %s4235_s20, %s2361_s20   ;;  %s3479_s15 = sphi %s4234_s15, %s2362_s15  }
 0x235   : >> { %2229 = vst [vmem:[%s3479_s15] sm:$0xf] %v2228_v16  ;;  %2231 = vst [vmem:[%s3479_s15 + $0x4] sm:$0xf] %v2230_v42  ;;  %v2234_v44 = vld [vmem:[%s3483_s20 + $0xc] sm:$0xf]  ;;  %s2356_s25 = sadd.s32 1, %s3487_s18 }
 0x236   : >> { %2233 = vst [vmem:[%s3479_s15 + $0x8] sm:$0xf] %v2232_v43  ;;  %v2236_v45 = vld [vmem:[%s3483_s20 + $0x10] sm:$0xf]  ;;  %v2238_v46 = vld [vmem:[%s3483_s20 + $0x14] sm:$0xf]  ;;  %p2357_p11 = scmp.ge.s32.totalorder %s2356_s25, %s4043_s23 }
 0x237   : >> { %2235 = vst [vmem:[%s3479_s15 + $0xc] sm:$0xf] %v2234_v44  ;;  %2237 = vst [vmem:[%s3479_s15 + $0x10] sm:$0xf] %v2236_v45  ;;  %v2240_v47 = vld [vmem:[%s3483_s20 + $0x18] sm:$0xf] }
 0x238   : >> { %2239 = vst [vmem:[%s3479_s15 + $0x14] sm:$0xf] %v2238_v46  ;;  %v2242_v48 = vld [vmem:[%s3483_s20 + $0x1c] sm:$0xf]  ;;  %v2244_v49 = vld [vmem:[%s3483_s20 + $0x20] sm:$0xf] }
 0x239   : >> { %2241 = vst [vmem:[%s3479_s15 + $0x18] sm:$0xf] %v2240_v47  ;;  %2243 = vst [vmem:[%s3479_s15 + $0x1c] sm:$0xf] %v2242_v48  ;;  %v2246_v50 = vld [vmem:[%s3483_s20 + $0x24] sm:$0xf] }
 0x23a   : >> { %2245 = vst [vmem:[%s3479_s15 + $0x20] sm:$0xf] %v2244_v49  ;;  %v2248_v51 = vld [vmem:[%s3483_s20 + $0x28] sm:$0xf]  ;;  %v2250_v52 = vld [vmem:[%s3483_s20 + $0x2c] sm:$0xf] }
 0x23b   : >> { %2247 = vst [vmem:[%s3479_s15 + $0x24] sm:$0xf] %v2246_v50  ;;  %2249 = vst [vmem:[%s3479_s15 + $0x28] sm:$0xf] %v2248_v51  ;;  %v2252_v53 = vld [vmem:[%s3483_s20 + $0x30] sm:$0xf] }
 0x23c   : >> { %2251 = vst [vmem:[%s3479_s15 + $0x2c] sm:$0xf] %v2250_v52  ;;  %v2254_v54 = vld [vmem:[%s3483_s20 + $0x34] sm:$0xf]  ;;  %v2256_v55 = vld [vmem:[%s3483_s20 + $0x38] sm:$0xf] }
 0x23d   : >> { %2253 = vst [vmem:[%s3479_s15 + $0x30] sm:$0xf] %v2252_v53  ;;  %2255 = vst [vmem:[%s3479_s15 + $0x34] sm:$0xf] %v2254_v54  ;;  %v2258_v56 = vld [vmem:[%s3483_s20 + $0x3c] sm:$0xf] }
 0x23e   : >> { %2257 = vst [vmem:[%s3479_s15 + $0x38] sm:$0xf] %v2256_v55  ;;  %v2260_v57 = vld [vmem:[%s3483_s20 + $0x40] sm:$0xf]  ;;  %v2262_v58 = vld [vmem:[%s3483_s20 + $0x44] sm:$0xf] }
 0x23f   : >> { %2259 = vst [vmem:[%s3479_s15 + $0x3c] sm:$0xf] %v2258_v56  ;;  %2261 = vst [vmem:[%s3479_s15 + $0x40] sm:$0xf] %v2260_v57  ;;  %v2264_v59 = vld [vmem:[%s3483_s20 + $0x48] sm:$0xf] }
 0x240   : >> { %2263 = vst [vmem:[%s3479_s15 + $0x44] sm:$0xf] %v2262_v58  ;;  %v2266_v60 = vld [vmem:[%s3483_s20 + $0x4c] sm:$0xf]  ;;  %v2268_v61 = vld [vmem:[%s3483_s20 + $0x50] sm:$0xf] }
 0x241   : >> { %2265 = vst [vmem:[%s3479_s15 + $0x48] sm:$0xf] %v2264_v59  ;;  %2267 = vst [vmem:[%s3479_s15 + $0x4c] sm:$0xf] %v2266_v60  ;;  %v2270_v62 = vld [vmem:[%s3483_s20 + $0x54] sm:$0xf] }
 0x242   : >> { %2269 = vst [vmem:[%s3479_s15 + $0x50] sm:$0xf] %v2268_v61  ;;  %v2272_v63 = vld [vmem:[%s3483_s20 + $0x58] sm:$0xf]  ;;  %v2274_v0 = vld [vmem:[%s3483_s20 + $0x5c] sm:$0xf] }
 0x243   : >> { %2271 = vst [vmem:[%s3479_s15 + $0x54] sm:$0xf] %v2270_v62  ;;  %2273 = vst [vmem:[%s3479_s15 + $0x58] sm:$0xf] %v2272_v63  ;;  %v2276_v1 = vld [vmem:[%s3483_s20 + $0x60] sm:$0xf] }
 0x244   : >> { %2275 = vst [vmem:[%s3479_s15 + $0x5c] sm:$0xf] %v2274_v0  ;;  %v2278_v2 = vld [vmem:[%s3483_s20 + $0x64] sm:$0xf]  ;;  %v2280_v3 = vld [vmem:[%s3483_s20 + $0x68] sm:$0xf] }
 0x245   : >> { %2277 = vst [vmem:[%s3479_s15 + $0x60] sm:$0xf] %v2276_v1  ;;  %2279 = vst [vmem:[%s3479_s15 + $0x64] sm:$0xf] %v2278_v2  ;;  %v2282_v4 = vld [vmem:[%s3483_s20 + $0x6c] sm:$0xf] }
 0x246   : >> { %2281 = vst [vmem:[%s3479_s15 + $0x68] sm:$0xf] %v2280_v3  ;;  %v2284_v5 = vld [vmem:[%s3483_s20 + $0x70] sm:$0xf]  ;;  %v2286_v6 = vld [vmem:[%s3483_s20 + $0x74] sm:$0xf] }
 0x247   : >> { %2283 = vst [vmem:[%s3479_s15 + $0x6c] sm:$0xf] %v2282_v4  ;;  %2285 = vst [vmem:[%s3479_s15 + $0x70] sm:$0xf] %v2284_v5  ;;  %v2288_v7 = vld [vmem:[%s3483_s20 + $0x78] sm:$0xf] }
 0x248   : >> { %2287 = vst [vmem:[%s3479_s15 + $0x74] sm:$0xf] %v2286_v6  ;;  %v2290_v8 = vld [vmem:[%s3483_s20 + $0x7c] sm:$0xf]  ;;  %v2292_v9 = vld [vmem:[%s3483_s20 + $0x80] sm:$0xf] }
 0x249   : >> { %2289 = vst [vmem:[%s3479_s15 + $0x78] sm:$0xf] %v2288_v7  ;;  %2291 = vst [vmem:[%s3479_s15 + $0x7c] sm:$0xf] %v2290_v8  ;;  %v2294_v10 = vld [vmem:[%s3483_s20 + $0x84] sm:$0xf] }
 0x24a   : >> { %2293 = vst [vmem:[%s3479_s15 + $0x80] sm:$0xf] %v2292_v9  ;;  %v2296_v11 = vld [vmem:[%s3483_s20 + $0x88] sm:$0xf]  ;;  %v2298_v12 = vld [vmem:[%s3483_s20 + $0x8c] sm:$0xf] }
 0x24b   : >> { %2295 = vst [vmem:[%s3479_s15 + $0x84] sm:$0xf] %v2294_v10  ;;  %2297 = vst [vmem:[%s3479_s15 + $0x88] sm:$0xf] %v2296_v11  ;;  %v2300_v13 = vld [vmem:[%s3483_s20 + $0x90] sm:$0xf] }
 0x24c   : >> { %2299 = vst [vmem:[%s3479_s15 + $0x8c] sm:$0xf] %v2298_v12  ;;  %v2302_v14 = vld [vmem:[%s3483_s20 + $0x94] sm:$0xf]  ;;  %v2304_v17 = vld [vmem:[%s3483_s20 + $0x98] sm:$0xf] }
 0x24d   : >> { %2301 = vst [vmem:[%s3479_s15 + $0x90] sm:$0xf] %v2300_v13  ;;  %2303 = vst [vmem:[%s3479_s15 + $0x94] sm:$0xf] %v2302_v14  ;;  %v2306_v18 = vld [vmem:[%s3483_s20 + $0x9c] sm:$0xf] }
 0x24e   : >> { %2305 = vst [vmem:[%s3479_s15 + $0x98] sm:$0xf] %v2304_v17  ;;  %v2308_v19 = vld [vmem:[%s3483_s20 + $0xa0] sm:$0xf]  ;;  %v2310_v20 = vld [vmem:[%s3483_s20 + $0xa4] sm:$0xf] }
 0x24f   : >> { %2307 = vst [vmem:[%s3479_s15 + $0x9c] sm:$0xf] %v2306_v18  ;;  %2309 = vst [vmem:[%s3479_s15 + $0xa0] sm:$0xf] %v2308_v19  ;;  %v2312_v15 = vld [vmem:[%s3483_s20 + $0xa8] sm:$0xf] }
 0x250   : >> { %2311 = vst [vmem:[%s3479_s15 + $0xa4] sm:$0xf] %v2310_v20  ;;  %v2314_v21 = vld [vmem:[%s3483_s20 + $0xac] sm:$0xf]  ;;  %v2316_v22 = vld [vmem:[%s3483_s20 + $0xb0] sm:$0xf] }
 0x251   : >> { %2313 = vst [vmem:[%s3479_s15 + $0xa8] sm:$0xf] %v2312_v15  ;;  %2315 = vst [vmem:[%s3479_s15 + $0xac] sm:$0xf] %v2314_v21  ;;  %v2318_v23 = vld [vmem:[%s3483_s20 + $0xb4] sm:$0xf] }
 0x252   : >> { %2317 = vst [vmem:[%s3479_s15 + $0xb0] sm:$0xf] %v2316_v22  ;;  %v2320_v24 = vld [vmem:[%s3483_s20 + $0xb8] sm:$0xf]  ;;  %v2322_v25 = vld [vmem:[%s3483_s20 + $0xbc] sm:$0xf] }
 0x253   : >> { %2319 = vst [vmem:[%s3479_s15 + $0xb4] sm:$0xf] %v2318_v23  ;;  %2321 = vst [vmem:[%s3479_s15 + $0xb8] sm:$0xf] %v2320_v24  ;;  %v2324_v26 = vld [vmem:[%s3483_s20 + $0xc0] sm:$0xf] }
 0x254   : >> { %2323 = vst [vmem:[%s3479_s15 + $0xbc] sm:$0xf] %v2322_v25  ;;  %v2326_v27 = vld [vmem:[%s3483_s20 + $0xc4] sm:$0xf]  ;;  %v2328_v28 = vld [vmem:[%s3483_s20 + $0xc8] sm:$0xf] }
 0x255   : >> { %2325 = vst [vmem:[%s3479_s15 + $0xc0] sm:$0xf] %v2324_v26  ;;  %2327 = vst [vmem:[%s3479_s15 + $0xc4] sm:$0xf] %v2326_v27  ;;  %v2330_v29 = vld [vmem:[%s3483_s20 + $0xcc] sm:$0xf] }
 0x256   : >> { %2329 = vst [vmem:[%s3479_s15 + $0xc8] sm:$0xf] %v2328_v28  ;;  %v2332_v30 = vld [vmem:[%s3483_s20 + $0xd0] sm:$0xf]  ;;  %v2334_v31 = vld [vmem:[%s3483_s20 + $0xd4] sm:$0xf] }
 0x257   : >> { %2331 = vst [vmem:[%s3479_s15 + $0xcc] sm:$0xf] %v2330_v29  ;;  %2333 = vst [vmem:[%s3479_s15 + $0xd0] sm:$0xf] %v2332_v30  ;;  %v2336_v32 = vld [vmem:[%s3483_s20 + $0xd8] sm:$0xf] }
 0x258   : >> { %2335 = vst [vmem:[%s3479_s15 + $0xd4] sm:$0xf] %v2334_v31  ;;  %v2338_v33 = vld [vmem:[%s3483_s20 + $0xdc] sm:$0xf]  ;;  %v2340_v34 = vld [vmem:[%s3483_s20 + $0xe0] sm:$0xf] }
 0x259   : >> { %2337 = vst [vmem:[%s3479_s15 + $0xd8] sm:$0xf] %v2336_v32  ;;  %2339 = vst [vmem:[%s3479_s15 + $0xdc] sm:$0xf] %v2338_v33  ;;  %v2342_v35 = vld [vmem:[%s3483_s20 + $0xe4] sm:$0xf] }
 0x25a   : >> { %2341 = vst [vmem:[%s3479_s15 + $0xe0] sm:$0xf] %v2340_v34  ;;  %v2344_v36 = vld [vmem:[%s3483_s20 + $0xe8] sm:$0xf]  ;;  %v2346_v37 = vld [vmem:[%s3483_s20 + $0xec] sm:$0xf] }
 0x25b   : >> { %2343 = vst [vmem:[%s3479_s15 + $0xe4] sm:$0xf] %v2342_v35  ;;  %2345 = vst [vmem:[%s3479_s15 + $0xe8] sm:$0xf] %v2344_v36  ;;  %v2348_v38 = vld [vmem:[%s3483_s20 + $0xf0] sm:$0xf] }
 0x25c   : >> { %2347 = vst [vmem:[%s3479_s15 + $0xec] sm:$0xf] %v2346_v37  ;;  %v2350_v39 = vld [vmem:[%s3483_s20 + $0xf4] sm:$0xf]  ;;  %v2352_v40 = vld [vmem:[%s3483_s20 + $0xf8] sm:$0xf] }
 0x25d   : >> { %2349 = vst [vmem:[%s3479_s15 + $0xf0] sm:$0xf] %v2348_v38  ;;  %2351 = vst [vmem:[%s3479_s15 + $0xf4] sm:$0xf] %v2350_v39  ;;  %v2354_v41 = vld [vmem:[%s3483_s20 + $0xfc] sm:$0xf] }
 0x25e   : >> { %2353 = vst [vmem:[%s3479_s15 + $0xf8] sm:$0xf] %v2352_v40  ;;  %2355 = vst [vmem:[%s3479_s15 + $0xfc] sm:$0xf] %v2354_v41  ;;  %s4243_s25 = smov (%p2357_p11, %s2356_s25), 0  ;;  %s2222_s24 = sadd.s32 1, %s3491_s24  }
 0x25f   : >> { %s2901_s26 = sshll.u32 %s4243_s25, 8  ;;  %p2221_p12 = scmp.ge.s32.totalorder %s2222_s24, %s4043_s23 }
 0x260   : >> { %s2361_s20 = scalar_lea.vmem %s3819_s12, %s2901_s26 [#allocation2]   ;;  %s2362_s15 = scalar_lea.vmem %s4037_s21, %s2901_s26  }
 0x261   : >> { %s4236_s18 = smov %s4243_s25  ;;  %2224 = sbr.rel (!%p2221_p12) target bundleno = 564 (0x234), region = 118 }
 0x268 PF: > { %s4211_s27 = sand.u32 63, %s4241_s9   ;;  %s2977_s28 = sshll.u32 %s4043_s23, 8 }
 0x269   : > { %s2367_s29 = scalar_lea.vmem %s3819_s12, %s2977_s28 [#allocation2]   ;;  %s2369_s30 = scalar_lea.vmem %s4037_s21, %s2977_s28  }
 0x26a   : > { %p2906_p13 = scmp.le.s32.totalorder %s4211_s27, 0 }
 0x26b   : > { %s3493_s4 = smov (!%p2906_p13), %s2369_s30   ;;  %s3497_s5 = smov (!%p2906_p13), %s2367_s29  }
 0x26c   : > { %2631 = sbr.rel (%p2906_p13) target bundleno = 637 (0x27d), region = 123  ;;  %s3501_s6 = smov (!%p2906_p13), 0  }
 0x26d   : > { %s3505_s7 = smov (!%p2906_p13), 0  }
 0x273 LB: >> { %v2379_v16 = vld [vmem:[%s3499_s5] sm:$0xf]  ;;  %s2381_s14 = sadd.s32 1, %s3503_s6  ;;  %s2373_s7 = sadd.s32 1, %s3507_s7   ;;  %s3507_s7 = sphi %s3505_s7, %s2373_s7   ;;  %s3503_s6 = sphi %s3501_s6, %s3502_s6   ;;  %s3499_s5 = sphi %s3497_s5, %s2386_s5   ;;  %s3495_s4 = sphi %s3493_s4, %s2387_s4  }
 0x274   : >> { %2380 = vst [vmem:[%s3495_s4] sm:$0xf] %v2379_v16  ;;  %p2382_p0 = scmp.ge.s32.totalorder %s2381_s14, %s4211_s27  ;;  %p2372_p1 = scmp.ge.s32.totalorder %s2373_s7, %s4211_s27 }
 0x276   : >> { %s4245_s14 = smov (%p2382_p0, %s2381_s14), 0  ;;  %2375 = sbr.rel (!%p2372_p1) target bundleno = 627 (0x273), region = 129 }
 0x277   : >> { %s2907_s12 = sshll.u32 %s4245_s14, 2  ;;  %s3502_s6 = smov %s4245_s14  }
 0x278   : >> { %s2386_s5 = scalar_lea.vmem %s2367_s29, %s2907_s12 [#allocation2]   ;;  %s2387_s4 = scalar_lea.vmem %s2369_s30, %s2907_s12  }
 0x27d PF: > { %p10_p2 = scmp.ge.s32.totalorder %s3545_s16, 5   ;;  %s4237_s12 = smov %s3471_s13 }
 0x27e   : > { %s4238_s13 = smov %s3553_s19  ;;  %s4239_s14 = smov %s3545_s16 }
 0x27f   :  { %12 = sbr.rel (!%p10_p2) target bundleno = 2 (0x2), region = 140 }

// kernel: convnet_quantized_forward.6
= control target key start
LH: loop header
LB: loop body
LE: loop exit
PB: predicated region body
PF: predicated region fallthrough
CT: control target
= control target key end

     0   :  { %s4431_s12 = smov 0   ;;  %s4433_s13 = smov 0   ;;  %s5524_s0 = inlined_call_operand.vmem [shape: bf16[1152,576], index: 0, kind: input, shape index: {}]   ;;  %s5525_s1 = inlined_call_operand.vmem [shape: bf16[576,64], index: 1, kind: input, shape index: {}]   ;;  %s5526_s2 = inlined_call_operand.vmem [shape: f32[1,64], index: 2, kind: input, shape index: {}]   ;;  %s5527_s3 = inlined_call_operand.vmem [shape: bf16[1152,64], index: 3, kind: output, shape index: {}]  }
   0x1   :  { %s4435_s14 = smov 0  }
   0x2 LB: > { %s4444_s15 = sadd.s32 4294967295, %s4376_s14   ;;  %s4446_s16 = sadd.s32 1, %s4376_s14   ;;  %s4376_s14 = sphi %s4435_s14, %s5570_s14   ;;  %s4372_s13 = sphi %s4433_s13, %s5569_s13   ;;  %s4368_s12 = sphi %s4431_s12, %s5568_s12  }
   0x3   : > { %s85_s17 = ssub.s32 %s4376_s14, %s4446_s16  ;;  %s88_s18 = sadd.s32 1, %s4372_s13 }
   0x4   : > { %p86_p0 = scmp.eq.s32.totalorder %s85_s17, 0  ;;  %p98_p1 = scmp.ne.s32.totalorder %s4372_s13, %s4368_s12 }
   0x5   : > { %p99_p2 = scmp.eq.s32.totalorder %s4444_s15, 2  ;;  %p3306_p3 = scmp.ge.s32.totalorder %s4376_s14, 1 }
   0x6   : > { %s4454_s19 = scalar_select %p86_p0, %s4372_s13, %s88_s18  }
   0x7   : > { %p4456_p4 = por %p99_p2, %p98_p1  ;;  %p149_p5 = scmp.lt.s32.totalorder %s4376_s14, 4 }
   0x9   : > { %p150_p6 = pnand %p3306_p3, %p149_p5 }
   0xb   : > { %153 = sbr.rel (%p150_p6) target bundleno = 709 (0x2c5), region = 32 }
  0x12   : > { %v4061_v0 = vld [vmem:[%s5525_s1] sm:$0xff]   ;;  %v4410_v1 = vmov 0   ;;  %s4466_s23 = sshll.u32 %s4444_s15, 6  ;;  %v4062_v2 = vld [vmem:[%s5525_s1 + $0x8] sm:$0xff]   ;;  %v4063_v3 = vld [vmem:[%s5525_s1 + $0x10] sm:$0xff]   ;;  %vm1488_vm0 = vcmask 523264  }
  0x13   : > { %1585 = vmatprep.subr.bf16.mxu0 %v4410_v1  ;;  %3795 = vmatprep.subr.bf16.mxu1 %v4410_v1  ;;  %p184_p7 = scmp.lt.s32.totalorder %s4466_s23, 143  ;;  %v4064_v4 = vld [vmem:[%s5525_s1 + $0x18] sm:$0xff]   ;;  %v4065_v5 = vld [vmem:[%s5525_s1 + $0x20] sm:$0xff]   ;;  %v4066_v7 = vld [vmem:[%s5525_s1 + $0x28] sm:$0xff]   ;;  %s175_s22 = sand.u32 1, %s4368_s12   ;;  %vm2772_vm1 = vcmask 519168  }
  0x14   : > { %1586 = vmatpush1.bf16.msra.mxu0 %v4061_v0  ;;  %3811 = vmatpush1.bf16.msra.mxu1 %v4061_v0  ;;  %v4067_v9 = vld [vmem:[%s5525_s1 + $0x30] sm:$0xff]   ;;  %v4068_v10 = vld [vmem:[%s5525_s1 + $0x38] sm:$0xff]   ;;  %v4069_v11 = vld [vmem:[%s5525_s1 + $0x40] sm:$0xff]   ;;  %s3307_s12 = sshll.u32 %s175_s22, 8  ;;  %s2845_s27 = ssub.s32 (%p4456_p4), 144, %s4466_s23 }
  0x15   : > { %1587 = vmatprep.subr.bf16.mxu0 %v4410_v1  ;;  %3796 = vmatprep.subr.bf16.mxu1 %v4410_v1  ;;  %s185_s28 = scalar_select %p184_p7, %s4466_s23, 143  ;;  %v4070_v12 = vld [vmem:[%s5525_s1 + $0x48] sm:$0xff]   ;;  %v4071_v13 = vld [vmem:[%s5525_s1 + $0x50] sm:$0xff]   ;;  %v4072_v14 = vld [vmem:[%s5525_s1 + $0x58] sm:$0xff]  }
  0x16   : > { %v4073_v15 = vld [vmem:[%s5525_s1 + $0x60] sm:$0xff]   ;;  %v4074_v16 = vld [vmem:[%s5525_s1 + $0x68] sm:$0xff]   ;;  %v4075_v17 = vld [vmem:[%s5525_s1 + $0x70] sm:$0xff]   ;;  %s5036_s24 = scalar_lea.vmem [#allocation2], %s3307_s12   ;;  %p2846_p8 = scmp.lt.s32.totalorder (%p4456_p4), %s2845_s27, 64 }
  0x17   : > { %s3971_s4 = smul.u32 20, %s185_s28  ;;  %v4076_v18 = vld [vmem:[%s5525_s1 + $0x78] sm:$0xff]   ;;  %v4084_v19 = vld [vmem:[%s5525_s1 + $0x100] sm:$0xff]   ;;  %v4133_v25 = vld [vmem:[%s5525_s1 + $0x108] sm:$0xff]   ;;  %s3684_s28 = sshll.u32 (%p4456_p4), %s4444_s15, 8 }
  0x18   : > { %1588 = vmatpush1.bf16.msra.mxu0 %v4062_v2  ;;  %3812 = vmatpush1.bf16.msra.mxu1 %v4062_v2  ;;  %v4083_v22 = vld [vmem:[%s5525_s1 + $0x80] sm:$0xff]   ;;  %v4085_v26 = vld [vmem:[%s5525_s1 + $0x88] sm:$0xff]   ;;  %v4092_v29 = vld [vmem:[%s5525_s1 + $0x90] sm:$0xff]  }
  0x19   : > { %1589 = vmatprep.subr.bf16.mxu0 %v4410_v1  ;;  %3797 = vmatprep.subr.bf16.mxu1 %v4410_v1  ;;  %s4491_s9 = scalar_lea.vmem %s5524_s0, %s3971_s4  ;;  %v4173_v30 = vld [vmem:[%s5525_s1 + $0x110] sm:$0xff]   ;;  %v4093_v33 = vld [vmem:[%s5525_s1 + $0x98] sm:$0xff]   ;;  %v4100_v36 = vld [vmem:[%s5525_s1 + $0xa0] sm:$0xff]   ;;  %s5332_s4 = scalar_lea.vmem (%p4456_p4), %s5527_s3, %s3684_s28  }
  0x1a   : > { %v4079_v6 = vld [vmem:[%s4491_s9 + $0x4] ss:$20 sps:$4 sm:$0xff]   ;;  %v4077_v20 = vld [vmem:[%s4491_s9] ss:$20 sps:$4 sm:$0xff]   ;;  %v4090_v27 = vld [vmem:[%s4491_s9 + $0x28] ss:$20 sps:$4 sm:$0xff]  }
  0x1b   : > { %v4082_v8 = vld [vmem:[%s4491_s9 + $0x144] ss:$20 sps:$4 sm:$0xff]   ;;  %1617 = vmatprep.mubr.bf16.mxu0 %v4079_v6  ;;  %v4080_v21 = vld [vmem:[%s4491_s9 + $0x140] ss:$20 sps:$4 sm:$0xff]   ;;  %v4091_v28 = vld [vmem:[%s4491_s9 + $0x168] ss:$20 sps:$4 sm:$0xff]  }
  0x1c   : > { %1590 = vmatpush1.bf16.msra.mxu0 %v4063_v3  ;;  %3813 = vmatpush1.bf16.msra.mxu1 %v4063_v3  ;;  %v4086_v23 = vld [vmem:[%s4491_s9 + $0x2c] ss:$20 sps:$4 sm:$0xff]   ;;  %v4094_v31 = vld [vmem:[%s4491_s9 + $0x54] ss:$20 sps:$4 sm:$0xff]   ;;  %v4098_v34 = vld [vmem:[%s4491_s9 + $0x50] ss:$20 sps:$4 sm:$0xff]  }
  0x1d   : > { %1591 = vmatprep.subr.bf16.mxu0 %v4410_v1  ;;  %3798 = vmatprep.subr.bf16.mxu1 %v4410_v1  ;;  %v4088_v24 = vld [vmem:[%s4491_s9 + $0x16c] ss:$20 sps:$4 sm:$0xff]   ;;  %v4096_v32 = vld [vmem:[%s4491_s9 + $0x194] ss:$20 sps:$4 sm:$0xff]   ;;  %v4099_v35 = vld [vmem:[%s4491_s9 + $0x190] ss:$20 sps:$4 sm:$0xff]  }
  0x1e   : > { %1681 = vmatprep.mubr.bf16.mxu1 %v4082_v8  ;;  %v4102_v37 = vld [vmem:[%s4491_s9 + $0x7c] ss:$20 sps:$4 sm:$0xff]   ;;  %v4101_v39 = vld [vmem:[%s5525_s1 + $0xa8] sm:$0xff]   ;;  %v4110_v43 = vld [vmem:[%s4491_s9 + $0xa4] ss:$20 sps:$4 sm:$0xff]  }
  0x1f   : > { %v4104_v38 = vld [vmem:[%s4491_s9 + $0x1bc] ss:$20 sps:$4 sm:$0xff]   ;;  %v4106_v40 = vld [vmem:[%s4491_s9 + $0x78] ss:$20 sps:$4 sm:$0xff]   ;;  %v4114_v47 = vld [vmem:[%s4491_s9 + $0xa0] ss:$20 sps:$4 sm:$0xff]  }
  0x20   : > { %1592 = vmatpush1.bf16.msra.mxu0 %v4064_v4  ;;  %3814 = vmatpush1.bf16.msra.mxu1 %v4064_v4  ;;  %v4107_v41 = vld [vmem:[%s4491_s9 + $0x1b8] ss:$20 sps:$4 sm:$0xff]   ;;  %v4108_v42 = vld [vmem:[%s5525_s1 + $0xb0] sm:$0xff]   ;;  %v4116_v49 = vld [vmem:[%s5525_s1 + $0xc0] sm:$0xff]  }
  0x21   : > { %1593 = vmatprep.subr.bf16.mxu0 %v4410_v1  ;;  %3799 = vmatprep.subr.bf16.mxu1 %v4410_v1  ;;  %v4210_v44 = vld [vmem:[%s5525_s1 + $0x118] sm:$0xff]   ;;  %v4115_v48 = vld [vmem:[%s4491_s9 + $0x1e0] ss:$20 sps:$4 sm:$0xff]   ;;  %v4117_v52 = vld [vmem:[%s5525_s1 + $0xc8] sm:$0xff]  }
  0x22   : > { %v4112_v45 = vld [vmem:[%s4491_s9 + $0x1e4] ss:$20 sps:$4 sm:$0xff]   ;;  %v4118_v50 = vld [vmem:[%s4491_s9 + $0xcc] ss:$20 sps:$4 sm:$0xff]   ;;  %v4122_v53 = vld [vmem:[%s4491_s9 + $0xc8] ss:$20 sps:$4 sm:$0xff]  }
  0x23   : > { %v4109_v46 = vld [vmem:[%s5525_s1 + $0xb8] sm:$0xff]   ;;  %v4120_v51 = vld [vmem:[%s4491_s9 + $0x20c] ss:$20 sps:$4 sm:$0xff]   ;;  %v4124_v55 = vld [vmem:[%s5525_s1 + $0xd0] sm:$0xff]  }
  0x24   : > { %1594 = vmatpush1.bf16.msra.mxu0 %v4065_v5  ;;  %3815 = vmatpush1.bf16.msra.mxu1 %v4065_v5  ;;  %v4123_v54 = vld [vmem:[%s4491_s9 + $0x208] ss:$20 sps:$4 sm:$0xff]   ;;  %v4130_v59 = vld [vmem:[%s4491_s9 + $0xf0] ss:$20 sps:$4 sm:$0xff]   ;;  %v4139_v2 = vld [vmem:[%s4491_s9 + $0x118] ss:$20 sps:$4 sm:$0xff]  }
  0x25   : > { %1595 = vmatprep.subr.bf16.mxu0 %v4410_v1  ;;  %3800 = vmatprep.subr.bf16.mxu1 %v4410_v1  ;;  %v4126_v56 = vld [vmem:[%s4491_s9 + $0xf4] ss:$20 sps:$4 sm:$0xff]   ;;  %v4125_v58 = vld [vmem:[%s5525_s1 + $0xd8] sm:$0xff]   ;;  %v4131_v60 = vld [vmem:[%s4491_s9 + $0x230] ss:$20 sps:$4 sm:$0xff]  }
  0x26   : > { %v4128_v57 = vld [vmem:[%s4491_s9 + $0x234] ss:$20 sps:$4 sm:$0xff]   ;;  %v4132_v61 = vld [vmem:[%s5525_s1 + $0xe0] sm:$0xff]   ;;  %v4135_v62 = vld [vmem:[%s4491_s9 + $0x11c] ss:$20 sps:$4 sm:$0xff]  }
  0x27   : > { %v4137_v63 = vld [vmem:[%s4491_s9 + $0x25c] ss:$20 sps:$4 sm:$0xff]   ;;  %v4134_v0 = vld [vmem:[%s5525_s1 + $0xe8] sm:$0xff]   ;;  %v4143_v5 = vld [vmem:[%s4491_s9 + $0x284] ss:$20 sps:$4 sm:$0xff]  }
  0x28   : > { %1596 = vmatpush1.bf16.msra.mxu0 %v4066_v7  ;;  %3816 = vmatpush1.bf16.msra.mxu1 %v4066_v7  ;;  %v4140_v3 = vld [vmem:[%s4491_s9 + $0x258] ss:$20 sps:$4 sm:$0xff]   ;;  %v4141_v4 = vld [vmem:[%s5525_s1 + $0xf0] sm:$0xff]   ;;  %v4145_v8 = vld [vmem:[%s4491_s9 + $0x8] ss:$20 sps:$4 sm:$0xff]  }
  0x29   : > { %1597 = vmatprep.subr.bf16.mxu0 %v4410_v1  ;;  %3801 = vmatprep.subr.bf16.mxu1 %v4410_v1  ;;  %v4147_v6 = vld [vmem:[%s4491_s9 + $0xc] ss:$20 sps:$4 sm:$0xff]   ;;  %v4142_v7 = vld [vmem:[%s5525_s1 + $0xf8] sm:$0xff]  }
  0x2c   : > { %1598 = vmatpush1.bf16.msra.mxu0 %v4067_v9  ;;  %3817 = vmatpush1.bf16.msra.mxu1 %v4067_v9  ;;  %v4148_v9 = vld [vmem:[%s4491_s9 + $0x280] ss:$20 sps:$4 sm:$0xff]  }
  0x2d   : > { %1599 = vmatprep.subr.bf16.mxu0 %v4410_v1  ;;  %3802 = vmatprep.subr.bf16.mxu1 %v4410_v1 }
  0x30   : > { %1600 = vmatpush1.bf16.msra.mxu0 %v4068_v10  ;;  %3818 = vmatpush1.bf16.msra.mxu1 %v4068_v10  ;;  %v4149_v10 = vld [vmem:[%s4491_s9 + $0x2ac] ss:$20 sps:$4 sm:$0xff]  }
  0x31   : > { %1601 = vmatprep.subr.bf16.mxu0 %v4410_v1  ;;  %3803 = vmatprep.subr.bf16.mxu1 %v4410_v1 }
  0x34   : > { %1602 = vmatpush1.bf16.msra.mxu0 %v4069_v11  ;;  %3819 = vmatpush1.bf16.msra.mxu1 %v4069_v11  ;;  %v4151_v11 = vld [vmem:[%s4491_s9 + $0x34] ss:$20 sps:$4 sm:$0xff]  }
  0x35   : > { %1603 = vmatprep.subr.bf16.mxu0 %v4410_v1  ;;  %3804 = vmatprep.subr.bf16.mxu1 %v4410_v1 }
  0x38   : > { %1604 = vmatpush1.bf16.msra.mxu0 %v4070_v12  ;;  %3820 = vmatpush1.bf16.msra.mxu1 %v4070_v12  ;;  %v4153_v12 = vld [vmem:[%s4491_s9 + $0x2a8] ss:$20 sps:$4 sm:$0xff]  }
  0x39   : > { %1605 = vmatprep.subr.bf16.mxu0 %v4410_v1  ;;  %3805 = vmatprep.subr.bf16.mxu1 %v4410_v1 }
  0x3c   : > { %1606 = vmatpush1.bf16.msra.mxu0 %v4071_v13  ;;  %3821 = vmatpush1.bf16.msra.mxu1 %v4071_v13  ;;  %v4154_v13 = vld [vmem:[%s4491_s9 + $0x30] ss:$20 sps:$4 sm:$0xff]  }
  0x3d   : > { %1607 = vmatprep.subr.bf16.mxu0 %v4410_v1  ;;  %3806 = vmatprep.subr.bf16.mxu1 %v4410_v1 }
  0x40   : > { %1608 = vmatpush1.bf16.msra.mxu0 %v4072_v14  ;;  %3822 = vmatpush1.bf16.msra.mxu1 %v4072_v14  ;;  %v4155_v14 = vld [vmem:[%s4491_s9 + $0x2d4] ss:$20 sps:$4 sm:$0xff]  }
  0x41   : > { %1609 = vmatprep.subr.bf16.mxu0 %v4410_v1  ;;  %3807 = vmatprep.subr.bf16.mxu1 %v4410_v1 }
  0x44   : > { %1610 = vmatpush1.bf16.msra.mxu0 %v4073_v15  ;;  %3823 = vmatpush1.bf16.msra.mxu1 %v4073_v15  ;;  %v4159_v15 = vld [vmem:[%s4491_s9 + $0x2d0] ss:$20 sps:$4 sm:$0xff]  }
  0x45   : > { %1611 = vmatprep.subr.bf16.mxu0 %v4410_v1  ;;  %3808 = vmatprep.subr.bf16.mxu1 %v4410_v1 }
  0x48   : > { %1612 = vmatpush1.bf16.msra.mxu0 %v4074_v16  ;;  %3824 = vmatpush1.bf16.msra.mxu1 %v4074_v16  ;;  %v4160_v16 = vld [vmem:[%s4491_s9 + $0x58] ss:$20 sps:$4 sm:$0xff]  }
  0x49   : > { %1613 = vmatprep.subr.bf16.mxu0 %v4410_v1  ;;  %3809 = vmatprep.subr.bf16.mxu1 %v4410_v1 }
  0x4c   : > { %1614 = vmatpush1.bf16.msra.mxu0 %v4075_v17  ;;  %3825 = vmatpush1.bf16.msra.mxu1 %v4075_v17  ;;  %v4161_v17 = vld [vmem:[%s4491_s9 + $0x2fc] ss:$20 sps:$4 sm:$0xff]  }
  0x4d   : > { %1615 = vmatprep.subr.bf16.mxu0 %v4410_v1  ;;  %3810 = vmatprep.subr.bf16.mxu1 %v4410_v1 }
  0x50   : > { %1616 = vmatpush1.bf16.msra.mxu0 %v4076_v18  ;;  %3826 = vmatpush1.bf16.msra.mxu1 %v4076_v18  ;;  %v4163_v18 = vld [vmem:[%s4491_s9 + $0x84] ss:$20 sps:$4 sm:$0xff]  }
  0x51   : > { %1874 = vmatprep.subr.bf16.mxu0 %v4410_v1  ;;  %3723 = vmatprep.subr.bf16.mxu1 %v4084_v19 }
  0x53   : > { %1618 = vmatmul.mubr.bf16.vlgmr.msra.gmra.mrb[0].mxu0 %v4077_v20  ;;  %1682 = vmatmul.mubr.bf16.vlgmr.msra.gmra.mrb[0].mxu1 %v4080_v21  ;;  %v4166_v20 = vld [vmem:[%s4491_s9 + $0x80] ss:$20 sps:$4 sm:$0xff]   ;;  %v4167_v21 = vld [vmem:[%s4491_s9 + $0x324] ss:$20 sps:$4 sm:$0xff]  }
  0x54   : > { %1875 = vmatpush1.bf16.msra.mxu0 %v4083_v22  ;;  %3724 = vmatpush3.bf16.msra.mxu1 %v4084_v19  ;;  %v4165_v19 = vld [vmem:[%s4491_s9 + $0x2f8] ss:$20 sps:$4 sm:$0xff]  }
  0x55   : > { %1876 = vmatprep.subr.bf16.mxu0 %v4410_v1  ;;  %1625 = vmatprep.mubr.bf16.mxu0 %v4086_v23  ;;  %v4169_v22 = vld [vmem:[%s4491_s9 + $0xac] ss:$20 sps:$4 sm:$0xff]  }
  0x56   : > { %1689 = vmatprep.mubr.bf16.mxu1 %v4088_v24  ;;  %3725 = vmatprep.subr.bf16.mxu1 %v4133_v25  ;;  %v4171_v23 = vld [vmem:[%s4491_s9 + $0x320] ss:$20 sps:$4 sm:$0xff]   ;;  %v4172_v24 = vld [vmem:[%s4491_s9 + $0xa8] ss:$20 sps:$4 sm:$0xff]  }
  0x58   : > { %1877 = vmatpush1.bf16.msra.mxu0 %v4085_v26  ;;  %3726 = vmatpush3.bf16.msra.mxu1 %v4133_v25  ;;  %v4174_v25 = vld [vmem:[%s4491_s9 + $0x34c] ss:$20 sps:$4 sm:$0xff]   ;;  %v4176_v26 = vld [vmem:[%s4491_s9 + $0xd4] ss:$20 sps:$4 sm:$0xff]  }
  0x59   : > { %1878 = vmatprep.subr.bf16.mxu0 %v4410_v1  ;;  %3727 = vmatprep.subr.bf16.mxu1 %v4173_v30 }
  0x5b   : > { %1626 = vmatmul.mubr.bf16.gmra.mrb[4].mxu0 %v4090_v27  ;;  %1690 = vmatmul.mubr.bf16.gmra.mrb[4].mxu1 %v4091_v28  ;;  %v4178_v27 = vld [vmem:[%s4491_s9 + $0x348] ss:$20 sps:$4 sm:$0xff]   ;;  %v4179_v28 = vld [vmem:[%s4491_s9 + $0xd0] ss:$20 sps:$4 sm:$0xff]  }
  0x5c   : > { %1879 = vmatpush1.bf16.msra.mxu0 %v4092_v29  ;;  %1633 = vmatprep.mubr.bf16.mxu0 %v4094_v31  ;;  %v4180_v29 = vld [vmem:[%s4491_s9 + $0x374] ss:$20 sps:$4 sm:$0xff]   ;;  %v4184_v31 = vld [vmem:[%s4491_s9 + $0x370] ss:$20 sps:$4 sm:$0xff]  }
  0x5d   : > { %1880 = vmatprep.subr.bf16.mxu0 %v4410_v1  ;;  %1697 = vmatprep.mubr.bf16.mxu1 %v4096_v32  ;;  %v4185_v32 = vld [vmem:[%s4491_s9 + $0xf8] ss:$20 sps:$4 sm:$0xff]  }
  0x5e   : > { %3728 = vmatpush3.bf16.msra.mxu1 %v4173_v30  ;;  %v4182_v30 = vld [vmem:[%s4491_s9 + $0xfc] ss:$20 sps:$4 sm:$0xff]  }
  0x5f   : > { %3729 = vmatprep.subr.bf16.mxu1 %v4210_v44 }
  0x60   : > { %1881 = vmatpush1.bf16.msra.mxu0 %v4093_v33  ;;  %v4186_v33 = vld [vmem:[%s4491_s9 + $0x39c] ss:$20 sps:$4 sm:$0xff]  }
  0x61   : > { %1882 = vmatprep.subr.bf16.mxu0 %v4410_v1 }
  0x62   : > { %3730 = vmatpush3.bf16.msra.mxu1 %v4210_v44  ;;  %v4203_v44 = vld [vmem:[%s4491_s9 + $0x170] ss:$20 sps:$4 sm:$0xff]  }
  0x63   : > { %1634 = vmatmul.mubr.bf16.gmra.mrb[8].mxu0 %v4098_v34  ;;  %1698 = vmatmul.mubr.bf16.gmra.mrb[8].mxu1 %v4099_v35  ;;  %v4188_v34 = vld [vmem:[%s4491_s9 + $0x124] ss:$20 sps:$4 sm:$0xff]  }
  0x64   : > { %1883 = vmatpush1.bf16.msra.mxu0 %v4100_v36  ;;  %1641 = vmatprep.mubr.bf16.mxu0 %v4102_v37  ;;  %v4190_v35 = vld [vmem:[%s4491_s9 + $0x398] ss:$20 sps:$4 sm:$0xff]   ;;  %v4191_v36 = vld [vmem:[%s4491_s9 + $0x120] ss:$20 sps:$4 sm:$0xff]  }
  0x65   : > { %1884 = vmatprep.subr.bf16.mxu0 %v4410_v1  ;;  %1705 = vmatprep.mubr.bf16.mxu1 %v4104_v38  ;;  %v4192_v37 = vld [vmem:[%s4491_s9 + $0x3c4] ss:$20 sps:$4 sm:$0xff]   ;;  %v4194_v38 = vld [vmem:[%s4491_s9 + $0x14c] ss:$20 sps:$4 sm:$0xff]  }
  0x68   : > { %1885 = vmatpush1.bf16.msra.mxu0 %v4101_v39  ;;  %v4196_v39 = vld [vmem:[%s4491_s9 + $0x3c0] ss:$20 sps:$4 sm:$0xff]  }
  0x69   : > { %1886 = vmatprep.subr.bf16.mxu0 %v4410_v1 }
  0x6b   : > { %1642 = vmatmul.mubr.bf16.gmra.mrb[12].mxu0 %v4106_v40  ;;  %1706 = vmatmul.mubr.bf16.gmra.mrb[12].mxu1 %v4107_v41  ;;  %v4197_v40 = vld [vmem:[%s4491_s9 + $0x148] ss:$20 sps:$4 sm:$0xff]   ;;  %v4198_v41 = vld [vmem:[%s4491_s9 + $0x3ec] ss:$20 sps:$4 sm:$0xff]  }
  0x6c   : > { %1887 = vmatpush1.bf16.msra.mxu0 %v4108_v42  ;;  %1649 = vmatprep.mubr.bf16.mxu0 %v4110_v43  ;;  %v4200_v42 = vld [vmem:[%s4491_s9 + $0x174] ss:$20 sps:$4 sm:$0xff]  }
  0x6d   : > { %1888 = vmatprep.subr.bf16.mxu0 %v4410_v1  ;;  %1713 = vmatprep.mubr.bf16.mxu1 %v4112_v45  ;;  %v4202_v43 = vld [vmem:[%s4491_s9 + $0x3e8] ss:$20 sps:$4 sm:$0xff]  }
  0x6e   : > { %v4204_v45 = vld [vmem:[%s4491_s9 + $0x414] ss:$20 sps:$4 sm:$0xff]  }
  0x70   : > { %1889 = vmatpush1.bf16.msra.mxu0 %v4109_v46  ;;  %v4206_v46 = vld [vmem:[%s4491_s9 + $0x19c] ss:$20 sps:$4 sm:$0xff]  }
  0x71   : > { %1890 = vmatprep.subr.bf16.mxu0 %v4410_v1 }
  0x73   : > { %1650 = vmatmul.mubr.bf16.gmra.mrb[16].mxu0 %v4114_v47  ;;  %1714 = vmatmul.mubr.bf16.gmra.mrb[16].mxu1 %v4115_v48  ;;  %v4208_v47 = vld [vmem:[%s4491_s9 + $0x410] ss:$20 sps:$4 sm:$0xff]   ;;  %v4209_v48 = vld [vmem:[%s4491_s9 + $0x198] ss:$20 sps:$4 sm:$0xff]  }
  0x74   : > { %1891 = vmatpush1.bf16.msra.mxu0 %v4116_v49  ;;  %1657 = vmatprep.mubr.bf16.mxu0 %v4118_v50  ;;  %v4211_v49 = vld [vmem:[%s4491_s9 + $0x43c] ss:$20 sps:$4 sm:$0xff]   ;;  %v4213_v50 = vld [vmem:[%s4491_s9 + $0x1c4] ss:$20 sps:$4 sm:$0xff]  }
  0x75   : > { %1892 = vmatprep.subr.bf16.mxu0 %v4410_v1  ;;  %1721 = vmatprep.mubr.bf16.mxu1 %v4120_v51  ;;  %v4215_v51 = vld [vmem:[%s4491_s9 + $0x438] ss:$20 sps:$4 sm:$0xff]  }
  0x78   : > { %1893 = vmatpush1.bf16.msra.mxu0 %v4117_v52  ;;  %v4216_v52 = vld [vmem:[%s4491_s9 + $0x1c0] ss:$20 sps:$4 sm:$0xff]  }
  0x79   : > { %1894 = vmatprep.subr.bf16.mxu0 %v4410_v1 }
  0x7b   : > { %1658 = vmatmul.mubr.bf16.gmra.mrb[20].mxu0 %v4122_v53  ;;  %1722 = vmatmul.mubr.bf16.gmra.mrb[20].mxu1 %v4123_v54  ;;  %v4217_v53 = vld [vmem:[%s4491_s9 + $0x464] ss:$20 sps:$4 sm:$0xff]   ;;  %v4219_v54 = vld [vmem:[%s4491_s9 + $0x1ec] ss:$20 sps:$4 sm:$0xff]  }
  0x7c   : > { %1895 = vmatpush1.bf16.msra.mxu0 %v4124_v55  ;;  %1665 = vmatprep.mubr.bf16.mxu0 %v4126_v56  ;;  %v4221_v55 = vld [vmem:[%s4491_s9 + $0x460] ss:$20 sps:$4 sm:$0xff]   ;;  %v4222_v56 = vld [vmem:[%s4491_s9 + $0x1e8] ss:$20 sps:$4 sm:$0xff]  }
  0x7d   : > { %1896 = vmatprep.subr.bf16.mxu0 %v4410_v1  ;;  %1729 = vmatprep.mubr.bf16.mxu1 %v4128_v57  ;;  %v4223_v57 = vld [vmem:[%s4491_s9 + $0x48c] ss:$20 sps:$4 sm:$0xff]  }
  0x80   : > { %1897 = vmatpush1.bf16.msra.mxu0 %v4125_v58  ;;  %v4225_v58 = vld [vmem:[%s4491_s9 + $0x214] ss:$20 sps:$4 sm:$0xff]  }
  0x81   : > { %1898 = vmatprep.subr.bf16.mxu0 %v4410_v1 }
  0x83   : > { %1666 = vmatmul.mubr.bf16.gmra.mrb[24].mxu0 %v4130_v59  ;;  %1730 = vmatmul.mubr.bf16.gmra.mrb[24].mxu1 %v4131_v60  ;;  %v4227_v59 = vld [vmem:[%s4491_s9 + $0x488] ss:$20 sps:$4 sm:$0xff]   ;;  %v4228_v60 = vld [vmem:[%s4491_s9 + $0x210] ss:$20 sps:$4 sm:$0xff]  }
  0x84   : > { %1899 = vmatpush1.bf16.msra.mxu0 %v4132_v61  ;;  %1673 = vmatprep.mubr.bf16.mxu0 %v4135_v62  ;;  %v4229_v61 = vld [vmem:[%s4491_s9 + $0x4b4] ss:$20 sps:$4 sm:$0xff]   ;;  %v4231_v62 = vld [vmem:[%s4491_s9 + $0x23c] ss:$20 sps:$4 sm:$0xff]  }
  0x85   : > { %1900 = vmatprep.subr.bf16.mxu0 %v4410_v1  ;;  %1737 = vmatprep.mubr.bf16.mxu1 %v4137_v63  ;;  %v4233_v63 = vld [vmem:[%s4491_s9 + $0x4b0] ss:$20 sps:$4 sm:$0xff]  }
  0x88   : > { %1901 = vmatpush1.bf16.msra.mxu0 %v4134_v0  ;;  %v4234_v0 = vld [vmem:[%s4491_s9 + $0x238] ss:$20 sps:$4 sm:$0xff]  }
  0x89   : > { %1902 = vmatprep.subr.bf16.mxu0 %v4410_v1 }
  0x8b   : > { %1674 = vmatmul.mubr.bf16.gmra.mrb[28].mxu0 %v4139_v2  ;;  %1738 = vmatmul.mubr.bf16.gmra.mrb[28].mxu1 %v4140_v3  ;;  %v4235_v2 = vld [vmem:[%s4491_s9 + $0x4dc] ss:$20 sps:$4 sm:$0xff]   ;;  %v4237_v3 = vld [vmem:[%s4491_s9 + $0x264] ss:$20 sps:$4 sm:$0xff]  }
  0x8c   : > { %1903 = vmatpush1.bf16.msra.mxu0 %v4141_v4  ;;  %1745 = vmatprep.mubr.bf16.mxu1 %v4143_v5  ;;  %v4239_v4 = vld [vmem:[%s4491_s9 + $0x4d8] ss:$20 sps:$4 sm:$0xff]   ;;  %v4240_v5 = vld [vmem:[%s4491_s9 + $0x260] ss:$20 sps:$4 sm:$0xff]  }
  0x8d   : > { %1904 = vmatprep.subr.bf16.mxu0 %v4410_v1  ;;  %1906 = vmatprep.mubr.bf16.mxu0 %v4147_v6  ;;  %v4157_v1 = vld [vmem:[%s4491_s9 + $0x5c] ss:$20 sps:$4 sm:$0xff]   ;;  %v4241_v6 = vld [vmem:[%s4491_s9 + $0x28c] ss:$20 sps:$4 sm:$0xff]  }
  0x90   : > { %1905 = vmatpush1.bf16.msra.mxu0 %v4142_v7  ;;  %v4243_v7 = vld [vmem:[%s4491_s9 + $0x10] ss:$20 sps:$4 sm:$0xff]  }
  0x93   : > { %1746 = vmatmul.mubr.bf16.gmra.mrb[32].mxu1 %v4148_v9  ;;  %1907 = vmatmul.mubr.bf16.vlgmr.msra.gmra.mrb[0].mxu0 %v4145_v8  ;;  %v4244_v8 = vld [vmem:[%s4491_s9 + $0x288] ss:$20 sps:$4 sm:$0xff]   ;;  %v4245_v9 = vld [vmem:[%s4491_s9 + $0x38] ss:$20 sps:$4 sm:$0xff]  }
  0x94   : > { %1753 = vmatprep.mubr.bf16.mxu1 %v4149_v10  ;;  %1914 = vmatprep.mubr.bf16.mxu0 %v4151_v11  ;;  %v4246_v10 = vld [vmem:[%s4491_s9 + $0x2b4] ss:$20 sps:$4 sm:$0xff]  }
  0x95   : > { %v4248_v11 = vld [vmem:[%s4491_s9 + $0x60] ss:$20 sps:$4 sm:$0xff]  }
  0x9b   : > { %1754 = vmatmul.mubr.bf16.gmra.mrb[36].mxu1 %v4153_v12  ;;  %1915 = vmatmul.mubr.bf16.gmra.mrb[4].mxu0 %v4154_v13  ;;  %v4249_v12 = vld [vmem:[%s4491_s9 + $0x2b0] ss:$20 sps:$4 sm:$0xff]   ;;  %v4250_v13 = vld [vmem:[%s4491_s9 + $0x88] ss:$20 sps:$4 sm:$0xff]  }
  0x9c   : > { %1761 = vmatprep.mubr.bf16.mxu1 %v4155_v14  ;;  %1922 = vmatprep.mubr.bf16.mxu0 %v4157_v1  ;;  %v4251_v14 = vld [vmem:[%s4491_s9 + $0x2dc] ss:$20 sps:$4 sm:$0xff]  }
  0x9d   : > { %v4253_v1 = vld [vmem:[%s4491_s9 + $0xb0] ss:$20 sps:$4 sm:$0xff]  }
  0xa3   : > { %1762 = vmatmul.mubr.bf16.gmra.mrb[40].mxu1 %v4159_v15  ;;  %1923 = vmatmul.mubr.bf16.gmra.mrb[8].mxu0 %v4160_v16  ;;  %v4254_v15 = vld [vmem:[%s4491_s9 + $0x2d8] ss:$20 sps:$4 sm:$0xff]  }
  0xa4   : > { %1769 = vmatprep.mubr.bf16.mxu1 %v4161_v17  ;;  %1930 = vmatprep.mubr.bf16.mxu0 %v4163_v18  ;;  %v4255_v16 = vld [vmem:[%s4491_s9 + $0xd8] ss:$20 sps:$4 sm:$0xff]   ;;  %v4258_v18 = vld [vmem:[%s4491_s9 + $0x100] ss:$20 sps:$4 sm:$0xff]  }
  0xa5   : > { %v4256_v17 = vld [vmem:[%s4491_s9 + $0x304] ss:$20 sps:$4 sm:$0xff]  }
  0xab   : > { %1770 = vmatmul.mubr.bf16.gmra.mrb[44].mxu1 %v4165_v19  ;;  %1931 = vmatmul.mubr.bf16.gmra.mrb[12].mxu0 %v4166_v20 }
  0xac   : > { %1777 = vmatprep.mubr.bf16.mxu1 %v4167_v21  ;;  %1938 = vmatprep.mubr.bf16.mxu0 %v4169_v22  ;;  %v4259_v21 = vld [vmem:[%s4491_s9 + $0x300] ss:$20 sps:$4 sm:$0xff]   ;;  %v4260_v22 = vld [vmem:[%s4491_s9 + $0x128] ss:$20 sps:$4 sm:$0xff]  }
  0xb3   : > { %1778 = vmatmul.mubr.bf16.gmra.mrb[48].mxu1 %v4171_v23  ;;  %1939 = vmatmul.mubr.bf16.gmra.mrb[16].mxu0 %v4172_v24  ;;  %v4261_v24 = vld [vmem:[%s4491_s9 + $0x32c] ss:$20 sps:$4 sm:$0xff]  }
  0xb4   : > { %1785 = vmatprep.mubr.bf16.mxu1 %v4174_v25  ;;  %1946 = vmatprep.mubr.bf16.mxu0 %v4176_v26  ;;  %v4263_v25 = vld [vmem:[%s4491_s9 + $0x150] ss:$20 sps:$4 sm:$0xff]  }
  0xbb   : > { %1786 = vmatmul.mubr.bf16.gmra.mrb[52].mxu1 %v4178_v27  ;;  %1947 = vmatmul.mubr.bf16.gmra.mrb[20].mxu0 %v4179_v28 }
  0xbc   : > { %1793 = vmatprep.mubr.bf16.mxu1 %v4180_v29  ;;  %1954 = vmatprep.mubr.bf16.mxu0 %v4182_v30  ;;  %v4264_v29 = vld [vmem:[%s4491_s9 + $0x328] ss:$20 sps:$4 sm:$0xff]   ;;  %v4265_v30 = vld [vmem:[%s4491_s9 + $0x178] ss:$20 sps:$4 sm:$0xff]  }
  0xc3   : > { %1794 = vmatmul.mubr.bf16.gmra.mrb[56].mxu1 %v4184_v31  ;;  %1955 = vmatmul.mubr.bf16.gmra.mrb[24].mxu0 %v4185_v32  ;;  %v4266_v32 = vld [vmem:[%s4491_s9 + $0x354] ss:$20 sps:$4 sm:$0xff]  }
  0xc4   : > { %1801 = vmatprep.mubr.bf16.mxu1 %v4186_v33  ;;  %1962 = vmatprep.mubr.bf16.mxu0 %v4188_v34  ;;  %v4268_v33 = vld [vmem:[%s4491_s9 + $0x1a0] ss:$20 sps:$4 sm:$0xff]  }
  0xcb   : > { %1802 = vmatmul.mubr.bf16.gmra.mrb[60].mxu1 %v4190_v35  ;;  %1963 = vmatmul.mubr.bf16.gmra.mrb[28].mxu0 %v4191_v36 }
  0xcc   : > { %1809 = vmatprep.mubr.bf16.mxu1 %v4192_v37  ;;  %1970 = vmatprep.mubr.bf16.mxu0 %v4194_v38  ;;  %v4269_v37 = vld [vmem:[%s4491_s9 + $0x350] ss:$20 sps:$4 sm:$0xff]   ;;  %v4270_v38 = vld [vmem:[%s4491_s9 + $0x1c8] ss:$20 sps:$4 sm:$0xff]  }
  0xd3   : > { %1810 = vmatmul.mubr.bf16.gmra.mrb[64].mxu1 %v4196_v39  ;;  %1971 = vmatmul.mubr.bf16.gmra.mrb[32].mxu0 %v4197_v40  ;;  %v4271_v40 = vld [vmem:[%s4491_s9 + $0x37c] ss:$20 sps:$4 sm:$0xff]  }
  0xd4   : > { %1817 = vmatprep.mubr.bf16.mxu1 %v4198_v41  ;;  %1978 = vmatprep.mubr.bf16.mxu0 %v4200_v42  ;;  %v4273_v41 = vld [vmem:[%s4491_s9 + $0x1f0] ss:$20 sps:$4 sm:$0xff]  }
  0xdb   : > { %1818 = vmatmul.mubr.bf16.gmra.mrb[68].mxu1 %v4202_v43  ;;  %1979 = vmatmul.mubr.bf16.gmra.mrb[36].mxu0 %v4203_v44 }
  0xdc   : > { %1825 = vmatprep.mubr.bf16.mxu1 %v4204_v45  ;;  %1986 = vmatprep.mubr.bf16.mxu0 %v4206_v46  ;;  %v4274_v45 = vld [vmem:[%s4491_s9 + $0x378] ss:$20 sps:$4 sm:$0xff]  }
  0xdd   : > { %v4275_v46 = vld [vmem:[%s4491_s9 + $0x218] ss:$20 sps:$4 sm:$0xff]  }
  0xe3   : > { %1826 = vmatmul.mubr.bf16.gmra.mrb[72].mxu1 %v4208_v47  ;;  %1987 = vmatmul.mubr.bf16.gmra.mrb[40].mxu0 %v4209_v48  ;;  %v4276_v48 = vld [vmem:[%s4491_s9 + $0x3a4] ss:$20 sps:$4 sm:$0xff]  }
  0xe4   : > { %1833 = vmatprep.mubr.bf16.mxu1 %v4211_v49  ;;  %1994 = vmatprep.mubr.bf16.mxu0 %v4213_v50  ;;  %v4278_v49 = vld [vmem:[%s4491_s9 + $0x240] ss:$20 sps:$4 sm:$0xff]  }
  0xeb   : > { %1834 = vmatmul.mubr.bf16.gmra.mrb[76].mxu1 %v4215_v51  ;;  %1995 = vmatmul.mubr.bf16.gmra.mrb[44].mxu0 %v4216_v52 }
  0xec   : > { %1841 = vmatprep.mubr.bf16.mxu1 %v4217_v53  ;;  %2002 = vmatprep.mubr.bf16.mxu0 %v4219_v54  ;;  %v4279_v53 = vld [vmem:[%s4491_s9 + $0x3a0] ss:$20 sps:$4 sm:$0xff]   ;;  %v4280_v54 = vld [vmem:[%s4491_s9 + $0x268] ss:$20 sps:$4 sm:$0xff]  }
  0xf3   : > { %1842 = vmatmul.mubr.bf16.gmra.mrb[80].mxu1 %v4221_v55  ;;  %2003 = vmatmul.mubr.bf16.gmra.mrb[48].mxu0 %v4222_v56  ;;  %v4281_v56 = vld [vmem:[%s4491_s9 + $0x3cc] ss:$20 sps:$4 sm:$0xff]  }
  0xf4   : > { %1849 = vmatprep.mubr.bf16.mxu1 %v4223_v57  ;;  %2010 = vmatprep.mubr.bf16.mxu0 %v4225_v58  ;;  %v4283_v57 = vld [vmem:[%s4491_s9 + $0x290] ss:$20 sps:$4 sm:$0xff]  }
  0xfb   : > { %1850 = vmatmul.mubr.bf16.gmra.mrb[84].mxu1 %v4227_v59  ;;  %2011 = vmatmul.mubr.bf16.gmra.mrb[52].mxu0 %v4228_v60 }
  0xfc   : > { %1857 = vmatprep.mubr.bf16.mxu1 %v4229_v61  ;;  %2018 = vmatprep.mubr.bf16.mxu0 %v4231_v62  ;;  %v4284_v61 = vld [vmem:[%s4491_s9 + $0x3c8] ss:$20 sps:$4 sm:$0xff]   ;;  %v4285_v62 = vld [vmem:[%s4491_s9 + $0x2b8] ss:$20 sps:$4 sm:$0xff]  }
 0x103   : > { %1858 = vmatmul.mubr.bf16.gmra.mrb[88].mxu1 %v4233_v63  ;;  %2019 = vmatmul.mubr.bf16.gmra.mrb[56].mxu0 %v4234_v0  ;;  %v4286_v0 = vld [vmem:[%s4491_s9 + $0x3f4] ss:$20 sps:$4 sm:$0xff]  }
 0x104   : > { %1865 = vmatprep.mubr.bf16.mxu1 %v4235_v2  ;;  %2026 = vmatprep.mubr.bf16.mxu0 %v4237_v3  ;;  %v4288_v2 = vld [vmem:[%s4491_s9 + $0x2e0] ss:$20 sps:$4 sm:$0xff]  }
 0x10b   : > { %1866 = vmatmul.mubr.bf16.gmra.mrb[92].mxu1 %v4239_v4  ;;  %2027 = vmatmul.mubr.bf16.gmra.mrb[60].mxu0 %v4240_v5 }
 0x10c   : > { %2034 = vmatprep.mubr.bf16.mxu0 %v4241_v6  ;;  %3731 = vmatprep.mubr.msk.bf16.mxu1 %vm1488_vm0, %v4243_v7  ;;  %v4289_v6 = vld [vmem:[%s4491_s9 + $0x3f0] ss:$20 sps:$4 sm:$0xff]   ;;  %v4290_v7 = vld [vmem:[%s4491_s9 + $0x308] ss:$20 sps:$4 sm:$0xff]  }
 0x113   : > { %2035 = vmatmul.mubr.bf16.gmra.mrb[64].mxu0 %v4244_v8  ;;  %3732 = vmatmul.mubr.msk.bf16.vlgmr.msra.gmra.mrb[96].mxu1 %vm1488_vm0, %v4245_v9  ;;  %v4291_v9 = vld [vmem:[%s4491_s9 + $0x41c] ss:$20 sps:$4 sm:$0xff]  }
 0x114   : > { %2042 = vmatprep.mubr.bf16.mxu0 %v4246_v10  ;;  %3735 = vmatprep.mubr.msk.bf16.mxu1 %vm1488_vm0, %v4248_v11  ;;  %v4293_v10 = vld [vmem:[%s4491_s9 + $0x330] ss:$20 sps:$4 sm:$0xff]  }
 0x11b   : > { %2043 = vmatmul.mubr.bf16.gmra.mrb[68].mxu0 %v4249_v12  ;;  %3736 = vmatmul.mubr.msk.bf16.gmra.mrb[100].mxu1 %vm1488_vm0, %v4250_v13 }
 0x11c   : > { %2050 = vmatprep.mubr.bf16.mxu0 %v4251_v14  ;;  %3739 = vmatprep.mubr.msk.bf16.mxu1 %vm1488_vm0, %v4253_v1  ;;  %v4294_v14 = vld [vmem:[%s4491_s9 + $0x418] ss:$20 sps:$4 sm:$0xff]  }
 0x11d   : > { %v4295_v1 = vld [vmem:[%s4491_s9 + $0x358] ss:$20 sps:$4 sm:$0xff]  }
 0x123   : > { %2051 = vmatmul.mubr.bf16.gmra.mrb[72].mxu0 %v4254_v15  ;;  %3740 = vmatmul.mubr.msk.bf16.gmra.mrb[104].mxu1 %vm1488_vm0, %v4255_v16  ;;  %v4296_v16 = vld [vmem:[%s4491_s9 + $0x444] ss:$20 sps:$4 sm:$0xff]  }
 0x124   : > { %2058 = vmatprep.mubr.bf16.mxu0 %v4256_v17  ;;  %3743 = vmatprep.mubr.msk.bf16.mxu1 %vm1488_vm0, %v4258_v18  ;;  %v4298_v17 = vld [vmem:[%s4491_s9 + $0x380] ss:$20 sps:$4 sm:$0xff]  }
 0x126   : > { %v4743_v19 = vpop.f32.mrb[0].mxu1 }
 0x127   : > { %v1685_v20 = vpop.f32.mrb[1].mxu1 }
 0x128   : > { %v4747_v23 = vpop.f32.mrb[2].mxu1 }
 0x129   : > { %v1688_v26 = vpop.f32.mrb[3].mxu1 }
 0x12a   : > { %v4300_v26 = vld [vmem:[%s4491_s9 + $0x3a8] ss:$20 sps:$4 sm:$0xff]  }
 0x12b   : > { %2059 = vmatmul.mubr.bf16.gmra.mrb[76].mxu0 %v4259_v21  ;;  %3744 = vmatmul.mubr.msk.bf16.gmra.mrb[108].mxu1 %vm1488_vm0, %v4260_v22 }
 0x12c   : > { %2066 = vmatprep.mubr.bf16.mxu0 %v4261_v24  ;;  %3747 = vmatprep.mubr.msk.bf16.mxu1 %vm1488_vm0, %v4263_v25  ;;  %v4299_v25 = vld [vmem:[%s4491_s9 + $0x440] ss:$20 sps:$4 sm:$0xff]  }
 0x12e   : > { %v4753_v27 = vpop.f32.mrb[4].mxu1 }
 0x12f   : > { %v1693_v28 = vpop.f32.mrb[5].mxu1 }
 0x130   : > { %v4757_v31 = vpop.f32.mrb[6].mxu1 }
 0x131   : > { %v1696_v34 = vpop.f32.mrb[7].mxu1 }
 0x133   : > { %2067 = vmatmul.mubr.bf16.gmra.mrb[80].mxu0 %v4264_v29  ;;  %3748 = vmatmul.mubr.msk.bf16.gmra.mrb[112].mxu1 %vm1488_vm0, %v4265_v30  ;;  %v4301_v30 = vld [vmem:[%s4491_s9 + $0x46c] ss:$20 sps:$4 sm:$0xff]  }
 0x134   : > { %2074 = vmatprep.mubr.bf16.mxu0 %v4266_v32  ;;  %3751 = vmatprep.mubr.msk.bf16.mxu1 %vm1488_vm0, %v4268_v33  ;;  %v4303_v32 = vld [vmem:[%s4491_s9 + $0x3d0] ss:$20 sps:$4 sm:$0xff]  }
 0x136   : > { %v4763_v35 = vpop.f32.mrb[8].mxu1 }
 0x137   : > { %v1701_v36 = vpop.f32.mrb[9].mxu1 }
 0x138   : > { %v4767_v39 = vpop.f32.mrb[10].mxu1 }
 0x139   : > { %v1704_v42 = vpop.f32.mrb[11].mxu1 }
 0x13a   : > { %v4305_v42 = vld [vmem:[%s4491_s9 + $0x3f8] ss:$20 sps:$4 sm:$0xff]  }
 0x13b   : > { %2075 = vmatmul.mubr.bf16.gmra.mrb[84].mxu0 %v4269_v37  ;;  %3752 = vmatmul.mubr.msk.bf16.gmra.mrb[116].mxu1 %vm1488_vm0, %v4270_v38 }
 0x13c   : > { %2082 = vmatprep.mubr.bf16.mxu0 %v4271_v40  ;;  %3755 = vmatprep.mubr.msk.bf16.mxu1 %vm1488_vm0, %v4273_v41  ;;  %v4304_v41 = vld [vmem:[%s4491_s9 + $0x468] ss:$20 sps:$4 sm:$0xff]  }
 0x13e   : > { %v4773_v43 = vpop.f32.mrb[12].mxu1 }
 0x13f   : > { %v1709_v44 = vpop.f32.mrb[13].mxu1 }
 0x140   : > { %v4777_v47 = vpop.f32.mrb[14].mxu1 }
 0x141   : > { %v1712_v50 = vpop.f32.mrb[15].mxu1 }
 0x143   : > { %2083 = vmatmul.mubr.bf16.gmra.mrb[88].mxu0 %v4274_v45  ;;  %3756 = vmatmul.mubr.msk.bf16.gmra.mrb[120].mxu1 %vm1488_vm0, %v4275_v46  ;;  %v4306_v46 = vld [vmem:[%s4491_s9 + $0x494] ss:$20 sps:$4 sm:$0xff]  }
 0x144   : > { %2090 = vmatprep.mubr.bf16.mxu0 %v4276_v48  ;;  %3759 = vmatprep.mubr.msk.bf16.mxu1 %vm1488_vm0, %v4278_v49  ;;  %v4308_v48 = vld [vmem:[%s4491_s9 + $0x420] ss:$20 sps:$4 sm:$0xff]  }
 0x146   : > { %v4783_v51 = vpop.f32.mrb[16].mxu1 }
 0x147   : > { %v1717_v52 = vpop.f32.mrb[17].mxu1 }
 0x148   : > { %v4787_v55 = vpop.f32.mrb[18].mxu1 }
 0x149   : > { %v1720_v58 = vpop.f32.mrb[19].mxu1 }
 0x14a   : > { %v4310_v58 = vld [vmem:[%s4491_s9 + $0x448] ss:$20 sps:$4 sm:$0xff]  }
 0x14b   : > { %2091 = vmatmul.mubr.bf16.gmra.mrb[92].mxu0 %v4279_v53  ;;  %3760 = vmatmul.mubr.msk.bf16.gmra.mrb[124].mxu1 %vm1488_vm0, %v4280_v54 }
 0x14c   : > { %2098 = vmatprep.mubr.bf16.mxu0 %v4281_v56  ;;  %3763 = vmatprep.mubr.msk.bf16.mxu1 %vm1488_vm0, %v4283_v57  ;;  %v4309_v57 = vld [vmem:[%s4491_s9 + $0x490] ss:$20 sps:$4 sm:$0xff]  }
 0x14e   : > { %v4793_v59 = vpop.f32.mrb[20].mxu1 }
 0x14f   : > { %v1725_v60 = vpop.f32.mrb[21].mxu1 }
 0x150   : > { %v4797_v63 = vpop.f32.mrb[22].mxu1 }
 0x151   : > { %v1728_v3 = vpop.f32.mrb[23].mxu1 }
 0x153   : > { %2099 = vmatmul.mubr.bf16.gmra.mrb[96].mxu0 %v4284_v61  ;;  %3764 = vmatmul.mubr.msk.bf16.gmra.mrb[128].mxu1 %vm1488_vm0, %v4285_v62  ;;  %v4311_v62 = vld [vmem:[%s4491_s9 + $0x4bc] ss:$20 sps:$4 sm:$0xff]  }
 0x154   : > { %2106 = vmatprep.mubr.bf16.mxu0 %v4286_v0  ;;  %3767 = vmatprep.mubr.msk.bf16.mxu1 %vm1488_vm0, %v4288_v2  ;;  %v4313_v0 = vld [vmem:[%s4491_s9 + $0x470] ss:$20 sps:$4 sm:$0xff]  }
 0x156   : > { %v4803_v4 = vpop.f32.mrb[24].mxu1 }
 0x157   : > { %v1733_v5 = vpop.f32.mrb[25].mxu1 }
 0x158   : > { %v4807_v8 = vpop.f32.mrb[26].mxu1 }
 0x159   : > { %v1736_v11 = vpop.f32.mrb[27].mxu1 }
 0x15a   : > { %v4315_v11 = vld [vmem:[%s4491_s9 + $0x498] ss:$20 sps:$4 sm:$0xff]  }
 0x15b   : > { %2107 = vmatmul.mubr.bf16.gmra.mrb[100].mxu0 %v4289_v6  ;;  %3768 = vmatmul.mubr.msk.bf16.gmra.mrb[132].mxu1 %vm1488_vm0, %v4290_v7 }
 0x15c   : > { %2114 = vmatprep.mubr.bf16.mxu0 %v4291_v9  ;;  %3771 = vmatprep.mubr.msk.bf16.mxu1 %vm1488_vm0, %v4293_v10  ;;  %v4314_v10 = vld [vmem:[%s4491_s9 + $0x4b8] ss:$20 sps:$4 sm:$0xff]  }
 0x15e   : > { %v4813_v12 = vpop.f32.mrb[28].mxu1 }
 0x15f   : > { %v1741_v13 = vpop.f32.mrb[29].mxu1 }
 0x160   : > { %v4817_v15 = vpop.f32.mrb[30].mxu1 }
 0x161   : > { %v1744_v18 = vpop.f32.mrb[31].mxu1 }
 0x163   : > { %2115 = vmatmul.mubr.bf16.gmra.mrb[104].mxu0 %v4294_v14  ;;  %3772 = vmatmul.mubr.msk.bf16.gmra.mrb[136].mxu1 %vm1488_vm0, %v4295_v1  ;;  %v4316_v1 = vld [vmem:[%s4491_s9 + $0x4e4] ss:$20 sps:$4 sm:$0xff]  }
 0x164   : > { %2122 = vmatprep.mubr.bf16.mxu0 %v4296_v16  ;;  %3775 = vmatprep.mubr.msk.bf16.mxu1 %vm1488_vm0, %v4298_v17  ;;  %v4318_v16 = vld [vmem:[%s4491_s9 + $0x4c0] ss:$20 sps:$4 sm:$0xff]  }
 0x166   : > { %v4823_v20 = vpop.f32.mrb[32].mxu1  ;;  %v4825_v21 = vpop.f32.mrb[0].mxu0 }
 0x167   : > { %v1749_v22 = vpop.f32.mrb[33].mxu1  ;;  %v1910_v24 = vpop.f32.mrb[1].mxu0 }
 0x168   : > { %v4829_v28 = vpop.f32.mrb[34].mxu1  ;;  %v4831_v29 = vpop.f32.mrb[2].mxu0 }
 0x169   : > { %v1752_v33 = vpop.f32.mrb[35].mxu1  ;;  %v1913_v34 = vpop.f32.mrb[3].mxu0 }
 0x16b   : > { %2123 = vmatmul.mubr.bf16.gmra.mrb[108].mxu0 %v4299_v25  ;;  %3776 = vmatmul.mubr.msk.bf16.gmra.mrb[140].mxu1 %vm1488_vm0, %v4300_v26 }
 0x16c   : > { %2130 = vmatprep.mubr.bf16.mxu0 %v4301_v30  ;;  %3779 = vmatprep.mubr.msk.bf16.mxu1 %vm1488_vm0, %v4303_v32  ;;  %v4319_v30 = vld [vmem:[%s4491_s9 + $0x4e0] ss:$20 sps:$4 sm:$0xff]   ;;  %v4320_v32 = vld [vmem:[%s4491_s9 + $0x4e8] ss:$20 sps:$4 sm:$0xff]  }
 0x16e   : > { %v4837_v36 = vpop.f32.mrb[36].mxu1  ;;  %v4839_v37 = vpop.f32.mrb[4].mxu0 }
 0x16f   : > { %v1757_v38 = vpop.f32.mrb[37].mxu1  ;;  %v1918_v40 = vpop.f32.mrb[5].mxu0 }
 0x170   : > { %v4843_v44 = vpop.f32.mrb[38].mxu1  ;;  %v4845_v45 = vpop.f32.mrb[6].mxu0 }
 0x171   : > { %v1760_v49 = vpop.f32.mrb[39].mxu1  ;;  %v1921_v50 = vpop.f32.mrb[7].mxu0 }
 0x173   : > { %2131 = vmatmul.mubr.bf16.gmra.mrb[112].mxu0 %v4304_v41  ;;  %3780 = vmatmul.mubr.msk.bf16.gmra.mrb[144].mxu1 %vm1488_vm0, %v4305_v42 }
 0x174   : > { %2138 = vmatprep.mubr.bf16.mxu0 %v4306_v46  ;;  %3783 = vmatprep.mubr.msk.bf16.mxu1 %vm1488_vm0, %v4308_v48 }
 0x176   : > { %v4851_v52 = vpop.f32.mrb[40].mxu1  ;;  %v4853_v53 = vpop.f32.mrb[8].mxu0 }
 0x177   : > { %v1765_v54 = vpop.f32.mrb[41].mxu1  ;;  %v1926_v56 = vpop.f32.mrb[9].mxu0 }
 0x178   : > { %v4857_v60 = vpop.f32.mrb[42].mxu1  ;;  %v4859_v61 = vpop.f32.mrb[10].mxu0 }
 0x179   : > { %v1768_v2 = vpop.f32.mrb[43].mxu1  ;;  %v1929_v3 = vpop.f32.mrb[11].mxu0 }
 0x17b   : > { %2139 = vmatmul.mubr.bf16.gmra.mrb[116].mxu0 %v4309_v57  ;;  %3784 = vmatmul.mubr.msk.bf16.gmra.mrb[148].mxu1 %vm1488_vm0, %v4310_v58 }
 0x17c   : > { %2146 = vmatprep.mubr.bf16.mxu0 %v4311_v62  ;;  %3787 = vmatprep.mubr.msk.bf16.mxu1 %vm1488_vm0, %v4313_v0 }
 0x17e   : > { %v4865_v5 = vpop.f32.mrb[44].mxu1  ;;  %v4867_v6 = vpop.f32.mrb[12].mxu0 }
 0x17f   : > { %v1773_v7 = vpop.f32.mrb[45].mxu1  ;;  %v1934_v9 = vpop.f32.mrb[13].mxu0 }
 0x180   : > { %v4871_v13 = vpop.f32.mrb[46].mxu1  ;;  %v4873_v14 = vpop.f32.mrb[14].mxu0 }
 0x181   : > { %v1776_v17 = vpop.f32.mrb[47].mxu1  ;;  %v1937_v18 = vpop.f32.mrb[15].mxu0 }
 0x183   : > { %2147 = vmatmul.mubr.bf16.gmra.mrb[120].mxu0 %v4314_v10  ;;  %3788 = vmatmul.mubr.msk.bf16.gmra.mrb[152].mxu1 %vm1488_vm0, %v4315_v11 }
 0x184   : > { %2154 = vmatprep.mubr.bf16.mxu0 %v4316_v1  ;;  %3791 = vmatprep.mubr.msk.bf16.mxu1 %vm1488_vm0, %v4318_v16 }
 0x186   : > { %v4879_v22 = vpop.f32.mrb[48].mxu1  ;;  %v4881_v24 = vpop.f32.mrb[16].mxu0 }
 0x187   : > { %v1781_v25 = vpop.f32.mrb[49].mxu1  ;;  %v1942_v26 = vpop.f32.mrb[17].mxu0 }
 0x188   : > { %v4885_v33 = vpop.f32.mrb[50].mxu1  ;;  %v4887_v34 = vpop.f32.mrb[18].mxu0 }
 0x189   : > { %v1784_v38 = vpop.f32.mrb[51].mxu1  ;;  %v1945_v40 = vpop.f32.mrb[19].mxu0 }
 0x18b   : > { %2155 = vmatmul.mubr.bf16.gmra.mrb[124].mxu0 %v4319_v30  ;;  %3792 = vmatmul.mubr.msk.bf16.gmra.mrb[156].mxu1 %vm1488_vm0, %v4320_v32  ;;  %v4917_v30 = vld [vmem:[%s5526_s2] ss:$0 sm:$0xff] }
 0x18c   : > { %v1684_v32 = vadd.f32 %v4917_v30, %v4743_v19  ;;  %v1692_v19 = vadd.f32 %v4917_v30, %v4753_v27  ;;  %v1700_v27 = vadd.f32 %v4917_v30, %v4763_v35  ;;  %v1708_v35 = vadd.f32 %v4917_v30, %v4773_v43 }
 0x18d   : > { %v1716_v43 = vadd.f32 %v4917_v30, %v4783_v51  ;;  %v1724_v51 = vadd.f32 %v4917_v30, %v4793_v59  ;;  %v1732_v59 = vadd.f32 %v4917_v30, %v4803_v4  ;;  %v1740_v4 = vadd.f32 %v4917_v30, %v4813_v12 }
 0x18e   : > { %v4890_v41 = vpop.f32.mrb[52].mxu1  ;;  %v4892_v42 = vpop.f32.mrb[20].mxu0  ;;  %v1748_v12 = vadd.f32 %v4917_v30, %v4823_v20 }
 0x18f   : > { %v1789_v46 = vpop.f32.mrb[53].mxu1  ;;  %v1950_v48 = vpop.f32.mrb[21].mxu0 }
 0x190   : > { %v4894_v49 = vpop.f32.mrb[54].mxu1  ;;  %v4896_v50 = vpop.f32.mrb[22].mxu0  ;;  %v1687_v46 = vadd.f32 %v4917_v30, %v4747_v23  ;;  %v1695_v23 = vadd.f32 %v4917_v30, %v4757_v31  ;;  %v1703_v31 = vadd.f32 %v4917_v30, %v4767_v39  ;;  %v1711_v39 = vadd.f32 %v4917_v30, %v4777_v47 }
 0x191   : > { %v1792_v54 = vpop.f32.mrb[55].mxu1  ;;  %v1953_v56 = vpop.f32.mrb[23].mxu0  ;;  %v1719_v47 = vadd.f32 %v4917_v30, %v4787_v55  ;;  %v1727_v55 = vadd.f32 %v4917_v30, %v4797_v63  ;;  %v1735_v63 = vadd.f32 %v4917_v30, %v4807_v8  ;;  %v1743_v8 = vadd.f32 %v4917_v30, %v4817_v15 }
 0x192   : > { %v3827_v15 = vadd.f32 %v4917_v30, %v4825_v21 }
 0x196   : > { %v4898_v57 = vpop.f32.mrb[56].mxu1  ;;  %v4900_v58 = vpop.f32.mrb[24].mxu0 }
 0x197   : > { %v1797_v62 = vpop.f32.mrb[57].mxu1  ;;  %v1958_v0 = vpop.f32.mrb[25].mxu0 }
 0x198   : > { %v4902_v2 = vpop.f32.mrb[58].mxu1  ;;  %v4904_v3 = vpop.f32.mrb[26].mxu0 }
 0x199   : > { %v1800_v7 = vpop.f32.mrb[59].mxu1  ;;  %v1961_v9 = vpop.f32.mrb[27].mxu0 }
 0x19e   : > { %v4906_v10 = vpop.f32.mrb[60].mxu1  ;;  %v4908_v11 = vpop.f32.mrb[28].mxu0 }
 0x19f   : > { %v1805_v1 = vpop.f32.mrb[61].mxu1  ;;  %v1966_v16 = vpop.f32.mrb[29].mxu0 }
 0x1a0   : > { %v4910_v17 = vpop.f32.mrb[62].mxu1  ;;  %v4912_v18 = vpop.f32.mrb[30].mxu0 }
 0x1a1   : > { %v1808_v25 = vpop.f32.mrb[63].mxu1  ;;  %v1969_v26 = vpop.f32.mrb[31].mxu0 }
 0x1a6   : > { %v4921_v38 = vpop.f32.mrb[64].mxu1  ;;  %v1972_v40 = vpop.f32.mrb[32].mxu0 }
 0x1a7   : > { %5529 = vst [vmem:[#allocation3_spill] sm:$0xff] %v4921_v38  ;;  %v4925_v48 = vadd.f32 %v1972_v40, %v1684_v32  ;;  %v1813_v54 = vpop.f32.mrb[65].mxu1  ;;  %v1974_v56 = vpop.f32.mrb[33].mxu0 }
 0x1a8   : > { %v4927_v62 = vpop.f32.mrb[66].mxu1  ;;  %v1975_v0 = vpop.f32.mrb[34].mxu0 }
 0x1a9   : > { %5530 = vst [vmem:[#allocation4_spill] sm:$0xff] %v4927_v62  ;;  %v4929_v7 = vadd.f32 %v1975_v0, %v1687_v46  ;;  %v1816_v9 = vpop.f32.mrb[67].mxu1  ;;  %v1977_v1 = vpop.f32.mrb[35].mxu0 }
 0x1ae   : > { %v4933_v16 = vpop.f32.mrb[68].mxu1  ;;  %v1980_v25 = vpop.f32.mrb[36].mxu0 }
 0x1af   : > { %5531 = vst [vmem:[#allocation5_spill] sm:$0xff] %v4933_v16  ;;  %v4937_v26 = vadd.f32 %v1980_v25, %v1692_v19  ;;  %v1821_v32 = vpop.f32.mrb[69].mxu1  ;;  %v1982_v40 = vpop.f32.mrb[37].mxu0 }
 0x1b0   : > { %v4939_v54 = vpop.f32.mrb[70].mxu1  ;;  %v1983_v56 = vpop.f32.mrb[38].mxu0 }
 0x1b1   : > { %5532 = vst [vmem:[#allocation6_spill] sm:$0xff] %v4939_v54  ;;  %v4941_v46 = vadd.f32 %v1983_v56, %v1695_v23  ;;  %v1824_v0 = vpop.f32.mrb[71].mxu1  ;;  %v1985_v9 = vpop.f32.mrb[39].mxu0 }
 0x1b6   : > { %v4945_v1 = vpop.f32.mrb[72].mxu1  ;;  %v1988_v16 = vpop.f32.mrb[40].mxu0 }
 0x1b7   : > { %5533 = vst [vmem:[#allocation7_spill] sm:$0xff] %v4945_v1  ;;  %v4949_v19 = vadd.f32 %v1988_v16, %v1700_v27  ;;  %v1829_v25 = vpop.f32.mrb[73].mxu1  ;;  %v1990_v32 = vpop.f32.mrb[41].mxu0 }
 0x1b8   : > { %v4951_v40 = vpop.f32.mrb[74].mxu1  ;;  %v1991_v54 = vpop.f32.mrb[42].mxu0 }
 0x1b9   : > { %5534 = vst [vmem:[#allocation8_spill] sm:$0xff] %v4951_v40  ;;  %v4953_v23 = vadd.f32 %v1991_v54, %v1703_v31  ;;  %v1832_v56 = vpop.f32.mrb[75].mxu1  ;;  %v1993_v0 = vpop.f32.mrb[43].mxu0 }
 0x1be   : > { %v4957_v9 = vpop.f32.mrb[76].mxu1  ;;  %v1996_v1 = vpop.f32.mrb[44].mxu0 }
 0x1bf   : > { %5535 = vst [vmem:[#allocation9_spill] sm:$0xff] %v4957_v9  ;;  %v4961_v16 = vadd.f32 %v1996_v1, %v1708_v35  ;;  %v1837_v27 = vpop.f32.mrb[77].mxu1  ;;  %v1998_v25 = vpop.f32.mrb[45].mxu0 }
 0x1c0   : > { %v4963_v32 = vpop.f32.mrb[78].mxu1  ;;  %v1999_v40 = vpop.f32.mrb[46].mxu0 }
 0x1c1   : > { %5536 = vst [vmem:[#allocation10_spill] sm:$0xff] %v4963_v32  ;;  %v4965_v54 = vadd.f32 %v1999_v40, %v1711_v39  ;;  %v1840_v31 = vpop.f32.mrb[79].mxu1  ;;  %v2001_v56 = vpop.f32.mrb[47].mxu0 }
 0x1c6   : > { %v4969_v0 = vpop.f32.mrb[80].mxu1  ;;  %v2004_v9 = vpop.f32.mrb[48].mxu0 }
 0x1c7   : > { %5537 = vst [vmem:[#allocation11_spill] sm:$0xff] %v4969_v0  ;;  %v4973_v1 = vadd.f32 %v2004_v9, %v1716_v43  ;;  %v1845_v35 = vpop.f32.mrb[81].mxu1  ;;  %v2006_v27 = vpop.f32.mrb[49].mxu0 }
 0x1c8   : > { %v4975_v25 = vpop.f32.mrb[82].mxu1  ;;  %v2007_v32 = vpop.f32.mrb[50].mxu0 }
 0x1c9   : > { %5538 = vst [vmem:[#allocation12_spill] sm:$0xff] %v4975_v25  ;;  %v4977_v40 = vadd.f32 %v2007_v32, %v1719_v47  ;;  %v1848_v39 = vpop.f32.mrb[83].mxu1  ;;  %v2009_v31 = vpop.f32.mrb[51].mxu0 }
 0x1ce   : > { %v4981_v56 = vpop.f32.mrb[84].mxu1  ;;  %v2012_v0 = vpop.f32.mrb[52].mxu0 }
 0x1cf   : > { %5539 = vst [vmem:[#allocation13_spill] sm:$0xff] %v4981_v56  ;;  %v4985_v9 = vadd.f32 %v2012_v0, %v1724_v51  ;;  %v1853_v43 = vpop.f32.mrb[85].mxu1  ;;  %v2014_v35 = vpop.f32.mrb[53].mxu0 }
 0x1d0   : > { %v4987_v27 = vpop.f32.mrb[86].mxu1  ;;  %v2015_v25 = vpop.f32.mrb[54].mxu0 }
 0x1d1   : > { %5540 = vst [vmem:[#allocation14_spill] sm:$0xff] %v4987_v27  ;;  %v4989_v32 = vadd.f32 %v2015_v25, %v1727_v55  ;;  %v1856_v47 = vpop.f32.mrb[87].mxu1  ;;  %v2017_v39 = vpop.f32.mrb[55].mxu0 }
 0x1d6   : > { %v4993_v31 = vpop.f32.mrb[88].mxu1  ;;  %v2020_v56 = vpop.f32.mrb[56].mxu0 }
 0x1d7   : > { %5541 = vst [vmem:[#allocation15_spill] sm:$0xff] %v4993_v31  ;;  %v4997_v0 = vadd.f32 %v2020_v56, %v1732_v59  ;;  %v1861_v51 = vpop.f32.mrb[89].mxu1  ;;  %v2022_v43 = vpop.f32.mrb[57].mxu0 }
 0x1d8   : > { %v4999_v35 = vpop.f32.mrb[90].mxu1  ;;  %v2023_v27 = vpop.f32.mrb[58].mxu0 }
 0x1d9   : > { %5542 = vst [vmem:[#allocation16_spill] sm:$0xff] %v4999_v35  ;;  %v5001_v25 = vadd.f32 %v2023_v27, %v1735_v63  ;;  %v1864_v55 = vpop.f32.mrb[91].mxu1  ;;  %v2025_v47 = vpop.f32.mrb[59].mxu0 }
 0x1da   : > { %v3829_v47 = vadd.f32 %v4917_v30, %v4839_v37  ;;  %v3828_v37 = vadd.f32 %v4917_v30, %v4831_v29  ;;  %v3833_v29 = vadd.f32 %v4917_v30, %v4867_v6  ;;  %v1759_v6 = vadd.f32 %v4917_v30, %v4843_v44 }
 0x1db   : > { %5543 = vst [vmem:[#allocation17_spill] sm:$0xff] %v5001_v25 }
 0x1de   : > { %v5005_v39 = vpop.f32.mrb[92].mxu1  ;;  %v2028_v31 = vpop.f32.mrb[60].mxu0 }
 0x1df   : > { %5544 = vst [vmem:[#allocation18_spill] sm:$0xff] %v5005_v39  ;;  %v5009_v56 = vadd.f32 %v2028_v31, %v1740_v4  ;;  %v1869_v59 = vpop.f32.mrb[93].mxu1  ;;  %v2030_v51 = vpop.f32.mrb[61].mxu0 }
 0x1e0   : > { %v5011_v43 = vpop.f32.mrb[94].mxu1  ;;  %v2031_v35 = vpop.f32.mrb[62].mxu0  ;;  %v1751_v59 = vadd.f32 %v4917_v30, %v4829_v28 }
 0x1e1   : > { %5545 = vst [vmem:[#allocation19_spill] sm:$0xff] %v5011_v43  ;;  %v5013_v27 = vadd.f32 %v2031_v35, %v1743_v8  ;;  %v1872_v63 = vpop.f32.mrb[95].mxu1  ;;  %v2033_v55 = vpop.f32.mrb[63].mxu0  ;;  %v3830_v35 = vadd.f32 %v4917_v30, %v4845_v45 }
 0x1e6   : > { %v2036_v31 = vpop.f32.mrb[64].mxu0  ;;  %v3733_v4 = vpop.f32.mrb[96].mxu1 }
 0x1e7   : > { %v5026_v8 = vadd.f32 %v2036_v31, %v1748_v12  ;;  %v2206_v51 = vadd.f32 %v3829_v47, %v3733_v4  ;;  %v2038_v63 = vpop.f32.mrb[65].mxu0  ;;  %v2197_v20 = vpop.f32.mrb[97].mxu1 }
 0x1e8   : > { %v2198_v55 = vadd.f32 %v3827_v15, %v2197_v20  ;;  %v2039_v43 = vpop.f32.mrb[66].mxu0  ;;  %v3734_v21 = vpop.f32.mrb[98].mxu1  ;;  %v1756_v63 = vadd.f32 %v4917_v30, %v4837_v36  ;;  %v3834_v15 = vadd.f32 %v4917_v30, %v4873_v14 }
 0x1e9   : > { %5546 = vst [vmem:[#allocation20_spill] sm:$0xff] %v5026_v8  ;;  %v2454_v39 = vmax.f32 %v2206_v51, 0.0  ;;  %v5030_v62 = vadd.f32 %v2039_v43, %v1751_v59  ;;  %v2209_v38 = vadd.f32 %v3830_v35, %v3734_v21  ;;  %v2041_v28 = vpop.f32.mrb[67].mxu0  ;;  %v2200_v25 = vpop.f32.mrb[99].mxu1 }
 0x1ea   : > { %v2452_v45 = vmax.f32 %v2198_v55, 0.0  ;;  %v2201_v12 = vadd.f32 %v3828_v37, %v2200_v25 }
 0x1eb   : > { %v3622_v31 = vpack.c.bf16 %v2454_v39, %v2454_v39  ;;  %v2455_v8 = vmax.f32 %v2209_v38, 0.0  ;;  %v3831_v38 = vadd.f32 %v4917_v30, %v4853_v53  ;;  %v3832_v53 = vadd.f32 %v4917_v30, %v4859_v61 }
 0x1ec   : > { %v3620_v47 = vpack.c.bf16 %v2452_v45, %v2452_v45  ;;  %v2453_v4 = vmax.f32 %v2201_v12, 0.0 }
 0x1ed   : > { %2775 = vst.msk [vmem:[%s5036_s24 + $0x8] sm:$0xf] %vm2772_vm1, %v3622_v31  ;;  %v3623_v43 = vpack.c.bf16 %v2455_v8, %v2455_v8 }
 0x1ee   : > { %2773 = vst.msk [vmem:[%s5036_s24] sm:$0xf] %vm2772_vm1, %v3620_v47  ;;  %v3621_v25 = vpack.c.bf16 %v2453_v4, %v2453_v4  ;;  %v2044_v39 = vpop.f32.mrb[68].mxu0  ;;  %v3737_v36 = vpop.f32.mrb[100].mxu1 }
 0x1ef   : > { %2776 = vst.msk [vmem:[%s5036_s24 + $0xc] sm:$0xf] %vm2772_vm1, %v3623_v43  ;;  %v5050_v59 = vadd.f32 %v2044_v39, %v1756_v63  ;;  %v2222_v35 = vadd.f32 %v3833_v29, %v3737_v36  ;;  %v2046_v8 = vpop.f32.mrb[69].mxu0  ;;  %v2213_v51 = vpop.f32.mrb[101].mxu1  ;;  %v1764_v29 = vadd.f32 %v4917_v30, %v4851_v52  ;;  %v3837_v43 = vadd.f32 %v4917_v30, %v4892_v42 }
 0x1f0   : > { %2774 = vst.msk [vmem:[%s5036_s24 + $0x4] sm:$0xf] %vm2772_vm1, %v3621_v25  ;;  %v2214_v20 = vadd.f32 %v3831_v38, %v2213_v51  ;;  %v2047_v37 = vpop.f32.mrb[70].mxu0  ;;  %v3738_v55 = vpop.f32.mrb[102].mxu1  ;;  %v3835_v25 = vadd.f32 %v4917_v30, %v4881_v24  ;;  %v3838_v52 = vadd.f32 %v4917_v30, %v4896_v50  ;;  %v3836_v24 = vadd.f32 %v4917_v30, %v4887_v34 }
 0x1f1   : > { %v2458_v44 = vmax.f32 %v2222_v35, 0.0  ;;  %v5056_v21 = vadd.f32 %v2047_v37, %v1759_v6  ;;  %v2225_v14 = vadd.f32 %v3834_v15, %v3738_v55  ;;  %v2049_v28 = vpop.f32.mrb[71].mxu0  ;;  %v2216_v45 = vpop.f32.mrb[103].mxu1  ;;  %v1767_v15 = vadd.f32 %v4917_v30, %v4857_v60 }
 0x1f2   : > { %v2456_v12 = vmax.f32 %v2214_v20, 0.0  ;;  %v2217_v31 = vadd.f32 %v3832_v53, %v2216_v45 }
 0x1f3   : > { %v3626_v47 = vpack.c.bf16 %v2458_v44, %v2458_v44  ;;  %v2459_v4 = vmax.f32 %v2225_v14, 0.0 }
 0x1f4   : > { %v3624_v63 = vpack.c.bf16 %v2456_v12, %v2456_v12  ;;  %v2457_v61 = vmax.f32 %v2217_v31, 0.0 }
 0x1f5   : > { %2779 = vst.msk [vmem:[%s5036_s24 + $0x18] sm:$0xf] %vm2772_vm1, %v3626_v47  ;;  %v3627_v38 = vpack.c.bf16 %v2459_v4, %v2459_v4  ;;  %v1772_v4 = vadd.f32 %v4917_v30, %v4865_v5  ;;  %v3842_v5 = vadd.f32 %v4917_v30, %v4912_v18 }
 0x1f6   : > { %2777 = vst.msk [vmem:[%s5036_s24 + $0x10] sm:$0xf] %vm2772_vm1, %v3624_v63  ;;  %v3625_v39 = vpack.c.bf16 %v2457_v61, %v2457_v61  ;;  %v2052_v36 = vpop.f32.mrb[72].mxu0  ;;  %v3741_v6 = vpop.f32.mrb[104].mxu1  ;;  %v3841_v63 = vadd.f32 %v4917_v30, %v4908_v11 }
 0x1f7   : > { %2780 = vst.msk [vmem:[%s5036_s24 + $0x1c] sm:$0xf] %vm2772_vm1, %v3627_v38  ;;  %v5074_v42 = vadd.f32 %v2052_v36, %v1764_v29  ;;  %v2238_v35 = vadd.f32 %v3837_v43, %v3741_v6  ;;  %v2054_v8 = vpop.f32.mrb[73].mxu0  ;;  %v2229_v51 = vpop.f32.mrb[105].mxu1  ;;  %v3839_v29 = vadd.f32 %v4917_v30, %v4900_v58  ;;  %v3840_v58 = vadd.f32 %v4917_v30, %v4904_v3 }
 0x1f8   : > { %2778 = vst.msk [vmem:[%s5036_s24 + $0x14] sm:$0xf] %vm2772_vm1, %v3625_v39  ;;  %v2230_v53 = vadd.f32 %v3835_v25, %v2229_v51  ;;  %v2055_v20 = vpop.f32.mrb[74].mxu0  ;;  %v3742_v37 = vpop.f32.mrb[106].mxu1  ;;  %v1775_v39 = vadd.f32 %v4917_v30, %v4871_v13 }
 0x1f9   : > { %v2462_v60 = vmax.f32 %v2238_v35, 0.0  ;;  %v5080_v55 = vadd.f32 %v2055_v20, %v1767_v15  ;;  %v2241_v50 = vadd.f32 %v3838_v52, %v3742_v37  ;;  %v2057_v44 = vpop.f32.mrb[75].mxu0  ;;  %v2232_v14 = vpop.f32.mrb[107].mxu1 }
 0x1fa   : > { %v2460_v28 = vmax.f32 %v2230_v53, 0.0  ;;  %v2233_v45 = vadd.f32 %v3836_v24, %v2232_v14  ;;  %v1780_v14 = vadd.f32 %v4917_v30, %v4879_v22 }
 0x1fb   : > { %v3630_v12 = vpack.c.bf16 %v2462_v60, %v2462_v60  ;;  %v2463_v31 = vmax.f32 %v2241_v50, 0.0 }
 0x1fc   : > { %v3628_v47 = vpack.c.bf16 %v2460_v28, %v2460_v28  ;;  %v2461_v34 = vmax.f32 %v2233_v45, 0.0 }
 0x1fd   : > { %2783 = vst.msk [vmem:[%s5036_s24 + $0x28] sm:$0xf] %vm2772_vm1, %v3630_v12  ;;  %v3631_v61 = vpack.c.bf16 %v2463_v31, %v2463_v31 }
 0x1fe   : > { %2781 = vst.msk [vmem:[%s5036_s24 + $0x20] sm:$0xf] %vm2772_vm1, %v3628_v47  ;;  %v3629_v43 = vpack.c.bf16 %v2461_v34, %v2461_v34  ;;  %v2060_v38 = vpop.f32.mrb[76].mxu0  ;;  %v3745_v25 = vpop.f32.mrb[108].mxu1  ;;  %v1783_v47 = vadd.f32 %v4917_v30, %v4885_v33 }
 0x1ff   : > { %2784 = vst.msk [vmem:[%s5036_s24 + $0x2c] sm:$0xf] %vm2772_vm1, %v3631_v61  ;;  %v5098_v11 = vadd.f32 %v2060_v38, %v1772_v4  ;;  %v2254_v36 = vadd.f32 %v3841_v63, %v3745_v25  ;;  %v2062_v6 = vpop.f32.mrb[77].mxu0  ;;  %v2245_v15 = vpop.f32.mrb[109].mxu1 }
 0x200   : > { %2782 = vst.msk [vmem:[%s5036_s24 + $0x24] sm:$0xf] %vm2772_vm1, %v3629_v43  ;;  %v2246_v52 = vadd.f32 %v3839_v29, %v2245_v15  ;;  %v2063_v35 = vpop.f32.mrb[78].mxu0  ;;  %v3746_v13 = vpop.f32.mrb[110].mxu1 }
 0x201   : > { %v2466_v8 = vmax.f32 %v2254_v36, 0.0  ;;  %v5104_v51 = vadd.f32 %v2063_v35, %v1775_v39  ;;  %v2257_v18 = vadd.f32 %v3842_v5, %v3746_v13  ;;  %v2065_v24 = vpop.f32.mrb[79].mxu0  ;;  %v2248_v53 = vpop.f32.mrb[111].mxu1 }
 0x202   : > { %v2464_v20 = vmax.f32 %v2246_v52, 0.0  ;;  %v2249_v37 = vadd.f32 %v3840_v58, %v2248_v53 }
 0x203   : > { %v3634_v60 = vpack.c.bf16 %v2466_v8, %v2466_v8  ;;  %v2467_v50 = vmax.f32 %v2257_v18, 0.0  ;;  %v1791_v18 = vadd.f32 %v4917_v30, %v4894_v49 }
 0x204   : > { %v3632_v3 = vpack.c.bf16 %v2464_v20, %v2464_v20  ;;  %v2465_v44 = vmax.f32 %v2249_v37, 0.0 }
 0x205   : > { %2787 = vst.msk [vmem:[%s5036_s24 + $0x38] sm:$0xf] %vm2772_vm1, %v3634_v60  ;;  %v3635_v28 = vpack.c.bf16 %v2467_v50, %v2467_v50 }
 0x206   : > { %2785 = vst.msk [vmem:[%s5036_s24 + $0x30] sm:$0xf] %vm2772_vm1, %v3632_v3  ;;  %v3633_v45 = vpack.c.bf16 %v2465_v44, %v2465_v44  ;;  %v2068_v12 = vpop.f32.mrb[80].mxu0  ;;  %v3749_v31 = vpop.f32.mrb[112].mxu1 }
 0x207   : > { %2788 = vst.msk [vmem:[%s5036_s24 + $0x3c] sm:$0xf] %vm2772_vm1, %v3635_v28  ;;  %v5116_v34 = vadd.f32 %v2068_v12, %v1780_v14  ;;  %v2270_v4 = vadd.f32 %v3749_v31, %v4937_v26  ;;  %v2070_v63 = vpop.f32.mrb[81].mxu0  ;;  %v2261_v61 = vpop.f32.mrb[113].mxu1 }
 0x208   : > { %2786 = vst.msk [vmem:[%s5036_s24 + $0x34] sm:$0xf] %vm2772_vm1, %v3633_v45  ;;  %v2262_v22 = vadd.f32 %v2261_v61, %v4925_v48  ;;  %v2071_v29 = vpop.f32.mrb[82].mxu0  ;;  %v3750_v43 = vpop.f32.mrb[114].mxu1  ;;  %v1788_v48 = vadd.f32 %v4917_v30, %v4890_v41 }
 0x209   : > { %v2470_v38 = vmax.f32 %v2270_v4, 0.0  ;;  %v5122_v25 = vadd.f32 %v2071_v29, %v1783_v47  ;;  %v2273_v33 = vadd.f32 %v3750_v43, %v4941_v46  ;;  %v2073_v39 = vpop.f32.mrb[83].mxu0  ;;  %v2264_v5 = vpop.f32.mrb[115].mxu1 }
 0x20a   : > { %v2468_v36 = vmax.f32 %v2262_v22, 0.0  ;;  %v2265_v26 = vadd.f32 %v2264_v5, %v4929_v7  ;;  %v1799_v22 = vadd.f32 %v4917_v30, %v4902_v2 }
 0x20b   : > { %v3638_v6 = vpack.c.bf16 %v2470_v38, %v2470_v38  ;;  %v2471_v15 = vmax.f32 %v2273_v33, 0.0 }
 0x20c   : > { %v3636_v58 = vpack.c.bf16 %v2468_v36, %v2468_v36  ;;  %v2469_v52 = vmax.f32 %v2265_v26, 0.0 }
 0x20d   : > { %2791 = vst.msk [vmem:[%s5036_s24 + $0x48] sm:$0xf] %vm2772_vm1, %v3638_v6  ;;  %v3639_v35 = vpack.c.bf16 %v2471_v15, %v2471_v15 }
 0x20e   : > { %2789 = vst.msk [vmem:[%s5036_s24 + $0x40] sm:$0xf] %vm2772_vm1, %v3636_v58  ;;  %v3637_v46 = vpack.c.bf16 %v2469_v52, %v2469_v52  ;;  %v2076_v13 = vpop.f32.mrb[84].mxu0  ;;  %v3753_v8 = vpop.f32.mrb[116].mxu1 }
 0x20f   : > { %2792 = vst.msk [vmem:[%s5036_s24 + $0x4c] sm:$0xf] %vm2772_vm1, %v3639_v35  ;;  %v5136_v7 = vadd.f32 %v2076_v13, %v1788_v48  ;;  %v2286_v24 = vadd.f32 %v3753_v8, %v4961_v16  ;;  %v2078_v53 = vpop.f32.mrb[85].mxu0  ;;  %v2277_v20 = vpop.f32.mrb[117].mxu1 }
 0x210   : > { %2790 = vst.msk [vmem:[%s5036_s24 + $0x44] sm:$0xf] %vm2772_vm1, %v3637_v46  ;;  %v2278_v41 = vadd.f32 %v2277_v20, %v4949_v19  ;;  %v2079_v37 = vpop.f32.mrb[86].mxu0  ;;  %v3754_v60 = vpop.f32.mrb[118].mxu1  ;;  %v1796_v19 = vadd.f32 %v4917_v30, %v4898_v57 }
 0x211   : > { %v2474_v50 = vmax.f32 %v2286_v24, 0.0  ;;  %v5142_v3 = vadd.f32 %v2079_v37, %v1791_v18  ;;  %v2289_v49 = vadd.f32 %v3754_v60, %v4965_v54  ;;  %v2081_v44 = vpop.f32.mrb[87].mxu0  ;;  %v2280_v14 = vpop.f32.mrb[119].mxu1  ;;  %v1807_v18 = vadd.f32 %v4917_v30, %v4910_v17 }
 0x212   : > { %v2472_v28 = vmax.f32 %v2278_v41, 0.0  ;;  %v2281_v16 = vadd.f32 %v2280_v14, %v4953_v23 }
 0x213   : > { %v3642_v45 = vpack.c.bf16 %v2474_v50, %v2474_v50  ;;  %v2475_v12 = vmax.f32 %v2289_v49, 0.0 }
 0x214   : > { %v3640_v31 = vpack.c.bf16 %v2472_v28, %v2472_v28  ;;  %v2473_v47 = vmax.f32 %v2281_v16, 0.0 }
 0x215   : > { %2795 = vst.msk [vmem:[%s5036_s24 + $0x58] sm:$0xf] %vm2772_vm1, %v3642_v45  ;;  %v3643_v4 = vpack.c.bf16 %v2475_v12, %v2475_v12 }
 0x216   : > { %2793 = vst.msk [vmem:[%s5036_s24 + $0x50] sm:$0xf] %vm2772_vm1, %v3640_v31  ;;  %v3641_v54 = vpack.c.bf16 %v2473_v47, %v2473_v47  ;;  %v2084_v63 = vpop.f32.mrb[88].mxu0  ;;  %v3757_v61 = vpop.f32.mrb[120].mxu1 }
 0x217   : > { %2796 = vst.msk [vmem:[%s5036_s24 + $0x5c] sm:$0xf] %vm2772_vm1, %v3643_v4  ;;  %v5156_v23 = vadd.f32 %v2084_v63, %v1796_v19  ;;  %v2302_v29 = vadd.f32 %v3757_v61, %v4985_v9  ;;  %v2086_v43 = vpop.f32.mrb[89].mxu0  ;;  %v2293_v38 = vpop.f32.mrb[121].mxu1  ;;  %v5549_v63 = vld [vmem:[#allocation4_spill] sm:$0xff] }
 0x218   : > { %2794 = vst.msk [vmem:[%s5036_s24 + $0x54] sm:$0xf] %vm2772_vm1, %v3641_v54  ;;  %v2294_v57 = vadd.f32 %v2293_v38, %v4973_v1  ;;  %v2087_v33 = vpop.f32.mrb[90].mxu0  ;;  %v3758_v39 = vpop.f32.mrb[122].mxu1  ;;  %v1804_v1 = vadd.f32 %v4917_v30, %v4906_v10  ;;  %v1815_v61 = vadd.f32 %v4917_v30, %v5549_v63 }
 0x219   : > { %v2478_v5 = vmax.f32 %v2302_v29, 0.0  ;;  %v5162_v36 = vadd.f32 %v2087_v33, %v1799_v22  ;;  %v2305_v2 = vadd.f32 %v3758_v39, %v4989_v32  ;;  %v2089_v26 = vpop.f32.mrb[91].mxu0  ;;  %v2296_v6 = vpop.f32.mrb[123].mxu1 }
 0x21a   : > { %v2476_v15 = vmax.f32 %v2294_v57, 0.0  ;;  %v2297_v9 = vadd.f32 %v2296_v6, %v4977_v40  ;;  %v5550_v57 = vld [vmem:[#allocation20_spill] sm:$0xff] }
 0x21b   : > { %v3646_v58 = vpack.c.bf16 %v2478_v5, %v2478_v5  ;;  %v2479_v52 = vmax.f32 %v2305_v2, 0.0 }
 0x21c   : > { %v3644_v48 = vpack.c.bf16 %v2476_v15, %v2476_v15  ;;  %v2477_v35 = vmax.f32 %v2297_v9, 0.0 }
 0x21d   : > { %2799 = vst.msk [vmem:[%s5036_s24 + $0x68] sm:$0xf] %vm2772_vm1, %v3646_v58  ;;  %v3647_v46 = vpack.c.bf16 %v2479_v52, %v2479_v52 }
 0x21e   : > { %2797 = vst.msk [vmem:[%s5036_s24 + $0x60] sm:$0xf] %vm2772_vm1, %v3644_v48  ;;  %v3645_v32 = vpack.c.bf16 %v2477_v35, %v2477_v35  ;;  %v2092_v13 = vpop.f32.mrb[92].mxu0  ;;  %v3761_v8 = vpop.f32.mrb[124].mxu1 }
 0x21f   : > { %2800 = vst.msk [vmem:[%s5036_s24 + $0x6c] sm:$0xf] %vm2772_vm1, %v3647_v46  ;;  %v5176_v40 = vadd.f32 %v2092_v13, %v1804_v1  ;;  %v2318_v24 = vadd.f32 %v3761_v8, %v5009_v56  ;;  %v2094_v53 = vpop.f32.mrb[93].mxu0  ;;  %v2309_v20 = vpop.f32.mrb[125].mxu1  ;;  %v5547_v56 = vld [vmem:[#allocation17_spill] sm:$0xff] }
 0x220   : > { %2798 = vst.msk [vmem:[%s5036_s24 + $0x64] sm:$0xf] %vm2772_vm1, %v3645_v32  ;;  %v2310_v10 = vadd.f32 %v2309_v20, %v4997_v0  ;;  %v2095_v41 = vpop.f32.mrb[94].mxu0  ;;  %v3762_v37 = vpop.f32.mrb[126].mxu1  ;;  %v5548_v0 = vld [vmem:[#allocation3_spill] sm:$0xff]  ;;  %v5551_v46 = vld [vmem:[#allocation5_spill] sm:$0xff] }
 0x221   : > { %v2482_v60 = vmax.f32 %v2318_v24, 0.0  ;;  %v5182_v50 = vadd.f32 %v2095_v41, %v1807_v18  ;;  %v2321_v17 = vadd.f32 %v3762_v37, %v5013_v27  ;;  %v2097_v49 = vpop.f32.mrb[95].mxu0  ;;  %v2312_v44 = vpop.f32.mrb[127].mxu1  ;;  %v1812_v47 = vadd.f32 %v4917_v30, %v5548_v0  ;;  %v5552_v24 = vld [vmem:[#allocation6_spill] sm:$0xff] }
 0x222   : > { %v2480_v14 = vmax.f32 %v2310_v10, 0.0  ;;  %v2313_v28 = vadd.f32 %v2312_v44, %v5547_v56  ;;  %v1820_v32 = vadd.f32 %v4917_v30, %v5551_v46  ;;  %v1823_v53 = vadd.f32 %v4917_v30, %v5552_v24 }
 0x223   : > { %v3650_v16 = vpack.c.bf16 %v2482_v60, %v2482_v60  ;;  %v2483_v45 = vmax.f32 %v2321_v17, 0.0 }
 0x224   : > { %v3648_v12 = vpack.c.bf16 %v2480_v14, %v2480_v14  ;;  %v2481_v31 = vmax.f32 %v2313_v28, 0.0 }
 0x225   : > { %2803 = vst.msk [vmem:[%s5036_s24 + $0x78] sm:$0xf] %vm2772_vm1, %v3650_v16  ;;  %v3651_v19 = vpack.c.bf16 %v2483_v45, %v2483_v45 }
 0x226   : > { %2801 = vst.msk [vmem:[%s5036_s24 + $0x70] sm:$0xf] %vm2772_vm1, %v3648_v12  ;;  %v3649_v27 = vpack.c.bf16 %v2481_v31, %v2481_v31  ;;  %v2100_v4 = vpop.f32.mrb[96].mxu0  ;;  %v3765_v54 = vpop.f32.mrb[128].mxu1 }
 0x227   : > { %2804 = vst.msk [vmem:[%s5036_s24 + $0x7c] sm:$0xf] %vm2772_vm1, %v3651_v19  ;;  %v5196_v22 = vadd.f32 %v2100_v4, %v1812_v47  ;;  %v2334_v29 = vadd.f32 %v3765_v54, %v5050_v59  ;;  %v2102_v43 = vpop.f32.mrb[97].mxu0  ;;  %v2325_v38 = vpop.f32.mrb[129].mxu1  ;;  %v5554_v54 = vld [vmem:[#allocation8_spill] sm:$0xff] }
 0x228   : > { %2802 = vst.msk [vmem:[%s5036_s24 + $0x74] sm:$0xf] %vm2772_vm1, %v3649_v27  ;;  %v2326_v33 = vadd.f32 %v2325_v38, %v5550_v57  ;;  %v2103_v39 = vpop.f32.mrb[98].mxu0  ;;  %v3766_v5 = vpop.f32.mrb[130].mxu1  ;;  %v1831_v63 = vadd.f32 %v4917_v30, %v5554_v54 }
 0x229   : > { %v2486_v2 = vmax.f32 %v2334_v29, 0.0  ;;  %v5202_v26 = vadd.f32 %v2103_v39, %v1815_v61  ;;  %v2337_v6 = vadd.f32 %v3766_v5, %v5056_v21  ;;  %v2105_v15 = vpop.f32.mrb[99].mxu0  ;;  %v2328_v9 = vpop.f32.mrb[131].mxu1 }
 0x22a   : > { %v2484_v58 = vmax.f32 %v2326_v33, 0.0  ;;  %v2329_v59 = vadd.f32 %v2328_v9, %v5030_v62 }
 0x22b   : > { %v3654_v52 = vpack.c.bf16 %v2486_v2, %v2486_v2  ;;  %v2487_v48 = vmax.f32 %v2337_v6, 0.0 }
 0x22c   : > { %v3652_v35 = vpack.c.bf16 %v2484_v58, %v2484_v58  ;;  %v2485_v1 = vmax.f32 %v2329_v59, 0.0 }
 0x22d   : > { %2807 = vst.msk [vmem:[%s5036_s24 + $0x88] sm:$0xf] %vm2772_vm1, %v3654_v52  ;;  %v3655_v13 = vpack.c.bf16 %v2487_v48, %v2487_v48 }
 0x22e   : > { %2805 = vst.msk [vmem:[%s5036_s24 + $0x80] sm:$0xf] %vm2772_vm1, %v3652_v35  ;;  %v3653_v21 = vpack.c.bf16 %v2485_v1, %v2485_v1  ;;  %v2108_v8 = vpop.f32.mrb[100].mxu0  ;;  %v3769_v18 = vpop.f32.mrb[132].mxu1 }
 0x22f   : > { %2808 = vst.msk [vmem:[%s5036_s24 + $0x8c] sm:$0xf] %vm2772_vm1, %v3655_v13  ;;  %v5216_v62 = vadd.f32 %v2108_v8, %v1820_v32  ;;  %v2350_v20 = vadd.f32 %v3769_v18, %v5098_v11  ;;  %v2110_v10 = vpop.f32.mrb[101].mxu0  ;;  %v2341_v41 = vpop.f32.mrb[133].mxu1  ;;  %v5556_v13 = vld [vmem:[#allocation10_spill] sm:$0xff] }
 0x230   : > { %2806 = vst.msk [vmem:[%s5036_s24 + $0x84] sm:$0xf] %vm2772_vm1, %v3653_v21  ;;  %v2342_v37 = vadd.f32 %v2341_v41, %v5074_v42  ;;  %v2111_v60 = vpop.f32.mrb[102].mxu0  ;;  %v3770_v17 = vpop.f32.mrb[134].mxu1  ;;  %v5553_v42 = vld [vmem:[#allocation7_spill] sm:$0xff]  ;;  %v1839_v21 = vadd.f32 %v4917_v30, %v5556_v13 }
 0x231   : > { %v2490_v49 = vmax.f32 %v2350_v20, 0.0  ;;  %v5222_v44 = vadd.f32 %v2111_v60, %v1823_v53  ;;  %v2353_v14 = vadd.f32 %v3770_v17, %v5104_v51  ;;  %v2113_v56 = vpop.f32.mrb[103].mxu0  ;;  %v2344_v28 = vpop.f32.mrb[135].mxu1  ;;  %v1828_v47 = vadd.f32 %v4917_v30, %v5553_v42  ;;  %v5558_v42 = vld [vmem:[#allocation12_spill] sm:$0xff] }
 0x232   : > { %v2488_v16 = vmax.f32 %v2342_v37, 0.0  ;;  %v2345_v11 = vadd.f32 %v2344_v28, %v5080_v55 }
 0x233   : > { %v3658_v45 = vpack.c.bf16 %v2490_v49, %v2490_v49  ;;  %v2491_v12 = vmax.f32 %v2353_v14, 0.0 }
 0x234   : > { %v3656_v31 = vpack.c.bf16 %v2488_v16, %v2488_v16  ;;  %v2489_v0 = vmax.f32 %v2345_v11, 0.0 }
 0x235   : > { %2811 = vst.msk [vmem:[%s5036_s24 + $0x98] sm:$0xf] %vm2772_vm1, %v3658_v45  ;;  %v3659_v19 = vpack.c.bf16 %v2491_v12, %v2491_v12  ;;  %v5557_v45 = vld [vmem:[#allocation11_spill] sm:$0xff] }
 0x236   : > { %2809 = vst.msk [vmem:[%s5036_s24 + $0x90] sm:$0xf] %vm2772_vm1, %v3656_v31  ;;  %v3657_v51 = vpack.c.bf16 %v2489_v0, %v2489_v0  ;;  %v2116_v27 = vpop.f32.mrb[104].mxu0  ;;  %v3773_v4 = vpop.f32.mrb[136].mxu1 }
 0x237   : > { %2812 = vst.msk [vmem:[%s5036_s24 + $0x9c] sm:$0xf] %vm2772_vm1, %v3659_v19  ;;  %v5236_v55 = vadd.f32 %v2116_v27, %v1828_v47  ;;  %v2366_v61 = vadd.f32 %v3773_v4, %v5136_v7  ;;  %v2118_v29 = vpop.f32.mrb[105].mxu0  ;;  %v2357_v43 = vpop.f32.mrb[137].mxu1  ;;  %v1847_v47 = vadd.f32 %v4917_v30, %v5558_v42 }
 0x238   : > { %2810 = vst.msk [vmem:[%s5036_s24 + $0x94] sm:$0xf] %vm2772_vm1, %v3657_v51  ;;  %v2358_v38 = vadd.f32 %v2357_v43, %v5116_v34  ;;  %v2119_v57 = vpop.f32.mrb[106].mxu0  ;;  %v3774_v33 = vpop.f32.mrb[138].mxu1  ;;  %v5555_v34 = vld [vmem:[#allocation9_spill] sm:$0xff] }
 0x239   : > { %v2494_v39 = vmax.f32 %v2366_v61, 0.0  ;;  %v5242_v5 = vadd.f32 %v2119_v57, %v1831_v63  ;;  %v2369_v2 = vadd.f32 %v3774_v33, %v5142_v3  ;;  %v2121_v6 = vpop.f32.mrb[107].mxu0  ;;  %v2360_v15 = vpop.f32.mrb[139].mxu1  ;;  %v1836_v35 = vadd.f32 %v4917_v30, %v5555_v34 }
 0x23a   : > { %v2492_v9 = vmax.f32 %v2358_v38, 0.0  ;;  %v2361_v7 = vadd.f32 %v2360_v15, %v5122_v25 }
 0x23b   : > { %v3662_v58 = vpack.c.bf16 %v2494_v39, %v2494_v39  ;;  %v2495_v59 = vmax.f32 %v2369_v2, 0.0 }
 0x23c   : > { %v3660_v52 = vpack.c.bf16 %v2492_v9, %v2492_v9  ;;  %v2493_v48 = vmax.f32 %v2361_v7, 0.0  ;;  %v5559_v9 = vld [vmem:[#allocation13_spill] sm:$0xff] }
 0x23d   : > { %2815 = vst.msk [vmem:[%s5036_s24 + $0xa8] sm:$0xf] %vm2772_vm1, %v3662_v58  ;;  %v3663_v1 = vpack.c.bf16 %v2495_v59, %v2495_v59 }
 0x23e   : > { %2813 = vst.msk [vmem:[%s5036_s24 + $0xa0] sm:$0xf] %vm2772_vm1, %v3660_v52  ;;  %v3661_v3 = vpack.c.bf16 %v2493_v48, %v2493_v48  ;;  %v2124_v46 = vpop.f32.mrb[108].mxu0  ;;  %v3777_v32 = vpop.f32.mrb[140].mxu1  ;;  %v5560_v52 = vld [vmem:[#allocation14_spill] sm:$0xff] }
 0x23f   : > { %2816 = vst.msk [vmem:[%s5036_s24 + $0xac] sm:$0xf] %vm2772_vm1, %v3663_v1  ;;  %v2125_v25 = vadd.f32 %v2124_v46, %v1836_v35  ;;  %v2382_v8 = vadd.f32 %v3777_v32, %v5176_v40  ;;  %v2126_v18 = vpop.f32.mrb[109].mxu0  ;;  %v2373_v24 = vpop.f32.mrb[141].mxu1  ;;  %v1855_v48 = vadd.f32 %v4917_v30, %v5560_v52 }
 0x240   : > { %2814 = vst.msk [vmem:[%s5036_s24 + $0xa4] sm:$0xf] %vm2772_vm1, %v3661_v3  ;;  %v2374_v53 = vadd.f32 %v2373_v24, %v5156_v23  ;;  %v2127_v20 = vpop.f32.mrb[110].mxu0  ;;  %v3778_v10 = vpop.f32.mrb[142].mxu1  ;;  %v1844_v23 = vadd.f32 %v4917_v30, %v5557_v45 }
 0x241   : > { %v2498_v41 = vmax.f32 %v2382_v8, 0.0  ;;  %v2128_v37 = vadd.f32 %v2127_v20, %v1839_v21  ;;  %v2385_v60 = vadd.f32 %v3778_v10, %v5182_v50  ;;  %v2129_v17 = vpop.f32.mrb[111].mxu0  ;;  %v2376_v49 = vpop.f32.mrb[143].mxu1 }
 0x242   : > { %v2496_v14 = vmax.f32 %v2374_v53, 0.0  ;;  %v2377_v40 = vadd.f32 %v2376_v49, %v5162_v36  ;;  %v5561_v17 = vld [vmem:[#allocation15_spill] sm:$0xff] }
 0x243   : > { %v3666_v56 = vpack.c.bf16 %v2498_v41, %v2498_v41  ;;  %v2499_v28 = vmax.f32 %v2385_v60, 0.0 }
 0x244   : > { %v3664_v16 = vpack.c.bf16 %v2496_v14, %v2496_v14  ;;  %v2497_v11 = vmax.f32 %v2377_v40, 0.0 }
 0x245   : > { %2819 = vst.msk [vmem:[%s5036_s24 + $0xb8] sm:$0xf] %vm2772_vm1, %v3666_v56  ;;  %v3667_v12 = vpack.c.bf16 %v2499_v28, %v2499_v28  ;;  %v5562_v56 = vld [vmem:[#allocation16_spill] sm:$0xff] }
 0x246   : > { %2817 = vst.msk [vmem:[%s5036_s24 + $0xb0] sm:$0xf] %vm2772_vm1, %v3664_v16  ;;  %v3665_v50 = vpack.c.bf16 %v2497_v11, %v2497_v11  ;;  %v2132_v31 = vpop.f32.mrb[112].mxu0  ;;  %v3781_v0 = vpop.f32.mrb[144].mxu1  ;;  %v1863_v28 = vadd.f32 %v4917_v30, %v5562_v56 }
 0x247   : > { %2820 = vst.msk [vmem:[%s5036_s24 + $0xbc] sm:$0xf] %vm2772_vm1, %v3667_v12  ;;  %v2133_v36 = vadd.f32 %v2132_v31, %v1844_v23  ;;  %v2398_v19 = vadd.f32 %v3781_v0, %v5216_v62  ;;  %v2134_v51 = vpop.f32.mrb[113].mxu0  ;;  %v2389_v27 = vpop.f32.mrb[145].mxu1 }
 0x248   : > { %2818 = vst.msk [vmem:[%s5036_s24 + $0xb4] sm:$0xf] %vm2772_vm1, %v3665_v50  ;;  %v2390_v4 = vadd.f32 %v2389_v27, %v5196_v22  ;;  %v2135_v54 = vpop.f32.mrb[114].mxu0  ;;  %v3782_v63 = vpop.f32.mrb[146].mxu1  ;;  %v1852_v22 = vadd.f32 %v4917_v30, %v5559_v9 }
 0x249   : > { %v2502_v61 = vmax.f32 %v2398_v19, 0.0  ;;  %v2136_v29 = vadd.f32 %v2135_v54, %v1847_v47  ;;  %v2401_v43 = vadd.f32 %v3782_v63, %v5222_v44  ;;  %v2137_v38 = vpop.f32.mrb[115].mxu0  ;;  %v2392_v57 = vpop.f32.mrb[147].mxu1 }
 0x24a   : > { %v2500_v33 = vmax.f32 %v2390_v4, 0.0  ;;  %v2393_v62 = vadd.f32 %v2392_v57, %v5202_v26 }
 0x24b   : > { %v3670_v39 = vpack.c.bf16 %v2502_v61, %v2502_v61  ;;  %v2503_v2 = vmax.f32 %v2401_v43, 0.0  ;;  %v5563_v61 = vld [vmem:[#allocation18_spill] sm:$0xff] }
 0x24c   : > { %v3668_v6 = vpack.c.bf16 %v2500_v33, %v2500_v33  ;;  %v2501_v15 = vmax.f32 %v2393_v62, 0.0 }
 0x24d   : > { %2823 = vst.msk [vmem:[%s5036_s24 + $0xc8] sm:$0xf] %vm2772_vm1, %v3670_v39  ;;  %v3671_v7 = vpack.c.bf16 %v2503_v2, %v2503_v2 }
 0x24e   : > { %2821 = vst.msk [vmem:[%s5036_s24 + $0xc0] sm:$0xf] %vm2772_vm1, %v3668_v6  ;;  %v3669_v44 = vpack.c.bf16 %v2501_v15, %v2501_v15  ;;  %v2140_v58 = vpop.f32.mrb[116].mxu0  ;;  %v3785_v59 = vpop.f32.mrb[148].mxu1 }
 0x24f   : > { %2824 = vst.msk [vmem:[%s5036_s24 + $0xcc] sm:$0xf] %vm2772_vm1, %v3671_v7  ;;  %v2141_v26 = vadd.f32 %v2140_v58, %v1852_v22  ;;  %v2414_v34 = vadd.f32 %v3785_v59, %v2125_v25  ;;  %v2142_v35 = vpop.f32.mrb[117].mxu0  ;;  %v2405_v1 = vpop.f32.mrb[149].mxu1 }
 0x250   : > { %2822 = vst.msk [vmem:[%s5036_s24 + $0xc4] sm:$0xf] %vm2772_vm1, %v3669_v44  ;;  %v2406_v3 = vadd.f32 %v2405_v1, %v5236_v55  ;;  %v2143_v46 = vpop.f32.mrb[118].mxu0  ;;  %v3786_v32 = vpop.f32.mrb[150].mxu1  ;;  %v1860_v55 = vadd.f32 %v4917_v30, %v5561_v17 }
 0x251   : > { %v2506_v13 = vmax.f32 %v2414_v34, 0.0  ;;  %v2144_v21 = vadd.f32 %v2143_v46, %v1855_v48  ;;  %v2417_v8 = vadd.f32 %v3786_v32, %v2128_v37  ;;  %v2145_v18 = vpop.f32.mrb[119].mxu0  ;;  %v2408_v24 = vpop.f32.mrb[151].mxu1 }
 0x252   : > { %v2504_v53 = vmax.f32 %v2406_v3, 0.0  ;;  %v2409_v20 = vadd.f32 %v2408_v24, %v5242_v5 }
 0x253   : > { %v3674_v25 = vpack.c.bf16 %v2506_v13, %v2506_v13  ;;  %v2507_v10 = vmax.f32 %v2417_v8, 0.0 }
 0x254   : > { %v3672_v41 = vpack.c.bf16 %v2504_v53, %v2504_v53  ;;  %v2505_v60 = vmax.f32 %v2409_v20, 0.0 }
 0x255   : > { %2827 = vst.msk [vmem:[%s5036_s24 + $0xd8] sm:$0xf] %vm2772_vm1, %v3674_v25  ;;  %v3675_v49 = vpack.c.bf16 %v2507_v10, %v2507_v10 }
 0x256   : > { %2825 = vst.msk [vmem:[%s5036_s24 + $0xd0] sm:$0xf] %vm2772_vm1, %v3672_v41  ;;  %v3673_v37 = vpack.c.bf16 %v2505_v60, %v2505_v60  ;;  %v2148_v14 = vpop.f32.mrb[120].mxu0  ;;  %v3789_v40 = vpop.f32.mrb[152].mxu1 }
 0x257   : > { %2828 = vst.msk [vmem:[%s5036_s24 + $0xdc] sm:$0xf] %vm2772_vm1, %v3675_v49  ;;  %v2149_v5 = vadd.f32 %v2148_v14, %v1860_v55  ;;  %v2430_v16 = vadd.f32 %v3789_v40, %v2141_v26  ;;  %v2150_v11 = vpop.f32.mrb[121].mxu0  ;;  %v2421_v45 = vpop.f32.mrb[153].mxu1 }
 0x258   : > { %2826 = vst.msk [vmem:[%s5036_s24 + $0xd4] sm:$0xf] %vm2772_vm1, %v3673_v37  ;;  %v2422_v23 = vadd.f32 %v2421_v45, %v2133_v36  ;;  %v2151_v12 = vpop.f32.mrb[122].mxu0  ;;  %v3790_v50 = vpop.f32.mrb[154].mxu1  ;;  %v4321_v36 = vld [vmem:[%s5526_s2] ss:$0 sm:$0xff] }
 0x259   : > { %v2510_v31 = vmax.f32 %v2430_v16, 0.0  ;;  %v2152_v0 = vadd.f32 %v2151_v12, %v1863_v28  ;;  %v2433_v42 = vadd.f32 %v3790_v50, %v2144_v21  ;;  %v2153_v47 = vpop.f32.mrb[123].mxu0  ;;  %v2424_v19 = vpop.f32.mrb[155].mxu1  ;;  %v1868_v43 = vadd.f32 %v4321_v36, %v5563_v61 }
 0x25a   : > { %v2508_v30 = vmax.f32 %v2422_v23, 0.0  ;;  %v2425_v51 = vadd.f32 %v2424_v19, %v2136_v29  ;;  %v5564_v29 = vld [vmem:[#allocation19_spill] sm:$0xff] }
 0x25b   : > { %v3678_v27 = vpack.c.bf16 %v2510_v31, %v2510_v31  ;;  %v2511_v4 = vmax.f32 %v2433_v42, 0.0  ;;  %v1871_v39 = vadd.f32 %v4321_v36, %v5564_v29 }
 0x25c   : > { %v3676_v54 = vpack.c.bf16 %v2508_v30, %v2508_v30  ;;  %v2509_v63 = vmax.f32 %v2425_v51, 0.0 }
 0x25d   : > { %2831 = vst.msk [vmem:[%s5036_s24 + $0xe8] sm:$0xf] %vm2772_vm1, %v3678_v27  ;;  %v3679_v38 = vpack.c.bf16 %v2511_v4, %v2511_v4 }
 0x25e   : > { %2829 = vst.msk [vmem:[%s5036_s24 + $0xe0] sm:$0xf] %vm2772_vm1, %v3676_v54  ;;  %v3677_v57 = vpack.c.bf16 %v2509_v63, %v2509_v63  ;;  %v2156_v33 = vpop.f32.mrb[124].mxu0  ;;  %v3793_v62 = vpop.f32.mrb[156].mxu1 }
 0x25f   : > { %2832 = vst.msk [vmem:[%s5036_s24 + $0xec] sm:$0xf] %vm2772_vm1, %v3679_v38  ;;  %v2157_v2 = vadd.f32 %v2156_v33, %v1868_v43  ;;  %v2158_v6 = vpop.f32.mrb[125].mxu0  ;;  %v2437_v15 = vpop.f32.mrb[157].mxu1 }
 0x260   : > { %2830 = vst.msk [vmem:[%s5036_s24 + $0xe4] sm:$0xf] %vm2772_vm1, %v3677_v57  ;;  %v2438_v9 = vadd.f32 %v2437_v15, %v2149_v5  ;;  %v2159_v22 = vpop.f32.mrb[126].mxu0  ;;  %v3794_v7 = vpop.f32.mrb[158].mxu1 }
 0x261   : > { %v2446_v44 = vadd.f32 %v3793_v62, %v2157_v2  ;;  %v2160_v58 = vadd.f32 %v2159_v22, %v1871_v39  ;;  %v2161_v59 = vpop.f32.mrb[127].mxu0  ;;  %v2440_v52 = vpop.f32.mrb[159].mxu1 }
 0x262   : > { %v2512_v48 = vmax.f32 %v2438_v9, 0.0  ;;  %v2441_v26 = vadd.f32 %v2440_v52, %v2152_v0 }
 0x263   : > { %v2514_v34 = vmax.f32 %v2446_v44, 0.0  ;;  %v2449_v35 = vadd.f32 %v3794_v7, %v2160_v58  ;;  %2843 = sbr.rel (!%p4456_p4) target bundleno = 709 (0x2c5), region = 36 }
 0x264   : > { %v3680_v1 = vpack.c.bf16 %v2512_v48, %v2512_v48  ;;  %v2513_v3 = vmax.f32 %v2441_v26, 0.0 }
 0x265   : > { %v3682_v46 = vpack.c.bf16 %v2514_v34, %v2514_v34  ;;  %v2515_v32 = vmax.f32 %v2449_v35, 0.0 }
 0x266   : > { %2833 = vst.msk [vmem:[%s5036_s24 + $0xf0] sm:$0xf] %vm2772_vm1, %v3680_v1  ;;  %v3681_v13 = vpack.c.bf16 %v2513_v3, %v2513_v3 }
 0x267   : > { %2835 = vst.msk [vmem:[%s5036_s24 + $0xf8] sm:$0xf] %vm2772_vm1, %v3682_v46  ;;  %v3683_v21 = vpack.c.bf16 %v2515_v32, %v2515_v32 }
 0x268   : > { %2834 = vst.msk [vmem:[%s5036_s24 + $0xf4] sm:$0xf] %vm2772_vm1, %v3681_v13 }
 0x269   : > { %2836 = vst.msk [vmem:[%s5036_s24 + $0xfc] sm:$0xf] %vm2772_vm1, %v3683_v21 }
 0x26a   : > { %s5572_s27 = smov (!%p2846_p8, %s2845_s27), 64 }
 0x26b   : > { %s3605_s5 = sshll.u32 %s5572_s27, 6 }
 0x26c   : > { %p3608_p9 = scmp.eq.s32.totalorder %s3605_s5, 0 }
 0x26d   : > { %s5338_s6 = sshrl.u32 (!%p3608_p9), %s5572_s27, 6 }
 0x26e   : > { %2854 = sbr.rel (%p3608_p9) target bundleno = 709 (0x2c5), region = 40  ;;  %p3609_p10 = scmp.le.s32.totalorder (!%p3608_p9), %s5338_s6, 0 }
 0x275   : > { %3259 = sbr.rel (%p3609_p10) target bundleno = 688 (0x2b0), region = 112  ;;  %s5565_s15 = smov (!%p3609_p10), %s5332_s4 }
 0x276   : > { %s5566_s20 = smov (!%p3609_p10), %s5036_s24  ;;  %s5347_s23 = smov (!%p3609_p10), 0  }
 0x277   : > { %s5349_s7 = smov (!%p3609_p10), 0  }
 0x27c LB: >> { %v2870_v8 = vld [vmem:[%s4384_s20] sm:$0xf]  ;;  %v2872_v18 = vld [vmem:[%s4384_s20 + $0x4] sm:$0xf]  ;;  %v2874_v24 = vld [vmem:[%s4384_s20 + $0x8] sm:$0xf]  ;;  %s4392_s7 = sphi %s5349_s7, %s2864_s7   ;;  %s4388_s23 = sphi %s5347_s23, %s5567_s23   ;;  %s4384_s20 = sphi %s5566_s20, %s3003_s20   ;;  %s4380_s15 = sphi %s5565_s15, %s3004_s15  }
 0x27d   : >> { %2871 = vst [vmem:[%s4380_s15] sm:$0xf] %v2870_v8  ;;  %2873 = vst [vmem:[%s4380_s15 + $0x4] sm:$0xf] %v2872_v18  ;;  %v2876_v53 = vld [vmem:[%s4384_s20 + $0xc] sm:$0xf]  ;;  %s2998_s8 = sadd.s32 1, %s4388_s23 }
 0x27e   : >> { %2875 = vst [vmem:[%s4380_s15 + $0x8] sm:$0xf] %v2874_v24  ;;  %v2878_v20 = vld [vmem:[%s4384_s20 + $0x10] sm:$0xf]  ;;  %v2880_v25 = vld [vmem:[%s4384_s20 + $0x14] sm:$0xf]  ;;  %p2999_p11 = scmp.ge.s32.totalorder %s2998_s8, %s5338_s6 }
 0x27f   : >> { %2877 = vst [vmem:[%s4380_s15 + $0xc] sm:$0xf] %v2876_v53  ;;  %2879 = vst [vmem:[%s4380_s15 + $0x10] sm:$0xf] %v2878_v20  ;;  %v2882_v10 = vld [vmem:[%s4384_s20 + $0x18] sm:$0xf] }
 0x280   : >> { %2881 = vst [vmem:[%s4380_s15 + $0x14] sm:$0xf] %v2880_v25  ;;  %v2884_v41 = vld [vmem:[%s4384_s20 + $0x1c] sm:$0xf]  ;;  %v2886_v60 = vld [vmem:[%s4384_s20 + $0x20] sm:$0xf] }
 0x281   : >> { %2883 = vst [vmem:[%s4380_s15 + $0x18] sm:$0xf] %v2882_v10  ;;  %2885 = vst [vmem:[%s4380_s15 + $0x1c] sm:$0xf] %v2884_v41  ;;  %v2888_v17 = vld [vmem:[%s4384_s20 + $0x24] sm:$0xf] }
 0x282   : >> { %2887 = vst [vmem:[%s4380_s15 + $0x20] sm:$0xf] %v2886_v60  ;;  %v2890_v55 = vld [vmem:[%s4384_s20 + $0x28] sm:$0xf]  ;;  %v2892_v49 = vld [vmem:[%s4384_s20 + $0x2c] sm:$0xf] }
 0x283   : >> { %2889 = vst [vmem:[%s4380_s15 + $0x24] sm:$0xf] %v2888_v17  ;;  %2891 = vst [vmem:[%s4380_s15 + $0x28] sm:$0xf] %v2890_v55  ;;  %v2894_v37 = vld [vmem:[%s4384_s20 + $0x30] sm:$0xf] }
 0x284   : >> { %2893 = vst [vmem:[%s4380_s15 + $0x2c] sm:$0xf] %v2892_v49  ;;  %v2896_v14 = vld [vmem:[%s4384_s20 + $0x34] sm:$0xf]  ;;  %v2898_v40 = vld [vmem:[%s4384_s20 + $0x38] sm:$0xf] }
 0x285   : >> { %2895 = vst [vmem:[%s4380_s15 + $0x30] sm:$0xf] %v2894_v37  ;;  %2897 = vst [vmem:[%s4380_s15 + $0x34] sm:$0xf] %v2896_v14  ;;  %v2900_v56 = vld [vmem:[%s4384_s20 + $0x3c] sm:$0xf] }
 0x286   : >> { %2899 = vst [vmem:[%s4380_s15 + $0x38] sm:$0xf] %v2898_v40  ;;  %v2902_v28 = vld [vmem:[%s4384_s20 + $0x40] sm:$0xf]  ;;  %v2904_v5 = vld [vmem:[%s4384_s20 + $0x44] sm:$0xf] }
 0x287   : >> { %2901 = vst [vmem:[%s4380_s15 + $0x3c] sm:$0xf] %v2900_v56  ;;  %2903 = vst [vmem:[%s4380_s15 + $0x40] sm:$0xf] %v2902_v28  ;;  %v2906_v16 = vld [vmem:[%s4384_s20 + $0x48] sm:$0xf] }
 0x288   : >> { %2905 = vst [vmem:[%s4380_s15 + $0x44] sm:$0xf] %v2904_v5  ;;  %v2908_v11 = vld [vmem:[%s4384_s20 + $0x4c] sm:$0xf]  ;;  %v2910_v45 = vld [vmem:[%s4384_s20 + $0x50] sm:$0xf] }
 0x289   : >> { %2907 = vst [vmem:[%s4380_s15 + $0x48] sm:$0xf] %v2906_v16  ;;  %2909 = vst [vmem:[%s4380_s15 + $0x4c] sm:$0xf] %v2908_v11  ;;  %v2912_v23 = vld [vmem:[%s4384_s20 + $0x54] sm:$0xf] }
 0x28a   : >> { %2911 = vst [vmem:[%s4380_s15 + $0x50] sm:$0xf] %v2910_v45  ;;  %v2914_v12 = vld [vmem:[%s4384_s20 + $0x58] sm:$0xf]  ;;  %v2916_v50 = vld [vmem:[%s4384_s20 + $0x5c] sm:$0xf] }
 0x28b   : >> { %2913 = vst [vmem:[%s4380_s15 + $0x54] sm:$0xf] %v2912_v23  ;;  %2915 = vst [vmem:[%s4380_s15 + $0x58] sm:$0xf] %v2914_v12  ;;  %v2918_v31 = vld [vmem:[%s4384_s20 + $0x60] sm:$0xf] }
 0x28c   : >> { %2917 = vst [vmem:[%s4380_s15 + $0x5c] sm:$0xf] %v2916_v50  ;;  %v2920_v0 = vld [vmem:[%s4384_s20 + $0x64] sm:$0xf]  ;;  %v2922_v42 = vld [vmem:[%s4384_s20 + $0x68] sm:$0xf] }
 0x28d   : >> { %2919 = vst [vmem:[%s4380_s15 + $0x60] sm:$0xf] %v2918_v31  ;;  %2921 = vst [vmem:[%s4380_s15 + $0x64] sm:$0xf] %v2920_v0  ;;  %v2924_v47 = vld [vmem:[%s4384_s20 + $0x6c] sm:$0xf] }
 0x28e   : >> { %2923 = vst [vmem:[%s4380_s15 + $0x68] sm:$0xf] %v2922_v42  ;;  %v2926_v19 = vld [vmem:[%s4384_s20 + $0x70] sm:$0xf]  ;;  %v2928_v30 = vld [vmem:[%s4384_s20 + $0x74] sm:$0xf] }
 0x28f   : >> { %2925 = vst [vmem:[%s4380_s15 + $0x6c] sm:$0xf] %v2924_v47  ;;  %2927 = vst [vmem:[%s4380_s15 + $0x70] sm:$0xf] %v2926_v19  ;;  %v2930_v51 = vld [vmem:[%s4384_s20 + $0x78] sm:$0xf] }
 0x290   : >> { %2929 = vst [vmem:[%s4380_s15 + $0x74] sm:$0xf] %v2928_v30  ;;  %v2932_v27 = vld [vmem:[%s4384_s20 + $0x7c] sm:$0xf]  ;;  %v2934_v4 = vld [vmem:[%s4384_s20 + $0x80] sm:$0xf] }
 0x291   : >> { %2931 = vst [vmem:[%s4380_s15 + $0x78] sm:$0xf] %v2930_v51  ;;  %2933 = vst [vmem:[%s4380_s15 + $0x7c] sm:$0xf] %v2932_v27  ;;  %v2936_v54 = vld [vmem:[%s4384_s20 + $0x84] sm:$0xf] }
 0x292   : >> { %2935 = vst [vmem:[%s4380_s15 + $0x80] sm:$0xf] %v2934_v4  ;;  %v2938_v63 = vld [vmem:[%s4384_s20 + $0x88] sm:$0xf]  ;;  %v2940_v36 = vld [vmem:[%s4384_s20 + $0x8c] sm:$0xf] }
 0x293   : >> { %2937 = vst [vmem:[%s4380_s15 + $0x84] sm:$0xf] %v2936_v54  ;;  %2939 = vst [vmem:[%s4380_s15 + $0x88] sm:$0xf] %v2938_v63  ;;  %v2942_v61 = vld [vmem:[%s4384_s20 + $0x90] sm:$0xf] }
 0x294   : >> { %2941 = vst [vmem:[%s4380_s15 + $0x8c] sm:$0xf] %v2940_v36  ;;  %v2944_v43 = vld [vmem:[%s4384_s20 + $0x94] sm:$0xf]  ;;  %v2946_v38 = vld [vmem:[%s4384_s20 + $0x98] sm:$0xf] }
 0x295   : >> { %2943 = vst [vmem:[%s4380_s15 + $0x90] sm:$0xf] %v2942_v61  ;;  %2945 = vst [vmem:[%s4380_s15 + $0x94] sm:$0xf] %v2944_v43  ;;  %v2948_v57 = vld [vmem:[%s4384_s20 + $0x9c] sm:$0xf] }
 0x296   : >> { %2947 = vst [vmem:[%s4380_s15 + $0x98] sm:$0xf] %v2946_v38  ;;  %v2950_v33 = vld [vmem:[%s4384_s20 + $0xa0] sm:$0xf]  ;;  %v2952_v62 = vld [vmem:[%s4384_s20 + $0xa4] sm:$0xf] }
 0x297   : >> { %2949 = vst [vmem:[%s4380_s15 + $0x9c] sm:$0xf] %v2948_v57  ;;  %2951 = vst [vmem:[%s4380_s15 + $0xa0] sm:$0xf] %v2950_v33  ;;  %v2954_v29 = vld [vmem:[%s4384_s20 + $0xa8] sm:$0xf] }
 0x298   : >> { %2953 = vst [vmem:[%s4380_s15 + $0xa4] sm:$0xf] %v2952_v62  ;;  %v2956_v39 = vld [vmem:[%s4384_s20 + $0xac] sm:$0xf]  ;;  %v2958_v2 = vld [vmem:[%s4384_s20 + $0xb0] sm:$0xf] }
 0x299   : >> { %2955 = vst [vmem:[%s4380_s15 + $0xa8] sm:$0xf] %v2954_v29  ;;  %2957 = vst [vmem:[%s4380_s15 + $0xac] sm:$0xf] %v2956_v39  ;;  %v2960_v6 = vld [vmem:[%s4384_s20 + $0xb4] sm:$0xf] }
 0x29a   : >> { %2959 = vst [vmem:[%s4380_s15 + $0xb0] sm:$0xf] %v2958_v2  ;;  %v2962_v15 = vld [vmem:[%s4384_s20 + $0xb8] sm:$0xf]  ;;  %v2964_v9 = vld [vmem:[%s4384_s20 + $0xbc] sm:$0xf] }
 0x29b   : >> { %2961 = vst [vmem:[%s4380_s15 + $0xb4] sm:$0xf] %v2960_v6  ;;  %2963 = vst [vmem:[%s4380_s15 + $0xb8] sm:$0xf] %v2962_v15  ;;  %v2966_v22 = vld [vmem:[%s4384_s20 + $0xc0] sm:$0xf] }
 0x29c   : >> { %2965 = vst [vmem:[%s4380_s15 + $0xbc] sm:$0xf] %v2964_v9  ;;  %v2968_v7 = vld [vmem:[%s4384_s20 + $0xc4] sm:$0xf]  ;;  %v2970_v44 = vld [vmem:[%s4384_s20 + $0xc8] sm:$0xf] }
 0x29d   : >> { %2967 = vst [vmem:[%s4380_s15 + $0xc0] sm:$0xf] %v2966_v22  ;;  %2969 = vst [vmem:[%s4380_s15 + $0xc4] sm:$0xf] %v2968_v7  ;;  %v2972_v58 = vld [vmem:[%s4384_s20 + $0xcc] sm:$0xf] }
 0x29e   : >> { %2971 = vst [vmem:[%s4380_s15 + $0xc8] sm:$0xf] %v2970_v44  ;;  %v2974_v59 = vld [vmem:[%s4384_s20 + $0xd0] sm:$0xf]  ;;  %v2976_v52 = vld [vmem:[%s4384_s20 + $0xd4] sm:$0xf] }
 0x29f   : >> { %2973 = vst [vmem:[%s4380_s15 + $0xcc] sm:$0xf] %v2972_v58  ;;  %2975 = vst [vmem:[%s4380_s15 + $0xd0] sm:$0xf] %v2974_v59  ;;  %v2978_v48 = vld [vmem:[%s4384_s20 + $0xd8] sm:$0xf] }
 0x2a0   : >> { %2977 = vst [vmem:[%s4380_s15 + $0xd4] sm:$0xf] %v2976_v52  ;;  %v2980_v26 = vld [vmem:[%s4384_s20 + $0xdc] sm:$0xf]  ;;  %v2982_v34 = vld [vmem:[%s4384_s20 + $0xe0] sm:$0xf] }
 0x2a1   : >> { %2979 = vst [vmem:[%s4380_s15 + $0xd8] sm:$0xf] %v2978_v48  ;;  %2981 = vst [vmem:[%s4380_s15 + $0xdc] sm:$0xf] %v2980_v26  ;;  %v2984_v35 = vld [vmem:[%s4384_s20 + $0xe4] sm:$0xf] }
 0x2a2   : >> { %2983 = vst [vmem:[%s4380_s15 + $0xe0] sm:$0xf] %v2982_v34  ;;  %v2986_v1 = vld [vmem:[%s4384_s20 + $0xe8] sm:$0xf]  ;;  %v2988_v3 = vld [vmem:[%s4384_s20 + $0xec] sm:$0xf] }
 0x2a3   : >> { %2985 = vst [vmem:[%s4380_s15 + $0xe4] sm:$0xf] %v2984_v35  ;;  %2987 = vst [vmem:[%s4380_s15 + $0xe8] sm:$0xf] %v2986_v1  ;;  %v2990_v46 = vld [vmem:[%s4384_s20 + $0xf0] sm:$0xf] }
 0x2a4   : >> { %2989 = vst [vmem:[%s4380_s15 + $0xec] sm:$0xf] %v2988_v3  ;;  %v2992_v32 = vld [vmem:[%s4384_s20 + $0xf4] sm:$0xf]  ;;  %v2994_v13 = vld [vmem:[%s4384_s20 + $0xf8] sm:$0xf] }
 0x2a5   : >> { %2991 = vst [vmem:[%s4380_s15 + $0xf0] sm:$0xf] %v2990_v46  ;;  %2993 = vst [vmem:[%s4380_s15 + $0xf4] sm:$0xf] %v2992_v32  ;;  %v2996_v21 = vld [vmem:[%s4384_s20 + $0xfc] sm:$0xf] }
 0x2a6   : >> { %2995 = vst [vmem:[%s4380_s15 + $0xf8] sm:$0xf] %v2994_v13  ;;  %2997 = vst [vmem:[%s4380_s15 + $0xfc] sm:$0xf] %v2996_v21  ;;  %s5574_s8 = smov (%p2999_p11, %s2998_s8), 0  ;;  %s2864_s7 = sadd.s32 1, %s4392_s7  }
 0x2a7   : >> { %s3610_s10 = sshll.u32 %s5574_s8, 8  ;;  %p2863_p12 = scmp.ge.s32.totalorder %s2864_s7, %s5338_s6 }
 0x2a8   : >> { %s3003_s20 = scalar_lea.vmem %s5036_s24, %s3610_s10 [#allocation2]   ;;  %s3004_s15 = scalar_lea.vmem %s5332_s4, %s3610_s10  }
 0x2a9   : >> { %s5567_s23 = smov %s5574_s8  ;;  %2866 = sbr.rel (!%p2863_p12) target bundleno = 636 (0x27c), region = 118 }
 0x2b0 PF: > { %s5506_s11 = sand.u32 63, %s5572_s27   ;;  %s3685_s14 = sshll.u32 %s5338_s6, 8 }
 0x2b1   : > { %s3009_s17 = scalar_lea.vmem %s5036_s24, %s3685_s14 [#allocation2]   ;;  %s3011_s18 = scalar_lea.vmem %s5332_s4, %s3685_s14  }
 0x2b2   : > { %p3615_p13 = scmp.le.s32.totalorder %s5506_s11, 0 }
 0x2b3   : > { %s4394_s9 = smov (!%p3615_p13), %s3011_s18   ;;  %s4398_s21 = smov (!%p3615_p13), %s3009_s17  }
 0x2b4   : > { %3273 = sbr.rel (%p3615_p13) target bundleno = 709 (0x2c5), region = 123  ;;  %s4402_s22 = smov (!%p3615_p13), 0  }
 0x2b5   : > { %s4406_s12 = smov (!%p3615_p13), 0  }
 0x2bb LB: >> { %v3021_v8 = vld [vmem:[%s4400_s21] sm:$0xf]  ;;  %s3023_s25 = sadd.s32 1, %s4404_s22  ;;  %s3015_s12 = sadd.s32 1, %s4408_s12   ;;  %s4408_s12 = sphi %s4406_s12, %s3015_s12   ;;  %s4404_s22 = sphi %s4402_s22, %s4403_s22   ;;  %s4400_s21 = sphi %s4398_s21, %s3028_s21   ;;  %s4396_s9 = sphi %s4394_s9, %s3029_s9  }
 0x2bc   : >> { %3022 = vst [vmem:[%s4396_s9] sm:$0xf] %v3021_v8  ;;  %p3024_p0 = scmp.ge.s32.totalorder %s3023_s25, %s5506_s11  ;;  %p3014_p1 = scmp.ge.s32.totalorder %s3015_s12, %s5506_s11 }
 0x2be   : >> { %s5576_s25 = smov (%p3024_p0, %s3023_s25), 0  ;;  %3017 = sbr.rel (!%p3014_p1) target bundleno = 699 (0x2bb), region = 129 }
 0x2bf   : >> { %s3616_s24 = sshll.u32 %s5576_s25, 2  ;;  %s4403_s22 = smov %s5576_s25  }
 0x2c0   : >> { %s3028_s21 = scalar_lea.vmem %s3009_s17, %s3616_s24 [#allocation2]   ;;  %s3029_s9 = scalar_lea.vmem %s3011_s18, %s3616_s24  }
 0x2c5 PF: > { %p10_p2 = scmp.ge.s32.totalorder %s4446_s16, 5   ;;  %s5568_s12 = smov %s4372_s13 }
 0x2c6   : > { %s5569_s13 = smov %s4454_s19  ;;  %s5570_s14 = smov %s4446_s16 }
 0x2c7   :  { %12 = sbr.rel (!%p10_p2) target bundleno = 2 (0x2), region = 140 }

// kernel: convnet_quantized_forward.7
= control target key start
LH: loop header
LB: loop body
LE: loop exit
PB: predicated region body
PF: predicated region fallthrough
CT: control target
= control target key end

     0   :  { %12 = vsyncpa [#allocation4], 0  ;;  %s5033_s24 = smov 0   ;;  %s5475_s0 = inlined_call_operand.vmem [shape: bf16[2,36864], index: 0, kind: input, shape index: {}]   ;;  %s5476_s1 = inlined_call_operand.vmem [shape: bf16[36864,128], index: 1, kind: input, shape index: {}]   ;;  %s5477_s2 = inlined_call_operand.vmem [shape: f32[1,128], index: 2, kind: input, shape index: {}]   ;;  %s5478_s3 = inlined_call_operand.vmem [shape: bf16[128,64], index: 3, kind: input, shape index: {}]   ;;  %s5479_s4 = inlined_call_operand.vmem [shape: f32[1,64], index: 4, kind: input, shape index: {}]   ;;  %s5480_s5 = inlined_call_operand.vmem [shape: bf16[64,29], index: 5, kind: input, shape index: {}]   ;;  %s5481_s6 = inlined_call_operand.vmem [shape: f32[1,29], index: 6, kind: input, shape index: {}]   ;;  %s5482_s7 = inlined_call_operand.hbm [shape: f32[2,29], index: 7, kind: output, shape index: {}]  }
   0x1 LB: > { %s5039_s25 = sadd.s32 4294967295, %s4986_s24   ;;  %p3868_p0 = scmp.ge.s32.totalorder %s4986_s24, 1  ;;  %s4986_s24 = sphi %s5033_s24, %s18_s24  }
   0x2   : > { %p244_p1 = scmp.lt.s32.totalorder %s4986_s24, 9 }
   0x4   : > { %p245_p2 = pnand %p3868_p0, %p244_p1 }
   0x5   : > { %s275_s26 = smul.u32 (!%p245_p2), 36, %s5039_s25  ;;  %p3870_p5 = scmp.ne.s32.totalorder (!%p245_p2), %s5039_s25, 0 }
   0x6   : > { %248 = sbr.rel (%p245_p2) target bundleno = 1321 (0x529), region = 48 }
   0x7   : > { %s280_s27 = smul.u32 (!%p245_p2), 576, %s5039_s25  ;;  %p276_p3 = scmp.lt.s32.totalorder (!%p245_p2), %s275_s26, 287 }
   0x9   : > { %p281_p4 = scmp.lt.s32.totalorder (!%p245_p2), %s280_s27, 4607 }
   0xd   : > { %s5484_s26 = smov (!%p276_p3, %s275_s26), 287  ;;  %s5486_s27 = smov (!%p281_p4, %s280_s27), 4607 }
   0xe   : > { %s5048_s30 = scalar_lea.vmem %s5475_s0, %s5484_s26  ;;  %s3869_s8 = sshll.u32 %s5486_s27, 2  ;;  %v4988_v0 = vmov (!%p3870_p5), 0.0  }
   0xf   : > { %s5053_s11 = scalar_lea.vmem %s5476_s1, %s3869_s8  ;;  %290 = sbr.rel (%p3870_p5) target bundleno = 22 (0x16), region = 52  ;;  %291 = vst [vmem:[#allocation2] sm:$0x3] (!%p3870_p5), %v4988_v0 }
  0x16 PF: > { %v4642_v1 = vld [vmem:[%s5053_s11 + $0x40] sm:$0xff]   ;;  %v4646_v5 = vld [vmem:[%s5053_s11 + $0x48] sm:$0xff]   ;;  %v4650_v9 = vld [vmem:[%s5053_s11 + $0x50] sm:$0xff]   ;;  %v883_v29 = vlaneseq  ;;  %v4989_v37 = vmov 1966171168   ;;  %p4160_p6 = scmp.ne.s32.totalorder %s5039_s25, 7 }
  0x17   : > { %v4643_v2 = vld [vmem:[%s5053_s11 + $0xc0] sm:$0xff]   ;;  %4181 = vmatprep.subr.bf16.mxu0 %v4642_v1  ;;  %v4647_v6 = vld [vmem:[%s5053_s11 + $0xc8] sm:$0xff]   ;;  %v4651_v10 = vld [vmem:[%s5053_s11 + $0xd0] sm:$0xff]   ;;  %v881_v38 = vunpack.c.l.s4 %v4989_v37  ;;  %vm4991_vm0 = vmmov (!%p4160_p6), 0   ;;  %vm3752_vm1 = vcmask (!%p4160_p6), 523264   ;;  %vm3796_vm2 = vcmask (!%p4160_p6), 230400  }
  0x18   : > { %v4644_v3 = vld [vmem:[%s5053_s11] sm:$0xff]   ;;  %4203 = vmatprep.subr.bf16.mxu1 %v4643_v2  ;;  %v4648_v7 = vld [vmem:[%s5053_s11 + $0x8] sm:$0xff]   ;;  %v4652_v11 = vld [vmem:[%s5053_s11 + $0x10] sm:$0xff]   ;;  %v884_v34 = vshrl.u32 %v883_v29, 7 }
  0x19   : > { %v4645_v4 = vld [vmem:[%s5053_s11 + $0x80] sm:$0xff]   ;;  %4182 = vmatpush3.bf16.msra.mxu0 %v4644_v3  ;;  %v4649_v8 = vld [vmem:[%s5053_s11 + $0x88] sm:$0xff]   ;;  %v4653_v12 = vld [vmem:[%s5053_s11 + $0x90] sm:$0xff]   ;;  %v882_v41 = vunpack.c.0.s8 %v881_v38 }
  0x1a   : > { %4204 = vmatpush3.bf16.msra.mxu1 %v4645_v4  ;;  %4183 = vmatprep.subr.bf16.mxu0 %v4646_v5  ;;  %v4654_v13 = vld [vmem:[%s5053_s11 + $0x58] sm:$0xff]   ;;  %v4658_v17 = vld [vmem:[%s5053_s11 + $0x60] sm:$0xff]   ;;  %v4662_v21 = vld [vmem:[%s5053_s11 + $0x68] sm:$0xff]  }
  0x1b   : > { %4205 = vmatprep.subr.bf16.mxu1 %v4647_v6  ;;  %v4655_v14 = vld [vmem:[%s5053_s11 + $0xd8] sm:$0xff]   ;;  %v4659_v18 = vld [vmem:[%s5053_s11 + $0xe0] sm:$0xff]   ;;  %v4663_v22 = vld [vmem:[%s5053_s11 + $0xe8] sm:$0xff]   ;;  %v5091_v42 = vsub.s32 %v882_v41, %v884_v34 }
  0x1c   : > { %v4656_v15 = vld [vmem:[%s5053_s11 + $0x18] sm:$0xff]   ;;  %v4660_v19 = vld [vmem:[%s5053_s11 + $0x20] sm:$0xff]   ;;  %v4664_v23 = vld [vmem:[%s5053_s11 + $0x28] sm:$0xff]  }
  0x1d   : > { %4184 = vmatpush3.bf16.msra.mxu0 %v4648_v7  ;;  %v4657_v16 = vld [vmem:[%s5053_s11 + $0x98] sm:$0xff]   ;;  %v4661_v20 = vld [vmem:[%s5053_s11 + $0xa0] sm:$0xff]   ;;  %v4665_v24 = vld [vmem:[%s5053_s11 + $0xa8] sm:$0xff]  }
  0x1e   : > { %4206 = vmatpush3.bf16.msra.mxu1 %v4649_v8  ;;  %4185 = vmatprep.subr.bf16.mxu0 %v4650_v9  ;;  %v4666_v25 = vld [vmem:[%s5053_s11 + $0x70] sm:$0xff]   ;;  %v4670_v30 = vld [vmem:[%s5053_s11 + $0x78] sm:$0xff]   ;;  %v293_v35 = vld [vmem:[%s5048_s30] sm:$0xff] }
  0x1f   : > { %4207 = vmatprep.subr.bf16.mxu1 %v4651_v10  ;;  %v4667_v26 = vld [vmem:[%s5053_s11 + $0xf0] sm:$0xff]   ;;  %v4671_v31 = vld [vmem:[%s5053_s11 + $0xf8] sm:$0xff]   ;;  %v4675_v36 = vld [vmem:[%s5053_s11 + $0x140] sm:$0xff]   ;;  %v879_v40 = vcombine.high %v293_v35, %v293_v35  ;;  %v886_v43 = vrot.slane %v293_v35, %v5091_v42 }
  0x20   : > { %v4668_v27 = vld [vmem:[%s5053_s11 + $0x30] sm:$0xff]   ;;  %v4672_v32 = vld [vmem:[%s5053_s11 + $0x38] sm:$0xff]   ;;  %v4676_v39 = vld [vmem:[%s5053_s11 + $0x1c0] sm:$0xff]  }
  0x21   : > { %4186 = vmatpush3.bf16.msra.mxu0 %v4652_v11  ;;  %v4669_v28 = vld [vmem:[%s5053_s11 + $0xb0] sm:$0xff]   ;;  %v4673_v33 = vld [vmem:[%s5053_s11 + $0xb8] sm:$0xff]   ;;  %v5095_v44 = vrot.slane %v879_v40, %v5091_v42  ;;  %v894_v45 = vcombine.high %v886_v43, %v886_v43  ;;  %v902_v46 = vrot.slane %v886_v43, %v5091_v42  ;;  %v4677_v48 = vld [vmem:[%s5053_s11 + $0x100] sm:$0xff]  }
  0x22   : > { %4208 = vmatpush3.bf16.msra.mxu1 %v4653_v12  ;;  %4187 = vmatprep.subr.bf16.mxu0 %v4654_v13  ;;  %v4678_v50 = vld [vmem:[%s5053_s11 + $0x180] sm:$0xff]   ;;  %v4679_v53 = vld [vmem:[%s5053_s11 + $0x148] sm:$0xff]   ;;  %v4683_v59 = vld [vmem:[%s5053_s11 + $0x150] sm:$0xff]  }
  0x23   : > { %4209 = vmatprep.subr.bf16.mxu1 %v4655_v14  ;;  %v895_v47 = vcombine.high %v5095_v44, %v5095_v44  ;;  %v916_v49 = vrot.slane %v894_v45, %v5091_v42  ;;  %v924_v52 = vcombine.high %v902_v46, %v902_v46  ;;  %v4680_v55 = vld [vmem:[%s5053_s11 + $0x1c8] sm:$0xff]   ;;  %v4684_v60 = vld [vmem:[%s5053_s11 + $0x1d0] sm:$0xff]   ;;  %v4687_v63 = vld [vmem:[%s5053_s11 + $0x158] sm:$0xff]  }
  0x24   : > { %v4681_v56 = vld [vmem:[%s5053_s11 + $0x108] sm:$0xff]   ;;  %v4685_v61 = vld [vmem:[%s5053_s11 + $0x110] sm:$0xff]   ;;  %v4688_v0 = vld [vmem:[%s5053_s11 + $0x1d8] sm:$0xff]  }
  0x25   : > { %4188 = vmatpush3.bf16.msra.mxu0 %v4656_v15  ;;  %v923_v51 = vrot.slane %v895_v47, %v5091_v42  ;;  %2895 = vmatprep.mubr.bf16.mxu0 %v916_v49  ;;  %v926_v54 = vcombine.high %v916_v49, %v916_v49  ;;  %v4682_v58 = vld [vmem:[%s5053_s11 + $0x188] sm:$0xff]   ;;  %v4686_v62 = vld [vmem:[%s5053_s11 + $0x190] sm:$0xff]   ;;  %v4689_v1 = vld [vmem:[%s5053_s11 + $0x118] sm:$0xff]  }
  0x26   : > { %4210 = vmatpush3.bf16.msra.mxu1 %v4657_v16  ;;  %4189 = vmatprep.subr.bf16.mxu0 %v4658_v17  ;;  %v4690_v2 = vld [vmem:[%s5053_s11 + $0x198] sm:$0xff]   ;;  %v4691_v3 = vld [vmem:[%s5053_s11 + $0x160] sm:$0xff]   ;;  %v4695_v7 = vld [vmem:[%s5053_s11 + $0x168] sm:$0xff]  }
  0x27   : > { %4211 = vmatprep.subr.bf16.mxu1 %v4659_v18  ;;  %v927_v57 = vcombine.high %v923_v51, %v923_v51  ;;  %2935 = vmatprep.mubr.bf16.mxu1 %v926_v54  ;;  %v4692_v4 = vld [vmem:[%s5053_s11 + $0x1e0] sm:$0xff]   ;;  %v4696_v8 = vld [vmem:[%s5053_s11 + $0x1e8] sm:$0xff]   ;;  %v4699_v11 = vld [vmem:[%s5053_s11 + $0x170] sm:$0xff]  }
  0x28   : > { %v4693_v5 = vld [vmem:[%s5053_s11 + $0x120] sm:$0xff]   ;;  %v4697_v9 = vld [vmem:[%s5053_s11 + $0x128] sm:$0xff]   ;;  %v4700_v12 = vld [vmem:[%s5053_s11 + $0x1f0] sm:$0xff]  }
  0x29   : > { %4190 = vmatpush3.bf16.msra.mxu0 %v4660_v19  ;;  %v4694_v6 = vld [vmem:[%s5053_s11 + $0x1a0] sm:$0xff]   ;;  %v4698_v10 = vld [vmem:[%s5053_s11 + $0x1a8] sm:$0xff]   ;;  %v4701_v13 = vld [vmem:[%s5053_s11 + $0x130] sm:$0xff]   ;;  %v909_v19 = vrot.slane %v5095_v44, %v5091_v42 }
  0x2a   : > { %4212 = vmatpush3.bf16.msra.mxu1 %v4661_v20  ;;  %4191 = vmatprep.subr.bf16.mxu0 %v4662_v21  ;;  %v4702_v14 = vld [vmem:[%s5053_s11 + $0x1b0] sm:$0xff]   ;;  %v4703_v15 = vld [vmem:[%s5053_s11 + $0x178] sm:$0xff]   ;;  %v4707_v20 = vld [vmem:[%s5053_s11 + $0x240] sm:$0xff]  }
  0x2b   : > { %4213 = vmatprep.subr.bf16.mxu1 %v4663_v22  ;;  %v4704_v16 = vld [vmem:[%s5053_s11 + $0x1f8] sm:$0xff]   ;;  %v4708_v21 = vld [vmem:[%s5053_s11 + $0x2c0] sm:$0xff]   ;;  %v4715_v29 = vld [vmem:[%s5053_s11 + $0x250] sm:$0xff]  }
  0x2c   : > { %v4705_v17 = vld [vmem:[%s5053_s11 + $0x138] sm:$0xff]   ;;  %v4709_v22 = vld [vmem:[%s5053_s11 + $0x200] sm:$0xff]   ;;  %v4727_v41 = vld [vmem:[%s5053_s11 + $0x268] sm:$0xff]  }
  0x2d   : > { %4192 = vmatpush3.bf16.msra.mxu0 %v4664_v23  ;;  %v4706_v18 = vld [vmem:[%s5053_s11 + $0x1b8] sm:$0xff]   ;;  %v4710_v23 = vld [vmem:[%s5053_s11 + $0x280] sm:$0xff]   ;;  %v4728_v43 = vld [vmem:[%s5053_s11 + $0x2e8] sm:$0xff]  }
  0x2e   : > { %4214 = vmatpush3.bf16.msra.mxu1 %v4665_v24  ;;  %4193 = vmatprep.subr.bf16.mxu0 %v4666_v25  ;;  %v925_v24 = vcombine.high %v909_v19, %v909_v19  ;;  %v4711_v25 = vld [vmem:[%s5053_s11 + $0x248] sm:$0xff]   ;;  %v4720_v34 = vld [vmem:[%s5053_s11 + $0x2d8] sm:$0xff]   ;;  %v4723_v37 = vld [vmem:[%s5053_s11 + $0x260] sm:$0xff]  }
  0x2f   : > { %4215 = vmatprep.subr.bf16.mxu1 %v4667_v26  ;;  %v4712_v26 = vld [vmem:[%s5053_s11 + $0x2c8] sm:$0xff]   ;;  %v4721_v35 = vld [vmem:[%s5053_s11 + $0x218] sm:$0xff]   ;;  %v4724_v38 = vld [vmem:[%s5053_s11 + $0x2e0] sm:$0xff]  }
  0x30   : > { %v4726_v40 = vld [vmem:[%s5053_s11 + $0x2a0] sm:$0xff]   ;;  %v4729_v44 = vld [vmem:[%s5053_s11 + $0x228] sm:$0xff]  }
  0x31   : > { %4194 = vmatpush3.bf16.msra.mxu0 %v4668_v27  ;;  %v4713_v27 = vld [vmem:[%s5053_s11 + $0x208] sm:$0xff]  }
  0x32   : > { %4216 = vmatpush3.bf16.msra.mxu1 %v4669_v28  ;;  %4195 = vmatprep.subr.bf16.mxu0 %v4670_v30  ;;  %v4714_v28 = vld [vmem:[%s5053_s11 + $0x288] sm:$0xff]   ;;  %v4716_v30 = vld [vmem:[%s5053_s11 + $0x2d0] sm:$0xff]  }
  0x33   : > { %4217 = vmatprep.subr.bf16.mxu1 %v4671_v31  ;;  %v4717_v31 = vld [vmem:[%s5053_s11 + $0x210] sm:$0xff]   ;;  %v4730_v45 = vld [vmem:[%s5053_s11 + $0x2a8] sm:$0xff]  }
  0x34   : > { %v294_v47 = vld [vmem:[%s5048_s30 + $0x8] sm:$0xff] }
  0x35   : > { %4196 = vmatpush3.bf16.msra.mxu0 %v4672_v32  ;;  %v4718_v32 = vld [vmem:[%s5053_s11 + $0x290] sm:$0xff]   ;;  %v935_v49 = vrot.slane %v294_v47, %v5091_v42 }
  0x36   : > { %4218 = vmatpush3.bf16.msra.mxu1 %v4673_v33  ;;  %4225 = vmatprep.subr.bf16.mxu0 %v4675_v36  ;;  %v4719_v33 = vld [vmem:[%s5053_s11 + $0x258] sm:$0xff]  }
  0x37   : > { %4247 = vmatprep.subr.bf16.mxu1 %v4676_v39  ;;  %v4722_v36 = vld [vmem:[%s5053_s11 + $0x298] sm:$0xff]   ;;  %v4725_v39 = vld [vmem:[%s5053_s11 + $0x220] sm:$0xff]  }
  0x38   : > { %2896 = vmatmul.mubr.bf16.vlgmr.msra.gmra.mrb[0].mxu0 %v902_v46  ;;  %v4731_v46 = vld [vmem:[%s5053_s11 + $0x270] sm:$0xff]  }
  0x39   : > { %4226 = vmatpush3.bf16.msra.mxu0 %v4677_v48  ;;  %2936 = vmatmul.mubr.bf16.vlgmr.msra.gmra.mrb[0].mxu1 %v924_v52  ;;  %v4732_v48 = vld [vmem:[%s5053_s11 + $0x2f0] sm:$0xff]  }
  0x3a   : > { %4227 = vmatprep.subr.bf16.mxu0 %v4679_v53  ;;  %4248 = vmatpush3.bf16.msra.mxu1 %v4678_v50  ;;  %v928_v50 = vcombine.high %v294_v47, %v294_v47  ;;  %v4734_v52 = vld [vmem:[%s5053_s11 + $0x2b0] sm:$0xff]   ;;  %v943_v53 = vcombine.high %v935_v49, %v935_v49 }
  0x3b   : > { %2975 = vmatprep.mubr.bf16.mxu0 %v923_v51  ;;  %4249 = vmatprep.subr.bf16.mxu1 %v4680_v55  ;;  %v4733_v51 = vld [vmem:[%s5053_s11 + $0x230] sm:$0xff]   ;;  %v4735_v55 = vld [vmem:[%s5053_s11 + $0x278] sm:$0xff]  }
  0x3c   : > { %3015 = vmatprep.mubr.bf16.mxu1 %v927_v57  ;;  %v5165_v54 = vrot.slane %v928_v50, %v5091_v42  ;;  %v965_v57 = vrot.slane %v943_v53, %v5091_v42  ;;  %v4782_v47 = vld [vmem:[%s5053_s11 + $0x410] sm:$0xff]   ;;  %v4785_v50 = vld [vmem:[%s5053_s11 + $0x4d8] sm:$0xff]   ;;  %v4788_v53 = vld [vmem:[%s5053_s11 + $0x460] sm:$0xff]  }
  0x3d   : > { %4228 = vmatpush3.bf16.msra.mxu0 %v4681_v56  ;;  %v4736_v56 = vld [vmem:[%s5053_s11 + $0x2f8] sm:$0xff]  }
  0x3e   : > { %4229 = vmatprep.subr.bf16.mxu0 %v4683_v59  ;;  %4250 = vmatpush3.bf16.msra.mxu1 %v4682_v58  ;;  %v944_v58 = vcombine.high %v5165_v54, %v5165_v54  ;;  %v4737_v59 = vld [vmem:[%s5053_s11 + $0x238] sm:$0xff]  }
  0x3f   : > { %4251 = vmatprep.subr.bf16.mxu1 %v4684_v60  ;;  %v4738_v60 = vld [vmem:[%s5053_s11 + $0x2b8] sm:$0xff]  }
  0x41   : > { %4230 = vmatpush3.bf16.msra.mxu0 %v4685_v61  ;;  %v975_v61 = vcombine.high %v965_v57, %v965_v57 }
  0x42   : > { %4231 = vmatprep.subr.bf16.mxu0 %v4687_v63  ;;  %4252 = vmatpush3.bf16.msra.mxu1 %v4686_v62  ;;  %v951_v62 = vrot.slane %v935_v49, %v5091_v42  ;;  %v4739_v63 = vld [vmem:[%s5053_s11 + $0x340] sm:$0xff]   ;;  %v4784_v49 = vld [vmem:[%s5053_s11 + $0x458] sm:$0xff]  }
  0x43   : > { %4253 = vmatprep.subr.bf16.mxu1 %v4688_v0  ;;  %v4740_v0 = vld [vmem:[%s5053_s11 + $0x3c0] sm:$0xff]  }
  0x45   : > { %4232 = vmatpush3.bf16.msra.mxu0 %v4689_v1  ;;  %v972_v1 = vrot.slane %v944_v58, %v5091_v42  ;;  %v4793_v58 = vld [vmem:[%s5053_s11 + $0x4e8] sm:$0xff]  }
  0x46   : > { %4233 = vmatprep.subr.bf16.mxu0 %v4691_v3  ;;  %4254 = vmatpush3.bf16.msra.mxu1 %v4690_v2  ;;  %v4741_v2 = vld [vmem:[%s5053_s11 + $0x300] sm:$0xff]  }
  0x47   : > { %4255 = vmatprep.subr.bf16.mxu1 %v4692_v4  ;;  %v4742_v3 = vld [vmem:[%s5053_s11 + $0x380] sm:$0xff]   ;;  %v973_v4 = vcombine.high %v951_v62, %v951_v62 }
  0x49   : > { %4234 = vmatpush3.bf16.msra.mxu0 %v4693_v5  ;;  %v4743_v5 = vld [vmem:[%s5053_s11 + $0x348] sm:$0xff]  }
  0x4a   : > { %4235 = vmatprep.subr.bf16.mxu0 %v4695_v7  ;;  %4256 = vmatpush3.bf16.msra.mxu1 %v4694_v6  ;;  %v4744_v6 = vld [vmem:[%s5053_s11 + $0x3c8] sm:$0xff]   ;;  %v976_v7 = vcombine.high %v972_v1, %v972_v1 }
  0x4b   : > { %4257 = vmatprep.subr.bf16.mxu1 %v4696_v8  ;;  %v4745_v8 = vld [vmem:[%s5053_s11 + $0x308] sm:$0xff]  }
  0x4d   : > { %4236 = vmatpush3.bf16.msra.mxu0 %v4697_v9  ;;  %v4746_v9 = vld [vmem:[%s5053_s11 + $0x388] sm:$0xff]  }
  0x4e   : > { %4237 = vmatprep.subr.bf16.mxu0 %v4699_v11  ;;  %4258 = vmatpush3.bf16.msra.mxu1 %v4698_v10  ;;  %v4747_v10 = vld [vmem:[%s5053_s11 + $0x350] sm:$0xff]  }
  0x4f   : > { %4259 = vmatprep.subr.bf16.mxu1 %v4700_v12  ;;  %v4748_v11 = vld [vmem:[%s5053_s11 + $0x3d0] sm:$0xff]  }
  0x50   : > { %v4749_v12 = vld [vmem:[%s5053_s11 + $0x310] sm:$0xff]  }
  0x51   : > { %4238 = vmatpush3.bf16.msra.mxu0 %v4701_v13  ;;  %v4750_v13 = vld [vmem:[%s5053_s11 + $0x390] sm:$0xff]  }
  0x52   : > { %4239 = vmatprep.subr.bf16.mxu0 %v4703_v15  ;;  %4260 = vmatpush3.bf16.msra.mxu1 %v4702_v14  ;;  %v4751_v14 = vld [vmem:[%s5053_s11 + $0x358] sm:$0xff]  }
  0x53   : > { %4261 = vmatprep.subr.bf16.mxu1 %v4704_v16  ;;  %v4752_v15 = vld [vmem:[%s5053_s11 + $0x3d8] sm:$0xff]  }
  0x54   : > { %v4753_v16 = vld [vmem:[%s5053_s11 + $0x318] sm:$0xff]  }
  0x55   : > { %4240 = vmatpush3.bf16.msra.mxu0 %v4705_v17  ;;  %v4754_v17 = vld [vmem:[%s5053_s11 + $0x398] sm:$0xff]  }
  0x56   : > { %4269 = vmatprep.subr.bf16.mxu0 %v4707_v20  ;;  %4262 = vmatpush3.bf16.msra.mxu1 %v4706_v18  ;;  %v4755_v18 = vld [vmem:[%s5053_s11 + $0x360] sm:$0xff]  }
  0x57   : > { %4291 = vmatprep.subr.bf16.mxu1 %v4708_v21  ;;  %v4757_v20 = vld [vmem:[%s5053_s11 + $0x320] sm:$0xff]  }
  0x58   : > { %2976 = vmatmul.mubr.bf16.vlgmr.msra.gmra.mrb[4].mxu0 %v909_v19  ;;  %v4756_v19 = vld [vmem:[%s5053_s11 + $0x3e0] sm:$0xff]  }
  0x59   : > { %4270 = vmatpush3.bf16.msra.mxu0 %v4709_v22  ;;  %3016 = vmatmul.mubr.bf16.vlgmr.msra.gmra.mrb[4].mxu1 %v925_v24  ;;  %v4758_v21 = vld [vmem:[%s5053_s11 + $0x3a0] sm:$0xff]   ;;  %v4759_v22 = vld [vmem:[%s5053_s11 + $0x368] sm:$0xff]  }
  0x5a   : > { %4271 = vmatprep.subr.bf16.mxu0 %v4711_v25  ;;  %4292 = vmatpush3.bf16.msra.mxu1 %v4710_v23  ;;  %v4760_v23 = vld [vmem:[%s5053_s11 + $0x3e8] sm:$0xff]  }
  0x5b   : > { %4293 = vmatprep.subr.bf16.mxu1 %v4712_v26  ;;  %3055 = vmatprep.mubr.bf16.mxu0 %v965_v57  ;;  %v4761_v24 = vld [vmem:[%s5053_s11 + $0x328] sm:$0xff]   ;;  %v4763_v26 = vld [vmem:[%s5053_s11 + $0x370] sm:$0xff]  }
  0x5c   : > { %3095 = vmatprep.mubr.bf16.mxu1 %v975_v61  ;;  %v4762_v25 = vld [vmem:[%s5053_s11 + $0x3a8] sm:$0xff]   ;;  %v4796_v61 = vld [vmem:[%s5053_s11 + $0x470] sm:$0xff]  }
  0x5d   : > { %4272 = vmatpush3.bf16.msra.mxu0 %v4713_v27  ;;  %v4764_v27 = vld [vmem:[%s5053_s11 + $0x3f0] sm:$0xff]   ;;  %v4792_v57 = vld [vmem:[%s5053_s11 + $0x468] sm:$0xff]  }
  0x5e   : > { %4273 = vmatprep.subr.bf16.mxu0 %v4715_v29  ;;  %4294 = vmatpush3.bf16.msra.mxu1 %v4714_v28  ;;  %v4765_v28 = vld [vmem:[%s5053_s11 + $0x330] sm:$0xff]  }
  0x5f   : > { %4295 = vmatprep.subr.bf16.mxu1 %v4716_v30  ;;  %v4766_v29 = vld [vmem:[%s5053_s11 + $0x3b0] sm:$0xff]   ;;  %v4767_v30 = vld [vmem:[%s5053_s11 + $0x378] sm:$0xff]  }
  0x61   : > { %4274 = vmatpush3.bf16.msra.mxu0 %v4717_v31  ;;  %v4768_v31 = vld [vmem:[%s5053_s11 + $0x3f8] sm:$0xff]  }
  0x62   : > { %4275 = vmatprep.subr.bf16.mxu0 %v4719_v33  ;;  %4296 = vmatpush3.bf16.msra.mxu1 %v4718_v32  ;;  %v4769_v32 = vld [vmem:[%s5053_s11 + $0x338] sm:$0xff]  }
  0x63   : > { %4297 = vmatprep.subr.bf16.mxu1 %v4720_v34  ;;  %v4770_v33 = vld [vmem:[%s5053_s11 + $0x3b8] sm:$0xff]   ;;  %v958_v34 = vrot.slane %v5165_v54, %v5091_v42  ;;  %v4789_v54 = vld [vmem:[%s5053_s11 + $0x4e0] sm:$0xff]  }
  0x65   : > { %4276 = vmatpush3.bf16.msra.mxu0 %v4721_v35  ;;  %v4772_v35 = vld [vmem:[%s5053_s11 + $0x440] sm:$0xff]  }
  0x66   : > { %4277 = vmatprep.subr.bf16.mxu0 %v4723_v37  ;;  %4298 = vmatpush3.bf16.msra.mxu1 %v4722_v36  ;;  %v4773_v36 = vld [vmem:[%s5053_s11 + $0x4c0] sm:$0xff]  }
  0x67   : > { %4299 = vmatprep.subr.bf16.mxu1 %v4724_v38  ;;  %v4774_v37 = vld [vmem:[%s5053_s11 + $0x400] sm:$0xff]  }
  0x68   : > { %v4775_v38 = vld [vmem:[%s5053_s11 + $0x480] sm:$0xff]  }
  0x69   : > { %4278 = vmatpush3.bf16.msra.mxu0 %v4725_v39  ;;  %v974_v39 = vcombine.high %v958_v34, %v958_v34 }
  0x6a   : > { %4279 = vmatprep.subr.bf16.mxu0 %v4727_v41  ;;  %4300 = vmatpush3.bf16.msra.mxu1 %v4726_v40  ;;  %v4776_v40 = vld [vmem:[%s5053_s11 + $0x448] sm:$0xff]  }
  0x6b   : > { %4301 = vmatprep.subr.bf16.mxu1 %v4728_v43  ;;  %v4777_v41 = vld [vmem:[%s5053_s11 + $0x4c8] sm:$0xff]  }
  0x6c   : > { %v4778_v43 = vld [vmem:[%s5053_s11 + $0x408] sm:$0xff]  }
  0x6d   : > { %4280 = vmatpush3.bf16.msra.mxu0 %v4729_v44  ;;  %v4779_v44 = vld [vmem:[%s5053_s11 + $0x488] sm:$0xff]  }
  0x6e   : > { %4281 = vmatprep.subr.bf16.mxu0 %v4731_v46  ;;  %4302 = vmatpush3.bf16.msra.mxu1 %v4730_v45  ;;  %v4780_v45 = vld [vmem:[%s5053_s11 + $0x450] sm:$0xff]  }
  0x6f   : > { %4303 = vmatprep.subr.bf16.mxu1 %v4732_v48  ;;  %v4781_v46 = vld [vmem:[%s5053_s11 + $0x4d0] sm:$0xff]  }
  0x70   : > { %v4783_v48 = vld [vmem:[%s5053_s11 + $0x490] sm:$0xff]  }
  0x71   : > { %4282 = vmatpush3.bf16.msra.mxu0 %v4733_v51  ;;  %v4786_v51 = vld [vmem:[%s5053_s11 + $0x418] sm:$0xff]  }
  0x72   : > { %4283 = vmatprep.subr.bf16.mxu0 %v4735_v55  ;;  %4304 = vmatpush3.bf16.msra.mxu1 %v4734_v52  ;;  %v4787_v52 = vld [vmem:[%s5053_s11 + $0x498] sm:$0xff]   ;;  %v4790_v55 = vld [vmem:[%s5053_s11 + $0x420] sm:$0xff]  }
  0x73   : > { %4305 = vmatprep.subr.bf16.mxu1 %v4736_v56  ;;  %v4791_v56 = vld [vmem:[%s5053_s11 + $0x4a0] sm:$0xff]  }
  0x75   : > { %4284 = vmatpush3.bf16.msra.mxu0 %v4737_v59  ;;  %v4794_v59 = vld [vmem:[%s5053_s11 + $0x428] sm:$0xff]  }
  0x76   : > { %4313 = vmatprep.subr.bf16.mxu0 %v4739_v63  ;;  %4306 = vmatpush3.bf16.msra.mxu1 %v4738_v60  ;;  %v4795_v60 = vld [vmem:[%s5053_s11 + $0x4a8] sm:$0xff]   ;;  %v4797_v63 = vld [vmem:[%s5053_s11 + $0x4f0] sm:$0xff]  }
  0x77   : > { %4335 = vmatprep.subr.bf16.mxu1 %v4740_v0 }
  0x78   : > { %3056 = vmatmul.mubr.bf16.vlgmr.msra.gmra.mrb[8].mxu0 %v951_v62  ;;  %v295_v62 = vld [vmem:[%s5048_s30 + $0x10] sm:$0xff] }
  0x79   : > { %4314 = vmatpush3.bf16.msra.mxu0 %v4741_v2  ;;  %3135 = vmatprep.mubr.bf16.mxu0 %v972_v1  ;;  %v984_v0 = vrot.slane %v295_v62, %v5091_v42  ;;  %v977_v1 = vcombine.high %v295_v62, %v295_v62  ;;  %v4798_v2 = vld [vmem:[%s5053_s11 + $0x430] sm:$0xff]  }
  0x7a   : > { %3096 = vmatmul.mubr.bf16.vlgmr.msra.gmra.mrb[8].mxu1 %v973_v4  ;;  %4315 = vmatprep.subr.bf16.mxu0 %v4743_v5  ;;  %v4847_v62 = vld [vmem:[%s5053_s11 + $0x610] sm:$0xff]  }
  0x7b   : > { %4336 = vmatpush3.bf16.msra.mxu1 %v4742_v3  ;;  %3175 = vmatprep.mubr.bf16.mxu1 %v976_v7  ;;  %v4799_v3 = vld [vmem:[%s5053_s11 + $0x4b0] sm:$0xff]   ;;  %v992_v4 = vcombine.high %v984_v0, %v984_v0  ;;  %v5241_v5 = vrot.slane %v977_v1, %v5091_v42  ;;  %v4801_v7 = vld [vmem:[%s5053_s11 + $0x4f8] sm:$0xff]  }
  0x7c   : > { %4337 = vmatprep.subr.bf16.mxu1 %v4744_v6  ;;  %v4800_v6 = vld [vmem:[%s5053_s11 + $0x478] sm:$0xff]  }
  0x7d   : > { %4316 = vmatpush3.bf16.msra.mxu0 %v4745_v8  ;;  %v1014_v8 = vrot.slane %v992_v4, %v5091_v42  ;;  %v4850_v1 = vld [vmem:[%s5053_s11 + $0x6d8] sm:$0xff]   ;;  %v4853_v4 = vld [vmem:[%s5053_s11 + $0x660] sm:$0xff]  }
  0x7e   : > { %4317 = vmatprep.subr.bf16.mxu0 %v4747_v10  ;;  %v4802_v10 = vld [vmem:[%s5053_s11 + $0x438] sm:$0xff]  }
  0x7f   : > { %4338 = vmatpush3.bf16.msra.mxu1 %v4746_v9  ;;  %v993_v9 = vcombine.high %v5241_v5, %v5241_v5 }
  0x80   : > { %4339 = vmatprep.subr.bf16.mxu1 %v4748_v11  ;;  %v4803_v11 = vld [vmem:[%s5053_s11 + $0x4b8] sm:$0xff]  }
  0x81   : > { %4318 = vmatpush3.bf16.msra.mxu0 %v4749_v12  ;;  %v1024_v12 = vcombine.high %v1014_v8, %v1014_v8 }
  0x82   : > { %4319 = vmatprep.subr.bf16.mxu0 %v4751_v14  ;;  %v4804_v14 = vld [vmem:[%s5053_s11 + $0x540] sm:$0xff]  }
  0x83   : > { %4340 = vmatpush3.bf16.msra.mxu1 %v4750_v13  ;;  %v1000_v13 = vrot.slane %v984_v0, %v5091_v42  ;;  %v4849_v0 = vld [vmem:[%s5053_s11 + $0x658] sm:$0xff]  }
  0x84   : > { %4341 = vmatprep.subr.bf16.mxu1 %v4752_v15  ;;  %v4805_v15 = vld [vmem:[%s5053_s11 + $0x5c0] sm:$0xff]  }
  0x85   : > { %4320 = vmatpush3.bf16.msra.mxu0 %v4753_v16  ;;  %v1021_v16 = vrot.slane %v993_v9, %v5091_v42  ;;  %v4858_v9 = vld [vmem:[%s5053_s11 + $0x6e8] sm:$0xff]  }
  0x86   : > { %4321 = vmatprep.subr.bf16.mxu0 %v4755_v18  ;;  %v4807_v18 = vld [vmem:[%s5053_s11 + $0x580] sm:$0xff]  }
  0x87   : > { %4342 = vmatpush3.bf16.msra.mxu1 %v4754_v17  ;;  %v4806_v17 = vld [vmem:[%s5053_s11 + $0x500] sm:$0xff]  }
  0x88   : > { %4343 = vmatprep.subr.bf16.mxu1 %v4756_v19  ;;  %v1022_v19 = vcombine.high %v1000_v13, %v1000_v13 }
  0x89   : > { %4322 = vmatpush3.bf16.msra.mxu0 %v4757_v20  ;;  %v4808_v20 = vld [vmem:[%s5053_s11 + $0x548] sm:$0xff]  }
  0x8a   : > { %4323 = vmatprep.subr.bf16.mxu0 %v4759_v22  ;;  %v1025_v22 = vcombine.high %v1021_v16, %v1021_v16 }
  0x8b   : > { %4344 = vmatpush3.bf16.msra.mxu1 %v4758_v21  ;;  %v4809_v21 = vld [vmem:[%s5053_s11 + $0x5c8] sm:$0xff]  }
  0x8c   : > { %4345 = vmatprep.subr.bf16.mxu1 %v4760_v23  ;;  %v4810_v23 = vld [vmem:[%s5053_s11 + $0x508] sm:$0xff]  }
  0x8d   : > { %4324 = vmatpush3.bf16.msra.mxu0 %v4761_v24  ;;  %v4811_v24 = vld [vmem:[%s5053_s11 + $0x588] sm:$0xff]  }
  0x8e   : > { %4325 = vmatprep.subr.bf16.mxu0 %v4763_v26  ;;  %v4813_v26 = vld [vmem:[%s5053_s11 + $0x5d0] sm:$0xff]  }
  0x8f   : > { %4346 = vmatpush3.bf16.msra.mxu1 %v4762_v25  ;;  %v4812_v25 = vld [vmem:[%s5053_s11 + $0x550] sm:$0xff]  }
  0x90   : > { %4347 = vmatprep.subr.bf16.mxu1 %v4764_v27  ;;  %v4814_v27 = vld [vmem:[%s5053_s11 + $0x510] sm:$0xff]  }
  0x91   : > { %4326 = vmatpush3.bf16.msra.mxu0 %v4765_v28  ;;  %v4815_v28 = vld [vmem:[%s5053_s11 + $0x590] sm:$0xff]  }
  0x92   : > { %4327 = vmatprep.subr.bf16.mxu0 %v4767_v30  ;;  %v4817_v30 = vld [vmem:[%s5053_s11 + $0x5d8] sm:$0xff]  }
  0x93   : > { %4348 = vmatpush3.bf16.msra.mxu1 %v4766_v29  ;;  %v4816_v29 = vld [vmem:[%s5053_s11 + $0x558] sm:$0xff]  }
  0x94   : > { %4349 = vmatprep.subr.bf16.mxu1 %v4768_v31  ;;  %v4818_v31 = vld [vmem:[%s5053_s11 + $0x518] sm:$0xff]  }
  0x95   : > { %4328 = vmatpush3.bf16.msra.mxu0 %v4769_v32  ;;  %v4819_v32 = vld [vmem:[%s5053_s11 + $0x598] sm:$0xff]  }
  0x96   : > { %4357 = vmatprep.subr.bf16.mxu0 %v4772_v35  ;;  %v4822_v35 = vld [vmem:[%s5053_s11 + $0x520] sm:$0xff]  }
  0x97   : > { %4350 = vmatpush3.bf16.msra.mxu1 %v4770_v33  ;;  %v4820_v33 = vld [vmem:[%s5053_s11 + $0x560] sm:$0xff]  }
  0x98   : > { %3136 = vmatmul.mubr.bf16.vlgmr.msra.gmra.mrb[12].mxu0 %v958_v34  ;;  %4379 = vmatprep.subr.bf16.mxu1 %v4773_v36  ;;  %v4821_v34 = vld [vmem:[%s5053_s11 + $0x5e0] sm:$0xff]  }
  0x99   : > { %4358 = vmatpush3.bf16.msra.mxu0 %v4774_v37  ;;  %3215 = vmatprep.mubr.bf16.mxu0 %v1014_v8  ;;  %v4823_v36 = vld [vmem:[%s5053_s11 + $0x5a0] sm:$0xff]   ;;  %v4824_v37 = vld [vmem:[%s5053_s11 + $0x568] sm:$0xff]  }
  0x9a   : > { %3176 = vmatmul.mubr.bf16.vlgmr.msra.gmra.mrb[12].mxu1 %v974_v39  ;;  %4359 = vmatprep.subr.bf16.mxu0 %v4776_v40  ;;  %v4826_v39 = vld [vmem:[%s5053_s11 + $0x528] sm:$0xff]  }
  0x9b   : > { %4380 = vmatpush3.bf16.msra.mxu1 %v4775_v38  ;;  %3255 = vmatprep.mubr.bf16.mxu1 %v1024_v12  ;;  %v4825_v38 = vld [vmem:[%s5053_s11 + $0x5e8] sm:$0xff]   ;;  %v4861_v12 = vld [vmem:[%s5053_s11 + $0x670] sm:$0xff]  }
  0x9c   : > { %4381 = vmatprep.subr.bf16.mxu1 %v4777_v41  ;;  %v4827_v40 = vld [vmem:[%s5053_s11 + $0x5a8] sm:$0xff]   ;;  %v4828_v41 = vld [vmem:[%s5053_s11 + $0x570] sm:$0xff]  }
  0x9d   : > { %4360 = vmatpush3.bf16.msra.mxu0 %v4778_v43  ;;  %v4829_v43 = vld [vmem:[%s5053_s11 + $0x5f0] sm:$0xff]   ;;  %v4857_v8 = vld [vmem:[%s5053_s11 + $0x668] sm:$0xff]  }
  0x9e   : > { %4361 = vmatprep.subr.bf16.mxu0 %v4780_v45  ;;  %v4831_v45 = vld [vmem:[%s5053_s11 + $0x5b0] sm:$0xff]  }
  0x9f   : > { %4382 = vmatpush3.bf16.msra.mxu1 %v4779_v44  ;;  %v4830_v44 = vld [vmem:[%s5053_s11 + $0x530] sm:$0xff]  }
  0xa0   : > { %4383 = vmatprep.subr.bf16.mxu1 %v4781_v46  ;;  %v4832_v46 = vld [vmem:[%s5053_s11 + $0x578] sm:$0xff]  }
  0xa1   : > { %4362 = vmatpush3.bf16.msra.mxu0 %v4782_v47  ;;  %v4833_v47 = vld [vmem:[%s5053_s11 + $0x5f8] sm:$0xff]  }
  0xa2   : > { %4363 = vmatprep.subr.bf16.mxu0 %v4784_v49  ;;  %v4835_v49 = vld [vmem:[%s5053_s11 + $0x5b8] sm:$0xff]  }
  0xa3   : > { %4384 = vmatpush3.bf16.msra.mxu1 %v4783_v48  ;;  %v4834_v48 = vld [vmem:[%s5053_s11 + $0x538] sm:$0xff]  }
  0xa4   : > { %4385 = vmatprep.subr.bf16.mxu1 %v4785_v50  ;;  %v1007_v50 = vrot.slane %v5241_v5, %v5091_v42  ;;  %v4854_v5 = vld [vmem:[%s5053_s11 + $0x6e0] sm:$0xff]  }
  0xa5   : > { %4364 = vmatpush3.bf16.msra.mxu0 %v4786_v51  ;;  %v4837_v51 = vld [vmem:[%s5053_s11 + $0x640] sm:$0xff]  }
  0xa6   : > { %4365 = vmatprep.subr.bf16.mxu0 %v4788_v53  ;;  %v4839_v53 = vld [vmem:[%s5053_s11 + $0x600] sm:$0xff]  }
  0xa7   : > { %4386 = vmatpush3.bf16.msra.mxu1 %v4787_v52  ;;  %v4838_v52 = vld [vmem:[%s5053_s11 + $0x6c0] sm:$0xff]  }
  0xa8   : > { %4387 = vmatprep.subr.bf16.mxu1 %v4789_v54  ;;  %v4840_v54 = vld [vmem:[%s5053_s11 + $0x680] sm:$0xff]  }
  0xa9   : > { %4366 = vmatpush3.bf16.msra.mxu0 %v4790_v55  ;;  %v1023_v55 = vcombine.high %v1007_v50, %v1007_v50 }
  0xaa   : > { %4367 = vmatprep.subr.bf16.mxu0 %v4792_v57  ;;  %v4842_v57 = vld [vmem:[%s5053_s11 + $0x6c8] sm:$0xff]  }
  0xab   : > { %4388 = vmatpush3.bf16.msra.mxu1 %v4791_v56  ;;  %v4841_v56 = vld [vmem:[%s5053_s11 + $0x648] sm:$0xff]  }
  0xac   : > { %4389 = vmatprep.subr.bf16.mxu1 %v4793_v58  ;;  %v4843_v58 = vld [vmem:[%s5053_s11 + $0x608] sm:$0xff]  }
  0xad   : > { %4368 = vmatpush3.bf16.msra.mxu0 %v4794_v59  ;;  %v4844_v59 = vld [vmem:[%s5053_s11 + $0x688] sm:$0xff]  }
  0xae   : > { %4369 = vmatprep.subr.bf16.mxu0 %v4796_v61  ;;  %v4846_v61 = vld [vmem:[%s5053_s11 + $0x6d0] sm:$0xff]  }
  0xaf   : > { %4390 = vmatpush3.bf16.msra.mxu1 %v4795_v60  ;;  %v4845_v60 = vld [vmem:[%s5053_s11 + $0x650] sm:$0xff]  }
  0xb0   : > { %4391 = vmatprep.subr.bf16.mxu1 %v4797_v63  ;;  %v4848_v63 = vld [vmem:[%s5053_s11 + $0x690] sm:$0xff]  }
  0xb1   : > { %4370 = vmatpush3.bf16.msra.mxu0 %v4798_v2  ;;  %v4851_v2 = vld [vmem:[%s5053_s11 + $0x618] sm:$0xff]  }
  0xb2   : > { %4371 = vmatprep.subr.bf16.mxu0 %v4800_v6  ;;  %v4855_v6 = vld [vmem:[%s5053_s11 + $0x620] sm:$0xff]  }
  0xb3   : > { %4392 = vmatpush3.bf16.msra.mxu1 %v4799_v3  ;;  %v4852_v3 = vld [vmem:[%s5053_s11 + $0x698] sm:$0xff]  }
  0xb4   : > { %4393 = vmatprep.subr.bf16.mxu1 %v4801_v7  ;;  %v4856_v7 = vld [vmem:[%s5053_s11 + $0x6a0] sm:$0xff]  }
  0xb5   : > { %4372 = vmatpush3.bf16.msra.mxu0 %v4802_v10  ;;  %v4859_v10 = vld [vmem:[%s5053_s11 + $0x628] sm:$0xff]  }
  0xb6   : > { %4401 = vmatprep.subr.bf16.mxu0 %v4804_v14  ;;  %v4862_v14 = vld [vmem:[%s5053_s11 + $0x6f0] sm:$0xff]  }
  0xb7   : > { %4394 = vmatpush3.bf16.msra.mxu1 %v4803_v11  ;;  %v4860_v11 = vld [vmem:[%s5053_s11 + $0x6a8] sm:$0xff]  }
  0xb8   : > { %3216 = vmatmul.mubr.bf16.vlgmr.msra.gmra.mrb[16].mxu0 %v1000_v13  ;;  %4423 = vmatprep.subr.bf16.mxu1 %v4805_v15  ;;  %v296_v13 = vld [vmem:[%s5048_s30 + $0x18] sm:$0xff] }
  0xb9   : > { %4402 = vmatpush3.bf16.msra.mxu0 %v4806_v17  ;;  %3295 = vmatprep.mubr.bf16.mxu0 %v1021_v16  ;;  %v1033_v15 = vrot.slane %v296_v13, %v5091_v42  ;;  %v1026_v16 = vcombine.high %v296_v13, %v296_v13  ;;  %v4863_v17 = vld [vmem:[%s5053_s11 + $0x630] sm:$0xff]   ;;  %v4900_v13 = vld [vmem:[%s5053_s11 + $0x7b8] sm:$0xff]  }
  0xba   : > { %3256 = vmatmul.mubr.bf16.vlgmr.msra.gmra.mrb[16].mxu1 %v1022_v19  ;;  %4403 = vmatprep.subr.bf16.mxu0 %v4808_v20 }
  0xbb   : > { %4424 = vmatpush3.bf16.msra.mxu1 %v4807_v18  ;;  %3335 = vmatprep.mubr.bf16.mxu1 %v1025_v22  ;;  %v4865_v18 = vld [vmem:[%s5053_s11 + $0x678] sm:$0xff]   ;;  %v1041_v19 = vcombine.high %v1033_v15, %v1033_v15  ;;  %v5317_v20 = vrot.slane %v1026_v16, %v5091_v42 }
  0xbc   : > { %4425 = vmatprep.subr.bf16.mxu1 %v4809_v21  ;;  %v4864_v21 = vld [vmem:[%s5053_s11 + $0x6b0] sm:$0xff]   ;;  %v4866_v22 = vld [vmem:[%s5053_s11 + $0x6f8] sm:$0xff]  }
  0xbd   : > { %4404 = vmatpush3.bf16.msra.mxu0 %v4810_v23  ;;  %v1063_v23 = vrot.slane %v1041_v19, %v5091_v42  ;;  %v4907_v19 = vld [vmem:[%s5053_s11 + $0x8c8] sm:$0xff]  }
  0xbe   : > { %4405 = vmatprep.subr.bf16.mxu0 %v4812_v25  ;;  %v4867_v25 = vld [vmem:[%s5053_s11 + $0x638] sm:$0xff]  }
  0xbf   : > { %4426 = vmatpush3.bf16.msra.mxu1 %v4811_v24  ;;  %v1042_v24 = vcombine.high %v5317_v20, %v5317_v20 }
  0xc0   : > { %4427 = vmatprep.subr.bf16.mxu1 %v4813_v26  ;;  %v1073_v26 = vcombine.high %v1063_v23, %v1063_v23 }
  0xc1   : > { %4406 = vmatpush3.bf16.msra.mxu0 %v4814_v27  ;;  %v1049_v27 = vrot.slane %v1033_v15, %v5091_v42  ;;  %v4904_v15 = vld [vmem:[%s5053_s11 + $0x800] sm:$0xff]  }
  0xc2   : > { %4407 = vmatprep.subr.bf16.mxu0 %v4816_v29  ;;  %v4868_v29 = vld [vmem:[%s5053_s11 + $0x6b8] sm:$0xff]  }
  0xc3   : > { %4428 = vmatpush3.bf16.msra.mxu1 %v4815_v28  ;;  %v4869_v28 = vld [vmem:[%s5053_s11 + $0x740] sm:$0xff]  }
  0xc4   : > { %4429 = vmatprep.subr.bf16.mxu1 %v4817_v30  ;;  %v1070_v30 = vrot.slane %v1042_v24, %v5091_v42  ;;  %v4912_v24 = vld [vmem:[%s5053_s11 + $0x810] sm:$0xff]  }
  0xc5   : > { %4408 = vmatpush3.bf16.msra.mxu0 %v4818_v31  ;;  %v4870_v31 = vld [vmem:[%s5053_s11 + $0x7c0] sm:$0xff]  }
  0xc6   : > { %4409 = vmatprep.subr.bf16.mxu0 %v4820_v33  ;;  %v1071_v33 = vcombine.high %v1049_v27, %v1049_v27 }
  0xc7   : > { %4430 = vmatpush3.bf16.msra.mxu1 %v4819_v32  ;;  %v4871_v32 = vld [vmem:[%s5053_s11 + $0x700] sm:$0xff]  }
  0xc8   : > { %4431 = vmatprep.subr.bf16.mxu1 %v4821_v34  ;;  %v4873_v34 = vld [vmem:[%s5053_s11 + $0x748] sm:$0xff]  }
  0xc9   : > { %4410 = vmatpush3.bf16.msra.mxu0 %v4822_v35  ;;  %v4872_v35 = vld [vmem:[%s5053_s11 + $0x780] sm:$0xff]  }
  0xca   : > { %4411 = vmatprep.subr.bf16.mxu0 %v4824_v37  ;;  %v4874_v37 = vld [vmem:[%s5053_s11 + $0x7c8] sm:$0xff]  }
  0xcb   : > { %4432 = vmatpush3.bf16.msra.mxu1 %v4823_v36  ;;  %v1074_v36 = vcombine.high %v1070_v30, %v1070_v30 }
  0xcc   : > { %4433 = vmatprep.subr.bf16.mxu1 %v4825_v38  ;;  %v4875_v38 = vld [vmem:[%s5053_s11 + $0x708] sm:$0xff]  }
  0xcd   : > { %4412 = vmatpush3.bf16.msra.mxu0 %v4826_v39  ;;  %v4877_v39 = vld [vmem:[%s5053_s11 + $0x750] sm:$0xff]  }
  0xce   : > { %4413 = vmatprep.subr.bf16.mxu0 %v4828_v41  ;;  %v4878_v41 = vld [vmem:[%s5053_s11 + $0x7d0] sm:$0xff]  }
  0xcf   : > { %4434 = vmatpush3.bf16.msra.mxu1 %v4827_v40  ;;  %v4876_v40 = vld [vmem:[%s5053_s11 + $0x788] sm:$0xff]  }
  0xd0   : > { %4435 = vmatprep.subr.bf16.mxu1 %v4829_v43  ;;  %v4879_v43 = vld [vmem:[%s5053_s11 + $0x710] sm:$0xff]  }
  0xd1   : > { %4414 = vmatpush3.bf16.msra.mxu0 %v4830_v44  ;;  %v4881_v44 = vld [vmem:[%s5053_s11 + $0x758] sm:$0xff]  }
  0xd2   : > { %4415 = vmatprep.subr.bf16.mxu0 %v4832_v46  ;;  %v4882_v46 = vld [vmem:[%s5053_s11 + $0x7d8] sm:$0xff]  }
  0xd3   : > { %4436 = vmatpush3.bf16.msra.mxu1 %v4831_v45  ;;  %v4880_v45 = vld [vmem:[%s5053_s11 + $0x790] sm:$0xff]  }
  0xd4   : > { %4437 = vmatprep.subr.bf16.mxu1 %v4833_v47  ;;  %v4883_v47 = vld [vmem:[%s5053_s11 + $0x718] sm:$0xff]  }
  0xd5   : > { %4416 = vmatpush3.bf16.msra.mxu0 %v4834_v48  ;;  %v4885_v48 = vld [vmem:[%s5053_s11 + $0x760] sm:$0xff]  }
  0xd6   : > { %4445 = vmatprep.subr.bf16.mxu0 %v4837_v51  ;;  %v4887_v51 = vld [vmem:[%s5053_s11 + $0x720] sm:$0xff]  }
  0xd7   : > { %4438 = vmatpush3.bf16.msra.mxu1 %v4835_v49  ;;  %v4884_v49 = vld [vmem:[%s5053_s11 + $0x798] sm:$0xff]  }
  0xd8   : > { %3296 = vmatmul.mubr.bf16.vlgmr.msra.gmra.mrb[20].mxu0 %v1007_v50  ;;  %4467 = vmatprep.subr.bf16.mxu1 %v4838_v52  ;;  %v4886_v50 = vld [vmem:[%s5053_s11 + $0x7e0] sm:$0xff]   ;;  %v4889_v52 = vld [vmem:[%s5053_s11 + $0x768] sm:$0xff]  }
  0xd9   : > { %4446 = vmatpush3.bf16.msra.mxu0 %v4839_v53  ;;  %3375 = vmatprep.mubr.bf16.mxu0 %v1063_v23  ;;  %v4888_v53 = vld [vmem:[%s5053_s11 + $0x7a0] sm:$0xff]   ;;  %v4911_v23 = vld [vmem:[%s5053_s11 + $0x8d0] sm:$0xff]  }
  0xda   : > { %3336 = vmatmul.mubr.bf16.vlgmr.msra.gmra.mrb[20].mxu1 %v1023_v55  ;;  %4447 = vmatprep.subr.bf16.mxu0 %v4841_v56  ;;  %v4891_v55 = vld [vmem:[%s5053_s11 + $0x728] sm:$0xff]   ;;  %v4893_v56 = vld [vmem:[%s5053_s11 + $0x770] sm:$0xff]  }
  0xdb   : > { %4468 = vmatpush3.bf16.msra.mxu1 %v4840_v54  ;;  %3415 = vmatprep.mubr.bf16.mxu1 %v1073_v26  ;;  %v4890_v54 = vld [vmem:[%s5053_s11 + $0x7e8] sm:$0xff]   ;;  %v4913_v26 = vld [vmem:[%s5053_s11 + $0x890] sm:$0xff]  }
  0xdc   : > { %4469 = vmatprep.subr.bf16.mxu1 %v4842_v57 }
  0xdd   : > { %4448 = vmatpush3.bf16.msra.mxu0 %v4843_v58  ;;  %v4892_v58 = vld [vmem:[%s5053_s11 + $0x7a8] sm:$0xff]  }
  0xde   : > { %4449 = vmatprep.subr.bf16.mxu0 %v4845_v60  ;;  %v4894_v60 = vld [vmem:[%s5053_s11 + $0x7f0] sm:$0xff]  }
  0xdf   : > { %4470 = vmatpush3.bf16.msra.mxu1 %v4844_v59 }
  0xe0   : > { %4471 = vmatprep.subr.bf16.mxu1 %v4846_v61 }
  0xe1   : > { %4450 = vmatpush3.bf16.msra.mxu0 %v4847_v62 }
  0xe2   : > { %4451 = vmatprep.subr.bf16.mxu0 %v4849_v0  ;;  %v4895_v0 = vld [vmem:[%s5053_s11 + $0x730] sm:$0xff]  }
  0xe3   : > { %4472 = vmatpush3.bf16.msra.mxu1 %v4848_v63 }
  0xe4   : > { %4473 = vmatprep.subr.bf16.mxu1 %v4850_v1  ;;  %v4897_v1 = vld [vmem:[%s5053_s11 + $0x778] sm:$0xff]  }
  0xe5   : > { %4452 = vmatpush3.bf16.msra.mxu0 %v4851_v2 }
  0xe6   : > { %4453 = vmatprep.subr.bf16.mxu0 %v4853_v4 }
  0xe7   : > { %4474 = vmatpush3.bf16.msra.mxu1 %v4852_v3 }
  0xe8   : > { %4475 = vmatprep.subr.bf16.mxu1 %v4854_v5 }
  0xe9   : > { %4454 = vmatpush3.bf16.msra.mxu0 %v4855_v6  ;;  %v4896_v6 = vld [vmem:[%s5053_s11 + $0x7b0] sm:$0xff]  }
  0xea   : > { %4455 = vmatprep.subr.bf16.mxu0 %v4857_v8  ;;  %v4898_v8 = vld [vmem:[%s5053_s11 + $0x7f8] sm:$0xff]  }
  0xeb   : > { %4476 = vmatpush3.bf16.msra.mxu1 %v4856_v7 }
  0xec   : > { %4477 = vmatprep.subr.bf16.mxu1 %v4858_v9 }
  0xed   : > { %4456 = vmatpush3.bf16.msra.mxu0 %v4859_v10  ;;  %v4899_v10 = vld [vmem:[%s5053_s11 + $0x738] sm:$0xff]  }
  0xee   : > { %4457 = vmatprep.subr.bf16.mxu0 %v4861_v12  ;;  %v4902_v12 = vld [vmem:[%s5053_s11 + $0x840] sm:$0xff]  }
  0xef   : > { %4478 = vmatpush3.bf16.msra.mxu1 %v4860_v11  ;;  %v1056_v11 = vrot.slane %v5317_v20, %v5091_v42  ;;  %v4908_v20 = vld [vmem:[%s5053_s11 + $0x808] sm:$0xff]  }
  0xf0   : > { %4479 = vmatprep.subr.bf16.mxu1 %v4862_v14  ;;  %v4903_v14 = vld [vmem:[%s5053_s11 + $0x8c0] sm:$0xff]  }
  0xf1   : > { %4458 = vmatpush3.bf16.msra.mxu0 %v4863_v17  ;;  %v1072_v16 = vcombine.high %v1056_v11, %v1056_v11  ;;  %v4906_v17 = vld [vmem:[%s5053_s11 + $0x848] sm:$0xff]  }
  0xf2   : > { %4459 = vmatprep.subr.bf16.mxu0 %v4865_v18  ;;  %v4905_v18 = vld [vmem:[%s5053_s11 + $0x880] sm:$0xff]  }
  0xf3   : > { %4480 = vmatpush3.bf16.msra.mxu1 %v4864_v21  ;;  %v4910_v21 = vld [vmem:[%s5053_s11 + $0x850] sm:$0xff]  }
  0xf4   : > { %4481 = vmatprep.subr.bf16.mxu1 %v4866_v22  ;;  %v4909_v22 = vld [vmem:[%s5053_s11 + $0x888] sm:$0xff]  }
  0xf5   : > { %4460 = vmatpush3.bf16.msra.mxu0 %v4867_v25  ;;  %v4914_v25 = vld [vmem:[%s5053_s11 + $0x858] sm:$0xff]  }
  0xf6   : > { %4489 = vmatprep.subr.bf16.mxu0 %v4869_v28  ;;  %v4916_v28 = vld [vmem:[%s5053_s11 + $0x818] sm:$0xff]  }
  0xf7   : > { %4482 = vmatpush3.bf16.msra.mxu1 %v4868_v29  ;;  %v4918_v29 = vld [vmem:[%s5053_s11 + $0x860] sm:$0xff]  }
  0xf8   : > { %3376 = vmatmul.mubr.bf16.vlgmr.msra.gmra.mrb[24].mxu0 %v1049_v27  ;;  %4511 = vmatprep.subr.bf16.mxu1 %v4870_v31  ;;  %v4915_v27 = vld [vmem:[%s5053_s11 + $0x8d8] sm:$0xff]   ;;  %v4919_v31 = vld [vmem:[%s5053_s11 + $0x8e0] sm:$0xff]  }
  0xf9   : > { %4490 = vmatpush3.bf16.msra.mxu0 %v4871_v32  ;;  %3455 = vmatprep.mubr.bf16.mxu0 %v1070_v30  ;;  %v4917_v30 = vld [vmem:[%s5053_s11 + $0x898] sm:$0xff]   ;;  %v4920_v32 = vld [vmem:[%s5053_s11 + $0x820] sm:$0xff]  }
  0xfa   : > { %3416 = vmatmul.mubr.bf16.vlgmr.msra.gmra.mrb[24].mxu1 %v1071_v33  ;;  %4491 = vmatprep.subr.bf16.mxu0 %v4873_v34  ;;  %v4922_v33 = vld [vmem:[%s5053_s11 + $0x868] sm:$0xff]   ;;  %v4921_v34 = vld [vmem:[%s5053_s11 + $0x8a0] sm:$0xff]  }
  0xfb   : > { %4512 = vmatpush3.bf16.msra.mxu1 %v4872_v35  ;;  %3495 = vmatprep.mubr.bf16.mxu1 %v1074_v36  ;;  %v4923_v35 = vld [vmem:[%s5053_s11 + $0x8e8] sm:$0xff]  }
  0xfc   : > { %4513 = vmatprep.subr.bf16.mxu1 %v4874_v37  ;;  %v4924_v36 = vld [vmem:[%s5053_s11 + $0x828] sm:$0xff]   ;;  %v4926_v37 = vld [vmem:[%s5053_s11 + $0x870] sm:$0xff]  }
  0xfd   : > { %4492 = vmatpush3.bf16.msra.mxu0 %v4875_v38 }
  0xfe   : > { %4493 = vmatprep.subr.bf16.mxu0 %v4877_v39  ;;  %v4925_v39 = vld [vmem:[%s5053_s11 + $0x8a8] sm:$0xff]  }
  0xff   : > { %4514 = vmatpush3.bf16.msra.mxu1 %v4876_v40 }
 0x100   : > { %4515 = vmatprep.subr.bf16.mxu1 %v4878_v41  ;;  %v4927_v41 = vld [vmem:[%s5053_s11 + $0x8f0] sm:$0xff]  }
 0x101   : > { %4494 = vmatpush3.bf16.msra.mxu0 %v4879_v43  ;;  %v3871_v43 = vld.sshfl [vmem:[%s5048_s30 + $0x20] sm:$0x33 pattern:$0x75316420] }
 0x102   : > { %4495 = vmatprep.subr.bf16.mxu0 %v4881_v44 }
 0x103   : > { %4516 = vmatpush3.bf16.msra.mxu1 %v4880_v45 }
 0x104   : > { %4517 = vmatprep.subr.bf16.mxu1 %v4882_v46 }
 0x105   : > { %4496 = vmatpush3.bf16.msra.mxu0 %v4883_v47  ;;  %v4928_v47 = vld [vmem:[%s5053_s11 + $0x830] sm:$0xff]  }
 0x106   : > { %4497 = vmatprep.subr.bf16.mxu0 %v4885_v48  ;;  %v1082_v48 = vcombine.high %v3871_v43, %v3871_v43 }
 0x107   : > { %4518 = vmatpush3.bf16.msra.mxu1 %v4884_v49 }
 0x108   : > { %4519 = vmatprep.subr.bf16.mxu1 %v4886_v50 }
 0x109   : > { %4498 = vmatpush3.bf16.msra.mxu0 %v4887_v51  ;;  %v4930_v51 = vld [vmem:[%s5053_s11 + $0x878] sm:$0xff]  }
 0x10a   : > { %4499 = vmatprep.subr.bf16.mxu0 %v4889_v52 }
 0x10b   : > { %4520 = vmatpush3.bf16.msra.mxu1 %v4888_v53  ;;  %v4197_v57 = vpop.f32.mrb[0].mxu0 }
 0x10c   : > { %v4198_v59 = vpop.f32.mrb[1].mxu0  ;;  %4521 = vmatprep.subr.bf16.mxu1 %v4890_v54  ;;  %v4219_v61 = vpop.f32.mrb[0].mxu1 }
 0x10d   : > { %v4199_v62 = vadd.f32 %v4198_v59, %v4197_v57  ;;  %v4200_v63 = vpop.f32.mrb[2].mxu0  ;;  %4500 = vmatpush3.bf16.msra.mxu0 %v4891_v55  ;;  %v4220_v2 = vpop.f32.mrb[1].mxu1  ;;  %v4929_v55 = vld [vmem:[%s5053_s11 + $0x8b0] sm:$0xff]  }
 0x10e   : > { %v4201_v3 = vpop.f32.mrb[3].mxu0  ;;  %4501 = vmatprep.subr.bf16.mxu0 %v4893_v56  ;;  %v4221_v4 = vadd.f32 %v4220_v2, %v4219_v61  ;;  %v4222_v5 = vpop.f32.mrb[2].mxu1  ;;  %v1096_v56 = vrot.slane %v1082_v48, %v5091_v42  ;;  %v4933_v63 = vld [vmem:[%s5053_s11 + $0x8b8] sm:$0xff]  }
 0x10f   : > { %4522 = vmatpush3.bf16.msra.mxu1 %v4892_v58  ;;  %v4223_v7 = vpop.f32.mrb[3].mxu1  ;;  %v4931_v58 = vld [vmem:[%s5053_s11 + $0x8f8] sm:$0xff]  }
 0x110   : > { %4523 = vmatprep.subr.bf16.mxu1 %v4894_v60  ;;  %v5358_v9 = vadd.f32 %v4221_v4, %v4199_v62  ;;  %v4932_v60 = vld [vmem:[%s5053_s11 + $0x838] sm:$0xff]   ;;  %v1098_v61 = vcombine.high %v1096_v56, %v1096_v56  ;;  %v1089_v62 = vrot.slane %v3871_v43, %v5091_v42 }
 0x111   : > { %4502 = vmatpush3.bf16.msra.mxu0 %v4895_v0 }
 0x112   : > { %4503 = vmatprep.subr.bf16.mxu0 %v4897_v1  ;;  %v1097_v0 = vcombine.high %v1089_v62, %v1089_v62 }
 0x113   : > { %4524 = vmatpush3.bf16.msra.mxu1 %v4896_v6 }
 0x114   : > { %4525 = vmatprep.subr.bf16.mxu1 %v4898_v8 }
 0x115   : > { %4504 = vmatpush3.bf16.msra.mxu0 %v4899_v10 }
 0x116   : > { %4533 = vmatprep.subr.bf16.mxu0 %v4902_v12 }
 0x117   : > { %4526 = vmatpush3.bf16.msra.mxu1 %v4900_v13 }
 0x118   : > { %3456 = vmatmul.mubr.bf16.vlgmr.msra.gmra.mrb[28].mxu0 %v1056_v11  ;;  %4555 = vmatprep.subr.bf16.mxu1 %v4903_v14 }
 0x119   : > { %4534 = vmatpush3.bf16.msra.mxu0 %v4904_v15  ;;  %3535 = vmatprep.mubr.bf16.mxu0 %v1096_v56 }
 0x11a   : > { %3496 = vmatmul.mubr.bf16.vlgmr.msra.gmra.mrb[28].mxu1 %v1072_v16  ;;  %4535 = vmatprep.subr.bf16.mxu0 %v4906_v17 }
 0x11b   : > { %4556 = vmatpush3.bf16.msra.mxu1 %v4905_v18  ;;  %3575 = vmatprep.mubr.bf16.mxu1 %v1098_v61 }
 0x11c   : > { %4557 = vmatprep.subr.bf16.mxu1 %v4907_v19 }
 0x11d   : > { %4536 = vmatpush3.bf16.msra.mxu0 %v4908_v20 }
 0x11e   : > { %4537 = vmatprep.subr.bf16.mxu0 %v4910_v21 }
 0x11f   : > { %4558 = vmatpush3.bf16.msra.mxu1 %v4909_v22 }
 0x120   : > { %4559 = vmatprep.subr.bf16.mxu1 %v4911_v23 }
 0x121   : > { %4538 = vmatpush3.bf16.msra.mxu0 %v4912_v24 }
 0x122   : > { %4539 = vmatprep.subr.bf16.mxu0 %v4914_v25 }
 0x123   : > { %4560 = vmatpush3.bf16.msra.mxu1 %v4913_v26 }
 0x124   : > { %4561 = vmatprep.subr.bf16.mxu1 %v4915_v27 }
 0x125   : > { %4540 = vmatpush3.bf16.msra.mxu0 %v4916_v28 }
 0x126   : > { %4541 = vmatprep.subr.bf16.mxu0 %v4918_v29 }
 0x127   : > { %4562 = vmatpush3.bf16.msra.mxu1 %v4917_v30 }
 0x128   : > { %4563 = vmatprep.subr.bf16.mxu1 %v4919_v31 }
 0x129   : > { %4542 = vmatpush3.bf16.msra.mxu0 %v4920_v32 }
 0x12a   : > { %4543 = vmatprep.subr.bf16.mxu0 %v4922_v33 }
 0x12b   : > { %4564 = vmatpush3.bf16.msra.mxu1 %v4921_v34  ;;  %v4241_v38 = vpop.f32.mrb[4].mxu0 }
 0x12c   : > { %v4242_v40 = vpop.f32.mrb[5].mxu0  ;;  %4565 = vmatprep.subr.bf16.mxu1 %v4923_v35  ;;  %v4263_v44 = vpop.f32.mrb[4].mxu1 }
 0x12d   : > { %v4243_v45 = vadd.f32 %v4242_v40, %v4241_v38  ;;  %v4244_v46 = vpop.f32.mrb[6].mxu0  ;;  %4544 = vmatpush3.bf16.msra.mxu0 %v4924_v36  ;;  %v4264_v49 = vpop.f32.mrb[5].mxu1 }
 0x12e   : > { %v4245_v50 = vpop.f32.mrb[7].mxu0  ;;  %4545 = vmatprep.subr.bf16.mxu0 %v4926_v37  ;;  %v4265_v53 = vadd.f32 %v4264_v49, %v4263_v44  ;;  %v4266_v54 = vpop.f32.mrb[6].mxu1 }
 0x12f   : > { %v2978_v52 = vadd.f32 %v4243_v45, %v5358_v9  ;;  %4566 = vmatpush3.bf16.msra.mxu1 %v4925_v39  ;;  %v4267_v57 = vpop.f32.mrb[7].mxu1 }
 0x130   : > { %4567 = vmatprep.subr.bf16.mxu1 %v4927_v41 }
 0x131   : > { %v3018_v59 = vadd.f32 %v4265_v53, %v2978_v52  ;;  %4546 = vmatpush3.bf16.msra.mxu0 %v4928_v47 }
 0x132   : > { %4547 = vmatprep.subr.bf16.mxu0 %v4930_v51 }
 0x133   : > { %4568 = vmatpush3.bf16.msra.mxu1 %v4929_v55 }
 0x134   : > { %4569 = vmatprep.subr.bf16.mxu1 %v4931_v58 }
 0x135   : > { %4548 = vmatpush3.bf16.msra.mxu0 %v4932_v60 }
 0x137   : > { %4570 = vmatpush3.bf16.msra.mxu1 %v4933_v63 }
 0x138   : > { %3536 = vmatmul.mubr.bf16.vlgmr.msra.gmra.mrb[32].mxu0 %v1089_v62 }
 0x13a   : > { %3576 = vmatmul.mubr.bf16.vlgmr.msra.gmra.mrb[32].mxu1 %v1097_v0 }
 0x14b   : > { %v4285_v1 = vpop.f32.mrb[8].mxu0 }
 0x14c   : > { %v4286_v2 = vpop.f32.mrb[9].mxu0 }
 0x14d   : > { %v4307_v3 = vpop.f32.mrb[8].mxu1  ;;  %v4287_v4 = vadd.f32 %v4286_v2, %v4285_v1  ;;  %v4288_v5 = vpop.f32.mrb[10].mxu0 }
 0x14e   : > { %v4308_v6 = vpop.f32.mrb[9].mxu1  ;;  %v4289_v7 = vpop.f32.mrb[11].mxu0 }
 0x14f   : > { %v3058_v8 = vadd.f32 %v4287_v4, %v3018_v59  ;;  %v4309_v9 = vadd.f32 %v4308_v6, %v4307_v3  ;;  %v4310_v10 = vpop.f32.mrb[10].mxu1 }
 0x150   : > { %v4311_v42 = vpop.f32.mrb[11].mxu1 }
 0x151   : > { %v3098_v11 = vadd.f32 %v4309_v9, %v3058_v8 }
 0x16b   : > { %v4329_v12 = vpop.f32.mrb[12].mxu0 }
 0x16c   : > { %v4330_v13 = vpop.f32.mrb[13].mxu0 }
 0x16d   : > { %v4351_v14 = vpop.f32.mrb[12].mxu1  ;;  %v4331_v15 = vadd.f32 %v4330_v13, %v4329_v12  ;;  %v4332_v16 = vpop.f32.mrb[14].mxu0 }
 0x16e   : > { %v4352_v17 = vpop.f32.mrb[13].mxu1  ;;  %v4333_v18 = vpop.f32.mrb[15].mxu0 }
 0x16f   : > { %v3138_v19 = vadd.f32 %v4331_v15, %v3098_v11  ;;  %v4353_v20 = vadd.f32 %v4352_v17, %v4351_v14  ;;  %v4354_v21 = vpop.f32.mrb[14].mxu1  ;;  %v292_v18 = vld [vmem:[#allocation2] sm:$0x3] }
 0x170   : > { %v4355_v22 = vpop.f32.mrb[15].mxu1 }
 0x171   : > { %v3178_v23 = vadd.f32 %v4353_v20, %v3138_v19  ;;  %v4934_v22 = vld [vmem:[%s5478_s3] sm:$0xff] (!%p4160_p6)  }
 0x18b   : > { %v4373_v24 = vpop.f32.mrb[16].mxu0 }
 0x18c   : > { %v4374_v25 = vpop.f32.mrb[17].mxu0 }
 0x18d   : > { %v4395_v26 = vpop.f32.mrb[16].mxu1  ;;  %v4375_v27 = vadd.f32 %v4374_v25, %v4373_v24  ;;  %v4376_v28 = vpop.f32.mrb[18].mxu0  ;;  %v4935_v24 = vld [vmem:[%s5478_s3 + $0x8] sm:$0xff] (!%p4160_p6)   ;;  %v4936_v25 = vld [vmem:[%s5478_s3 + $0x10] sm:$0xff] (!%p4160_p6)  }
 0x18e   : > { %v4396_v29 = vpop.f32.mrb[17].mxu1  ;;  %v4377_v30 = vpop.f32.mrb[19].mxu0  ;;  %v4943_v28 = vld [vmem:[%s5480_s5 + $0x8] sm:$0xff] (!%p4160_p6)  }
 0x18f   : > { %v3218_v31 = vadd.f32 %v4375_v27, %v3178_v23  ;;  %v4397_v32 = vadd.f32 %v4396_v29, %v4395_v26  ;;  %v4398_v33 = vpop.f32.mrb[18].mxu1  ;;  %v4990_v23 = vmov (!%p4160_p6), 0.0   ;;  %v4942_v26 = vld [vmem:[%s5480_s5] sm:$0xff] (!%p4160_p6)   ;;  %v4937_v27 = vld [vmem:[%s5478_s3 + $0x18] sm:$0xff] (!%p4160_p6)   ;;  %v4939_v30 = vld [vmem:[%s5478_s3 + $0x28] sm:$0xff] (!%p4160_p6)  }
 0x190   : > { %v4399_v34 = vpop.f32.mrb[19].mxu1  ;;  %4591 = vmatprep.subr.bf16.mxu0 (!%p4160_p6), %v4990_v23  ;;  %4611 = vmatprep.subr.bf16.mxu1 (!%p4160_p6), %v4990_v23  ;;  %v4938_v29 = vld [vmem:[%s5478_s3 + $0x20] sm:$0xff] (!%p4160_p6)  }
 0x191   : > { %v3258_v35 = vadd.f32 %v4397_v32, %v3218_v31  ;;  %4592 = vmatpush3.bf16.msra.mxu0 (!%p4160_p6), %v4934_v22  ;;  %4607 = vmatprep.mubr.msk.bf16.mxu0 (!%p4160_p6), %vm4991_vm0, %v4990_v23  ;;  %v4161_v32 = vld [vmem:[%s5477_s2] ss:$0 sm:$0xff] (!%p4160_p6)  ;;  %v4940_v34 = vld [vmem:[%s5478_s3 + $0x30] sm:$0xff] (!%p4160_p6)  }
 0x192   : > { %4593 = vmatprep.subr.bf16.mxu0 (!%p4160_p6), %v4990_v23  ;;  %4619 = vmatprep.mubr.msk.bf16.mxu1 (!%p4160_p6), %vm4991_vm0, %v4990_v23 }
 0x193   : > { %4612 = vmatpush3.bf16.msra.mxu1 (!%p4160_p6), %v4942_v26 }
 0x194   : > { %4613 = vmatprep.subr.bf16.mxu1 (!%p4160_p6), %v4990_v23 }
 0x195   : > { %4594 = vmatpush3.bf16.msra.mxu0 (!%p4160_p6), %v4935_v24 }
 0x196   : > { %4595 = vmatprep.subr.bf16.mxu0 (!%p4160_p6), %v4990_v23 }
 0x197   : > { %4614 = vmatpush3.bf16.msra.mxu1 (!%p4160_p6), %v4943_v28 }
 0x198   : > { %4615 = vmatprep.subr.bf16.mxu1 (!%p4160_p6), %v4990_v23 }
 0x199   : > { %4596 = vmatpush3.bf16.msra.mxu0 (!%p4160_p6), %v4936_v25 }
 0x19a   : > { %4597 = vmatprep.subr.bf16.mxu0 (!%p4160_p6), %v4990_v23 }
 0x19d   : > { %4598 = vmatpush3.bf16.msra.mxu0 (!%p4160_p6), %v4937_v27 }
 0x19e   : > { %4599 = vmatprep.subr.bf16.mxu0 (!%p4160_p6), %v4990_v23 }
 0x1a1   : > { %4600 = vmatpush3.bf16.msra.mxu0 (!%p4160_p6), %v4938_v29 }
 0x1a2   : > { %4601 = vmatprep.subr.bf16.mxu0 (!%p4160_p6), %v4990_v23 }
 0x1a5   : > { %4602 = vmatpush3.bf16.msra.mxu0 (!%p4160_p6), %v4939_v30 }
 0x1a6   : > { %4603 = vmatprep.subr.bf16.mxu0 (!%p4160_p6), %v4990_v23 }
 0x1a9   : > { %4604 = vmatpush3.bf16.msra.mxu0 (!%p4160_p6), %v4940_v34 }
 0x1aa   : > { %4605 = vmatprep.subr.bf16.mxu0 (!%p4160_p6), %v4990_v23 }
 0x1ab   : > { %v4417_v36 = vpop.f32.mrb[20].mxu0 }
 0x1ac   : > { %v4418_v37 = vpop.f32.mrb[21].mxu0 }
 0x1ad   : > { %v4439_v38 = vpop.f32.mrb[20].mxu1  ;;  %v4419_v39 = vadd.f32 %v4418_v37, %v4417_v36  ;;  %v4420_v40 = vpop.f32.mrb[22].mxu0  ;;  %v4941_v36 = vld [vmem:[%s5478_s3 + $0x38] sm:$0xff] (!%p4160_p6)  }
 0x1ae   : > { %v4440_v41 = vpop.f32.mrb[21].mxu1  ;;  %v4421_v43 = vpop.f32.mrb[23].mxu0  ;;  %4606 = vmatpush3.bf16.msra.mxu0 (!%p4160_p6), %v4941_v36  ;;  %v4162_v40 = vld [vmem:[%s5479_s4] ss:$0 sm:$0xff] (!%p4160_p6) }
 0x1af   : > { %v3298_v44 = vadd.f32 %v4419_v39, %v3258_v35  ;;  %v4441_v45 = vadd.f32 %v4440_v41, %v4439_v38  ;;  %v4442_v46 = vpop.f32.mrb[22].mxu1  ;;  %v4944_v38 = vld [vmem:[%s5480_s5 + $0x10] sm:$0xff] (!%p4160_p6)   ;;  %v4945_v39 = vld [vmem:[%s5480_s5 + $0x18] sm:$0xff] (!%p4160_p6)  }
 0x1b0   : > { %v4443_v47 = vpop.f32.mrb[23].mxu1  ;;  %4616 = vmatpush3.bf16.msra.mxu1 (!%p4160_p6), %v4944_v38 }
 0x1b1   : > { %v3338_v48 = vadd.f32 %v4441_v45, %v3298_v44  ;;  %4617 = vmatprep.subr.bf16.mxu1 (!%p4160_p6), %v4990_v23 }
 0x1b4   : > { %4618 = vmatpush3.bf16.msra.mxu1 (!%p4160_p6), %v4945_v39 }
 0x1cb   : > { %v4461_v49 = vpop.f32.mrb[24].mxu0 }
 0x1cc   : > { %v4462_v50 = vpop.f32.mrb[25].mxu0 }
 0x1cd   : > { %v4483_v51 = vpop.f32.mrb[24].mxu1  ;;  %v4463_v52 = vadd.f32 %v4462_v50, %v4461_v49  ;;  %v4464_v53 = vpop.f32.mrb[26].mxu0  ;;  %v4171_v49 = vld [vmem:[%s5481_s6] ss:$0 sm:$0xff] (!%p4160_p6) }
 0x1ce   : > { %v4484_v54 = vpop.f32.mrb[25].mxu1  ;;  %v4465_v55 = vpop.f32.mrb[27].mxu0 }
 0x1cf   : > { %v3378_v56 = vadd.f32 %v4463_v52, %v3338_v48  ;;  %v4485_v57 = vadd.f32 %v4484_v54, %v4483_v51  ;;  %v4486_v58 = vpop.f32.mrb[26].mxu1 }
 0x1d0   : > { %v4487_v59 = vpop.f32.mrb[27].mxu1 }
 0x1d1   : > { %v3418_v60 = vadd.f32 %v4485_v57, %v3378_v56 }
 0x1eb   : > { %v4505_v61 = vpop.f32.mrb[28].mxu0 }
 0x1ec   : > { %v4506_v62 = vpop.f32.mrb[29].mxu0 }
 0x1ed   : > { %v4527_v63 = vpop.f32.mrb[28].mxu1  ;;  %v4507_v0 = vadd.f32 %v4506_v62, %v4505_v61  ;;  %v4508_v1 = vpop.f32.mrb[30].mxu0 }
 0x1ee   : > { %v4528_v2 = vpop.f32.mrb[29].mxu1  ;;  %v4509_v3 = vpop.f32.mrb[31].mxu0 }
 0x1ef   : > { %v3458_v4 = vadd.f32 %v4507_v0, %v3418_v60  ;;  %v4529_v5 = vadd.f32 %v4528_v2, %v4527_v63  ;;  %v4530_v6 = vpop.f32.mrb[30].mxu1 }
 0x1f0   : > { %v4531_v7 = vpop.f32.mrb[31].mxu1 }
 0x1f1   : > { %v3498_v8 = vadd.f32 %v4529_v5, %v3458_v4 }
 0x20b   : > { %v4549_v9 = vpop.f32.mrb[32].mxu0 }
 0x20c   : > { %v4550_v10 = vpop.f32.mrb[33].mxu0 }
 0x20d   : > { %v4571_v42 = vpop.f32.mrb[32].mxu1  ;;  %v4551_v11 = vadd.f32 %v4550_v10, %v4549_v9  ;;  %v4552_v12 = vpop.f32.mrb[34].mxu0 }
 0x20e   : > { %v4572_v13 = vpop.f32.mrb[33].mxu1  ;;  %v4553_v14 = vpop.f32.mrb[35].mxu0 }
 0x20f   : > { %v3538_v15 = vadd.f32 %v4551_v11, %v3498_v8  ;;  %v4573_v16 = vadd.f32 %v4572_v13, %v4571_v42  ;;  %v4574_v17 = vpop.f32.mrb[34].mxu1  ;;  %3588 = sbr.rel (%p4160_p6) target bundleno = 1296 (0x510), region = 56 }
 0x210   : > { %v4575_v19 = vpop.f32.mrb[35].mxu1 }
 0x211   : > { %v3578_v20 = vadd.f32 %v4573_v16, %v3538_v15 }
 0x213   : > { %v3583_v21 = vadd.f32 %v3578_v20, %v292_v18 }
 0x215   : > { %3584 = vst [vmem:[#allocation2] sm:$0x3] %v3583_v21 }
 0x21c   : > { %v3589_v31 = vld [vmem:[#allocation2] sm:$0x3] }
 0x21d   : > { %v3597_v33 = vadd.f32 %v4161_v32, %v3589_v31 }
 0x21f   : > { %v3598_v35 = vmax.f32 %v3597_v33, 0.0 }
 0x221   : > { %v3599_v37 = vpack.c.bf16 %v3598_v35, %v3598_v35 }
 0x223   : > { %4608 = vmatmul.mubr.bf16.vlgmr.msra.gmra.mrb[0].mxu0 %v3599_v37 }
 0x2f6   : > { %v3705_v41 = vpop.f32.mrb[0].mxu0 }
 0x2f7   : > { %v3706_v43 = vadd.f32 %v4162_v40, %v3705_v41  ;;  %v4609_v44 = vpop.f32.mrb[1].mxu0 }
 0x2f8   : > { %v3708_v45 = vpop.f32.mrb[2].mxu0 }
 0x2f9   : > { %v3711_v46 = vmax.f32 %v3706_v43, 0.0  ;;  %v4610_v47 = vpop.f32.mrb[3].mxu0 }
 0x2fb   : > { %v3712_v48 = vpack.c.bf16 %v3711_v46, %v3711_v46 }
 0x2fd   : > { %4620 = vmatmul.mubr.msk.bf16.vlgmr.msra.gmra.mrb[0].mxu1 %vm3752_vm1, %v3712_v48 }
 0x3d0   : > { %v3790_v50 = vpop.f32.mrb[0].mxu1 }
 0x3d1   : > { %v3791_v51 = vadd.f32 %v4171_v49, %v3790_v50  ;;  %v4621_v52 = vpop.f32.mrb[1].mxu1 }
 0x3d2   : > { %v3793_v53 = vpop.f32.mrb[2].mxu1 }
 0x3d3   : > { %v4622_v54 = vpop.f32.mrb[3].mxu1  ;;  %v3797_v55 = vsel %vm3796_vm2, %v3791_v51, -inf }
 0x3d4   : > { %3798 = vmax.xlane.f32.xlu0 %v3797_v55 }
 0x461   : > { %v3799_v56 = vpop.xlane.xlu0 %3798 }
 0x462   : > { %v3800_v57 = vsub.f32 %v3791_v51, %v3799_v56 }
 0x464   : > { %v3801_v58 = vmul.f32 1.442695, %v3800_v57 }
 0x466   : > { %4946 = vpow2.f32 %v3801_v58 }
 0x470   : > { %v4947_v59 = vpop.eup %4946 }
 0x471   : > { %v3803_v60 = vsel %vm3796_vm2, %v4947_v59, 0.0 }
 0x472   : > { %3804 = vadd.xlane.f32.xlu0 %v3803_v60 }
 0x4ff   : > { %v3805_v61 = vpop.xlane.xlu0 %3804 }
 0x500   : > { %4948 = vlog2.f32 %v3805_v61 }
 0x50a   : > { %v4949_v62 = vpop.eup %4948 }
 0x50b   : > { %v3807_v63 = vmul.f32 0.6931472, %v4949_v62 }
 0x50d   : > { %v3808_v0 = vsub.f32 %v3800_v57, %v3807_v63 }
 0x50f   : > { %3809 = vst.msk [vmem:[#allocation3] sm:$0x3] %vm3796_vm2, %v3808_v0 }
 0x510 PF: > { %p4627_p7 = scmp.eq.s32.totalorder %s5039_s25, 7  ;;  %s4992_s21 = smov [#allocation3]  }
 0x511   : > { %s3817_s22 = sshll.u32 %s4992_s21, 4  ;;  %s3818_s22 = int_to_ptr.vmem [resolvable:$true] %s3817_s22 }
 0x512   : > { %s4950_s23 = scalar_lea.vmem %s3818_s22, 32  ;;  %p4957_p11 = scmp.lt.s32.totalorder %s3818_s22, %s3818_s22 }
 0x513   : > { %p4951_p8 = scmp.ne.s32.totalorder %s3818_s22, %s4950_s23  ;;  %p4958_p12 = scmp.lt.s32.totalorder %s4950_s23, %s4950_s23 }
 0x515   : > { %p4952_p9 = pnand %p4951_p8, %p4627_p7  ;;  %p4959_p13 = por %p4958_p12, %p4957_p11 }
 0x517   : > { %p4953_p10 = pneg %p4952_p9 }
 0x519   : > { %p4960_p0 = pnand %p4959_p13, %p4953_p10 }
 0x51b   : > { %4963 = shalt.err (!%p4960_p0)
}
 0x51c   : > { %s4964_s28 = scalar_lea.hbm %s5482_s7, 32 }
 0x51d   : > { %p4965_p1 = scmp.ne.s32.totalorder %s5482_s7, %s4964_s28  ;;  %p4970_p4 = scmp.lt.u32.totalorder %s4964_s28, %s5482_s7 }
 0x51f   : > { %p4966_p2 = pnand %p4965_p1, %p4627_p7 }
 0x521   : > { %p4967_p3 = pneg %p4966_p2 }
 0x523   : > { %p4972_p5 = pnand %p4970_p4, %p4967_p3 }
 0x525   : > { %4975 = shalt.err (!%p4972_p5)
}
 0x526   : > { %4624 = dma.vmem_to_hbm [thread:$0]  (%p4627_p7), %s3818_s22, 32, %s5482_s7, [#allocation4]  }
 0x527   : > { %4981 = dma.done.wait (%p4627_p7), [#allocation4], 32  }
 0x528   : > { %4983 = vsyncadd (%p4627_p7), [#allocation4], 4294967264 }
 0x529 PF: > { %s18_s24 = sadd.s32 1, %s4986_s24  }
 0x52a   : > { %p15_p6 = scmp.ge.s32.totalorder %s18_s24, 10  }
 0x52c   :  { %17 = sbr.rel (!%p15_p6) target bundleno = 1 (0x1), region = 86 }
 0x533   :  { %3830 = vsyncpa [#allocation4], 1 }
 0x534   :  { %3832 = vsyncpa [#allocation4 + $0x1], 1 }

</bundles_post_ra>
